<compile_context>
chip_gen: v7x
topology: tpu7x:2x2x1
jax: 0.10.0
libtpu: 0.0.40
codegen_flags: <defaults>
</compile_context>

<pallas_src>
import numpy as np
import jax
import jax.numpy as jnp
from jax.experimental import pallas as pl
from jax.experimental.pallas import tpu as pltpu

N_MFCC = 20          # H
FIXED_WIDTH = 40     # W
BN_EPS = 1e-5

H, W = N_MFCC, FIXED_WIDTH
HW = H * W                        # 800
C1, C2, C3 = 16, 32, 64
FLAT = C3 * HW                    # 51200

# 3x3 tap order is (dy, dx) row-major, t = dy*3 + dx; flat lane offset of the neighbour.
TAP_SHIFTS = tuple((dy - 1) * W + (dx - 1) for dy in range(3) for dx in range(3))


def _make_tap_masks():
    # mask[t, q] == 1 iff output position q = y*W + x has a valid in-image neighbour for tap t.
    q = np.arange(HW)
    y, x = q // W, q % W
    m = []
    for dy in range(3):
        for dx in range(3):
            ry, rx = dy - 1, dx - 1
            ok = (y + ry >= 0) & (y + ry < H) & (x + rx >= 0) & (x + rx < W)
            m.append(ok.astype(np.float32))
    return np.stack(m, axis=0)                       # (9, HW)


# ----------------------------------------------------------------------------
# Fused conv stack: conv1+bn+relu -> conv2+bn+relu -> conv3+bn+relu.
# One batch element per grid step; everything channel-major (C, HW), all
# intermediate activations stay on-chip (vregs / compiler-managed VMEM).
# ----------------------------------------------------------------------------
def fused_conv_kernel(xcol_ref, w1_ref, t1_ref, w2_ref, t2_ref,
                      w3_ref, t3_ref, mask_ref, o_ref):

    def conv3x3(act, w_ref, t_ref):
        # act: (Cin, HW); w_ref: (9, Cout, Cin); t_ref: (Cout, 1).
        cin = act.shape[0]
        acc = None
        for t, s in enumerate(TAP_SHIFTS):
            # shifted[:, q] = act[:, q + s], zero-filled at the array ends ("same" padding).
            if s == 0:
                shifted = act
            elif s > 0:
                shifted = jnp.concatenate(
                    [act[:, s:], jnp.zeros((cin, s), jnp.float32)], axis=1)
            else:
                shifted = jnp.concatenate(
                    [jnp.zeros((cin, -s), jnp.float32), act[:, :s]], axis=1)
            # Per-tap mask kills cross-row wrap reads (left/right image border).
            shifted = shifted * mask_ref[t:t + 1, :]
            contrib = jnp.dot(w_ref[t], shifted, preferred_element_type=jnp.float32)
            acc = contrib if acc is None else acc + contrib
        # Folded-BN shift + ReLU (scale already folded into the weights).
        return jnp.maximum(acc + t_ref[...], 0.0)

    # conv1 (+BN1, ReLU): one MXU matmul on the wrapper-built im2col patches (padding baked in).
    y = jnp.dot(w1_ref[...], xcol_ref[0], preferred_element_type=jnp.float32)
    y = jnp.maximum(y + t1_ref[...], 0.0)             # (C1, HW)
    y = conv3x3(y, w2_ref, t2_ref)                    # (C2, HW)
    y = conv3x3(y, w3_ref, t3_ref)                    # (C3, HW)
    o_ref[0] = y                                      # lane-dense (C3, 800) store


def fused_conv_stack(xcol, conv_params, tap_masks):
    B = xcol.shape[0]
    (w1, t1), (w2, t2), (w3, t3) = conv_params
    return pl.pallas_call(
        fused_conv_kernel,
        out_shape=jax.ShapeDtypeStruct((B, C3, HW), jnp.float32),
        grid_spec=pltpu.PrefetchScalarGridSpec(
            num_scalar_prefetch=0,
            grid=(B,),
            in_specs=[
                pl.BlockSpec((1, 9, HW), lambda b: (b, 0, 0)),
                pl.BlockSpec((C1, 9), lambda b: (0, 0)),
                pl.BlockSpec((C1, 1), lambda b: (0, 0)),
                pl.BlockSpec((9, C2, C1), lambda b: (0, 0, 0)),
                pl.BlockSpec((C2, 1), lambda b: (0, 0)),
                pl.BlockSpec((9, C3, C2), lambda b: (0, 0, 0)),
                pl.BlockSpec((C3, 1), lambda b: (0, 0)),
                pl.BlockSpec((9, HW), lambda b: (0, 0)),
            ],
            out_specs=pl.BlockSpec((1, C3, HW), lambda b: (b, 0, 0)),
        ),
        compiler_params=pltpu.CompilerParams(
            dimension_semantics=("parallel",)),        # v7x: one batch element per TensorCore
    )(xcol, w1, t1, w2, t2, w3, t3, tap_masks)


# ----------------------------------------------------------------------------
# fc1: K-tiled over the 51200 input features with bf16 weights, split into two
# halves on a "parallel" axis (both v7x TensorCores stream fc1_w concurrently).
# Each half accumulates its (B, 64) partial directly in the resident output block.
# ----------------------------------------------------------------------------
def fc1_partial_kernel(x_ref, w1_ref, o_ref):
    k = pl.program_id(1)
    part = jnp.dot(x_ref[...].astype(jnp.bfloat16), w1_ref[...],
                   preferred_element_type=jnp.float32)

    @pl.when(k == 0)
    def _():
        o_ref[0] = part

    @pl.when(k > 0)
    def _():
        o_ref[0] = o_ref[0] + part


def fc1_partials(x_flat, w1_bf16, *, tk=6400, splits=2):
    B, K = x_flat.shape
    H1 = w1_bf16.shape[1]
    assert K % (splits * tk) == 0
    nk = K // (splits * tk)                           # K-steps per split
    return pl.pallas_call(
        fc1_partial_kernel,
        out_shape=jax.ShapeDtypeStruct((splits, B, H1), jnp.float32),
        grid_spec=pltpu.PrefetchScalarGridSpec(
            num_scalar_prefetch=0,
            grid=(splits, nk),
            in_specs=[
                pl.BlockSpec((B, tk), lambda c, k: (0, c * nk + k)),
                pl.BlockSpec((tk, H1), lambda c, k: (c * nk + k, 0)),
            ],
            out_specs=pl.BlockSpec((1, B, H1), lambda c, k: (c, 0, 0)),
        ),
        compiler_params=pltpu.CompilerParams(
            dimension_semantics=("parallel", "arbitrary")),
    )(x_flat, w1_bf16)


def mlp_combine_kernel(p_ref, b1_ref, w2_ref, b2_ref, o_ref):
    # Sum the K-split partials, then bias + ReLU + fc2 (all f32 math).
    h = p_ref[0]
    for i in range(1, p_ref.shape[0]):
        h = h + p_ref[i]
    h = jnp.maximum(h + b1_ref[...], 0.0)
    o_ref[...] = (jnp.dot(h, w2_ref[...], preferred_element_type=jnp.float32)
                  + b2_ref[...])


def mlp_head(x_flat, w1_bf16, b1, w2, b2, *, tk=6400, splits=2):
    partials = fc1_partials(x_flat, w1_bf16, tk=tk, splits=splits)   # (splits, B, 64)
    B = x_flat.shape[0]
    return pl.pallas_call(
        mlp_combine_kernel,
        out_shape=jax.ShapeDtypeStruct((B, w2.shape[1]), jnp.float32),
    )(partials, b1, w2, b2)


# ----------------------------------------------------------------------------
# Parameter construction (deterministic, synthetic) + forward pass
# ----------------------------------------------------------------------------
def _fold_conv_bn(w_oihw, b, gamma, beta, mean, var):
    # Eval-mode BN folded into the conv:  y = conv(x, w*scale) + shift.
    scale = gamma / jnp.sqrt(var + BN_EPS)                     # (Cout,)
    shift = (b - mean) * scale + beta                          # (Cout,)
    w_scaled = w_oihw * scale[:, None, None, None]
    cout, cin = w_oihw.shape[0], w_oihw.shape[1]
    if cin == 1:
        w_k = w_scaled.reshape(cout, 9)                        # (Cout, 9): matches xcol taps
    else:
        # OIHW -> per-tap (9, Cout, Cin), tap index t = dy*3 + dx.
        w_k = jnp.transpose(w_scaled, (2, 3, 0, 1)).reshape(9, cout, cin)
    return w_k, shift[:, None]                                 # shift as (Cout, 1)


def init_params(key):
    keys = jax.random.split(key, 22)
    ki = iter(keys)

    def conv_block(cin, cout):
        w = 0.05 * jax.random.normal(next(ki), (cout, cin, 3, 3), jnp.float32)   # OIHW
        b = 0.05 * jax.random.normal(next(ki), (cout,), jnp.float32)
        gamma = 1.0 + 0.1 * jax.random.normal(next(ki), (cout,), jnp.float32)
        beta = 0.1 * jax.random.normal(next(ki), (cout,), jnp.float32)
        mean = 0.1 * jax.random.normal(next(ki), (cout,), jnp.float32)
        var = 1.0 + 0.1 * jax.random.uniform(next(ki), (cout,), jnp.float32)
        return _fold_conv_bn(w, b, gamma, beta, mean, var)

    p = {}
    p["conv1"] = conv_block(1, C1)
    p["conv2"] = conv_block(C1, C2)
    p["conv3"] = conv_block(C2, C3)
    # fc1 weights in bf16: the fc1 HBM weight stream dominates end-to-end time (13.1->6.5 MB).
    p["fc1_w"] = (0.01 * jax.random.normal(next(ki), (FLAT, 64), jnp.float32)
                  ).astype(jnp.bfloat16)
    p["fc1_b"] = 0.01 * jax.random.normal(next(ki), (1, 64), jnp.float32)
    p["fc2_w"] = 0.1 * jax.random.normal(next(ki), (64, 2), jnp.float32)
    p["fc2_b"] = 0.1 * jax.random.normal(next(ki), (1, 2), jnp.float32)
    p["tap_masks"] = jnp.asarray(_make_tap_masks())            # (9, 800) f32
    return p


def audio_classifier_forward(params, x_nchw):
    # x_nchw: (B, 1, N_MFCC, FIXED_WIDTH) float32, matching the PyTorch module.
    B = x_nchw.shape[0]
    # Tiny im2col of the single-channel input ("same" zero padding baked in): (B, 9, 800).
    xp = jnp.pad(x_nchw[:, 0], ((0, 0), (1, 1), (1, 1)))       # (B, H+2, W+2)
    xcol = jnp.stack([xp[:, dy:dy + H, dx:dx + W].reshape(B, HW)
                      for dy in range(3) for dx in range(3)], axis=1)

    x3 = fused_conv_stack(
        xcol, (params["conv1"], params["conv2"], params["conv3"]), params["tap_masks"])
    # torch flatten(1) on NCHW == channel-major (C, H*W) order: free contiguous reshape.
    x_flat = x3.reshape(B, FLAT)
    return mlp_head(x_flat, params["fc1_w"], params["fc1_b"],
                    params["fc2_w"], params["fc2_b"])


if __name__ == "__main__":
    key = jax.random.PRNGKey(0)
    pkey, xkey = jax.random.split(key)
    params = init_params(pkey)

    batch = 2
    x = jax.random.normal(xkey, (batch, 1, N_MFCC, FIXED_WIDTH), jnp.float32)

    fwd = jax.jit(audio_classifier_forward)
    logits = fwd(params, x)
    jax.block_until_ready(logits)
    assert logits.shape == (batch, 2) and logits.dtype == jnp.float32
    print("KERNEL_OK")
</pallas_src>

<mosaic_0001>
module attributes {stable_mosaic.version = 11 : i64} {
  func.func @fused_conv_kernel(%arg0: i32, %arg1: memref<1x9x800xf32, #tpu.memory_space<vmem>>, %arg2: memref<16x9xf32, #tpu.memory_space<vmem>>, %arg3: memref<16x1xf32, #tpu.memory_space<vmem>>, %arg4: memref<9x32x16xf32, #tpu.memory_space<vmem>>, %arg5: memref<32x1xf32, #tpu.memory_space<vmem>>, %arg6: memref<9x64x32xf32, #tpu.memory_space<vmem>>, %arg7: memref<64x1xf32, #tpu.memory_space<vmem>>, %arg8: memref<9x800xf32, #tpu.memory_space<vmem>>, %arg9: memref<1x64x800xf32, #tpu.memory_space<vmem>>) attributes {dimension_semantics = [#tpu.dimension_semantics<parallel>], iteration_bounds = array<i64: 2>, scalar_prefetch = 0 : i64, scratch_operands = 0 : i64, tpu.core_type = #tpu.core_type<tc>, window_params = [{transform_indices = @transform_0, window_bounds = array<i64: 1, 9, 800>}, {pipeline_mode = #tpu.pipeline_mode<synchronous>, transform_indices = @transform_1, window_bounds = array<i64: 16, 9>}, {pipeline_mode = #tpu.pipeline_mode<synchronous>, transform_indices = @transform_2, window_bounds = array<i64: 16, 1>}, {pipeline_mode = #tpu.pipeline_mode<synchronous>, transform_indices = @transform_3, window_bounds = array<i64: 9, 32, 16>}, {pipeline_mode = #tpu.pipeline_mode<synchronous>, transform_indices = @transform_4, window_bounds = array<i64: 32, 1>}, {pipeline_mode = #tpu.pipeline_mode<synchronous>, transform_indices = @transform_5, window_bounds = array<i64: 9, 64, 32>}, {pipeline_mode = #tpu.pipeline_mode<synchronous>, transform_indices = @transform_6, window_bounds = array<i64: 64, 1>}, {pipeline_mode = #tpu.pipeline_mode<synchronous>, transform_indices = @transform_7, window_bounds = array<i64: 9, 800>}, {transform_indices = @transform_8, window_bounds = array<i64: 1, 64, 800>}]} {
    %c0 = arith.constant 0 : index
    %c0_0 = arith.constant 0 : index
    %0 = vector.load %arg2[%c0, %c0_0] : memref<16x9xf32, #tpu.memory_space<vmem>>, vector<16x9xf32>
    %c0_1 = arith.constant 0 : index
    %c0_2 = arith.constant 0 : index
    %c0_3 = arith.constant 0 : index
    %1 = vector.load %arg1[%c0_1, %c0_2, %c0_3] : memref<1x9x800xf32, #tpu.memory_space<vmem>>, vector<1x9x800xf32>
    %2 = vector.shape_cast %1 : vector<1x9x800xf32> to vector<9x800xf32>
    %cst = arith.constant dense<0.000000e+00> : vector<16x800xf32>
    %3 = tpu.matmul %0, %2, %cst {dimension_numbers = #tpu.dot_dimension_numbers<[1], [0], [0], [1], [0, 0, 1, 1], [], []>} : vector<16x9xf32>, vector<9x800xf32>, vector<16x800xf32> -> vector<16x800xf32>
    %c0_4 = arith.constant 0 : index
    %c0_5 = arith.constant 0 : index
    %4 = vector.load %arg3[%c0_4, %c0_5] : memref<16x1xf32, #tpu.memory_space<vmem>>, vector<16x1xf32>
    %5 = vector.broadcast %4 : vector<16x1xf32> to vector<16x800xf32>
    %6 = arith.addf %3, %5 : vector<16x800xf32>
    %cst_6 = arith.constant 0.000000e+00 : f32
    %7 = vector.broadcast %cst_6 : f32 to vector<16x800xf32>
    %8 = arith.maximumf %6, %7 : vector<16x800xf32>
    %cst_7 = arith.constant 0.000000e+00 : f32
    %9 = vector.broadcast %cst_7 : f32 to vector<16x41xf32>
    %10 = vector.extract_strided_slice %8 {offsets = [0, 0], sizes = [16, 759], strides = [1, 1]} : vector<16x800xf32> to vector<16x759xf32>
    %11 = tpu.concatenate %9, %10 in 1 : vector<16x41xf32>, vector<16x759xf32> -> vector<16x800xf32>
    %c0_8 = arith.constant 0 : index
    %c0_9 = arith.constant 0 : index
    %12 = vector.load %arg8[%c0_8, %c0_9] : memref<9x800xf32, #tpu.memory_space<vmem>>, vector<1x800xf32>
    %13 = vector.broadcast %12 : vector<1x800xf32> to vector<16x800xf32>
    %14 = arith.mulf %11, %13 : vector<16x800xf32>
    %c0_10 = arith.constant 0 : index
    %c0_11 = arith.constant 0 : index
    %c0_12 = arith.constant 0 : index
    %15 = vector.load %arg4[%c0_10, %c0_11, %c0_12] : memref<9x32x16xf32, #tpu.memory_space<vmem>>, vector<1x32x16xf32>
    %16 = vector.shape_cast %15 : vector<1x32x16xf32> to vector<32x16xf32>
    %cst_13 = arith.constant dense<0.000000e+00> : vector<32x800xf32>
    %17 = tpu.matmul %16, %14, %cst_13 {dimension_numbers = #tpu.dot_dimension_numbers<[1], [0], [0], [1], [0, 0, 1, 1], [], []>} : vector<32x16xf32>, vector<16x800xf32>, vector<32x800xf32> -> vector<32x800xf32>
    %cst_14 = arith.constant 0.000000e+00 : f32
    %18 = vector.broadcast %cst_14 : f32 to vector<16x40xf32>
    %19 = vector.extract_strided_slice %8 {offsets = [0, 0], sizes = [16, 760], strides = [1, 1]} : vector<16x800xf32> to vector<16x760xf32>
    %20 = tpu.concatenate %18, %19 in 1 : vector<16x40xf32>, vector<16x760xf32> -> vector<16x800xf32>
    %c1 = arith.constant 1 : index
    %c0_15 = arith.constant 0 : index
    %21 = vector.load %arg8[%c1, %c0_15] : memref<9x800xf32, #tpu.memory_space<vmem>>, vector<1x800xf32>
    %22 = vector.broadcast %21 : vector<1x800xf32> to vector<16x800xf32>
    %23 = arith.mulf %20, %22 : vector<16x800xf32>
    %c1_16 = arith.constant 1 : index
    %c0_17 = arith.constant 0 : index
    %c0_18 = arith.constant 0 : index
    %24 = vector.load %arg4[%c1_16, %c0_17, %c0_18] : memref<9x32x16xf32, #tpu.memory_space<vmem>>, vector<1x32x16xf32>
    %25 = vector.shape_cast %24 : vector<1x32x16xf32> to vector<32x16xf32>
    %cst_19 = arith.constant dense<0.000000e+00> : vector<32x800xf32>
    %26 = tpu.matmul %25, %23, %cst_19 {dimension_numbers = #tpu.dot_dimension_numbers<[1], [0], [0], [1], [0, 0, 1, 1], [], []>} : vector<32x16xf32>, vector<16x800xf32>, vector<32x800xf32> -> vector<32x800xf32>
    %27 = arith.addf %17, %26 : vector<32x800xf32>
    %cst_20 = arith.constant 0.000000e+00 : f32
    %28 = vector.broadcast %cst_20 : f32 to vector<16x39xf32>
    %29 = vector.extract_strided_slice %8 {offsets = [0, 0], sizes = [16, 761], strides = [1, 1]} : vector<16x800xf32> to vector<16x761xf32>
    %30 = tpu.concatenate %28, %29 in 1 : vector<16x39xf32>, vector<16x761xf32> -> vector<16x800xf32>
    %c2 = arith.constant 2 : index
    %c0_21 = arith.constant 0 : index
    %31 = vector.load %arg8[%c2, %c0_21] : memref<9x800xf32, #tpu.memory_space<vmem>>, vector<1x800xf32>
    %32 = vector.broadcast %31 : vector<1x800xf32> to vector<16x800xf32>
    %33 = arith.mulf %30, %32 : vector<16x800xf32>
    %c2_22 = arith.constant 2 : index
    %c0_23 = arith.constant 0 : index
    %c0_24 = arith.constant 0 : index
    %34 = vector.load %arg4[%c2_22, %c0_23, %c0_24] : memref<9x32x16xf32, #tpu.memory_space<vmem>>, vector<1x32x16xf32>
    %35 = vector.shape_cast %34 : vector<1x32x16xf32> to vector<32x16xf32>
    %cst_25 = arith.constant dense<0.000000e+00> : vector<32x800xf32>
    %36 = tpu.matmul %35, %33, %cst_25 {dimension_numbers = #tpu.dot_dimension_numbers<[1], [0], [0], [1], [0, 0, 1, 1], [], []>} : vector<32x16xf32>, vector<16x800xf32>, vector<32x800xf32> -> vector<32x800xf32>
    %37 = arith.addf %27, %36 : vector<32x800xf32>
    %cst_26 = arith.constant 0.000000e+00 : f32
    %38 = vector.broadcast %cst_26 : f32 to vector<16x1xf32>
    %39 = vector.extract_strided_slice %8 {offsets = [0, 0], sizes = [16, 799], strides = [1, 1]} : vector<16x800xf32> to vector<16x799xf32>
    %40 = tpu.concatenate %38, %39 in 1 : vector<16x1xf32>, vector<16x799xf32> -> vector<16x800xf32>
    %c3 = arith.constant 3 : index
    %c0_27 = arith.constant 0 : index
    %41 = vector.load %arg8[%c3, %c0_27] : memref<9x800xf32, #tpu.memory_space<vmem>>, vector<1x800xf32>
    %42 = vector.broadcast %41 : vector<1x800xf32> to vector<16x800xf32>
    %43 = arith.mulf %40, %42 : vector<16x800xf32>
    %c3_28 = arith.constant 3 : index
    %c0_29 = arith.constant 0 : index
    %c0_30 = arith.constant 0 : index
    %44 = vector.load %arg4[%c3_28, %c0_29, %c0_30] : memref<9x32x16xf32, #tpu.memory_space<vmem>>, vector<1x32x16xf32>
    %45 = vector.shape_cast %44 : vector<1x32x16xf32> to vector<32x16xf32>
    %cst_31 = arith.constant dense<0.000000e+00> : vector<32x800xf32>
    %46 = tpu.matmul %45, %43, %cst_31 {dimension_numbers = #tpu.dot_dimension_numbers<[1], [0], [0], [1], [0, 0, 1, 1], [], []>} : vector<32x16xf32>, vector<16x800xf32>, vector<32x800xf32> -> vector<32x800xf32>
    %47 = arith.addf %37, %46 : vector<32x800xf32>
    %c4 = arith.constant 4 : index
    %c0_32 = arith.constant 0 : index
    %48 = vector.load %arg8[%c4, %c0_32] : memref<9x800xf32, #tpu.memory_space<vmem>>, vector<1x800xf32>
    %49 = vector.broadcast %48 : vector<1x800xf32> to vector<16x800xf32>
    %50 = arith.mulf %8, %49 : vector<16x800xf32>
    %c4_33 = arith.constant 4 : index
    %c0_34 = arith.constant 0 : index
    %c0_35 = arith.constant 0 : index
    %51 = vector.load %arg4[%c4_33, %c0_34, %c0_35] : memref<9x32x16xf32, #tpu.memory_space<vmem>>, vector<1x32x16xf32>
    %52 = vector.shape_cast %51 : vector<1x32x16xf32> to vector<32x16xf32>
    %cst_36 = arith.constant dense<0.000000e+00> : vector<32x800xf32>
    %53 = tpu.matmul %52, %50, %cst_36 {dimension_numbers = #tpu.dot_dimension_numbers<[1], [0], [0], [1], [0, 0, 1, 1], [], []>} : vector<32x16xf32>, vector<16x800xf32>, vector<32x800xf32> -> vector<32x800xf32>
    %54 = arith.addf %47, %53 : vector<32x800xf32>
    %55 = vector.extract_strided_slice %8 {offsets = [0, 1], sizes = [16, 799], strides = [1, 1]} : vector<16x800xf32> to vector<16x799xf32>
    %cst_37 = arith.constant 0.000000e+00 : f32
    %56 = vector.broadcast %cst_37 : f32 to vector<16x1xf32>
    %57 = tpu.concatenate %55, %56 in 1 : vector<16x799xf32>, vector<16x1xf32> -> vector<16x800xf32>
    %c5 = arith.constant 5 : index
    %c0_38 = arith.constant 0 : index
    %58 = vector.load %arg8[%c5, %c0_38] : memref<9x800xf32, #tpu.memory_space<vmem>>, vector<1x800xf32>
    %59 = vector.broadcast %58 : vector<1x800xf32> to vector<16x800xf32>
    %60 = arith.mulf %57, %59 : vector<16x800xf32>
    %c5_39 = arith.constant 5 : index
    %c0_40 = arith.constant 0 : index
    %c0_41 = arith.constant 0 : index
    %61 = vector.load %arg4[%c5_39, %c0_40, %c0_41] : memref<9x32x16xf32, #tpu.memory_space<vmem>>, vector<1x32x16xf32>
    %62 = vector.shape_cast %61 : vector<1x32x16xf32> to vector<32x16xf32>
    %cst_42 = arith.constant dense<0.000000e+00> : vector<32x800xf32>
    %63 = tpu.matmul %62, %60, %cst_42 {dimension_numbers = #tpu.dot_dimension_numbers<[1], [0], [0], [1], [0, 0, 1, 1], [], []>} : vector<32x16xf32>, vector<16x800xf32>, vector<32x800xf32> -> vector<32x800xf32>
    %64 = arith.addf %54, %63 : vector<32x800xf32>
    %65 = vector.extract_strided_slice %8 {offsets = [0, 39], sizes = [16, 761], strides = [1, 1]} : vector<16x800xf32> to vector<16x761xf32>
    %cst_43 = arith.constant 0.000000e+00 : f32
    %66 = vector.broadcast %cst_43 : f32 to vector<16x39xf32>
    %67 = tpu.concatenate %65, %66 in 1 : vector<16x761xf32>, vector<16x39xf32> -> vector<16x800xf32>
    %c6 = arith.constant 6 : index
    %c0_44 = arith.constant 0 : index
    %68 = vector.load %arg8[%c6, %c0_44] : memref<9x800xf32, #tpu.memory_space<vmem>>, vector<1x800xf32>
    %69 = vector.broadcast %68 : vector<1x800xf32> to vector<16x800xf32>
    %70 = arith.mulf %67, %69 : vector<16x800xf32>
    %c6_45 = arith.constant 6 : index
    %c0_46 = arith.constant 0 : index
    %c0_47 = arith.constant 0 : index
    %71 = vector.load %arg4[%c6_45, %c0_46, %c0_47] : memref<9x32x16xf32, #tpu.memory_space<vmem>>, vector<1x32x16xf32>
    %72 = vector.shape_cast %71 : vector<1x32x16xf32> to vector<32x16xf32>
    %cst_48 = arith.constant dense<0.000000e+00> : vector<32x800xf32>
    %73 = tpu.matmul %72, %70, %cst_48 {dimension_numbers = #tpu.dot_dimension_numbers<[1], [0], [0], [1], [0, 0, 1, 1], [], []>} : vector<32x16xf32>, vector<16x800xf32>, vector<32x800xf32> -> vector<32x800xf32>
    %74 = arith.addf %64, %73 : vector<32x800xf32>
    %75 = vector.extract_strided_slice %8 {offsets = [0, 40], sizes = [16, 760], strides = [1, 1]} : vector<16x800xf32> to vector<16x760xf32>
    %cst_49 = arith.constant 0.000000e+00 : f32
    %76 = vector.broadcast %cst_49 : f32 to vector<16x40xf32>
    %77 = tpu.concatenate %75, %76 in 1 : vector<16x760xf32>, vector<16x40xf32> -> vector<16x800xf32>
    %c7 = arith.constant 7 : index
    %c0_50 = arith.constant 0 : index
    %78 = vector.load %arg8[%c7, %c0_50] : memref<9x800xf32, #tpu.memory_space<vmem>>, vector<1x800xf32>
    %79 = vector.broadcast %78 : vector<1x800xf32> to vector<16x800xf32>
    %80 = arith.mulf %77, %79 : vector<16x800xf32>
    %c7_51 = arith.constant 7 : index
    %c0_52 = arith.constant 0 : index
    %c0_53 = arith.constant 0 : index
    %81 = vector.load %arg4[%c7_51, %c0_52, %c0_53] : memref<9x32x16xf32, #tpu.memory_space<vmem>>, vector<1x32x16xf32>
    %82 = vector.shape_cast %81 : vector<1x32x16xf32> to vector<32x16xf32>
    %cst_54 = arith.constant dense<0.000000e+00> : vector<32x800xf32>
    %83 = tpu.matmul %82, %80, %cst_54 {dimension_numbers = #tpu.dot_dimension_numbers<[1], [0], [0], [1], [0, 0, 1, 1], [], []>} : vector<32x16xf32>, vector<16x800xf32>, vector<32x800xf32> -> vector<32x800xf32>
    %84 = arith.addf %74, %83 : vector<32x800xf32>
    %85 = vector.extract_strided_slice %8 {offsets = [0, 41], sizes = [16, 759], strides = [1, 1]} : vector<16x800xf32> to vector<16x759xf32>
    %cst_55 = arith.constant 0.000000e+00 : f32
    %86 = vector.broadcast %cst_55 : f32 to vector<16x41xf32>
    %87 = tpu.concatenate %85, %86 in 1 : vector<16x759xf32>, vector<16x41xf32> -> vector<16x800xf32>
    %c8 = arith.constant 8 : index
    %c0_56 = arith.constant 0 : index
    %88 = vector.load %arg8[%c8, %c0_56] : memref<9x800xf32, #tpu.memory_space<vmem>>, vector<1x800xf32>
    %89 = vector.broadcast %88 : vector<1x800xf32> to vector<16x800xf32>
    %90 = arith.mulf %87, %89 : vector<16x800xf32>
    %c8_57 = arith.constant 8 : index
    %c0_58 = arith.constant 0 : index
    %c0_59 = arith.constant 0 : index
    %91 = vector.load %arg4[%c8_57, %c0_58, %c0_59] : memref<9x32x16xf32, #tpu.memory_space<vmem>>, vector<1x32x16xf32>
    %92 = vector.shape_cast %91 : vector<1x32x16xf32> to vector<32x16xf32>
    %cst_60 = arith.constant dense<0.000000e+00> : vector<32x800xf32>
    %93 = tpu.matmul %92, %90, %cst_60 {dimension_numbers = #tpu.dot_dimension_numbers<[1], [0], [0], [1], [0, 0, 1, 1], [], []>} : vector<32x16xf32>, vector<16x800xf32>, vector<32x800xf32> -> vector<32x800xf32>
    %94 = arith.addf %84, %93 : vector<32x800xf32>
    %c0_61 = arith.constant 0 : index
    %c0_62 = arith.constant 0 : index
    %95 = vector.load %arg5[%c0_61, %c0_62] : memref<32x1xf32, #tpu.memory_space<vmem>>, vector<32x1xf32>
    %96 = vector.broadcast %95 : vector<32x1xf32> to vector<32x800xf32>
    %97 = arith.addf %94, %96 : vector<32x800xf32>
    %cst_63 = arith.constant 0.000000e+00 : f32
    %98 = vector.broadcast %cst_63 : f32 to vector<32x800xf32>
    %99 = arith.maximumf %97, %98 : vector<32x800xf32>
    %cst_64 = arith.constant 0.000000e+00 : f32
    %100 = vector.broadcast %cst_64 : f32 to vector<32x41xf32>
    %101 = vector.extract_strided_slice %99 {offsets = [0, 0], sizes = [32, 759], strides = [1, 1]} : vector<32x800xf32> to vector<32x759xf32>
    %102 = tpu.concatenate %100, %101 in 1 : vector<32x41xf32>, vector<32x759xf32> -> vector<32x800xf32>
    %c0_65 = arith.constant 0 : index
    %c0_66 = arith.constant 0 : index
    %103 = vector.load %arg8[%c0_65, %c0_66] : memref<9x800xf32, #tpu.memory_space<vmem>>, vector<1x800xf32>
    %104 = vector.broadcast %103 : vector<1x800xf32> to vector<32x800xf32>
    %105 = arith.mulf %102, %104 : vector<32x800xf32>
    %c0_67 = arith.constant 0 : index
    %c0_68 = arith.constant 0 : index
    %c0_69 = arith.constant 0 : index
    %106 = vector.load %arg6[%c0_67, %c0_68, %c0_69] : memref<9x64x32xf32, #tpu.memory_space<vmem>>, vector<1x64x32xf32>
    %107 = vector.shape_cast %106 : vector<1x64x32xf32> to vector<64x32xf32>
    %cst_70 = arith.constant dense<0.000000e+00> : vector<64x800xf32>
    %108 = tpu.matmul %107, %105, %cst_70 {dimension_numbers = #tpu.dot_dimension_numbers<[1], [0], [0], [1], [0, 0, 1, 1], [], []>} : vector<64x32xf32>, vector<32x800xf32>, vector<64x800xf32> -> vector<64x800xf32>
    %cst_71 = arith.constant 0.000000e+00 : f32
    %109 = vector.broadcast %cst_71 : f32 to vector<32x40xf32>
    %110 = vector.extract_strided_slice %99 {offsets = [0, 0], sizes = [32, 760], strides = [1, 1]} : vector<32x800xf32> to vector<32x760xf32>
    %111 = tpu.concatenate %109, %110 in 1 : vector<32x40xf32>, vector<32x760xf32> -> vector<32x800xf32>
    %c1_72 = arith.constant 1 : index
    %c0_73 = arith.constant 0 : index
    %112 = vector.load %arg8[%c1_72, %c0_73] : memref<9x800xf32, #tpu.memory_space<vmem>>, vector<1x800xf32>
    %113 = vector.broadcast %112 : vector<1x800xf32> to vector<32x800xf32>
    %114 = arith.mulf %111, %113 : vector<32x800xf32>
    %c1_74 = arith.constant 1 : index
    %c0_75 = arith.constant 0 : index
    %c0_76 = arith.constant 0 : index
    %115 = vector.load %arg6[%c1_74, %c0_75, %c0_76] : memref<9x64x32xf32, #tpu.memory_space<vmem>>, vector<1x64x32xf32>
    %116 = vector.shape_cast %115 : vector<1x64x32xf32> to vector<64x32xf32>
    %cst_77 = arith.constant dense<0.000000e+00> : vector<64x800xf32>
    %117 = tpu.matmul %116, %114, %cst_77 {dimension_numbers = #tpu.dot_dimension_numbers<[1], [0], [0], [1], [0, 0, 1, 1], [], []>} : vector<64x32xf32>, vector<32x800xf32>, vector<64x800xf32> -> vector<64x800xf32>
    %118 = arith.addf %108, %117 : vector<64x800xf32>
    %cst_78 = arith.constant 0.000000e+00 : f32
    %119 = vector.broadcast %cst_78 : f32 to vector<32x39xf32>
    %120 = vector.extract_strided_slice %99 {offsets = [0, 0], sizes = [32, 761], strides = [1, 1]} : vector<32x800xf32> to vector<32x761xf32>
    %121 = tpu.concatenate %119, %120 in 1 : vector<32x39xf32>, vector<32x761xf32> -> vector<32x800xf32>
    %c2_79 = arith.constant 2 : index
    %c0_80 = arith.constant 0 : index
    %122 = vector.load %arg8[%c2_79, %c0_80] : memref<9x800xf32, #tpu.memory_space<vmem>>, vector<1x800xf32>
    %123 = vector.broadcast %122 : vector<1x800xf32> to vector<32x800xf32>
    %124 = arith.mulf %121, %123 : vector<32x800xf32>
    %c2_81 = arith.constant 2 : index
    %c0_82 = arith.constant 0 : index
    %c0_83 = arith.constant 0 : index
    %125 = vector.load %arg6[%c2_81, %c0_82, %c0_83] : memref<9x64x32xf32, #tpu.memory_space<vmem>>, vector<1x64x32xf32>
    %126 = vector.shape_cast %125 : vector<1x64x32xf32> to vector<64x32xf32>
    %cst_84 = arith.constant dense<0.000000e+00> : vector<64x800xf32>
    %127 = tpu.matmul %126, %124, %cst_84 {dimension_numbers = #tpu.dot_dimension_numbers<[1], [0], [0], [1], [0, 0, 1, 1], [], []>} : vector<64x32xf32>, vector<32x800xf32>, vector<64x800xf32> -> vector<64x800xf32>
    %128 = arith.addf %118, %127 : vector<64x800xf32>
    %cst_85 = arith.constant 0.000000e+00 : f32
    %129 = vector.broadcast %cst_85 : f32 to vector<32x1xf32>
    %130 = vector.extract_strided_slice %99 {offsets = [0, 0], sizes = [32, 799], strides = [1, 1]} : vector<32x800xf32> to vector<32x799xf32>
    %131 = tpu.concatenate %129, %130 in 1 : vector<32x1xf32>, vector<32x799xf32> -> vector<32x800xf32>
    %c3_86 = arith.constant 3 : index
    %c0_87 = arith.constant 0 : index
    %132 = vector.load %arg8[%c3_86, %c0_87] : memref<9x800xf32, #tpu.memory_space<vmem>>, vector<1x800xf32>
    %133 = vector.broadcast %132 : vector<1x800xf32> to vector<32x800xf32>
    %134 = arith.mulf %131, %133 : vector<32x800xf32>
    %c3_88 = arith.constant 3 : index
    %c0_89 = arith.constant 0 : index
    %c0_90 = arith.constant 0 : index
    %135 = vector.load %arg6[%c3_88, %c0_89, %c0_90] : memref<9x64x32xf32, #tpu.memory_space<vmem>>, vector<1x64x32xf32>
    %136 = vector.shape_cast %135 : vector<1x64x32xf32> to vector<64x32xf32>
    %cst_91 = arith.constant dense<0.000000e+00> : vector<64x800xf32>
    %137 = tpu.matmul %136, %134, %cst_91 {dimension_numbers = #tpu.dot_dimension_numbers<[1], [0], [0], [1], [0, 0, 1, 1], [], []>} : vector<64x32xf32>, vector<32x800xf32>, vector<64x800xf32> -> vector<64x800xf32>
    %138 = arith.addf %128, %137 : vector<64x800xf32>
    %c4_92 = arith.constant 4 : index
    %c0_93 = arith.constant 0 : index
    %139 = vector.load %arg8[%c4_92, %c0_93] : memref<9x800xf32, #tpu.memory_space<vmem>>, vector<1x800xf32>
    %140 = vector.broadcast %139 : vector<1x800xf32> to vector<32x800xf32>
    %141 = arith.mulf %99, %140 : vector<32x800xf32>
    %c4_94 = arith.constant 4 : index
    %c0_95 = arith.constant 0 : index
    %c0_96 = arith.constant 0 : index
    %142 = vector.load %arg6[%c4_94, %c0_95, %c0_96] : memref<9x64x32xf32, #tpu.memory_space<vmem>>, vector<1x64x32xf32>
    %143 = vector.shape_cast %142 : vector<1x64x32xf32> to vector<64x32xf32>
    %cst_97 = arith.constant dense<0.000000e+00> : vector<64x800xf32>
    %144 = tpu.matmul %143, %141, %cst_97 {dimension_numbers = #tpu.dot_dimension_numbers<[1], [0], [0], [1], [0, 0, 1, 1], [], []>} : vector<64x32xf32>, vector<32x800xf32>, vector<64x800xf32> -> vector<64x800xf32>
    %145 = arith.addf %138, %144 : vector<64x800xf32>
    %146 = vector.extract_strided_slice %99 {offsets = [0, 1], sizes = [32, 799], strides = [1, 1]} : vector<32x800xf32> to vector<32x799xf32>
    %cst_98 = arith.constant 0.000000e+00 : f32
    %147 = vector.broadcast %cst_98 : f32 to vector<32x1xf32>
    %148 = tpu.concatenate %146, %147 in 1 : vector<32x799xf32>, vector<32x1xf32> -> vector<32x800xf32>
    %c5_99 = arith.constant 5 : index
    %c0_100 = arith.constant 0 : index
    %149 = vector.load %arg8[%c5_99, %c0_100] : memref<9x800xf32, #tpu.memory_space<vmem>>, vector<1x800xf32>
    %150 = vector.broadcast %149 : vector<1x800xf32> to vector<32x800xf32>
    %151 = arith.mulf %148, %150 : vector<32x800xf32>
    %c5_101 = arith.constant 5 : index
    %c0_102 = arith.constant 0 : index
    %c0_103 = arith.constant 0 : index
    %152 = vector.load %arg6[%c5_101, %c0_102, %c0_103] : memref<9x64x32xf32, #tpu.memory_space<vmem>>, vector<1x64x32xf32>
    %153 = vector.shape_cast %152 : vector<1x64x32xf32> to vector<64x32xf32>
    %cst_104 = arith.constant dense<0.000000e+00> : vector<64x800xf32>
    %154 = tpu.matmul %153, %151, %cst_104 {dimension_numbers = #tpu.dot_dimension_numbers<[1], [0], [0], [1], [0, 0, 1, 1], [], []>} : vector<64x32xf32>, vector<32x800xf32>, vector<64x800xf32> -> vector<64x800xf32>
    %155 = arith.addf %145, %154 : vector<64x800xf32>
    %156 = vector.extract_strided_slice %99 {offsets = [0, 39], sizes = [32, 761], strides = [1, 1]} : vector<32x800xf32> to vector<32x761xf32>
    %cst_105 = arith.constant 0.000000e+00 : f32
    %157 = vector.broadcast %cst_105 : f32 to vector<32x39xf32>
    %158 = tpu.concatenate %156, %157 in 1 : vector<32x761xf32>, vector<32x39xf32> -> vector<32x800xf32>
    %c6_106 = arith.constant 6 : index
    %c0_107 = arith.constant 0 : index
    %159 = vector.load %arg8[%c6_106, %c0_107] : memref<9x800xf32, #tpu.memory_space<vmem>>, vector<1x800xf32>
    %160 = vector.broadcast %159 : vector<1x800xf32> to vector<32x800xf32>
    %161 = arith.mulf %158, %160 : vector<32x800xf32>
    %c6_108 = arith.constant 6 : index
    %c0_109 = arith.constant 0 : index
    %c0_110 = arith.constant 0 : index
    %162 = vector.load %arg6[%c6_108, %c0_109, %c0_110] : memref<9x64x32xf32, #tpu.memory_space<vmem>>, vector<1x64x32xf32>
    %163 = vector.shape_cast %162 : vector<1x64x32xf32> to vector<64x32xf32>
    %cst_111 = arith.constant dense<0.000000e+00> : vector<64x800xf32>
    %164 = tpu.matmul %163, %161, %cst_111 {dimension_numbers = #tpu.dot_dimension_numbers<[1], [0], [0], [1], [0, 0, 1, 1], [], []>} : vector<64x32xf32>, vector<32x800xf32>, vector<64x800xf32> -> vector<64x800xf32>
    %165 = arith.addf %155, %164 : vector<64x800xf32>
    %166 = vector.extract_strided_slice %99 {offsets = [0, 40], sizes = [32, 760], strides = [1, 1]} : vector<32x800xf32> to vector<32x760xf32>
    %cst_112 = arith.constant 0.000000e+00 : f32
    %167 = vector.broadcast %cst_112 : f32 to vector<32x40xf32>
    %168 = tpu.concatenate %166, %167 in 1 : vector<32x760xf32>, vector<32x40xf32> -> vector<32x800xf32>
    %c7_113 = arith.constant 7 : index
    %c0_114 = arith.constant 0 : index
    %169 = vector.load %arg8[%c7_113, %c0_114] : memref<9x800xf32, #tpu.memory_space<vmem>>, vector<1x800xf32>
    %170 = vector.broadcast %169 : vector<1x800xf32> to vector<32x800xf32>
    %171 = arith.mulf %168, %170 : vector<32x800xf32>
    %c7_115 = arith.constant 7 : index
    %c0_116 = arith.constant 0 : index
    %c0_117 = arith.constant 0 : index
    %172 = vector.load %arg6[%c7_115, %c0_116, %c0_117] : memref<9x64x32xf32, #tpu.memory_space<vmem>>, vector<1x64x32xf32>
    %173 = vector.shape_cast %172 : vector<1x64x32xf32> to vector<64x32xf32>
    %cst_118 = arith.constant dense<0.000000e+00> : vector<64x800xf32>
    %174 = tpu.matmul %173, %171, %cst_118 {dimension_numbers = #tpu.dot_dimension_numbers<[1], [0], [0], [1], [0, 0, 1, 1], [], []>} : vector<64x32xf32>, vector<32x800xf32>, vector<64x800xf32> -> vector<64x800xf32>
    %175 = arith.addf %165, %174 : vector<64x800xf32>
    %176 = vector.extract_strided_slice %99 {offsets = [0, 41], sizes = [32, 759], strides = [1, 1]} : vector<32x800xf32> to vector<32x759xf32>
    %cst_119 = arith.constant 0.000000e+00 : f32
    %177 = vector.broadcast %cst_119 : f32 to vector<32x41xf32>
    %178 = tpu.concatenate %176, %177 in 1 : vector<32x759xf32>, vector<32x41xf32> -> vector<32x800xf32>
    %c8_120 = arith.constant 8 : index
    %c0_121 = arith.constant 0 : index
    %179 = vector.load %arg8[%c8_120, %c0_121] : memref<9x800xf32, #tpu.memory_space<vmem>>, vector<1x800xf32>
    %180 = vector.broadcast %179 : vector<1x800xf32> to vector<32x800xf32>
    %181 = arith.mulf %178, %180 : vector<32x800xf32>
    %c8_122 = arith.constant 8 : index
    %c0_123 = arith.constant 0 : index
    %c0_124 = arith.constant 0 : index
    %182 = vector.load %arg6[%c8_122, %c0_123, %c0_124] : memref<9x64x32xf32, #tpu.memory_space<vmem>>, vector<1x64x32xf32>
    %183 = vector.shape_cast %182 : vector<1x64x32xf32> to vector<64x32xf32>
    %cst_125 = arith.constant dense<0.000000e+00> : vector<64x800xf32>
    %184 = tpu.matmul %183, %181, %cst_125 {dimension_numbers = #tpu.dot_dimension_numbers<[1], [0], [0], [1], [0, 0, 1, 1], [], []>} : vector<64x32xf32>, vector<32x800xf32>, vector<64x800xf32> -> vector<64x800xf32>
    %185 = arith.addf %175, %184 : vector<64x800xf32>
    %c0_126 = arith.constant 0 : index
    %c0_127 = arith.constant 0 : index
    %186 = vector.load %arg7[%c0_126, %c0_127] : memref<64x1xf32, #tpu.memory_space<vmem>>, vector<64x1xf32>
    %187 = vector.broadcast %186 : vector<64x1xf32> to vector<64x800xf32>
    %188 = arith.addf %185, %187 : vector<64x800xf32>
    %cst_128 = arith.constant 0.000000e+00 : f32
    %189 = vector.broadcast %cst_128 : f32 to vector<64x800xf32>
    %190 = arith.maximumf %188, %189 : vector<64x800xf32>
    %c0_129 = arith.constant 0 : index
    %c0_130 = arith.constant 0 : index
    %c0_131 = arith.constant 0 : index
    %191 = vector.load %arg9[%c0_129, %c0_130, %c0_131] : memref<1x64x800xf32, #tpu.memory_space<vmem>>, vector<1x64x800xf32>
    %192 = vector.shape_cast %191 : vector<1x64x800xf32> to vector<64x800xf32>
    %193 = vector.shape_cast %190 : vector<64x800xf32> to vector<1x64x800xf32>
    tpu.vector_store %arg9[%c0_129, %c0_130, %c0_131], %193 {strides = array<i32>} : memref<1x64x800xf32, #tpu.memory_space<vmem>>, vector<1x64x800xf32>,
    return
  }
  func.func @transform_0(%arg0: i32) -> (i32, i32, i32) {
    %c0_i32 = arith.constant 0 : i32
    %c0_i32_0 = arith.constant 0 : i32
    %c0_i32_1 = arith.constant 0 : i32
    return %arg0, %c0_i32, %c0_i32_0 : i32, i32, i32
  }
  func.func @transform_1(%arg0: i32) -> (i32, i32) {
    %c0_i32 = arith.constant 0 : i32
    %c0_i32_0 = arith.constant 0 : i32
    %c0_i32_1 = arith.constant 0 : i32
    return %c0_i32, %c0_i32_0 : i32, i32
  }
  func.func @transform_2(%arg0: i32) -> (i32, i32) {
    %c0_i32 = arith.constant 0 : i32
    %c0_i32_0 = arith.constant 0 : i32
    %c0_i32_1 = arith.constant 0 : i32
    return %c0_i32, %c0_i32_0 : i32, i32
  }
  func.func @transform_3(%arg0: i32) -> (i32, i32, i32) {
    %c0_i32 = arith.constant 0 : i32
    %c0_i32_0 = arith.constant 0 : i32
    %c0_i32_1 = arith.constant 0 : i32
    %c0_i32_2 = arith.constant 0 : i32
    return %c0_i32, %c0_i32_0, %c0_i32_1 : i32, i32, i32
  }
  func.func @transform_4(%arg0: i32) -> (i32, i32) {
    %c0_i32 = arith.constant 0 : i32
    %c0_i32_0 = arith.constant 0 : i32
    %c0_i32_1 = arith.constant 0 : i32
    return %c0_i32, %c0_i32_0 : i32, i32
  }
  func.func @transform_5(%arg0: i32) -> (i32, i32, i32) {
    %c0_i32 = arith.constant 0 : i32
    %c0_i32_0 = arith.constant 0 : i32
    %c0_i32_1 = arith.constant 0 : i32
    %c0_i32_2 = arith.constant 0 : i32
    return %c0_i32, %c0_i32_0, %c0_i32_1 : i32, i32, i32
  }
  func.func @transform_6(%arg0: i32) -> (i32, i32) {
    %c0_i32 = arith.constant 0 : i32
    %c0_i32_0 = arith.constant 0 : i32
    %c0_i32_1 = arith.constant 0 : i32
    return %c0_i32, %c0_i32_0 : i32, i32
  }
  func.func @transform_7(%arg0: i32) -> (i32, i32) {
    %c0_i32 = arith.constant 0 : i32
    %c0_i32_0 = arith.constant 0 : i32
    %c0_i32_1 = arith.constant 0 : i32
    return %c0_i32, %c0_i32_0 : i32, i32
  }
  func.func @transform_8(%arg0: i32) -> (i32, i32, i32) {
    %c0_i32 = arith.constant 0 : i32
    %c0_i32_0 = arith.constant 0 : i32
    %c0_i32_1 = arith.constant 0 : i32
    return %arg0, %c0_i32, %c0_i32_0 : i32, i32, i32
  }
}

module attributes {stable_mosaic.version = 11 : i64} {
  func.func @fc1_partial_kernel(%arg0: i32, %arg1: i32, %arg2: memref<2x6400xf32, #tpu.memory_space<vmem>>, %arg3: memref<6400x64xbf16, #tpu.memory_space<vmem>>, %arg4: memref<1x2x64xf32, #tpu.memory_space<vmem>>) attributes {dimension_semantics = [#tpu.dimension_semantics<parallel>, #tpu.dimension_semantics<arbitrary>], iteration_bounds = array<i64: 2, 4>, scalar_prefetch = 0 : i64, scratch_operands = 0 : i64, tpu.core_type = #tpu.core_type<tc>, window_params = [{transform_indices = @transform_0, window_bounds = array<i64: 2, 6400>}, {transform_indices = @transform_1, window_bounds = array<i64: 6400, 64>}, {transform_indices = @transform_2, window_bounds = array<i64: 1, 2, 64>}]} {
    %c0 = arith.constant 0 : index
    %c0_0 = arith.constant 0 : index
    %0 = vector.load %arg2[%c0, %c0_0] : memref<2x6400xf32, #tpu.memory_space<vmem>>, vector<2x6400xf32>
    %1 = arith.truncf %0 : vector<2x6400xf32> to vector<2x6400xbf16>
    %c0_1 = arith.constant 0 : index
    %c0_2 = arith.constant 0 : index
    %2 = vector.load %arg3[%c0_1, %c0_2] : memref<6400x64xbf16, #tpu.memory_space<vmem>>, vector<6400x64xbf16>
    %cst = arith.constant dense<0.000000e+00> : vector<2x64xf32>
    %3 = tpu.matmul %1, %2, %cst {dimension_numbers = #tpu.dot_dimension_numbers<[1], [0], [0], [1], [0, 0, 1, 1], [], []>} : vector<2x6400xbf16>, vector<6400x64xbf16>, vector<2x64xf32> -> vector<2x64xf32>
    %c0_i32 = arith.constant 0 : i32
    %4 = arith.cmpi eq, %arg1, %c0_i32 : i32
    %5 = arith.extui %4 : i1 to i32
    %c0_i32_3 = arith.constant 0 : i32
    %6 = arith.cmpi ne, %5, %c0_i32_3 : i32
    scf.if %6 {
      %c0_6 = arith.constant 0 : index
      %c0_7 = arith.constant 0 : index
      %c0_8 = arith.constant 0 : index
      %10 = vector.load %arg4[%c0_6, %c0_7, %c0_8] : memref<1x2x64xf32, #tpu.memory_space<vmem>>, vector<1x2x64xf32>
      %11 = vector.shape_cast %10 : vector<1x2x64xf32> to vector<2x64xf32>
      %12 = vector.shape_cast %3 : vector<2x64xf32> to vector<1x2x64xf32>
      tpu.vector_store %arg4[%c0_6, %c0_7, %c0_8], %12 {strides = array<i32>} : memref<1x2x64xf32, #tpu.memory_space<vmem>>, vector<1x2x64xf32>,
    } else {
    }
    %c0_i32_4 = arith.constant 0 : i32
    %7 = arith.cmpi sgt, %arg1, %c0_i32_4 : i32
    %8 = arith.extui %7 : i1 to i32
    %c0_i32_5 = arith.constant 0 : i32
    %9 = arith.cmpi ne, %8, %c0_i32_5 : i32
    scf.if %9 {
      %c0_6 = arith.constant 0 : index
      %c0_7 = arith.constant 0 : index
      %c0_8 = arith.constant 0 : index
      %10 = vector.load %arg4[%c0_6, %c0_7, %c0_8] : memref<1x2x64xf32, #tpu.memory_space<vmem>>, vector<1x2x64xf32>
      %11 = vector.shape_cast %10 : vector<1x2x64xf32> to vector<2x64xf32>
      %12 = arith.addf %11, %3 : vector<2x64xf32>
      %c0_9 = arith.constant 0 : index
      %c0_10 = arith.constant 0 : index
      %c0_11 = arith.constant 0 : index
      %13 = vector.load %arg4[%c0_9, %c0_10, %c0_11] : memref<1x2x64xf32, #tpu.memory_space<vmem>>, vector<1x2x64xf32>
      %14 = vector.shape_cast %13 : vector<1x2x64xf32> to vector<2x64xf32>
      %15 = vector.shape_cast %12 : vector<2x64xf32> to vector<1x2x64xf32>
      tpu.vector_store %arg4[%c0_9, %c0_10, %c0_11], %15 {strides = array<i32>} : memref<1x2x64xf32, #tpu.memory_space<vmem>>, vector<1x2x64xf32>,
    } else {
    }
    return
  }
  func.func @transform_0(%arg0: i32, %arg1: i32) -> (i32, i32) {
    %c4_i32 = arith.constant 4 : i32
    %0 = arith.muli %arg0, %c4_i32 : i32
    %1 = arith.addi %0, %arg1 : i32
    %c0_i32 = arith.constant 0 : i32
    %c0_i32_0 = arith.constant 0 : i32
    return %c0_i32, %1 : i32, i32
  }
  func.func @transform_1(%arg0: i32, %arg1: i32) -> (i32, i32) {
    %c4_i32 = arith.constant 4 : i32
    %0 = arith.muli %arg0, %c4_i32 : i32
    %1 = arith.addi %0, %arg1 : i32
    %c0_i32 = arith.constant 0 : i32
    %c0_i32_0 = arith.constant 0 : i32
    return %1, %c0_i32 : i32, i32
  }
  func.func @transform_2(%arg0: i32, %arg1: i32) -> (i32, i32, i32) {
    %c0_i32 = arith.constant 0 : i32
    %c0_i32_0 = arith.constant 0 : i32
    %c0_i32_1 = arith.constant 0 : i32
    return %arg0, %c0_i32, %c0_i32_0 : i32, i32, i32
  }
}

module attributes {stable_mosaic.version = 11 : i64} {
  func.func @mlp_combine_kernel(%arg0: memref<2x2x64xf32, #tpu.memory_space<vmem>>, %arg1: memref<1x64xf32, #tpu.memory_space<vmem>>, %arg2: memref<64x2xf32, #tpu.memory_space<vmem>>, %arg3: memref<1x2xf32, #tpu.memory_space<vmem>>, %arg4: memref<2x2xf32, #tpu.memory_space<vmem>>) attributes {dimension_semantics = [], scalar_prefetch = 0 : i64, scratch_operands = 0 : i64, tpu.core_type = #tpu.core_type<tc>} {
    %c0 = arith.constant 0 : index
    %c0_0 = arith.constant 0 : index
    %c0_1 = arith.constant 0 : index
    %0 = vector.load %arg0[%c0, %c0_0, %c0_1] : memref<2x2x64xf32, #tpu.memory_space<vmem>>, vector<1x2x64xf32>
    %1 = vector.shape_cast %0 : vector<1x2x64xf32> to vector<2x64xf32>
    %c1 = arith.constant 1 : index
    %c0_2 = arith.constant 0 : index
    %c0_3 = arith.constant 0 : index
    %2 = vector.load %arg0[%c1, %c0_2, %c0_3] : memref<2x2x64xf32, #tpu.memory_space<vmem>>, vector<1x2x64xf32>
    %3 = vector.shape_cast %2 : vector<1x2x64xf32> to vector<2x64xf32>
    %4 = arith.addf %1, %3 : vector<2x64xf32>
    %c0_4 = arith.constant 0 : index
    %c0_5 = arith.constant 0 : index
    %5 = vector.load %arg1[%c0_4, %c0_5] : memref<1x64xf32, #tpu.memory_space<vmem>>, vector<1x64xf32>
    %6 = vector.broadcast %5 : vector<1x64xf32> to vector<2x64xf32>
    %7 = arith.addf %4, %6 : vector<2x64xf32>
    %cst = arith.constant 0.000000e+00 : f32
    %8 = vector.broadcast %cst : f32 to vector<2x64xf32>
    %9 = arith.maximumf %7, %8 : vector<2x64xf32>
    %c0_6 = arith.constant 0 : index
    %c0_7 = arith.constant 0 : index
    %10 = vector.load %arg2[%c0_6, %c0_7] : memref<64x2xf32, #tpu.memory_space<vmem>>, vector<64x2xf32>
    %cst_8 = arith.constant dense<0.000000e+00> : vector<2x2xf32>
    %11 = tpu.matmul %9, %10, %cst_8 {dimension_numbers = #tpu.dot_dimension_numbers<[1], [0], [0], [1], [0, 0, 1, 1], [], []>} : vector<2x64xf32>, vector<64x2xf32>, vector<2x2xf32> -> vector<2x2xf32>
    %c0_9 = arith.constant 0 : index
    %c0_10 = arith.constant 0 : index
    %12 = vector.load %arg3[%c0_9, %c0_10] : memref<1x2xf32, #tpu.memory_space<vmem>>, vector<1x2xf32>
    %13 = vector.broadcast %12 : vector<1x2xf32> to vector<2x2xf32>
    %14 = arith.addf %11, %13 : vector<2x2xf32>
    %c0_11 = arith.constant 0 : index
    %c0_12 = arith.constant 0 : index
    %15 = vector.load %arg4[%c0_11, %c0_12] : memref<2x2xf32, #tpu.memory_space<vmem>>, vector<2x2xf32>
    tpu.vector_store %arg4[%c0_11, %c0_12], %14 {strides = array<i32>} : memref<2x2xf32, #tpu.memory_space<vmem>>, vector<2x2xf32>,
    return
  }
}

</mosaic_0001>

<bundles_post_ra>
// kernel: audio_classifier_forward.5
= control target key start
LH: loop header
LB: loop body
LE: loop exit
PB: predicated region body
PF: predicated region fallthrough
CT: control target
= control target key end

     0   :  { %v208_v3 = vmov 0.0|0.0   ;;  %vm209_vm0 = vmmov 0   ;;  %v210_v6 = vmov 0.0   ;;  %s285_s0 = inlined_call_operand.vmem [shape: f32[2,2,64], index: 0, kind: input, shape index: {}]   ;;  %s286_s1 = inlined_call_operand.vmem [shape: f32[1,64], index: 1, kind: input, shape index: {}]   ;;  %s287_s2 = inlined_call_operand.vmem [shape: f32[64,2], index: 2, kind: input, shape index: {}]   ;;  %s288_s3 = inlined_call_operand.vmem [shape: f32[1,2], index: 3, kind: input, shape index: {}]   ;;  %s289_s4 = inlined_call_operand.hbm [shape: f32[2,2], index: 4, kind: output, shape index: {}]  }
   0x1   :  { %v31_v0 = vld [vmem:[%s287_s2] sm:$0xff]  ;;  %v32_v1 = vld [vmem:[%s287_s2 + $0x8] sm:$0xff]  ;;  %v33_v2 = vld [vmem:[%s287_s2 + $0x10] sm:$0xff]  ;;  %168 = vmatprep.subr.bf16.mxu0 %v208_v3  ;;  %165 = vmatprep.mubr.msk.f32.mxu0 %vm209_vm0, %v210_v6 }
   0x2   :  { %v169_v4 = vpack.c.bf16 %v32_v1, %v31_v0  ;;  %v34_v5 = vld [vmem:[%s287_s2 + $0x18] sm:$0xff]  ;;  %v18_v8 = vld [vmem:[%s285_s0] sm:$0x3]  ;;  %v136_v9 = vld [vmem:[%s285_s0 + $0x2] sm:$0x3] }
   0x3   :  { %v172_v7 = vpack.c.bf16 %v34_v5, %v33_v2  ;;  %v35_v10 = vld [vmem:[%s287_s2 + $0x20] sm:$0xff]  ;;  %v36_v11 = vld [vmem:[%s287_s2 + $0x28] sm:$0xff] }
   0x4   :  { %170 = vmatpush3.bf16.msra.mxu0 %v169_v4 }
   0x5   :  { %171 = vmatprep.subr.bf16.mxu0 %v208_v3 }
   0x6   :  { %9 = vsyncpa [#allocation3], 0  ;;  %v21_v12 = vadd.f32 %v136_v9, %v18_v8  ;;  %v175_v13 = vpack.c.bf16 %v36_v11, %v35_v10  ;;  %v137_v14 = vld [vmem:[%s286_s1] ss:$0 sm:$0xff]  ;;  %v37_v15 = vld [vmem:[%s287_s2 + $0x30] sm:$0xff]  ;;  %vm46_vm1 = vcmask 523264  }
   0x7   :  { %v38_v16 = vld [vmem:[%s287_s2 + $0x38] sm:$0xff]  ;;  %v138_v20 = vld [vmem:[%s288_s3] ss:$0 sm:$0xff]  ;;  %s211_s1 = smov [#allocation2]   ;;  %vm120_vm2 = vcmask 9216  }
   0x8   :  { %173 = vmatpush3.bf16.msra.mxu0 %v172_v7  ;;  %v29_v17 = vadd.f32 %v137_v14, %v21_v12  ;;  %v178_v18 = vpack.c.bf16 %v38_v16, %v37_v15  ;;  %s128_s12 = sshll.u32 %s211_s1, 4  ;;  %s129_s12 = int_to_ptr.vmem [resolvable:$true] %s128_s12 }
   0x9   :  { %174 = vmatprep.subr.bf16.mxu0 %v208_v3  ;;  %s184_s2 = scalar_lea.vmem %s129_s12, 32  ;;  %p189_p1 = scmp.lt.s32.totalorder %s129_s12, %s129_s12 }
   0xa   :  { %v30_v19 = vmax.f32 %v29_v17, 0.0  ;;  %p185_p0 = scmp.ne.s32.totalorder %s129_s12, %s184_s2  ;;  %p190_p2 = scmp.lt.s32.totalorder %s184_s2, %s184_s2 }
   0xc   :  { %176 = vmatpush3.bf16.msra.mxu0 %v175_v13  ;;  %p191_p3 = por %p190_p2, %p189_p1 }
   0xd   :  { %177 = vmatprep.subr.bf16.mxu0 %v208_v3 }
   0xe   :  { %p192_p4 = pnand %p191_p3, %p185_p0 }
  0x10   :  { %179 = vmatpush3.bf16.msra.mxu0 %v178_v18 }
  0x13   :  { %166 = vmatmul.mubr.msk.f32.vlgmr.msra.gmra.mrb[0].mxu0 %vm46_vm1, %v30_v19 }
  0xe6   :  { %v116_v21 = vpop.f32.mrb[0].mxu0 }
  0xe7   :  { %v117_v22 = vadd.f32 %v138_v20, %v116_v21  ;;  %v167_v23 = vpop.f32.mrb[1].mxu0 }
  0xe9   :  { %121 = vst.msk [vmem:[#allocation2] sm:$0x3] %vm120_vm2, %v117_v22 }
  0xea   :  { %195 = shalt.err (!%p192_p4)
}
  0xeb   :  { %s196_s15 = scalar_lea.hbm %s289_s4, 32 }
  0xec   :  { %p197_p5 = scmp.ne.s32.totalorder %s289_s4, %s196_s15  ;;  %p200_p6 = scmp.lt.u32.totalorder %s196_s15, %s289_s4 }
  0xee   :  { %p202_p7 = pnand %p200_p6, %p197_p5 }
  0xf0   :  { %205 = shalt.err (!%p202_p7)
}
  0xf1   :  { %131 = dma.vmem_to_hbm [thread:$0]  %s129_s12, 32, %s289_s4, [#allocation3]  }
  0xf2   :  { %206 = dma.done.wait [#allocation3], 32  }
  0xf3   :  { %207 = vsyncadd [#allocation3], 4294967264 }
  0xf4   :  { %135 = vsyncpa [#allocation3], 1 }

// kernel: audio_classifier_forward.4
= control target key start
LH: loop header
LB: loop body
LE: loop exit
PB: predicated region body
PF: predicated region fallthrough
CT: control target
= control target key end

     0   :  { %s6313_s9 = smov 0   ;;  %s6315_s10 = smov 0   ;;  %s6839_s0 = inlined_call_operand.vmem [shape: f32[2,51200], index: 0, kind: input, shape index: {}]   ;;  %s6840_s1 = inlined_call_operand.vmem [shape: bf16[51200,64], index: 1, kind: input, shape index: {}]   ;;  %s6841_s2 = inlined_call_operand.vmem [shape: f32[2,2,64], index: 2, kind: output, shape index: {}]  }
   0x1   :  { %s6317_s11 = smov 0   ;;  %s6319_s12 = smov 0  }
   0x2   :  { %s6321_s13 = smov 0  }
   0x3 LB: > { %s21_s14 = sadd.s32 1, %s6287_s11  ;;  %s24_s15 = sadd.s32 1, %s6291_s12  ;;  %s6295_s13 = sphi %s6321_s13, %s12_s13   ;;  %s6291_s12 = sphi %s6319_s12, %s6845_s12   ;;  %s6287_s11 = sphi %s6317_s11, %s6844_s11   ;;  %s6283_s10 = sphi %s6315_s10, %s6843_s10   ;;  %s6279_s9 = sphi %s6313_s9, %s6842_s9  }
   0x4   : > { %p22_p0 = scmp.ge.s32.totalorder %s21_s14, 4  ;;  %p4843_p1 = scmp.ge.s32.totalorder %s6295_s13, 1 }
   0x5   : > { %p152_p2 = scmp.lt.s32.totalorder %s6295_s13, 9 }
   0x6   : > { %s6847_s14 = smov (%p22_p0, %s21_s14), 0  ;;  %s6849_s15 = smov (!%p22_p0, %s24_s15), %s6291_s12 }
   0x7   : > { %p153_p3 = pnand %p4843_p1, %p152_p2  ;;  %p26_p4 = scmp.ge.s32.totalorder %s6849_s15, 2 }
   0x8   : > { %s4844_s16 = sshll.u32 (!%p153_p3), %s6283_s10, 2  ;;  %p202_p5 = scmp.lt.s32.totalorder (!%p153_p3), %s6283_s10, 1  ;;  %v6297_v22 = vmov (!%p153_p3), 1983009808   ;;  %v237_v24 = vlaneseq (!%p153_p3) }
   0x9   : > { %s6851_s15 = smov (%p26_p4, %s6849_s15), 0  ;;  %156 = sbr.rel (%p153_p3) target bundleno = 665 (0x299), region = 28 }
   0xa   : > { %s6346_s17 = sadd.s32 (!%p153_p3), %s6279_s9, %s4844_s16  ;;  %v235_v23 = vunpack.c.l.s4 (!%p153_p3), %v6297_v22  ;;  %v238_v30 = vshrl.u32 (!%p153_p3), %v237_v24, 7  ;;  %p5250_p8 = scmp.ne.s32.totalorder (!%p153_p3), %s6279_s9, 0 }
   0xb   : > { %s194_s18 = smul.u32 (!%p153_p3), 800, %s6346_s17 }
   0xc   : > { %s184_s27 = smul.u32 (!%p153_p3), 50, %s6346_s17  ;;  %v236_v29 = vunpack.c.0.s8 (!%p153_p3), %v235_v23 }
   0xd   : > { %p195_p6 = scmp.lt.s32.totalorder (!%p153_p3), %s194_s18, 6399 }
   0xe   : > { %p185_p7 = scmp.lt.s32.totalorder (!%p153_p3), %s184_s27, 399  ;;  %v6395_v35 = vsub.s32 (!%p153_p3), %v236_v29, %v238_v30 }
  0x10   : > { %s6853_s10 = smov (!%p202_p5, %s6283_s10), 1  ;;  %s6855_s18 = smov (!%p195_p6, %s194_s18), 6399 }
  0x11   : > { %s4848_s19 = sshll.u32 %s6853_s10, 1  ;;  %s4847_s23 = sshll.u32 %s6855_s18, 2  ;;  %vm4749_vm0 = vcmask (!%p5250_p8), 517120  }
  0x12   : > { %s6352_s22 = scalar_lea.vmem %s6841_s2, %s4848_s19  ;;  %s6357_s26 = scalar_lea.vmem %s6840_s1, %s4847_s23 }
  0x13   : > { %v5845_v0 = vld [vmem:[%s6357_s26 + $0x40] sm:$0xff]   ;;  %v5849_v4 = vld [vmem:[%s6357_s26 + $0x48] sm:$0xff]   ;;  %v5853_v8 = vld [vmem:[%s6357_s26 + $0x50] sm:$0xff]   ;;  %s6857_s27 = smov (!%p185_p7, %s184_s27), 399 }
  0x14   : > { %v5846_v1 = vld [vmem:[%s6357_s26 + $0xc0] sm:$0xff]   ;;  %5254 = vmatprep.subr.bf16.mxu0 %v5845_v0  ;;  %v5850_v5 = vld [vmem:[%s6357_s26 + $0xc8] sm:$0xff]   ;;  %v5854_v9 = vld [vmem:[%s6357_s26 + $0xd0] sm:$0xff]   ;;  %s4845_s28 = sshll.u32 %s6857_s27, 1 }
  0x15   : > { %v5847_v2 = vld [vmem:[%s6357_s26] sm:$0xff]   ;;  %5276 = vmatprep.subr.bf16.mxu1 %v5846_v1  ;;  %v5851_v6 = vld [vmem:[%s6357_s26 + $0x8] sm:$0xff]   ;;  %v5855_v10 = vld [vmem:[%s6357_s26 + $0x10] sm:$0xff]   ;;  %s6393_s3 = scalar_lea.vmem %s6839_s0, %s4845_s28 }
  0x16   : > { %v5848_v3 = vld [vmem:[%s6357_s26 + $0x80] sm:$0xff]   ;;  %5255 = vmatpush3.bf16.msra.mxu0 %v5847_v2  ;;  %v5852_v7 = vld [vmem:[%s6357_s26 + $0x88] sm:$0xff]   ;;  %v5856_v11 = vld [vmem:[%s6357_s26 + $0x90] sm:$0xff]  }
  0x17   : > { %5277 = vmatpush3.bf16.msra.mxu1 %v5848_v3  ;;  %5256 = vmatprep.subr.bf16.mxu0 %v5849_v4  ;;  %v5857_v12 = vld [vmem:[%s6357_s26 + $0x58] sm:$0xff]   ;;  %v5861_v16 = vld [vmem:[%s6357_s26 + $0x60] sm:$0xff]   ;;  %v5865_v20 = vld [vmem:[%s6357_s26 + $0x68] sm:$0xff]  }
  0x18   : > { %5278 = vmatprep.subr.bf16.mxu1 %v5850_v5  ;;  %v5858_v13 = vld [vmem:[%s6357_s26 + $0xd8] sm:$0xff]   ;;  %v5862_v17 = vld [vmem:[%s6357_s26 + $0xe0] sm:$0xff]   ;;  %v5866_v21 = vld [vmem:[%s6357_s26 + $0xe8] sm:$0xff]  }
  0x19   : > { %v5859_v14 = vld [vmem:[%s6357_s26 + $0x18] sm:$0xff]   ;;  %v5863_v18 = vld [vmem:[%s6357_s26 + $0x20] sm:$0xff]   ;;  %v5867_v25 = vld [vmem:[%s6357_s26 + $0x28] sm:$0xff]  }
  0x1a   : > { %5257 = vmatpush3.bf16.msra.mxu0 %v5851_v6  ;;  %v5860_v15 = vld [vmem:[%s6357_s26 + $0x98] sm:$0xff]   ;;  %v5864_v19 = vld [vmem:[%s6357_s26 + $0xa0] sm:$0xff]   ;;  %v5868_v26 = vld [vmem:[%s6357_s26 + $0xa8] sm:$0xff]  }
  0x1b   : > { %5279 = vmatpush3.bf16.msra.mxu1 %v5852_v7  ;;  %5258 = vmatprep.subr.bf16.mxu0 %v5853_v8  ;;  %v5869_v27 = vld [vmem:[%s6357_s26 + $0x70] sm:$0xff]   ;;  %v5873_v33 = vld [vmem:[%s6357_s26 + $0x78] sm:$0xff]   ;;  %v207_v38 = vld [vmem:[%s6393_s3] sm:$0xff] }
  0x1c   : > { %5280 = vmatprep.subr.bf16.mxu1 %v5854_v9  ;;  %v5870_v28 = vld [vmem:[%s6357_s26 + $0xf0] sm:$0xff]   ;;  %v5874_v34 = vld [vmem:[%s6357_s26 + $0xf8] sm:$0xff]   ;;  %v240_v39 = vrot.slane %v207_v38, %v6395_v35  ;;  %v233_v40 = vcombine.high %v207_v38, %v207_v38  ;;  %v5878_v41 = vld [vmem:[%s6357_s26 + $0x140] sm:$0xff]  }
  0x1d   : > { %v5871_v31 = vld [vmem:[%s6357_s26 + $0x30] sm:$0xff]   ;;  %v5875_v36 = vld [vmem:[%s6357_s26 + $0x38] sm:$0xff]   ;;  %v5880_v44 = vld [vmem:[%s6357_s26 + $0x1c0] sm:$0xff]  }
  0x1e   : > { %5259 = vmatpush3.bf16.msra.mxu0 %v5855_v10  ;;  %v5872_v32 = vld [vmem:[%s6357_s26 + $0xb0] sm:$0xff]   ;;  %v5876_v37 = vld [vmem:[%s6357_s26 + $0xb8] sm:$0xff]   ;;  %v248_v42 = vcombine.high %v240_v39, %v240_v39  ;;  %v247_v43 = vrot.slane %v233_v40, %v6395_v35  ;;  %v495_v45 = vpack.c.bf16 %v240_v39, %v240_v39  ;;  %v5879_v46 = vld [vmem:[%s6357_s26 + $0x100] sm:$0xff]  }
  0x1f   : > { %5281 = vmatpush3.bf16.msra.mxu1 %v5856_v11  ;;  %5260 = vmatprep.subr.bf16.mxu0 %v5857_v12  ;;  %v5881_v49 = vld [vmem:[%s6357_s26 + $0x180] sm:$0xff]   ;;  %v5882_v51 = vld [vmem:[%s6357_s26 + $0x148] sm:$0xff]   ;;  %v5886_v56 = vld [vmem:[%s6357_s26 + $0x150] sm:$0xff]  }
  0x20   : > { %5282 = vmatprep.subr.bf16.mxu1 %v5858_v13  ;;  %v496_v47 = vpack.c.bf16 %v248_v42, %v248_v42  ;;  %v249_v48 = vcombine.high %v247_v43, %v247_v43  ;;  %v497_v50 = vpack.c.bf16 %v247_v43, %v247_v43  ;;  %v5883_v53 = vld [vmem:[%s6357_s26 + $0x108] sm:$0xff]   ;;  %v5887_v57 = vld [vmem:[%s6357_s26 + $0x110] sm:$0xff]   ;;  %v5890_v60 = vld [vmem:[%s6357_s26 + $0x158] sm:$0xff]  }
  0x21   : > { %v5884_v54 = vld [vmem:[%s6357_s26 + $0x1c8] sm:$0xff]   ;;  %v5888_v58 = vld [vmem:[%s6357_s26 + $0x1d0] sm:$0xff]   ;;  %v5891_v61 = vld [vmem:[%s6357_s26 + $0x118] sm:$0xff]  }
  0x22   : > { %5261 = vmatpush3.bf16.msra.mxu0 %v5859_v14  ;;  %3777 = vmatprep.mubr.bf16.mxu0 %v496_v47  ;;  %v498_v52 = vpack.c.bf16 %v249_v48, %v249_v48  ;;  %v5885_v55 = vld [vmem:[%s6357_s26 + $0x188] sm:$0xff]   ;;  %v5889_v59 = vld [vmem:[%s6357_s26 + $0x190] sm:$0xff]   ;;  %v5892_v62 = vld [vmem:[%s6357_s26 + $0x1d8] sm:$0xff]  }
  0x23   : > { %5283 = vmatpush3.bf16.msra.mxu1 %v5860_v15  ;;  %5262 = vmatprep.subr.bf16.mxu0 %v5861_v16  ;;  %v5893_v63 = vld [vmem:[%s6357_s26 + $0x198] sm:$0xff]   ;;  %v5894_v0 = vld [vmem:[%s6357_s26 + $0x160] sm:$0xff]   ;;  %v5898_v4 = vld [vmem:[%s6357_s26 + $0x168] sm:$0xff]  }
  0x24   : > { %5284 = vmatprep.subr.bf16.mxu1 %v5862_v17  ;;  %3817 = vmatprep.mubr.bf16.mxu1 %v498_v52  ;;  %v5895_v1 = vld [vmem:[%s6357_s26 + $0x120] sm:$0xff]   ;;  %v5899_v5 = vld [vmem:[%s6357_s26 + $0x128] sm:$0xff]   ;;  %v5902_v8 = vld [vmem:[%s6357_s26 + $0x170] sm:$0xff]  }
  0x25   : > { %v5896_v2 = vld [vmem:[%s6357_s26 + $0x1e0] sm:$0xff]   ;;  %v5900_v6 = vld [vmem:[%s6357_s26 + $0x1e8] sm:$0xff]   ;;  %v5903_v9 = vld [vmem:[%s6357_s26 + $0x130] sm:$0xff]  }
  0x26   : > { %5263 = vmatpush3.bf16.msra.mxu0 %v5863_v18  ;;  %v5897_v3 = vld [vmem:[%s6357_s26 + $0x1a0] sm:$0xff]   ;;  %v5901_v7 = vld [vmem:[%s6357_s26 + $0x1a8] sm:$0xff]   ;;  %v5904_v10 = vld [vmem:[%s6357_s26 + $0x1f0] sm:$0xff]  }
  0x27   : > { %5285 = vmatpush3.bf16.msra.mxu1 %v5864_v19  ;;  %5264 = vmatprep.subr.bf16.mxu0 %v5865_v20  ;;  %v5905_v11 = vld [vmem:[%s6357_s26 + $0x1b0] sm:$0xff]   ;;  %v5906_v12 = vld [vmem:[%s6357_s26 + $0x178] sm:$0xff]   ;;  %v208_v14 = vld [vmem:[%s6393_s3 + $0x8] sm:$0xff] }
  0x28   : > { %5286 = vmatprep.subr.bf16.mxu1 %v5866_v21  ;;  %v5907_v13 = vld [vmem:[%s6357_s26 + $0x138] sm:$0xff]   ;;  %v257_v16 = vrot.slane %v208_v14, %v6395_v35  ;;  %v250_v17 = vcombine.high %v208_v14, %v208_v14  ;;  %v5910_v20 = vld [vmem:[%s6357_s26 + $0x240] sm:$0xff]   ;;  %v5915_v30 = vld [vmem:[%s6357_s26 + $0x248] sm:$0xff]  }
  0x29   : > { %v5908_v15 = vld [vmem:[%s6357_s26 + $0x1f8] sm:$0xff]   ;;  %v5912_v22 = vld [vmem:[%s6357_s26 + $0x200] sm:$0xff]   ;;  %v5922_v38 = vld [vmem:[%s6357_s26 + $0x290] sm:$0xff]  }
  0x2a   : > { %5265 = vmatpush3.bf16.msra.mxu0 %v5867_v25  ;;  %v5909_v18 = vld [vmem:[%s6357_s26 + $0x1b8] sm:$0xff]   ;;  %v265_v19 = vcombine.high %v257_v16, %v257_v16  ;;  %v264_v21 = vrot.slane %v250_v17, %v6395_v35  ;;  %v499_v24 = vpack.c.bf16 %v257_v16, %v257_v16  ;;  %v5927_v43 = vld [vmem:[%s6357_s26 + $0x260] sm:$0xff]   ;;  %v5931_v47 = vld [vmem:[%s6357_s26 + $0x268] sm:$0xff]  }
  0x2b   : > { %5287 = vmatpush3.bf16.msra.mxu1 %v5868_v26  ;;  %5266 = vmatprep.subr.bf16.mxu0 %v5869_v27  ;;  %v5913_v26 = vld [vmem:[%s6357_s26 + $0x2c0] sm:$0xff]   ;;  %v5923_v39 = vld [vmem:[%s6357_s26 + $0x258] sm:$0xff]   ;;  %v5932_v48 = vld [vmem:[%s6357_s26 + $0x228] sm:$0xff]  }
  0x2c   : > { %5288 = vmatprep.subr.bf16.mxu1 %v5870_v28  ;;  %v500_v23 = vpack.c.bf16 %v265_v19, %v265_v19  ;;  %v266_v25 = vcombine.high %v264_v21, %v264_v21  ;;  %v5914_v27 = vld [vmem:[%s6357_s26 + $0x280] sm:$0xff]   ;;  %v501_v29 = vpack.c.bf16 %v264_v21, %v264_v21  ;;  %v5924_v40 = vld [vmem:[%s6357_s26 + $0x218] sm:$0xff]   ;;  %v5936_v52 = vld [vmem:[%s6357_s26 + $0x230] sm:$0xff]  }
  0x2d   : > { %v5926_v42 = vld [vmem:[%s6357_s26 + $0x298] sm:$0xff]   ;;  %v5953_v14 = vld [vmem:[%s6357_s26 + $0x310] sm:$0xff]   ;;  %v5960_v21 = vld [vmem:[%s6357_s26 + $0x360] sm:$0xff]  }
  0x2e   : > { %5267 = vmatpush3.bf16.msra.mxu0 %v5871_v31  ;;  %v502_v28 = vpack.c.bf16 %v266_v25, %v266_v25  ;;  %v5916_v31 = vld [vmem:[%s6357_s26 + $0x208] sm:$0xff]   ;;  %v5955_v16 = vld [vmem:[%s6357_s26 + $0x390] sm:$0xff]   ;;  %v5956_v17 = vld [vmem:[%s6357_s26 + $0x358] sm:$0xff]  }
  0x2f   : > { %5289 = vmatpush3.bf16.msra.mxu1 %v5872_v32  ;;  %5268 = vmatprep.subr.bf16.mxu0 %v5873_v33  ;;  %v5917_v32 = vld [vmem:[%s6357_s26 + $0x2c8] sm:$0xff]   ;;  %v5958_v19 = vld [vmem:[%s6357_s26 + $0x3d8] sm:$0xff]  }
  0x30   : > { %5290 = vmatprep.subr.bf16.mxu1 %v5874_v34  ;;  %v5918_v33 = vld [vmem:[%s6357_s26 + $0x288] sm:$0xff]   ;;  %v5919_v34 = vld [vmem:[%s6357_s26 + $0x250] sm:$0xff]  }
  0x31   : > { %v5964_v25 = vld [vmem:[%s6357_s26 + $0x368] sm:$0xff]  }
  0x32   : > { %5269 = vmatpush3.bf16.msra.mxu0 %v5875_v36  ;;  %v5920_v36 = vld [vmem:[%s6357_s26 + $0x210] sm:$0xff]  }
  0x33   : > { %5291 = vmatpush3.bf16.msra.mxu1 %v5876_v37  ;;  %5298 = vmatprep.subr.bf16.mxu0 %v5878_v41  ;;  %v5921_v37 = vld [vmem:[%s6357_s26 + $0x2d0] sm:$0xff]   ;;  %v5925_v41 = vld [vmem:[%s6357_s26 + $0x2d8] sm:$0xff]  }
  0x34   : > { %5320 = vmatprep.subr.bf16.mxu1 %v5880_v44  ;;  %v5928_v44 = vld [vmem:[%s6357_s26 + $0x220] sm:$0xff]  }
  0x35   : > { %3778 = vmatmul.mubr.bf16.vlgmr.msra.gmra.mrb[0].mxu0 %v495_v45  ;;  %v5929_v45 = vld [vmem:[%s6357_s26 + $0x2e0] sm:$0xff]  }
  0x36   : > { %5299 = vmatpush3.bf16.msra.mxu0 %v5879_v46  ;;  %3818 = vmatmul.mubr.bf16.vlgmr.msra.gmra.mrb[0].mxu1 %v497_v50  ;;  %v5930_v46 = vld [vmem:[%s6357_s26 + $0x2a0] sm:$0xff]   ;;  %v5934_v50 = vld [vmem:[%s6357_s26 + $0x2a8] sm:$0xff]  }
  0x37   : > { %5300 = vmatprep.subr.bf16.mxu0 %v5882_v51  ;;  %5321 = vmatpush3.bf16.msra.mxu1 %v5881_v49  ;;  %v5933_v49 = vld [vmem:[%s6357_s26 + $0x2e8] sm:$0xff]   ;;  %v5935_v51 = vld [vmem:[%s6357_s26 + $0x270] sm:$0xff]  }
  0x38   : > { %5322 = vmatprep.subr.bf16.mxu1 %v5884_v54  ;;  %3857 = vmatprep.mubr.bf16.mxu0 %v500_v23  ;;  %v5938_v54 = vld [vmem:[%s6357_s26 + $0x2b0] sm:$0xff]   ;;  %v5962_v23 = vld [vmem:[%s6357_s26 + $0x3e0] sm:$0xff]  }
  0x39   : > { %3897 = vmatprep.mubr.bf16.mxu1 %v502_v28  ;;  %v5967_v28 = vld [vmem:[%s6357_s26 + $0x3a8] sm:$0xff]  }
  0x3a   : > { %5301 = vmatpush3.bf16.msra.mxu0 %v5883_v53  ;;  %v5937_v53 = vld [vmem:[%s6357_s26 + $0x2f0] sm:$0xff]  }
  0x3b   : > { %5302 = vmatprep.subr.bf16.mxu0 %v5886_v56  ;;  %5323 = vmatpush3.bf16.msra.mxu1 %v5885_v55  ;;  %v5939_v55 = vld [vmem:[%s6357_s26 + $0x278] sm:$0xff]  }
  0x3c   : > { %5324 = vmatprep.subr.bf16.mxu1 %v5888_v58  ;;  %v5940_v56 = vld [vmem:[%s6357_s26 + $0x238] sm:$0xff]  }
  0x3d   : > { %v5941_v58 = vld [vmem:[%s6357_s26 + $0x2f8] sm:$0xff]  }
  0x3e   : > { %5303 = vmatpush3.bf16.msra.mxu0 %v5887_v57  ;;  %v209_v57 = vld [vmem:[%s6393_s3 + $0x10] sm:$0xff] }
  0x3f   : > { %5304 = vmatprep.subr.bf16.mxu0 %v5890_v60  ;;  %5325 = vmatpush3.bf16.msra.mxu1 %v5889_v59  ;;  %v274_v59 = vrot.slane %v209_v57, %v6395_v35  ;;  %v267_v60 = vcombine.high %v209_v57, %v209_v57  ;;  %v5986_v57 = vld [vmem:[%s6357_s26 + $0x410] sm:$0xff]  }
  0x40   : > { %5326 = vmatprep.subr.bf16.mxu1 %v5892_v62 }
  0x41   : > { %v282_v62 = vcombine.high %v274_v59, %v274_v59 }
  0x42   : > { %5305 = vmatpush3.bf16.msra.mxu0 %v5891_v61  ;;  %v5942_v61 = vld [vmem:[%s6357_s26 + $0x2b8] sm:$0xff]  }
  0x43   : > { %5306 = vmatprep.subr.bf16.mxu0 %v5894_v0  ;;  %5327 = vmatpush3.bf16.msra.mxu1 %v5893_v63  ;;  %v5943_v63 = vld [vmem:[%s6357_s26 + $0x340] sm:$0xff]   ;;  %v281_v0 = vrot.slane %v267_v60, %v6395_v35  ;;  %v5989_v60 = vld [vmem:[%s6357_s26 + $0x458] sm:$0xff]  }
  0x44   : > { %5328 = vmatprep.subr.bf16.mxu1 %v5896_v2  ;;  %v504_v2 = vpack.c.bf16 %v282_v62, %v282_v62  ;;  %v5991_v62 = vld [vmem:[%s6357_s26 + $0x4d8] sm:$0xff]  }
  0x46   : > { %5307 = vmatpush3.bf16.msra.mxu0 %v5895_v1  ;;  %v5945_v1 = vld [vmem:[%s6357_s26 + $0x300] sm:$0xff]  }
  0x47   : > { %5308 = vmatprep.subr.bf16.mxu0 %v5898_v4  ;;  %5329 = vmatpush3.bf16.msra.mxu1 %v5897_v3  ;;  %v503_v3 = vpack.c.bf16 %v274_v59, %v274_v59  ;;  %v283_v4 = vcombine.high %v281_v0, %v281_v0  ;;  %v5988_v59 = vld [vmem:[%s6357_s26 + $0x490] sm:$0xff]  }
  0x48   : > { %5330 = vmatprep.subr.bf16.mxu1 %v5900_v6  ;;  %v5947_v6 = vld [vmem:[%s6357_s26 + $0x380] sm:$0xff]  }
  0x4a   : > { %5309 = vmatpush3.bf16.msra.mxu0 %v5899_v5  ;;  %v5946_v5 = vld [vmem:[%s6357_s26 + $0x3c0] sm:$0xff]  }
  0x4b   : > { %5310 = vmatprep.subr.bf16.mxu0 %v5902_v8  ;;  %5331 = vmatpush3.bf16.msra.mxu1 %v5901_v7  ;;  %v506_v7 = vpack.c.bf16 %v283_v4, %v283_v4  ;;  %v505_v8 = vpack.c.bf16 %v281_v0, %v281_v0  ;;  %v5993_v0 = vld [vmem:[%s6357_s26 + $0x460] sm:$0xff]   ;;  %v5997_v4 = vld [vmem:[%s6357_s26 + $0x468] sm:$0xff]  }
  0x4c   : > { %5332 = vmatprep.subr.bf16.mxu1 %v5904_v10  ;;  %v5949_v10 = vld [vmem:[%s6357_s26 + $0x308] sm:$0xff]  }
  0x4e   : > { %5311 = vmatpush3.bf16.msra.mxu0 %v5903_v9  ;;  %v5948_v9 = vld [vmem:[%s6357_s26 + $0x348] sm:$0xff]  }
  0x4f   : > { %5312 = vmatprep.subr.bf16.mxu0 %v5906_v12  ;;  %5333 = vmatpush3.bf16.msra.mxu1 %v5905_v11  ;;  %v5950_v11 = vld [vmem:[%s6357_s26 + $0x3c8] sm:$0xff]  }
  0x50   : > { %5334 = vmatprep.subr.bf16.mxu1 %v5908_v15  ;;  %v5951_v12 = vld [vmem:[%s6357_s26 + $0x388] sm:$0xff]   ;;  %v5954_v15 = vld [vmem:[%s6357_s26 + $0x3d0] sm:$0xff]  }
  0x52   : > { %5313 = vmatpush3.bf16.msra.mxu0 %v5907_v13  ;;  %v5952_v13 = vld [vmem:[%s6357_s26 + $0x350] sm:$0xff]  }
  0x53   : > { %5342 = vmatprep.subr.bf16.mxu0 %v5910_v20  ;;  %5335 = vmatpush3.bf16.msra.mxu1 %v5909_v18  ;;  %v5957_v18 = vld [vmem:[%s6357_s26 + $0x318] sm:$0xff]  }
  0x54   : > { %5364 = vmatprep.subr.bf16.mxu1 %v5913_v26  ;;  %v5959_v20 = vld [vmem:[%s6357_s26 + $0x398] sm:$0xff]   ;;  %v5965_v26 = vld [vmem:[%s6357_s26 + $0x328] sm:$0xff]  }
  0x55   : > { %3858 = vmatmul.mubr.bf16.vlgmr.msra.gmra.mrb[4].mxu0 %v499_v24  ;;  %v5963_v24 = vld [vmem:[%s6357_s26 + $0x3a0] sm:$0xff]  }
  0x56   : > { %5343 = vmatpush3.bf16.msra.mxu0 %v5912_v22  ;;  %3898 = vmatmul.mubr.bf16.vlgmr.msra.gmra.mrb[4].mxu1 %v501_v29  ;;  %v5961_v22 = vld [vmem:[%s6357_s26 + $0x320] sm:$0xff]   ;;  %v5968_v29 = vld [vmem:[%s6357_s26 + $0x370] sm:$0xff]  }
  0x57   : > { %5344 = vmatprep.subr.bf16.mxu0 %v5915_v30  ;;  %5365 = vmatpush3.bf16.msra.mxu1 %v5914_v27  ;;  %v5966_v27 = vld [vmem:[%s6357_s26 + $0x3e8] sm:$0xff]   ;;  %v5969_v30 = vld [vmem:[%s6357_s26 + $0x330] sm:$0xff]  }
  0x58   : > { %5366 = vmatprep.subr.bf16.mxu1 %v5917_v32  ;;  %3937 = vmatprep.mubr.bf16.mxu0 %v504_v2  ;;  %v5971_v32 = vld [vmem:[%s6357_s26 + $0x3b0] sm:$0xff]   ;;  %v5995_v2 = vld [vmem:[%s6357_s26 + $0x4e0] sm:$0xff]  }
  0x59   : > { %3977 = vmatprep.mubr.bf16.mxu1 %v506_v7  ;;  %v6000_v7 = vld [vmem:[%s6357_s26 + $0x4a8] sm:$0xff]  }
  0x5a   : > { %5345 = vmatpush3.bf16.msra.mxu0 %v5916_v31  ;;  %v5970_v31 = vld [vmem:[%s6357_s26 + $0x3f0] sm:$0xff]  }
  0x5b   : > { %5346 = vmatprep.subr.bf16.mxu0 %v5919_v34  ;;  %5367 = vmatpush3.bf16.msra.mxu1 %v5918_v33  ;;  %v5972_v33 = vld [vmem:[%s6357_s26 + $0x378] sm:$0xff]  }
  0x5c   : > { %5368 = vmatprep.subr.bf16.mxu1 %v5921_v37  ;;  %v5973_v34 = vld [vmem:[%s6357_s26 + $0x338] sm:$0xff]  }
  0x5d   : > { %v210_v37 = vld [vmem:[%s6393_s3 + $0x18] sm:$0xff] }
  0x5e   : > { %5347 = vmatpush3.bf16.msra.mxu0 %v5920_v36  ;;  %v5974_v36 = vld [vmem:[%s6357_s26 + $0x3f8] sm:$0xff]  }
  0x5f   : > { %5348 = vmatprep.subr.bf16.mxu0 %v5923_v39  ;;  %5369 = vmatpush3.bf16.msra.mxu1 %v5922_v38  ;;  %v291_v38 = vrot.slane %v210_v37, %v6395_v35  ;;  %v5975_v39 = vld [vmem:[%s6357_s26 + $0x3b8] sm:$0xff]  }
  0x60   : > { %5370 = vmatprep.subr.bf16.mxu1 %v5925_v41  ;;  %v5976_v41 = vld [vmem:[%s6357_s26 + $0x440] sm:$0xff]  }
  0x62   : > { %5349 = vmatpush3.bf16.msra.mxu0 %v5924_v40  ;;  %v284_v40 = vcombine.high %v210_v37, %v210_v37  ;;  %v6020_v37 = vld [vmem:[%s6357_s26 + $0x5d0] sm:$0xff]  }
  0x63   : > { %5350 = vmatprep.subr.bf16.mxu0 %v5927_v43  ;;  %5371 = vmatpush3.bf16.msra.mxu1 %v5926_v42  ;;  %v299_v42 = vcombine.high %v291_v38, %v291_v38 }
  0x64   : > { %5372 = vmatprep.subr.bf16.mxu1 %v5929_v45  ;;  %v298_v43 = vrot.slane %v284_v40, %v6395_v35  ;;  %v507_v45 = vpack.c.bf16 %v291_v38, %v291_v38  ;;  %v6021_v38 = vld [vmem:[%s6357_s26 + $0x590] sm:$0xff]   ;;  %v6023_v40 = vld [vmem:[%s6357_s26 + $0x518] sm:$0xff]  }
  0x66   : > { %5351 = vmatpush3.bf16.msra.mxu0 %v5928_v44  ;;  %v5978_v44 = vld [vmem:[%s6357_s26 + $0x400] sm:$0xff]  }
  0x67   : > { %5352 = vmatprep.subr.bf16.mxu0 %v5931_v47  ;;  %5373 = vmatpush3.bf16.msra.mxu1 %v5930_v46  ;;  %v5979_v46 = vld [vmem:[%s6357_s26 + $0x4c0] sm:$0xff]   ;;  %v508_v47 = vpack.c.bf16 %v299_v42, %v299_v42  ;;  %v6025_v42 = vld [vmem:[%s6357_s26 + $0x598] sm:$0xff]  }
  0x68   : > { %5374 = vmatprep.subr.bf16.mxu1 %v5933_v49  ;;  %v5980_v49 = vld [vmem:[%s6357_s26 + $0x480] sm:$0xff]  }
  0x6a   : > { %5353 = vmatpush3.bf16.msra.mxu0 %v5932_v48  ;;  %v300_v48 = vcombine.high %v298_v43, %v298_v43 }
  0x6b   : > { %5354 = vmatprep.subr.bf16.mxu0 %v5935_v51  ;;  %5375 = vmatpush3.bf16.msra.mxu1 %v5934_v50  ;;  %v509_v50 = vpack.c.bf16 %v298_v43, %v298_v43  ;;  %v5981_v51 = vld [vmem:[%s6357_s26 + $0x448] sm:$0xff]   ;;  %v6026_v43 = vld [vmem:[%s6357_s26 + $0x560] sm:$0xff]  }
  0x6c   : > { %5376 = vmatprep.subr.bf16.mxu1 %v5937_v53  ;;  %v5982_v53 = vld [vmem:[%s6357_s26 + $0x408] sm:$0xff]  }
  0x6e   : > { %5355 = vmatpush3.bf16.msra.mxu0 %v5936_v52  ;;  %v510_v52 = vpack.c.bf16 %v300_v48, %v300_v48  ;;  %v6031_v48 = vld [vmem:[%s6357_s26 + $0x528] sm:$0xff]  }
  0x6f   : > { %5356 = vmatprep.subr.bf16.mxu0 %v5939_v55  ;;  %5377 = vmatpush3.bf16.msra.mxu1 %v5938_v54  ;;  %v5983_v54 = vld [vmem:[%s6357_s26 + $0x4c8] sm:$0xff]  }
  0x70   : > { %5378 = vmatprep.subr.bf16.mxu1 %v5941_v58  ;;  %v5984_v55 = vld [vmem:[%s6357_s26 + $0x488] sm:$0xff]   ;;  %v5987_v58 = vld [vmem:[%s6357_s26 + $0x4d0] sm:$0xff]  }
  0x72   : > { %5357 = vmatpush3.bf16.msra.mxu0 %v5940_v56  ;;  %v5985_v56 = vld [vmem:[%s6357_s26 + $0x450] sm:$0xff]  }
  0x73   : > { %5386 = vmatprep.subr.bf16.mxu0 %v5943_v63  ;;  %5379 = vmatpush3.bf16.msra.mxu1 %v5942_v61  ;;  %v5990_v61 = vld [vmem:[%s6357_s26 + $0x418] sm:$0xff]  }
  0x74   : > { %5408 = vmatprep.subr.bf16.mxu1 %v5946_v5  ;;  %v5992_v63 = vld [vmem:[%s6357_s26 + $0x498] sm:$0xff]   ;;  %v5998_v5 = vld [vmem:[%s6357_s26 + $0x428] sm:$0xff]  }
  0x75   : > { %3938 = vmatmul.mubr.bf16.vlgmr.msra.gmra.mrb[8].mxu0 %v503_v3  ;;  %v5996_v3 = vld [vmem:[%s6357_s26 + $0x4a0] sm:$0xff]  }
  0x76   : > { %5387 = vmatpush3.bf16.msra.mxu0 %v5945_v1  ;;  %3978 = vmatmul.mubr.bf16.vlgmr.msra.gmra.mrb[8].mxu1 %v505_v8  ;;  %v5994_v1 = vld [vmem:[%s6357_s26 + $0x420] sm:$0xff]   ;;  %v6001_v8 = vld [vmem:[%s6357_s26 + $0x470] sm:$0xff]  }
  0x77   : > { %5388 = vmatprep.subr.bf16.mxu0 %v5948_v9  ;;  %5409 = vmatpush3.bf16.msra.mxu1 %v5947_v6  ;;  %v5999_v6 = vld [vmem:[%s6357_s26 + $0x4e8] sm:$0xff]   ;;  %v6002_v9 = vld [vmem:[%s6357_s26 + $0x430] sm:$0xff]  }
  0x78   : > { %5410 = vmatprep.subr.bf16.mxu1 %v5950_v11  ;;  %4017 = vmatprep.mubr.bf16.mxu0 %v508_v47  ;;  %v6004_v11 = vld [vmem:[%s6357_s26 + $0x4b0] sm:$0xff]   ;;  %v6030_v47 = vld [vmem:[%s6357_s26 + $0x568] sm:$0xff]  }
  0x79   : > { %4057 = vmatprep.mubr.bf16.mxu1 %v510_v52  ;;  %v6035_v52 = vld [vmem:[%s6357_s26 + $0x530] sm:$0xff]  }
  0x7a   : > { %5389 = vmatpush3.bf16.msra.mxu0 %v5949_v10  ;;  %v6003_v10 = vld [vmem:[%s6357_s26 + $0x4f0] sm:$0xff]  }
  0x7b   : > { %5390 = vmatprep.subr.bf16.mxu0 %v5952_v13  ;;  %5411 = vmatpush3.bf16.msra.mxu1 %v5951_v12  ;;  %v6005_v12 = vld [vmem:[%s6357_s26 + $0x478] sm:$0xff]  }
  0x7c   : > { %5412 = vmatprep.subr.bf16.mxu1 %v5954_v15  ;;  %v6006_v13 = vld [vmem:[%s6357_s26 + $0x438] sm:$0xff]   ;;  %v211_v15 = vld [vmem:[%s6393_s3 + $0x20] sm:$0xff] }
  0x7e   : > { %5391 = vmatpush3.bf16.msra.mxu0 %v5953_v14  ;;  %v6007_v14 = vld [vmem:[%s6357_s26 + $0x4f8] sm:$0xff]  }
  0x7f   : > { %5392 = vmatprep.subr.bf16.mxu0 %v5956_v17  ;;  %5413 = vmatpush3.bf16.msra.mxu1 %v5955_v16  ;;  %v308_v16 = vrot.slane %v211_v15, %v6395_v35  ;;  %v6008_v17 = vld [vmem:[%s6357_s26 + $0x4b8] sm:$0xff]  }
  0x80   : > { %5414 = vmatprep.subr.bf16.mxu1 %v5958_v19  ;;  %v6009_v19 = vld [vmem:[%s6357_s26 + $0x540] sm:$0xff]  }
  0x82   : > { %5393 = vmatpush3.bf16.msra.mxu0 %v5957_v18  ;;  %v301_v18 = vcombine.high %v211_v15, %v211_v15  ;;  %v6053_v15 = vld [vmem:[%s6357_s26 + $0x6d0] sm:$0xff]  }
  0x83   : > { %5394 = vmatprep.subr.bf16.mxu0 %v5960_v21  ;;  %5415 = vmatpush3.bf16.msra.mxu1 %v5959_v20  ;;  %v316_v20 = vcombine.high %v308_v16, %v308_v16 }
  0x84   : > { %5416 = vmatprep.subr.bf16.mxu1 %v5962_v23  ;;  %v315_v21 = vrot.slane %v301_v18, %v6395_v35  ;;  %v511_v23 = vpack.c.bf16 %v308_v16, %v308_v16  ;;  %v6054_v16 = vld [vmem:[%s6357_s26 + $0x690] sm:$0xff]   ;;  %v6056_v18 = vld [vmem:[%s6357_s26 + $0x618] sm:$0xff]  }
  0x86   : > { %5395 = vmatpush3.bf16.msra.mxu0 %v5961_v22  ;;  %v6011_v22 = vld [vmem:[%s6357_s26 + $0x500] sm:$0xff]  }
  0x87   : > { %5396 = vmatprep.subr.bf16.mxu0 %v5964_v25  ;;  %5417 = vmatpush3.bf16.msra.mxu1 %v5963_v24  ;;  %v6012_v24 = vld [vmem:[%s6357_s26 + $0x5c0] sm:$0xff]   ;;  %v512_v25 = vpack.c.bf16 %v316_v20, %v316_v20  ;;  %v6058_v20 = vld [vmem:[%s6357_s26 + $0x698] sm:$0xff]  }
  0x88   : > { %5418 = vmatprep.subr.bf16.mxu1 %v5966_v27  ;;  %v6013_v27 = vld [vmem:[%s6357_s26 + $0x580] sm:$0xff]  }
  0x8a   : > { %5397 = vmatpush3.bf16.msra.mxu0 %v5965_v26  ;;  %v317_v26 = vcombine.high %v315_v21, %v315_v21 }
  0x8b   : > { %5398 = vmatprep.subr.bf16.mxu0 %v5968_v29  ;;  %5419 = vmatpush3.bf16.msra.mxu1 %v5967_v28  ;;  %v513_v28 = vpack.c.bf16 %v315_v21, %v315_v21  ;;  %v6014_v29 = vld [vmem:[%s6357_s26 + $0x548] sm:$0xff]   ;;  %v6059_v21 = vld [vmem:[%s6357_s26 + $0x660] sm:$0xff]  }
  0x8c   : > { %5420 = vmatprep.subr.bf16.mxu1 %v5970_v31  ;;  %v6015_v31 = vld [vmem:[%s6357_s26 + $0x508] sm:$0xff]  }
  0x8e   : > { %5399 = vmatpush3.bf16.msra.mxu0 %v5969_v30  ;;  %v514_v30 = vpack.c.bf16 %v317_v26, %v317_v26  ;;  %v6064_v26 = vld [vmem:[%s6357_s26 + $0x628] sm:$0xff]  }
  0x8f   : > { %5400 = vmatprep.subr.bf16.mxu0 %v5972_v33  ;;  %5421 = vmatpush3.bf16.msra.mxu1 %v5971_v32  ;;  %v6016_v32 = vld [vmem:[%s6357_s26 + $0x5c8] sm:$0xff]  }
  0x90   : > { %5422 = vmatprep.subr.bf16.mxu1 %v5974_v36  ;;  %v6017_v33 = vld [vmem:[%s6357_s26 + $0x588] sm:$0xff]   ;;  %v6019_v36 = vld [vmem:[%s6357_s26 + $0x510] sm:$0xff]  }
  0x92   : > { %5401 = vmatpush3.bf16.msra.mxu0 %v5973_v34  ;;  %v6018_v34 = vld [vmem:[%s6357_s26 + $0x550] sm:$0xff]  }
  0x93   : > { %5430 = vmatprep.subr.bf16.mxu0 %v5976_v41  ;;  %5423 = vmatpush3.bf16.msra.mxu1 %v5975_v39  ;;  %v6022_v39 = vld [vmem:[%s6357_s26 + $0x558] sm:$0xff]  }
  0x94   : > { %5452 = vmatprep.subr.bf16.mxu1 %v5979_v46  ;;  %v6024_v41 = vld [vmem:[%s6357_s26 + $0x5d8] sm:$0xff]   ;;  %v6029_v46 = vld [vmem:[%s6357_s26 + $0x5a0] sm:$0xff]  }
  0x95   : > { %4018 = vmatmul.mubr.bf16.vlgmr.msra.gmra.mrb[12].mxu0 %v507_v45  ;;  %v6028_v45 = vld [vmem:[%s6357_s26 + $0x5e0] sm:$0xff]  }
  0x96   : > { %5431 = vmatpush3.bf16.msra.mxu0 %v5978_v44  ;;  %4058 = vmatmul.mubr.bf16.vlgmr.msra.gmra.mrb[12].mxu1 %v509_v50  ;;  %v6027_v44 = vld [vmem:[%s6357_s26 + $0x520] sm:$0xff]   ;;  %v6033_v50 = vld [vmem:[%s6357_s26 + $0x5a8] sm:$0xff]  }
  0x97   : > { %5432 = vmatprep.subr.bf16.mxu0 %v5981_v51  ;;  %5453 = vmatpush3.bf16.msra.mxu1 %v5980_v49  ;;  %v6032_v49 = vld [vmem:[%s6357_s26 + $0x5e8] sm:$0xff]   ;;  %v6034_v51 = vld [vmem:[%s6357_s26 + $0x570] sm:$0xff]  }
  0x98   : > { %5454 = vmatprep.subr.bf16.mxu1 %v5983_v54  ;;  %4097 = vmatprep.mubr.bf16.mxu0 %v512_v25  ;;  %v6037_v54 = vld [vmem:[%s6357_s26 + $0x5b0] sm:$0xff]   ;;  %v6063_v25 = vld [vmem:[%s6357_s26 + $0x668] sm:$0xff]  }
  0x99   : > { %4137 = vmatprep.mubr.bf16.mxu1 %v514_v30  ;;  %v6068_v30 = vld [vmem:[%s6357_s26 + $0x630] sm:$0xff]  }
  0x9a   : > { %5433 = vmatpush3.bf16.msra.mxu0 %v5982_v53  ;;  %v6036_v53 = vld [vmem:[%s6357_s26 + $0x5f0] sm:$0xff]  }
  0x9b   : > { %5434 = vmatprep.subr.bf16.mxu0 %v5985_v56  ;;  %5455 = vmatpush3.bf16.msra.mxu1 %v5984_v55  ;;  %v6038_v55 = vld [vmem:[%s6357_s26 + $0x578] sm:$0xff]  }
  0x9c   : > { %5456 = vmatprep.subr.bf16.mxu1 %v5987_v58  ;;  %v6039_v56 = vld [vmem:[%s6357_s26 + $0x538] sm:$0xff]   ;;  %v212_v58 = vld [vmem:[%s6393_s3 + $0x28] sm:$0xff] }
  0x9e   : > { %5435 = vmatpush3.bf16.msra.mxu0 %v5986_v57  ;;  %v6040_v57 = vld [vmem:[%s6357_s26 + $0x5f8] sm:$0xff]  }
  0x9f   : > { %5436 = vmatprep.subr.bf16.mxu0 %v5989_v60  ;;  %5457 = vmatpush3.bf16.msra.mxu1 %v5988_v59  ;;  %v325_v59 = vrot.slane %v212_v58, %v6395_v35  ;;  %v6041_v60 = vld [vmem:[%s6357_s26 + $0x5b8] sm:$0xff]  }
  0xa0   : > { %5458 = vmatprep.subr.bf16.mxu1 %v5991_v62  ;;  %v6042_v62 = vld [vmem:[%s6357_s26 + $0x640] sm:$0xff]  }
  0xa2   : > { %5437 = vmatpush3.bf16.msra.mxu0 %v5990_v61  ;;  %v318_v61 = vcombine.high %v212_v58, %v212_v58  ;;  %v6085_v58 = vld [vmem:[%s6357_s26 + $0x710] sm:$0xff]  }
  0xa3   : > { %5438 = vmatprep.subr.bf16.mxu0 %v5993_v0  ;;  %5459 = vmatpush3.bf16.msra.mxu1 %v5992_v63  ;;  %v333_v63 = vcombine.high %v325_v59, %v325_v59 }
  0xa4   : > { %5460 = vmatprep.subr.bf16.mxu1 %v5995_v2  ;;  %v332_v0 = vrot.slane %v318_v61, %v6395_v35  ;;  %v515_v2 = vpack.c.bf16 %v325_v59, %v325_v59  ;;  %v6088_v59 = vld [vmem:[%s6357_s26 + $0x758] sm:$0xff]  }
  0xa5   : > { %v6090_v61 = vld [vmem:[%s6357_s26 + $0x7d8] sm:$0xff]  }
  0xa6   : > { %5439 = vmatpush3.bf16.msra.mxu0 %v5994_v1  ;;  %v6044_v1 = vld [vmem:[%s6357_s26 + $0x600] sm:$0xff]  }
  0xa7   : > { %5440 = vmatprep.subr.bf16.mxu0 %v5997_v4  ;;  %5461 = vmatpush3.bf16.msra.mxu1 %v5996_v3  ;;  %v6045_v3 = vld [vmem:[%s6357_s26 + $0x6c0] sm:$0xff]   ;;  %v516_v4 = vpack.c.bf16 %v333_v63, %v333_v63 }
  0xa8   : > { %5462 = vmatprep.subr.bf16.mxu1 %v5999_v6  ;;  %v6046_v6 = vld [vmem:[%s6357_s26 + $0x680] sm:$0xff]  }
  0xa9   : > { %v6092_v63 = vld [vmem:[%s6357_s26 + $0x760] sm:$0xff]  }
  0xaa   : > { %5441 = vmatpush3.bf16.msra.mxu0 %v5998_v5  ;;  %v334_v5 = vcombine.high %v332_v0, %v332_v0 }
  0xab   : > { %5442 = vmatprep.subr.bf16.mxu0 %v6001_v8  ;;  %5463 = vmatpush3.bf16.msra.mxu1 %v6000_v7  ;;  %v517_v7 = vpack.c.bf16 %v332_v0, %v332_v0  ;;  %v6047_v8 = vld [vmem:[%s6357_s26 + $0x648] sm:$0xff]   ;;  %v6091_v0 = vld [vmem:[%s6357_s26 + $0x798] sm:$0xff]  }
  0xac   : > { %5464 = vmatprep.subr.bf16.mxu1 %v6003_v10  ;;  %v6048_v10 = vld [vmem:[%s6357_s26 + $0x608] sm:$0xff]  }
  0xae   : > { %5443 = vmatpush3.bf16.msra.mxu0 %v6002_v9  ;;  %v518_v9 = vpack.c.bf16 %v334_v5, %v334_v5  ;;  %v6098_v5 = vld [vmem:[%s6357_s26 + $0x7e8] sm:$0xff]  }
  0xaf   : > { %5444 = vmatprep.subr.bf16.mxu0 %v6005_v12  ;;  %5465 = vmatpush3.bf16.msra.mxu1 %v6004_v11  ;;  %v6049_v11 = vld [vmem:[%s6357_s26 + $0x6c8] sm:$0xff]  }
  0xb0   : > { %5466 = vmatprep.subr.bf16.mxu1 %v6007_v14  ;;  %v6050_v12 = vld [vmem:[%s6357_s26 + $0x688] sm:$0xff]   ;;  %v6052_v14 = vld [vmem:[%s6357_s26 + $0x610] sm:$0xff]  }
  0xb2   : > { %5445 = vmatpush3.bf16.msra.mxu0 %v6006_v13  ;;  %v6051_v13 = vld [vmem:[%s6357_s26 + $0x650] sm:$0xff]  }
  0xb3   : > { %5474 = vmatprep.subr.bf16.mxu0 %v6009_v19  ;;  %5467 = vmatpush3.bf16.msra.mxu1 %v6008_v17  ;;  %v6055_v17 = vld [vmem:[%s6357_s26 + $0x658] sm:$0xff]  }
  0xb4   : > { %5496 = vmatprep.subr.bf16.mxu1 %v6012_v24  ;;  %v6057_v19 = vld [vmem:[%s6357_s26 + $0x6d8] sm:$0xff]   ;;  %v6062_v24 = vld [vmem:[%s6357_s26 + $0x6a0] sm:$0xff]  }
  0xb5   : > { %4098 = vmatmul.mubr.bf16.vlgmr.msra.gmra.mrb[16].mxu0 %v511_v23  ;;  %v6061_v23 = vld [vmem:[%s6357_s26 + $0x6e0] sm:$0xff]  }
  0xb6   : > { %5475 = vmatpush3.bf16.msra.mxu0 %v6011_v22  ;;  %4138 = vmatmul.mubr.bf16.vlgmr.msra.gmra.mrb[16].mxu1 %v513_v28  ;;  %v6060_v22 = vld [vmem:[%s6357_s26 + $0x620] sm:$0xff]   ;;  %v6066_v28 = vld [vmem:[%s6357_s26 + $0x6a8] sm:$0xff]  }
  0xb7   : > { %5476 = vmatprep.subr.bf16.mxu0 %v6014_v29  ;;  %5497 = vmatpush3.bf16.msra.mxu1 %v6013_v27  ;;  %v6065_v27 = vld [vmem:[%s6357_s26 + $0x6e8] sm:$0xff]   ;;  %v6067_v29 = vld [vmem:[%s6357_s26 + $0x670] sm:$0xff]  }
  0xb8   : > { %5498 = vmatprep.subr.bf16.mxu1 %v6016_v32  ;;  %4177 = vmatprep.mubr.bf16.mxu0 %v516_v4  ;;  %v6070_v32 = vld [vmem:[%s6357_s26 + $0x6b0] sm:$0xff]   ;;  %v6095_v4 = vld [vmem:[%s6357_s26 + $0x7a0] sm:$0xff]  }
  0xb9   : > { %4217 = vmatprep.mubr.bf16.mxu1 %v518_v9 }
  0xba   : > { %5477 = vmatpush3.bf16.msra.mxu0 %v6015_v31  ;;  %v6069_v31 = vld [vmem:[%s6357_s26 + $0x6f0] sm:$0xff]  }
  0xbb   : > { %5478 = vmatprep.subr.bf16.mxu0 %v6018_v34  ;;  %5499 = vmatpush3.bf16.msra.mxu1 %v6017_v33  ;;  %v6071_v33 = vld [vmem:[%s6357_s26 + $0x678] sm:$0xff]  }
  0xbc   : > { %5500 = vmatprep.subr.bf16.mxu1 %v6020_v37  ;;  %v6072_v34 = vld [vmem:[%s6357_s26 + $0x638] sm:$0xff]   ;;  %v213_v37 = vld [vmem:[%s6393_s3 + $0x30] sm:$0xff] }
  0xbe   : > { %5479 = vmatpush3.bf16.msra.mxu0 %v6019_v36  ;;  %v6073_v36 = vld [vmem:[%s6357_s26 + $0x6f8] sm:$0xff]  }
  0xbf   : > { %5480 = vmatprep.subr.bf16.mxu0 %v6022_v39  ;;  %5501 = vmatpush3.bf16.msra.mxu1 %v6021_v38  ;;  %v342_v38 = vrot.slane %v213_v37, %v6395_v35  ;;  %v6074_v39 = vld [vmem:[%s6357_s26 + $0x6b8] sm:$0xff]  }
  0xc0   : > { %5502 = vmatprep.subr.bf16.mxu1 %v6024_v41  ;;  %v6075_v41 = vld [vmem:[%s6357_s26 + $0x740] sm:$0xff]  }
  0xc2   : > { %5481 = vmatpush3.bf16.msra.mxu0 %v6023_v40  ;;  %v335_v40 = vcombine.high %v213_v37, %v213_v37 }
  0xc3   : > { %5482 = vmatprep.subr.bf16.mxu0 %v6026_v43  ;;  %5503 = vmatpush3.bf16.msra.mxu1 %v6025_v42  ;;  %v350_v42 = vcombine.high %v342_v38, %v342_v38 }
  0xc4   : > { %5504 = vmatprep.subr.bf16.mxu1 %v6028_v45  ;;  %v349_v43 = vrot.slane %v335_v40, %v6395_v35  ;;  %v6078_v45 = vld [vmem:[%s6357_s26 + $0x7c0] sm:$0xff]  }
  0xc6   : > { %5483 = vmatpush3.bf16.msra.mxu0 %v6027_v44  ;;  %v519_v44 = vpack.c.bf16 %v342_v38, %v342_v38 }
  0xc7   : > { %5484 = vmatprep.subr.bf16.mxu0 %v6030_v47  ;;  %5505 = vmatpush3.bf16.msra.mxu1 %v6029_v46  ;;  %v520_v46 = vpack.c.bf16 %v350_v42, %v350_v42  ;;  %v351_v47 = vcombine.high %v349_v43, %v349_v43 }
  0xc8   : > { %5506 = vmatprep.subr.bf16.mxu1 %v6032_v49  ;;  %v521_v49 = vpack.c.bf16 %v349_v43, %v349_v43  ;;  %v6114_v43 = vld [vmem:[%s6357_s26 + $0x808] sm:$0xff]  }
  0xca   : > { %5485 = vmatpush3.bf16.msra.mxu0 %v6031_v48  ;;  %v6077_v48 = vld [vmem:[%s6357_s26 + $0x700] sm:$0xff]  }
  0xcb   : > { %5486 = vmatprep.subr.bf16.mxu0 %v6034_v51  ;;  %5507 = vmatpush3.bf16.msra.mxu1 %v6033_v50  ;;  %v6080_v50 = vld [vmem:[%s6357_s26 + $0x748] sm:$0xff]   ;;  %v522_v51 = vpack.c.bf16 %v351_v47, %v351_v47  ;;  %v6118_v47 = vld [vmem:[%s6357_s26 + $0x810] sm:$0xff]  }
  0xcc   : > { %5508 = vmatprep.subr.bf16.mxu1 %v6036_v53  ;;  %v6082_v53 = vld [vmem:[%s6357_s26 + $0x7c8] sm:$0xff]  }
  0xce   : > { %5487 = vmatpush3.bf16.msra.mxu0 %v6035_v52  ;;  %v6079_v52 = vld [vmem:[%s6357_s26 + $0x780] sm:$0xff]  }
  0xcf   : > { %5488 = vmatprep.subr.bf16.mxu0 %v6038_v55  ;;  %5509 = vmatpush3.bf16.msra.mxu1 %v6037_v54  ;;  %v6081_v54 = vld [vmem:[%s6357_s26 + $0x708] sm:$0xff]   ;;  %v6084_v55 = vld [vmem:[%s6357_s26 + $0x750] sm:$0xff]  }
  0xd0   : > { %5510 = vmatprep.subr.bf16.mxu1 %v6040_v57  ;;  %v6086_v57 = vld [vmem:[%s6357_s26 + $0x7d0] sm:$0xff]  }
  0xd2   : > { %5489 = vmatpush3.bf16.msra.mxu0 %v6039_v56  ;;  %v6083_v56 = vld [vmem:[%s6357_s26 + $0x788] sm:$0xff]  }
  0xd3   : > { %5518 = vmatprep.subr.bf16.mxu0 %v6042_v62  ;;  %5511 = vmatpush3.bf16.msra.mxu1 %v6041_v60  ;;  %v6087_v60 = vld [vmem:[%s6357_s26 + $0x790] sm:$0xff]   ;;  %v6089_v62 = vld [vmem:[%s6357_s26 + $0x718] sm:$0xff]  }
  0xd4   : > { %5540 = vmatprep.subr.bf16.mxu1 %v6045_v3  ;;  %v6096_v3 = vld [vmem:[%s6357_s26 + $0x768] sm:$0xff]  }
  0xd5   : > { %4178 = vmatmul.mubr.bf16.vlgmr.msra.gmra.mrb[20].mxu0 %v515_v2  ;;  %v6093_v2 = vld [vmem:[%s6357_s26 + $0x720] sm:$0xff]  }
  0xd6   : > { %5519 = vmatpush3.bf16.msra.mxu0 %v6044_v1  ;;  %4218 = vmatmul.mubr.bf16.vlgmr.msra.gmra.mrb[20].mxu1 %v517_v7  ;;  %v6094_v1 = vld [vmem:[%s6357_s26 + $0x7e0] sm:$0xff]  }
  0xd7   : > { %5520 = vmatprep.subr.bf16.mxu0 %v6047_v8  ;;  %5541 = vmatpush3.bf16.msra.mxu1 %v6046_v6  ;;  %v6097_v6 = vld [vmem:[%s6357_s26 + $0x728] sm:$0xff]   ;;  %v6100_v8 = vld [vmem:[%s6357_s26 + $0x770] sm:$0xff]  }
  0xd8   : > { %5542 = vmatprep.subr.bf16.mxu1 %v6049_v11  ;;  %4257 = vmatprep.mubr.bf16.mxu0 %v520_v46  ;;  %v6117_v46 = vld [vmem:[%s6357_s26 + $0x850] sm:$0xff]  }
  0xd9   : > { %4297 = vmatprep.mubr.bf16.mxu1 %v522_v51  ;;  %v6122_v51 = vld [vmem:[%s6357_s26 + $0x818] sm:$0xff]  }
  0xda   : > { %5521 = vmatpush3.bf16.msra.mxu0 %v6048_v10  ;;  %v6099_v10 = vld [vmem:[%s6357_s26 + $0x7a8] sm:$0xff]  }
  0xdb   : > { %5522 = vmatprep.subr.bf16.mxu0 %v6051_v13  ;;  %5543 = vmatpush3.bf16.msra.mxu1 %v6050_v12 }
  0xdc   : > { %5544 = vmatprep.subr.bf16.mxu1 %v6053_v15  ;;  %v6102_v15 = vld [vmem:[%s6357_s26 + $0x7f0] sm:$0xff]  }
  0xde   : > { %5523 = vmatpush3.bf16.msra.mxu0 %v6052_v14  ;;  %v6101_v14 = vld [vmem:[%s6357_s26 + $0x730] sm:$0xff]  }
  0xdf   : > { %5524 = vmatprep.subr.bf16.mxu0 %v6055_v17  ;;  %5545 = vmatpush3.bf16.msra.mxu1 %v6054_v16 }
  0xe0   : > { %5546 = vmatprep.subr.bf16.mxu1 %v6057_v19 }
  0xe2   : > { %5525 = vmatpush3.bf16.msra.mxu0 %v6056_v18  ;;  %v6103_v18 = vld [vmem:[%s6357_s26 + $0x7b0] sm:$0xff]  }
  0xe3   : > { %5526 = vmatprep.subr.bf16.mxu0 %v6059_v21  ;;  %5547 = vmatpush3.bf16.msra.mxu1 %v6058_v20  ;;  %v6104_v20 = vld [vmem:[%s6357_s26 + $0x778] sm:$0xff]  }
  0xe4   : > { %5548 = vmatprep.subr.bf16.mxu1 %v6061_v23 }
  0xe6   : > { %5527 = vmatpush3.bf16.msra.mxu0 %v6060_v22  ;;  %v6105_v22 = vld [vmem:[%s6357_s26 + $0x738] sm:$0xff]  }
  0xe7   : > { %5528 = vmatprep.subr.bf16.mxu0 %v6063_v25  ;;  %5549 = vmatpush3.bf16.msra.mxu1 %v6062_v24  ;;  %v6106_v25 = vld [vmem:[%s6357_s26 + $0x7f8] sm:$0xff]  }
  0xe8   : > { %5550 = vmatprep.subr.bf16.mxu1 %v6065_v27 }
  0xea   : > { %5529 = vmatpush3.bf16.msra.mxu0 %v6064_v26  ;;  %v214_v26 = vld [vmem:[%s6393_s3 + $0x38] sm:$0xff] }
  0xeb   : > { %5530 = vmatprep.subr.bf16.mxu0 %v6067_v29  ;;  %5551 = vmatpush3.bf16.msra.mxu1 %v6066_v28  ;;  %v359_v27 = vrot.slane %v214_v26, %v6395_v35  ;;  %v6107_v28 = vld [vmem:[%s6357_s26 + $0x7b8] sm:$0xff]   ;;  %v352_v29 = vcombine.high %v214_v26, %v214_v26  ;;  %v6144_v26 = vld [vmem:[%s6357_s26 + $0x9c0] sm:$0xff]  }
  0xec   : > { %5552 = vmatprep.subr.bf16.mxu1 %v6069_v31 }
  0xed   : > { %v367_v31 = vcombine.high %v359_v27, %v359_v27 }
  0xee   : > { %5531 = vmatpush3.bf16.msra.mxu0 %v6068_v30  ;;  %v6108_v30 = vld [vmem:[%s6357_s26 + $0x840] sm:$0xff]  }
  0xef   : > { %5532 = vmatprep.subr.bf16.mxu0 %v6071_v33  ;;  %5553 = vmatpush3.bf16.msra.mxu1 %v6070_v32  ;;  %v366_v32 = vrot.slane %v352_v29, %v6395_v35  ;;  %v6110_v33 = vld [vmem:[%s6357_s26 + $0x800] sm:$0xff]   ;;  %v524_v37 = vpack.c.bf16 %v367_v31, %v367_v31  ;;  %v6146_v31 = vld [vmem:[%s6357_s26 + $0x948] sm:$0xff]  }
  0xf0   : > { %5554 = vmatprep.subr.bf16.mxu1 %v6073_v36  ;;  %v6111_v36 = vld [vmem:[%s6357_s26 + $0x8c0] sm:$0xff]  }
  0xf1   : > { %v368_v38 = vcombine.high %v366_v32, %v366_v32  ;;  %v525_v40 = vpack.c.bf16 %v366_v32, %v366_v32  ;;  %v6145_v29 = vld [vmem:[%s6357_s26 + $0x980] sm:$0xff]  }
  0xf2   : > { %5533 = vmatpush3.bf16.msra.mxu0 %v6072_v34  ;;  %v523_v34 = vpack.c.bf16 %v359_v27, %v359_v27 }
  0xf3   : > { %5562 = vmatprep.subr.bf16.mxu0 %v6075_v41  ;;  %5555 = vmatpush3.bf16.msra.mxu1 %v6074_v39  ;;  %v6112_v39 = vld [vmem:[%s6357_s26 + $0x880] sm:$0xff]   ;;  %v6113_v41 = vld [vmem:[%s6357_s26 + $0x848] sm:$0xff]   ;;  %v526_v42 = vpack.c.bf16 %v368_v38, %v368_v38  ;;  %v6151_v38 = vld [vmem:[%s6357_s26 + $0x910] sm:$0xff]  }
  0xf4   : > { %5584 = vmatprep.subr.bf16.mxu1 %v6078_v45  ;;  %v6116_v45 = vld [vmem:[%s6357_s26 + $0x888] sm:$0xff]  }
  0xf5   : > { %4258 = vmatmul.mubr.bf16.vlgmr.msra.gmra.mrb[24].mxu0 %v519_v44  ;;  %v6115_v44 = vld [vmem:[%s6357_s26 + $0x8c8] sm:$0xff]  }
  0xf6   : > { %5563 = vmatpush3.bf16.msra.mxu0 %v6077_v48  ;;  %4298 = vmatmul.mubr.bf16.vlgmr.msra.gmra.mrb[24].mxu1 %v521_v49  ;;  %v6119_v48 = vld [vmem:[%s6357_s26 + $0x8d0] sm:$0xff]  }
  0xf7   : > { %5564 = vmatprep.subr.bf16.mxu0 %v6080_v50  ;;  %5585 = vmatpush3.bf16.msra.mxu1 %v6079_v52  ;;  %v6120_v49 = vld [vmem:[%s6357_s26 + $0x890] sm:$0xff]   ;;  %v6121_v50 = vld [vmem:[%s6357_s26 + $0x858] sm:$0xff]  }
  0xf8   : > { %5586 = vmatprep.subr.bf16.mxu1 %v6082_v53  ;;  %4337 = vmatprep.mubr.bf16.mxu0 %v524_v37  ;;  %v6123_v52 = vld [vmem:[%s6357_s26 + $0x8d8] sm:$0xff]   ;;  %v6150_v37 = vld [vmem:[%s6357_s26 + $0x950] sm:$0xff]  }
  0xf9   : > { %4377 = vmatprep.mubr.bf16.mxu1 %v526_v42  ;;  %v6124_v53 = vld [vmem:[%s6357_s26 + $0x898] sm:$0xff]  }
  0xfa   : > { %5565 = vmatpush3.bf16.msra.mxu0 %v6081_v54  ;;  %v6125_v54 = vld [vmem:[%s6357_s26 + $0x860] sm:$0xff]   ;;  %v6155_v42 = vld [vmem:[%s6357_s26 + $0x918] sm:$0xff]  }
  0xfb   : > { %5566 = vmatprep.subr.bf16.mxu0 %v6084_v55  ;;  %5587 = vmatpush3.bf16.msra.mxu1 %v6083_v56  ;;  %v6126_v55 = vld [vmem:[%s6357_s26 + $0x820] sm:$0xff]  }
  0xfc   : > { %5588 = vmatprep.subr.bf16.mxu1 %v6086_v57  ;;  %v6127_v56 = vld [vmem:[%s6357_s26 + $0x8e0] sm:$0xff]  }
  0xfd   : > { %v6128_v57 = vld [vmem:[%s6357_s26 + $0x8a0] sm:$0xff]  }
  0xfe   : > { %5567 = vmatpush3.bf16.msra.mxu0 %v6085_v58  ;;  %v6129_v58 = vld [vmem:[%s6357_s26 + $0x868] sm:$0xff]  }
  0xff   : > { %5568 = vmatprep.subr.bf16.mxu0 %v6088_v59  ;;  %5589 = vmatpush3.bf16.msra.mxu1 %v6087_v60  ;;  %v6130_v59 = vld [vmem:[%s6357_s26 + $0x828] sm:$0xff]  }
 0x100   : > { %5590 = vmatprep.subr.bf16.mxu1 %v6090_v61  ;;  %v6131_v60 = vld [vmem:[%s6357_s26 + $0x8e8] sm:$0xff]  }
 0x101   : > { %v6132_v61 = vld [vmem:[%s6357_s26 + $0x8a8] sm:$0xff]  }
 0x102   : > { %5569 = vmatpush3.bf16.msra.mxu0 %v6089_v62 }
 0x103   : > { %5570 = vmatprep.subr.bf16.mxu0 %v6092_v63  ;;  %5591 = vmatpush3.bf16.msra.mxu1 %v6091_v0  ;;  %v6133_v63 = vld [vmem:[%s6357_s26 + $0x870] sm:$0xff]  }
 0x104   : > { %5592 = vmatprep.subr.bf16.mxu1 %v6094_v1  ;;  %v6134_v1 = vld [vmem:[%s6357_s26 + $0x830] sm:$0xff]  }
 0x106   : > { %5571 = vmatpush3.bf16.msra.mxu0 %v6093_v2 }
 0x107   : > { %5572 = vmatprep.subr.bf16.mxu0 %v6096_v3  ;;  %5593 = vmatpush3.bf16.msra.mxu1 %v6095_v4 }
 0x108   : > { %v5270_v7 = vpop.f32.mrb[0].mxu0  ;;  %5594 = vmatprep.subr.bf16.mxu1 %v6098_v5 }
 0x109   : > { %v5271_v9 = vpop.f32.mrb[1].mxu0  ;;  %v5292_v11 = vpop.f32.mrb[0].mxu1 }
 0x10a   : > { %v5272_v12 = vadd.f32 %v5271_v9, %v5270_v7  ;;  %v5273_v13 = vpop.f32.mrb[2].mxu0  ;;  %v5293_v16 = vpop.f32.mrb[1].mxu1  ;;  %5573 = vmatpush3.bf16.msra.mxu0 %v6097_v6  ;;  %v6135_v7 = vld [vmem:[%s6357_s26 + $0x8f0] sm:$0xff]  }
 0x10b   : > { %v5274_v17 = vpop.f32.mrb[3].mxu0  ;;  %v5294_v19 = vadd.f32 %v5293_v16, %v5292_v11  ;;  %5574 = vmatprep.subr.bf16.mxu0 %v6100_v8  ;;  %v5295_v21 = vpop.f32.mrb[2].mxu1  ;;  %5595 = vmatpush3.bf16.msra.mxu1 %v6099_v10  ;;  %v6136_v8 = vld [vmem:[%s6357_s26 + $0x8b0] sm:$0xff]   ;;  %v6137_v11 = vld [vmem:[%s6357_s26 + $0x878] sm:$0xff]  }
 0x10c   : > { %v5296_v23 = vpop.f32.mrb[3].mxu1  ;;  %5596 = vmatprep.subr.bf16.mxu1 %v6102_v15  ;;  %v6139_v16 = vld [vmem:[%s6357_s26 + $0x8f8] sm:$0xff]   ;;  %v215_v17 = vld [vmem:[%s6393_s3 + $0x40] sm:$0xff] }
 0x10d   : > { %v6642_v24 = vadd.f32 %v5294_v19, %v5272_v12  ;;  %v6140_v19 = vld [vmem:[%s6357_s26 + $0x8b8] sm:$0xff]   ;;  %v6141_v21 = vld [vmem:[%s6357_s26 + $0x940] sm:$0xff]  }
 0x10e   : > { %5575 = vmatpush3.bf16.msra.mxu0 %v6101_v14  ;;  %v6138_v14 = vld [vmem:[%s6357_s26 + $0x838] sm:$0xff]  }
 0x10f   : > { %5576 = vmatprep.subr.bf16.mxu0 %v6104_v20  ;;  %5597 = vmatpush3.bf16.msra.mxu1 %v6103_v18  ;;  %v376_v18 = vrot.slane %v215_v17, %v6395_v35  ;;  %v369_v20 = vcombine.high %v215_v17, %v215_v17 }
 0x110   : > { %5598 = vmatprep.subr.bf16.mxu1 %v6106_v25 }
 0x111   : > { %v383_v23 = vrot.slane %v369_v20, %v6395_v35  ;;  %v527_v25 = vpack.c.bf16 %v376_v18, %v376_v18 }
 0x112   : > { %5577 = vmatpush3.bf16.msra.mxu0 %v6105_v22  ;;  %v384_v22 = vcombine.high %v376_v18, %v376_v18 }
 0x113   : > { %5606 = vmatprep.subr.bf16.mxu0 %v6108_v30  ;;  %5599 = vmatpush3.bf16.msra.mxu1 %v6107_v28  ;;  %v385_v28 = vcombine.high %v383_v23, %v383_v23  ;;  %v529_v30 = vpack.c.bf16 %v383_v23, %v383_v23  ;;  %v6178_v23 = vld [vmem:[%s6357_s26 + $0xa80] sm:$0xff]  }
 0x114   : > { %5628 = vmatprep.subr.bf16.mxu1 %v6111_v36  ;;  %v528_v27 = vpack.c.bf16 %v384_v22, %v384_v22  ;;  %v6149_v36 = vld [vmem:[%s6357_s26 + $0x988] sm:$0xff]  }
 0x115   : > { %4338 = vmatmul.mubr.bf16.vlgmr.msra.gmra.mrb[28].mxu0 %v523_v34  ;;  %v530_v32 = vpack.c.bf16 %v385_v28, %v385_v28  ;;  %v6148_v34 = vld [vmem:[%s6357_s26 + $0x9c8] sm:$0xff]   ;;  %v6185_v28 = vld [vmem:[%s6357_s26 + $0xad0] sm:$0xff]  }
 0x116   : > { %5607 = vmatpush3.bf16.msra.mxu0 %v6110_v33  ;;  %4378 = vmatmul.mubr.bf16.vlgmr.msra.gmra.mrb[28].mxu1 %v525_v40  ;;  %v6147_v33 = vld [vmem:[%s6357_s26 + $0x908] sm:$0xff]   ;;  %v6153_v40 = vld [vmem:[%s6357_s26 + $0x990] sm:$0xff]  }
 0x117   : > { %5608 = vmatprep.subr.bf16.mxu0 %v6113_v41  ;;  %5629 = vmatpush3.bf16.msra.mxu1 %v6112_v39  ;;  %v6152_v39 = vld [vmem:[%s6357_s26 + $0x9d0] sm:$0xff]   ;;  %v6154_v41 = vld [vmem:[%s6357_s26 + $0x958] sm:$0xff]  }
 0x118   : > { %5630 = vmatprep.subr.bf16.mxu1 %v6115_v44  ;;  %4417 = vmatprep.mubr.bf16.mxu0 %v528_v27  ;;  %v6157_v44 = vld [vmem:[%s6357_s26 + $0x998] sm:$0xff]   ;;  %v6182_v27 = vld [vmem:[%s6357_s26 + $0xa88] sm:$0xff]  }
 0x119   : > { %4457 = vmatprep.mubr.bf16.mxu1 %v530_v32  ;;  %v6189_v32 = vld [vmem:[%s6357_s26 + $0xad8] sm:$0xff]  }
 0x11a   : > { %5609 = vmatpush3.bf16.msra.mxu0 %v6114_v43  ;;  %v6156_v43 = vld [vmem:[%s6357_s26 + $0x9d8] sm:$0xff]  }
 0x11b   : > { %5610 = vmatprep.subr.bf16.mxu0 %v6117_v46  ;;  %5631 = vmatpush3.bf16.msra.mxu1 %v6116_v45  ;;  %v6158_v45 = vld [vmem:[%s6357_s26 + $0x960] sm:$0xff]  }
 0x11c   : > { %5632 = vmatprep.subr.bf16.mxu1 %v6119_v48  ;;  %v6159_v46 = vld [vmem:[%s6357_s26 + $0x920] sm:$0xff]  }
 0x11d   : > { %v6161_v48 = vld [vmem:[%s6357_s26 + $0x9a0] sm:$0xff]  }
 0x11e   : > { %5611 = vmatpush3.bf16.msra.mxu0 %v6118_v47  ;;  %v6160_v47 = vld [vmem:[%s6357_s26 + $0x9e0] sm:$0xff]  }
 0x11f   : > { %5612 = vmatprep.subr.bf16.mxu0 %v6121_v50  ;;  %5633 = vmatpush3.bf16.msra.mxu1 %v6120_v49  ;;  %v6162_v49 = vld [vmem:[%s6357_s26 + $0x968] sm:$0xff]  }
 0x120   : > { %5634 = vmatprep.subr.bf16.mxu1 %v6123_v52  ;;  %v6163_v50 = vld [vmem:[%s6357_s26 + $0x928] sm:$0xff]  }
 0x122   : > { %5613 = vmatpush3.bf16.msra.mxu0 %v6122_v51  ;;  %v6164_v51 = vld [vmem:[%s6357_s26 + $0x9e8] sm:$0xff]  }
 0x123   : > { %5614 = vmatprep.subr.bf16.mxu0 %v6125_v54  ;;  %5635 = vmatpush3.bf16.msra.mxu1 %v6124_v53  ;;  %v6165_v53 = vld [vmem:[%s6357_s26 + $0x9a8] sm:$0xff]  }
 0x124   : > { %5636 = vmatprep.subr.bf16.mxu1 %v6127_v56 }
 0x126   : > { %5615 = vmatpush3.bf16.msra.mxu0 %v6126_v55  ;;  %v6166_v55 = vld [vmem:[%s6357_s26 + $0x970] sm:$0xff]  }
 0x127   : > { %5616 = vmatprep.subr.bf16.mxu0 %v6129_v58  ;;  %5637 = vmatpush3.bf16.msra.mxu1 %v6128_v57 }
 0x128   : > { %v5314_v62 = vpop.f32.mrb[4].mxu0  ;;  %5638 = vmatprep.subr.bf16.mxu1 %v6131_v60  ;;  %v6168_v60 = vld [vmem:[%s6357_s26 + $0x9f0] sm:$0xff]  }
 0x129   : > { %v5315_v0 = vpop.f32.mrb[5].mxu0  ;;  %v5336_v4 = vpop.f32.mrb[4].mxu1 }
 0x12a   : > { %v5316_v2 = vadd.f32 %v5315_v0, %v5314_v62  ;;  %v5317_v3 = vpop.f32.mrb[6].mxu0  ;;  %5617 = vmatpush3.bf16.msra.mxu0 %v6130_v59  ;;  %v5337_v6 = vpop.f32.mrb[5].mxu1  ;;  %v6167_v59 = vld [vmem:[%s6357_s26 + $0x930] sm:$0xff]  }
 0x12b   : > { %v5318_v5 = vpop.f32.mrb[7].mxu0  ;;  %v5338_v10 = vadd.f32 %v5337_v6, %v5336_v4  ;;  %5618 = vmatprep.subr.bf16.mxu0 %v6133_v63  ;;  %5639 = vmatpush3.bf16.msra.mxu1 %v6132_v61  ;;  %v5339_v12 = vpop.f32.mrb[6].mxu1  ;;  %v6170_v3 = vld [vmem:[%s6357_s26 + $0x978] sm:$0xff]  }
 0x12c   : > { %v3860_v9 = vadd.f32 %v5316_v2, %v6642_v24  ;;  %5640 = vmatprep.subr.bf16.mxu1 %v6135_v7  ;;  %v5340_v15 = vpop.f32.mrb[7].mxu1  ;;  %v6143_v24 = vld [vmem:[%s6357_s26 + $0x900] sm:$0xff]   ;;  %v6171_v6 = vld [vmem:[%s6357_s26 + $0x938] sm:$0xff]  }
 0x12d   : > { %v6172_v7 = vld [vmem:[%s6357_s26 + $0x9f8] sm:$0xff]   ;;  %v6174_v12 = vld [vmem:[%s6357_s26 + $0xa40] sm:$0xff]  }
 0x12e   : > { %v6679_v13 = vadd.f32 %v5338_v10, %v3860_v9  ;;  %5619 = vmatpush3.bf16.msra.mxu0 %v6134_v1  ;;  %v6169_v1 = vld [vmem:[%s6357_s26 + $0x9b0] sm:$0xff]   ;;  %v6173_v10 = vld [vmem:[%s6357_s26 + $0x9b8] sm:$0xff]  }
 0x12f   : > { %5620 = vmatprep.subr.bf16.mxu0 %v6137_v11  ;;  %5641 = vmatpush3.bf16.msra.mxu1 %v6136_v8  ;;  %v216_v8 = vld [vmem:[%s6393_s3 + $0x48] sm:$0xff] }
 0x130   : > { %5642 = vmatprep.subr.bf16.mxu1 %v6139_v16  ;;  %v393_v9 = vrot.slane %v216_v8, %v6395_v35  ;;  %v386_v11 = vcombine.high %v216_v8, %v216_v8  ;;  %v6177_v16 = vld [vmem:[%s6357_s26 + $0xac0] sm:$0xff]  }
 0x131   : > { %v6210_v8 = vld [vmem:[%s6357_s26 + $0xbc0] sm:$0xff]  }
 0x132   : > { %5621 = vmatpush3.bf16.msra.mxu0 %v6138_v14  ;;  %v400_v14 = vrot.slane %v386_v11, %v6395_v35  ;;  %v531_v15 = vpack.c.bf16 %v393_v9, %v393_v9  ;;  %v6211_v11 = vld [vmem:[%s6357_s26 + $0xb80] sm:$0xff]  }
 0x133   : > { %5650 = vmatprep.subr.bf16.mxu0 %v6141_v21  ;;  %5643 = vmatpush3.bf16.msra.mxu1 %v6140_v19  ;;  %v6176_v19 = vld [vmem:[%s6357_s26 + $0xa00] sm:$0xff]   ;;  %v6179_v21 = vld [vmem:[%s6357_s26 + $0xa48] sm:$0xff]  }
 0x134   : > { %5672 = vmatprep.subr.bf16.mxu1 %v6144_v26  ;;  %v402_v18 = vcombine.high %v400_v14, %v400_v14  ;;  %v533_v20 = vpack.c.bf16 %v400_v14, %v400_v14  ;;  %v6183_v26 = vld [vmem:[%s6357_s26 + $0xa50] sm:$0xff]  }
 0x135   : > { %4418 = vmatmul.mubr.bf16.vlgmr.msra.gmra.mrb[32].mxu0 %v527_v25  ;;  %v6180_v25 = vld [vmem:[%s6357_s26 + $0xa08] sm:$0xff]  }
 0x136   : > { %5651 = vmatpush3.bf16.msra.mxu0 %v6143_v24  ;;  %4458 = vmatmul.mubr.bf16.vlgmr.msra.gmra.mrb[32].mxu1 %v529_v30  ;;  %v534_v22 = vpack.c.bf16 %v402_v18, %v402_v18  ;;  %v6181_v24 = vld [vmem:[%s6357_s26 + $0xac8] sm:$0xff]   ;;  %v6187_v30 = vld [vmem:[%s6357_s26 + $0xa58] sm:$0xff]   ;;  %v6216_v18 = vld [vmem:[%s6357_s26 + $0xb50] sm:$0xff]  }
 0x137   : > { %5652 = vmatprep.subr.bf16.mxu0 %v6146_v31  ;;  %5673 = vmatpush3.bf16.msra.mxu1 %v6145_v29  ;;  %v6184_v29 = vld [vmem:[%s6357_s26 + $0xa10] sm:$0xff]  }
 0x138   : > { %5674 = vmatprep.subr.bf16.mxu1 %v6148_v34  ;;  %4537 = vmatprep.mubr.bf16.mxu1 %v534_v22  ;;  %v6186_v31 = vld [vmem:[%s6357_s26 + $0xa90] sm:$0xff]   ;;  %v6191_v34 = vld [vmem:[%s6357_s26 + $0xa60] sm:$0xff]   ;;  %v6220_v22 = vld [vmem:[%s6357_s26 + $0xb58] sm:$0xff]  }
 0x13a   : > { %5653 = vmatpush3.bf16.msra.mxu0 %v6147_v33  ;;  %v6188_v33 = vld [vmem:[%s6357_s26 + $0xa18] sm:$0xff]  }
 0x13b   : > { %5654 = vmatprep.subr.bf16.mxu0 %v6150_v37  ;;  %5675 = vmatpush3.bf16.msra.mxu1 %v6149_v36  ;;  %v6190_v36 = vld [vmem:[%s6357_s26 + $0xa98] sm:$0xff]   ;;  %v6193_v37 = vld [vmem:[%s6357_s26 + $0xae0] sm:$0xff]  }
 0x13c   : > { %5676 = vmatprep.subr.bf16.mxu1 %v6152_v39  ;;  %v6195_v39 = vld [vmem:[%s6357_s26 + $0xa68] sm:$0xff]  }
 0x13e   : > { %5655 = vmatpush3.bf16.msra.mxu0 %v6151_v38  ;;  %v6192_v38 = vld [vmem:[%s6357_s26 + $0xa20] sm:$0xff]  }
 0x13f   : > { %5656 = vmatprep.subr.bf16.mxu0 %v6154_v41  ;;  %5677 = vmatpush3.bf16.msra.mxu1 %v6153_v40  ;;  %v6194_v40 = vld [vmem:[%s6357_s26 + $0xaa0] sm:$0xff]  }
 0x140   : > { %5678 = vmatprep.subr.bf16.mxu1 %v6156_v43 }
 0x142   : > { %5657 = vmatpush3.bf16.msra.mxu0 %v6155_v42  ;;  %v6197_v42 = vld [vmem:[%s6357_s26 + $0xae8] sm:$0xff]  }
 0x143   : > { %5658 = vmatprep.subr.bf16.mxu0 %v6158_v45  ;;  %5679 = vmatpush3.bf16.msra.mxu1 %v6157_v44  ;;  %v6196_v44 = vld [vmem:[%s6357_s26 + $0xa28] sm:$0xff]  }
 0x144   : > { %5680 = vmatprep.subr.bf16.mxu1 %v6160_v47 }
 0x146   : > { %5659 = vmatpush3.bf16.msra.mxu0 %v6159_v46 }
 0x147   : > { %5660 = vmatprep.subr.bf16.mxu0 %v6162_v49  ;;  %5681 = vmatpush3.bf16.msra.mxu1 %v6161_v48  ;;  %v6198_v48 = vld [vmem:[%s6357_s26 + $0xaa8] sm:$0xff]   ;;  %v6199_v49 = vld [vmem:[%s6357_s26 + $0xa70] sm:$0xff]  }
 0x148   : > { %v5358_v52 = vpop.f32.mrb[8].mxu0  ;;  %5682 = vmatprep.subr.bf16.mxu1 %v6164_v51 }
 0x149   : > { %v5359_v54 = vpop.f32.mrb[9].mxu0  ;;  %v5380_v58 = vpop.f32.mrb[8].mxu1 }
 0x14a   : > { %v5360_v56 = vadd.f32 %v5359_v54, %v5358_v52  ;;  %v5361_v57 = vpop.f32.mrb[10].mxu0  ;;  %v5381_v62 = vpop.f32.mrb[9].mxu1  ;;  %5661 = vmatpush3.bf16.msra.mxu0 %v6163_v50  ;;  %v6200_v52 = vld [vmem:[%s6357_s26 + $0xa30] sm:$0xff]  }
 0x14b   : > { %v5362_v61 = vpop.f32.mrb[11].mxu0  ;;  %v5382_v0 = vadd.f32 %v5381_v62, %v5380_v58  ;;  %v5383_v2 = vpop.f32.mrb[10].mxu1  ;;  %5662 = vmatprep.subr.bf16.mxu0 %v6166_v55  ;;  %5683 = vmatpush3.bf16.msra.mxu1 %v6165_v53  ;;  %v6201_v55 = vld [vmem:[%s6357_s26 + $0xaf0] sm:$0xff]   ;;  %v6205_v62 = vld [vmem:[%s6357_s26 + $0xaf8] sm:$0xff]  }
 0x14c   : > { %v3940_v63 = vadd.f32 %v5360_v56, %v6679_v13  ;;  %v5384_v4 = vpop.f32.mrb[11].mxu1  ;;  %5684 = vmatprep.subr.bf16.mxu1 %v6168_v60  ;;  %v401_v13 = vcombine.high %v393_v9, %v393_v9  ;;  %v6202_v57 = vld [vmem:[%s6357_s26 + $0xab0] sm:$0xff]   ;;  %v6203_v60 = vld [vmem:[%s6357_s26 + $0xa78] sm:$0xff]  }
 0x14d   : > { %v6204_v61 = vld [vmem:[%s6357_s26 + $0xa38] sm:$0xff]  }
 0x14e   : > { %v6717_v5 = vadd.f32 %v5382_v0, %v3940_v63  ;;  %5663 = vmatpush3.bf16.msra.mxu0 %v6167_v59  ;;  %v532_v17 = vpack.c.bf16 %v401_v13, %v401_v13  ;;  %v217_v63 = vld [vmem:[%s6393_s3 + $0x50] sm:$0xff]  ;;  %v6212_v13 = vld [vmem:[%s6357_s26 + $0xb48] sm:$0xff]  }
 0x14f   : > { %5664 = vmatprep.subr.bf16.mxu0 %v6170_v3  ;;  %5685 = vmatpush3.bf16.msra.mxu1 %v6169_v1  ;;  %v410_v0 = vrot.slane %v217_v63, %v6395_v35  ;;  %v6206_v1 = vld [vmem:[%s6357_s26 + $0xab8] sm:$0xff]   ;;  %v403_v2 = vcombine.high %v217_v63, %v217_v63  ;;  %v6207_v3 = vld [vmem:[%s6357_s26 + $0xb40] sm:$0xff]  }
 0x150   : > { %5686 = vmatprep.subr.bf16.mxu1 %v6172_v7  ;;  %4497 = vmatprep.mubr.bf16.mxu0 %v532_v17  ;;  %v6215_v17 = vld [vmem:[%s6357_s26 + $0xb88] sm:$0xff]  }
 0x151   : > { %v418_v4 = vcombine.high %v410_v0, %v410_v0  ;;  %v535_v7 = vpack.c.bf16 %v410_v0, %v410_v0  ;;  %v6242_v0 = vld [vmem:[%s6357_s26 + $0xc00] sm:$0xff]  }
 0x152   : > { %5665 = vmatpush3.bf16.msra.mxu0 %v6171_v6  ;;  %v6209_v6 = vld [vmem:[%s6357_s26 + $0xb00] sm:$0xff]  }
 0x153   : > { %5694 = vmatprep.subr.bf16.mxu0 %v6174_v12  ;;  %5687 = vmatpush3.bf16.msra.mxu1 %v6173_v10  ;;  %v536_v9 = vpack.c.bf16 %v418_v4, %v418_v4  ;;  %v6245_v4 = vld [vmem:[%s6357_s26 + $0xc50] sm:$0xff]  }
 0x154   : > { %5716 = vmatprep.subr.bf16.mxu1 %v6177_v16  ;;  %v6214_v16 = vld [vmem:[%s6357_s26 + $0xbc8] sm:$0xff]  }
 0x155   : > { %4498 = vmatmul.mubr.bf16.vlgmr.msra.gmra.mrb[36].mxu0 %v531_v15  ;;  %v6213_v15 = vld [vmem:[%s6357_s26 + $0xb08] sm:$0xff]  }
 0x156   : > { %5695 = vmatpush3.bf16.msra.mxu0 %v6176_v19  ;;  %4538 = vmatmul.mubr.bf16.vlgmr.msra.gmra.mrb[36].mxu1 %v533_v20  ;;  %v6217_v19 = vld [vmem:[%s6357_s26 + $0xb10] sm:$0xff]  }
 0x157   : > { %5696 = vmatprep.subr.bf16.mxu0 %v6179_v21  ;;  %5717 = vmatpush3.bf16.msra.mxu1 %v6178_v23  ;;  %v6218_v20 = vld [vmem:[%s6357_s26 + $0xbd0] sm:$0xff]   ;;  %v6221_v23 = vld [vmem:[%s6357_s26 + $0xb18] sm:$0xff]  }
 0x158   : > { %5718 = vmatprep.subr.bf16.mxu1 %v6181_v24  ;;  %4577 = vmatprep.mubr.bf16.mxu0 %v536_v9  ;;  %v6219_v21 = vld [vmem:[%s6357_s26 + $0xb90] sm:$0xff]   ;;  %v6222_v24 = vld [vmem:[%s6357_s26 + $0xbd8] sm:$0xff]   ;;  %v4849_v9 = vld.sshfl [vmem:[%s6393_s3 + $0x60] sm:$0x33 pattern:$0x76325410] }
 0x15a   : > { %5697 = vmatpush3.bf16.msra.mxu0 %v6180_v25  ;;  %v6223_v25 = vld [vmem:[%s6357_s26 + $0xb98] sm:$0xff]  }
 0x15b   : > { %5698 = vmatprep.subr.bf16.mxu0 %v6183_v26  ;;  %5719 = vmatpush3.bf16.msra.mxu1 %v6182_v27  ;;  %v6224_v26 = vld [vmem:[%s6357_s26 + $0xb60] sm:$0xff]  }
 0x15c   : > { %5720 = vmatprep.subr.bf16.mxu1 %v6185_v28  ;;  %v6225_v27 = vld [vmem:[%s6357_s26 + $0xb20] sm:$0xff]  }
 0x15d   : > { %v6226_v28 = vld [vmem:[%s6357_s26 + $0xbe0] sm:$0xff]  }
 0x15e   : > { %5699 = vmatpush3.bf16.msra.mxu0 %v6184_v29  ;;  %v6227_v29 = vld [vmem:[%s6357_s26 + $0xba0] sm:$0xff]  }
 0x15f   : > { %5700 = vmatprep.subr.bf16.mxu0 %v6187_v30  ;;  %5721 = vmatpush3.bf16.msra.mxu1 %v6186_v31  ;;  %v6228_v30 = vld [vmem:[%s6357_s26 + $0xb68] sm:$0xff]  }
 0x160   : > { %5722 = vmatprep.subr.bf16.mxu1 %v6189_v32  ;;  %v6229_v31 = vld [vmem:[%s6357_s26 + $0xb28] sm:$0xff]  }
 0x162   : > { %5701 = vmatpush3.bf16.msra.mxu0 %v6188_v33  ;;  %v6230_v33 = vld [vmem:[%s6357_s26 + $0xbe8] sm:$0xff]  }
 0x163   : > { %5702 = vmatprep.subr.bf16.mxu0 %v6191_v34  ;;  %5723 = vmatpush3.bf16.msra.mxu1 %v6190_v36  ;;  %v6231_v36 = vld [vmem:[%s6357_s26 + $0xba8] sm:$0xff]  }
 0x164   : > { %5724 = vmatprep.subr.bf16.mxu1 %v6193_v37 }
 0x166   : > { %5703 = vmatpush3.bf16.msra.mxu0 %v6192_v38 }
 0x167   : > { %5704 = vmatprep.subr.bf16.mxu0 %v6195_v39  ;;  %5725 = vmatpush3.bf16.msra.mxu1 %v6194_v40 }
 0x168   : > { %v5402_v41 = vpop.f32.mrb[12].mxu0  ;;  %5726 = vmatprep.subr.bf16.mxu1 %v6197_v42  ;;  %v6232_v42 = vld [vmem:[%s6357_s26 + $0xb70] sm:$0xff]  }
 0x169   : > { %v5403_v43 = vpop.f32.mrb[13].mxu0  ;;  %v5424_v47 = vpop.f32.mrb[12].mxu1 }
 0x16a   : > { %v5404_v45 = vadd.f32 %v5403_v43, %v5402_v41  ;;  %v5405_v46 = vpop.f32.mrb[14].mxu0  ;;  %v5425_v51 = vpop.f32.mrb[13].mxu1  ;;  %5705 = vmatpush3.bf16.msra.mxu0 %v6196_v44  ;;  %v6233_v43 = vld [vmem:[%s6357_s26 + $0xb30] sm:$0xff]  }
 0x16b   : > { %v5406_v50 = vpop.f32.mrb[15].mxu0  ;;  %v5426_v54 = vadd.f32 %v5425_v51, %v5424_v47  ;;  %v5427_v56 = vpop.f32.mrb[14].mxu1  ;;  %5706 = vmatprep.subr.bf16.mxu0 %v6199_v49  ;;  %5727 = vmatpush3.bf16.msra.mxu1 %v6198_v48  ;;  %v6234_v46 = vld [vmem:[%s6357_s26 + $0xbf0] sm:$0xff]   ;;  %v6236_v51 = vld [vmem:[%s6357_s26 + $0xb78] sm:$0xff]  }
 0x16c   : > { %v4020_v53 = vadd.f32 %v5404_v45, %v6717_v5  ;;  %v5428_v58 = vpop.f32.mrb[15].mxu1  ;;  %5728 = vmatprep.subr.bf16.mxu1 %v6201_v55  ;;  %v417_v5 = vrot.slane %v403_v2, %v6395_v35  ;;  %v6235_v49 = vld [vmem:[%s6357_s26 + $0xbb0] sm:$0xff]   ;;  %v6239_v56 = vld [vmem:[%s6357_s26 + $0xbb8] sm:$0xff]   ;;  %v6243_v2 = vld [vmem:[%s6357_s26 + $0xc48] sm:$0xff]  }
 0x16d   : > { %v6240_v58 = vld [vmem:[%s6357_s26 + $0xc40] sm:$0xff]  }
 0x16e   : > { %v6754_v59 = vadd.f32 %v5426_v54, %v4020_v53  ;;  %5707 = vmatpush3.bf16.msra.mxu0 %v6200_v52  ;;  %v419_v10 = vcombine.high %v417_v5, %v417_v5  ;;  %v537_v12 = vpack.c.bf16 %v417_v5, %v417_v5  ;;  %v6237_v52 = vld [vmem:[%s6357_s26 + $0xb38] sm:$0xff]   ;;  %v6246_v5 = vld [vmem:[%s6357_s26 + $0xc10] sm:$0xff]  }
 0x16f   : > { %5708 = vmatprep.subr.bf16.mxu0 %v6203_v60  ;;  %5729 = vmatpush3.bf16.msra.mxu1 %v6202_v57  ;;  %v6238_v53 = vld [vmem:[%s6357_s26 + $0xbf8] sm:$0xff]  }
 0x170   : > { %5730 = vmatprep.subr.bf16.mxu1 %v6205_v62  ;;  %v538_v14 = vpack.c.bf16 %v419_v10, %v419_v10  ;;  %v218_v54 = vld [vmem:[%s6393_s3 + $0x58] sm:$0xff]  ;;  %v444_v10 = vcombine.high %v4849_v9, %v4849_v9 }
 0x171   : > { %v427_v55 = vrot.slane %v218_v54, %v6395_v35  ;;  %v420_v57 = vcombine.high %v218_v54, %v218_v54 }
 0x172   : > { %5709 = vmatpush3.bf16.msra.mxu0 %v6204_v61  ;;  %4617 = vmatprep.mubr.bf16.mxu1 %v538_v14 }
 0x173   : > { %5738 = vmatprep.subr.bf16.mxu0 %v6207_v3  ;;  %5731 = vmatpush3.bf16.msra.mxu1 %v6206_v1  ;;  %v434_v60 = vrot.slane %v420_v57, %v6395_v35  ;;  %v539_v61 = vpack.c.bf16 %v427_v55, %v427_v55  ;;  %v6244_v35 = vld [vmem:[%s6357_s26 + $0xc08] sm:$0xff]  }
 0x174   : > { %5760 = vmatprep.subr.bf16.mxu1 %v6210_v8  ;;  %v6249_v8 = vld [vmem:[%s6357_s26 + $0xc60] sm:$0xff]  }
 0x175   : > { %4578 = vmatmul.mubr.bf16.vlgmr.msra.gmra.mrb[40].mxu0 %v535_v7  ;;  %v436_v63 = vcombine.high %v434_v60, %v434_v60  ;;  %v541_v1 = vpack.c.bf16 %v434_v60, %v434_v60  ;;  %v6248_v7 = vld [vmem:[%s6357_s26 + $0xc18] sm:$0xff]  }
 0x176   : > { %5739 = vmatpush3.bf16.msra.mxu0 %v6209_v6  ;;  %4618 = vmatmul.mubr.bf16.vlgmr.msra.gmra.mrb[40].mxu1 %v537_v12  ;;  %v6247_v6 = vld [vmem:[%s6357_s26 + $0xc58] sm:$0xff]   ;;  %v544_v12 = vpack.c.bf16 %v444_v10, %v444_v10 }
 0x177   : > { %5740 = vmatprep.subr.bf16.mxu0 %v6212_v13  ;;  %5761 = vmatpush3.bf16.msra.mxu1 %v6211_v11  ;;  %v542_v3 = vpack.c.bf16 %v436_v63, %v436_v63  ;;  %v6250_v11 = vld [vmem:[%s6357_s26 + $0xc20] sm:$0xff]   ;;  %v6251_v13 = vld [vmem:[%s6357_s26 + $0xc68] sm:$0xff]  }
 0x178   : > { %5762 = vmatprep.subr.bf16.mxu1 %v6214_v16 }
 0x179   : > { %4697 = vmatprep.mubr.bf16.mxu1 %v542_v3 }
 0x17a   : > { %5741 = vmatpush3.bf16.msra.mxu0 %v6213_v15 }
 0x17b   : > { %5742 = vmatprep.subr.bf16.mxu0 %v6216_v18  ;;  %5763 = vmatpush3.bf16.msra.mxu1 %v6215_v17 }
 0x17c   : > { %5764 = vmatprep.subr.bf16.mxu1 %v6218_v20 }
 0x17e   : > { %5743 = vmatpush3.bf16.msra.mxu0 %v6217_v19  ;;  %v6252_v19 = vld [vmem:[%s6357_s26 + $0xc28] sm:$0xff]  }
 0x17f   : > { %5744 = vmatprep.subr.bf16.mxu0 %v6220_v22  ;;  %5765 = vmatpush3.bf16.msra.mxu1 %v6219_v21  ;;  %v6253_v22 = vld [vmem:[%s6357_s26 + $0xc70] sm:$0xff]  }
 0x180   : > { %5766 = vmatprep.subr.bf16.mxu1 %v6222_v24 }
 0x182   : > { %5745 = vmatpush3.bf16.msra.mxu0 %v6221_v23 }
 0x183   : > { %5746 = vmatprep.subr.bf16.mxu0 %v6224_v26  ;;  %5767 = vmatpush3.bf16.msra.mxu1 %v6223_v25 }
 0x184   : > { %5768 = vmatprep.subr.bf16.mxu1 %v6226_v28  ;;  %v6254_v28 = vld [vmem:[%s6357_s26 + $0xc30] sm:$0xff]  }
 0x186   : > { %5747 = vmatpush3.bf16.msra.mxu0 %v6225_v27 }
 0x187   : > { %5748 = vmatprep.subr.bf16.mxu0 %v6228_v30  ;;  %5769 = vmatpush3.bf16.msra.mxu1 %v6227_v29  ;;  %v6255_v29 = vld [vmem:[%s6357_s26 + $0xc78] sm:$0xff]  }
 0x188   : > { %v5446_v32 = vpop.f32.mrb[16].mxu0  ;;  %5770 = vmatprep.subr.bf16.mxu1 %v6230_v33  ;;  %v6256_v30 = vld [vmem:[%s6357_s26 + $0xc38] sm:$0xff]  }
 0x189   : > { %v5447_v34 = vpop.f32.mrb[17].mxu0  ;;  %v5468_v39 = vpop.f32.mrb[16].mxu1 }
 0x18a   : > { %v5448_v37 = vadd.f32 %v5447_v34, %v5446_v32  ;;  %v5449_v38 = vpop.f32.mrb[18].mxu0  ;;  %v5469_v41 = vpop.f32.mrb[17].mxu1  ;;  %5749 = vmatpush3.bf16.msra.mxu0 %v6229_v31  ;;  %v543_v31 = vpack.c.bf16 %v4849_v9, %v4849_v9 }
 0x18b   : > { %v5450_v40 = vpop.f32.mrb[19].mxu0  ;;  %v5470_v45 = vadd.f32 %v5469_v41, %v5468_v39  ;;  %v5471_v47 = vpop.f32.mrb[18].mxu1  ;;  %5750 = vmatprep.subr.bf16.mxu0 %v6232_v42  ;;  %5771 = vmatpush3.bf16.msra.mxu1 %v6231_v36 }
 0x18c   : > { %v4100_v44 = vadd.f32 %v5448_v37, %v6754_v59  ;;  %v5472_v50 = vpop.f32.mrb[19].mxu1  ;;  %5772 = vmatprep.subr.bf16.mxu1 %v6234_v46  ;;  %v435_v59 = vcombine.high %v427_v55, %v427_v55 }
 0x18e   : > { %v6791_v48 = vadd.f32 %v5470_v45, %v4100_v44  ;;  %5751 = vmatpush3.bf16.msra.mxu0 %v6233_v43  ;;  %v540_v62 = vpack.c.bf16 %v435_v59, %v435_v59 }
 0x18f   : > { %5752 = vmatprep.subr.bf16.mxu0 %v6236_v51  ;;  %5773 = vmatpush3.bf16.msra.mxu1 %v6235_v49 }
 0x190   : > { %5774 = vmatprep.subr.bf16.mxu1 %v6238_v53  ;;  %4657 = vmatprep.mubr.bf16.mxu0 %v540_v62 }
 0x192   : > { %5753 = vmatpush3.bf16.msra.mxu0 %v6237_v52 }
 0x193   : > { %5782 = vmatprep.subr.bf16.mxu0 %v6240_v58  ;;  %5775 = vmatpush3.bf16.msra.mxu1 %v6239_v56 }
 0x195   : > { %4658 = vmatmul.mubr.bf16.vlgmr.msra.gmra.mrb[44].mxu0 %v539_v61 }
 0x196   : > { %5783 = vmatpush3.bf16.msra.mxu0 %v6242_v0  ;;  %4698 = vmatmul.mubr.bf16.vlgmr.msra.gmra.mrb[44].mxu1 %v541_v1 }
 0x197   : > { %5784 = vmatprep.subr.bf16.mxu0 %v6243_v2  ;;  %4737 = vmatprep.mubr.bf16.mxu0 %v544_v12 }
 0x19a   : > { %5785 = vmatpush3.bf16.msra.mxu0 %v6244_v35 }
 0x19b   : > { %5786 = vmatprep.subr.bf16.mxu0 %v6245_v4 }
 0x19e   : > { %5787 = vmatpush3.bf16.msra.mxu0 %v6246_v5 }
 0x19f   : > { %5788 = vmatprep.subr.bf16.mxu0 %v6247_v6 }
 0x1a2   : > { %5789 = vmatpush3.bf16.msra.mxu0 %v6248_v7 }
 0x1a3   : > { %5790 = vmatprep.subr.bf16.mxu0 %v6249_v8 }
 0x1a6   : > { %5791 = vmatpush3.bf16.msra.mxu0 %v6250_v11 }
 0x1a7   : > { %5792 = vmatprep.subr.bf16.mxu0 %v6251_v13 }
 0x1a8   : > { %v5490_v14 = vpop.f32.mrb[20].mxu0 }
 0x1a9   : > { %v5491_v15 = vpop.f32.mrb[21].mxu0  ;;  %v5512_v18 = vpop.f32.mrb[20].mxu1 }
 0x1aa   : > { %v5492_v16 = vadd.f32 %v5491_v15, %v5490_v14  ;;  %v5493_v17 = vpop.f32.mrb[22].mxu0  ;;  %v5513_v21 = vpop.f32.mrb[21].mxu1  ;;  %5793 = vmatpush3.bf16.msra.mxu0 %v6252_v19 }
 0x1ab   : > { %v5494_v20 = vpop.f32.mrb[23].mxu0  ;;  %v5514_v24 = vadd.f32 %v5513_v21, %v5512_v18  ;;  %v5515_v25 = vpop.f32.mrb[22].mxu1  ;;  %5794 = vmatprep.subr.bf16.mxu0 %v6253_v22 }
 0x1ac   : > { %v4180_v23 = vadd.f32 %v5492_v16, %v6791_v48  ;;  %v5516_v26 = vpop.f32.mrb[23].mxu1 }
 0x1ae   : > { %v4220_v27 = vadd.f32 %v5514_v24, %v4180_v23  ;;  %5795 = vmatpush3.bf16.msra.mxu0 %v6254_v28 }
 0x1af   : > { %5796 = vmatprep.subr.bf16.mxu0 %v6255_v29 }
 0x1b2   : > { %5797 = vmatpush3.bf16.msra.mxu0 %v6256_v30 }
 0x1b5   : > { %4738 = vmatmul.mubr.bf16.vlgmr.msra.gmra.mrb[48].mxu0 %v543_v31 }
 0x1c8   : > { %v5534_v32 = vpop.f32.mrb[24].mxu0 }
 0x1c9   : > { %v5535_v33 = vpop.f32.mrb[25].mxu0  ;;  %v5556_v37 = vpop.f32.mrb[24].mxu1 }
 0x1ca   : > { %v5536_v34 = vadd.f32 %v5535_v33, %v5534_v32  ;;  %v5537_v36 = vpop.f32.mrb[26].mxu0  ;;  %v5557_v39 = vpop.f32.mrb[25].mxu1 }
 0x1cb   : > { %v5538_v38 = vpop.f32.mrb[27].mxu0  ;;  %v5558_v41 = vadd.f32 %v5557_v39, %v5556_v37  ;;  %v5559_v42 = vpop.f32.mrb[26].mxu1 }
 0x1cc   : > { %v4260_v40 = vadd.f32 %v5536_v34, %v4220_v27  ;;  %v5560_v43 = vpop.f32.mrb[27].mxu1 }
 0x1ce   : > { %v4300_v44 = vadd.f32 %v5558_v41, %v4260_v40 }
 0x1e8   : > { %v5578_v45 = vpop.f32.mrb[28].mxu0 }
 0x1e9   : > { %v5579_v46 = vpop.f32.mrb[29].mxu0  ;;  %v5600_v49 = vpop.f32.mrb[28].mxu1 }
 0x1ea   : > { %v5580_v47 = vadd.f32 %v5579_v46, %v5578_v45  ;;  %v5581_v48 = vpop.f32.mrb[30].mxu0  ;;  %v5601_v51 = vpop.f32.mrb[29].mxu1 }
 0x1eb   : > { %v5582_v50 = vpop.f32.mrb[31].mxu0  ;;  %v5602_v53 = vadd.f32 %v5601_v51, %v5600_v49  ;;  %v5603_v54 = vpop.f32.mrb[30].mxu1 }
 0x1ec   : > { %v4340_v52 = vadd.f32 %v5580_v47, %v4300_v44  ;;  %v5604_v55 = vpop.f32.mrb[31].mxu1 }
 0x1ee   : > { %v4380_v56 = vadd.f32 %v5602_v53, %v4340_v52 }
 0x208   : > { %v5622_v57 = vpop.f32.mrb[32].mxu0 }
 0x209   : > { %v5623_v58 = vpop.f32.mrb[33].mxu0  ;;  %v5644_v61 = vpop.f32.mrb[32].mxu1 }
 0x20a   : > { %v5624_v59 = vadd.f32 %v5623_v58, %v5622_v57  ;;  %v5625_v60 = vpop.f32.mrb[34].mxu0  ;;  %v5645_v63 = vpop.f32.mrb[33].mxu1 }
 0x20b   : > { %v5626_v62 = vpop.f32.mrb[35].mxu0  ;;  %v5646_v1 = vadd.f32 %v5645_v63, %v5644_v61  ;;  %v5647_v2 = vpop.f32.mrb[34].mxu1 }
 0x20c   : > { %v4420_v0 = vadd.f32 %v5624_v59, %v4380_v56  ;;  %v5648_v3 = vpop.f32.mrb[35].mxu1 }
 0x20e   : > { %v4460_v35 = vadd.f32 %v5646_v1, %v4420_v0 }
 0x228   : > { %v5666_v4 = vpop.f32.mrb[36].mxu0 }
 0x229   : > { %v5667_v5 = vpop.f32.mrb[37].mxu0  ;;  %v5688_v8 = vpop.f32.mrb[36].mxu1 }
 0x22a   : > { %v5668_v6 = vadd.f32 %v5667_v5, %v5666_v4  ;;  %v5669_v7 = vpop.f32.mrb[38].mxu0  ;;  %v5689_v10 = vpop.f32.mrb[37].mxu1 }
 0x22b   : > { %v5670_v9 = vpop.f32.mrb[39].mxu0  ;;  %v5690_v12 = vadd.f32 %v5689_v10, %v5688_v8  ;;  %v5691_v13 = vpop.f32.mrb[38].mxu1 }
 0x22c   : > { %v4500_v11 = vadd.f32 %v5668_v6, %v4460_v35  ;;  %v5692_v14 = vpop.f32.mrb[39].mxu1 }
 0x22e   : > { %v4540_v15 = vadd.f32 %v5690_v12, %v4500_v11 }
 0x248   : > { %v5710_v16 = vpop.f32.mrb[40].mxu0 }
 0x249   : > { %v5711_v17 = vpop.f32.mrb[41].mxu0  ;;  %v5732_v20 = vpop.f32.mrb[40].mxu1 }
 0x24a   : > { %v5712_v18 = vadd.f32 %v5711_v17, %v5710_v16  ;;  %v5713_v19 = vpop.f32.mrb[42].mxu0  ;;  %v5733_v22 = vpop.f32.mrb[41].mxu1 }
 0x24b   : > { %v5714_v21 = vpop.f32.mrb[43].mxu0  ;;  %v5734_v24 = vadd.f32 %v5733_v22, %v5732_v20  ;;  %v5735_v25 = vpop.f32.mrb[42].mxu1 }
 0x24c   : > { %v4580_v23 = vadd.f32 %v5712_v18, %v4540_v15  ;;  %v5736_v26 = vpop.f32.mrb[43].mxu1 }
 0x24e   : > { %v4620_v27 = vadd.f32 %v5734_v24, %v4580_v23 }
 0x268   : > { %v5754_v28 = vpop.f32.mrb[44].mxu0 }
 0x269   : > { %v5755_v29 = vpop.f32.mrb[45].mxu0  ;;  %v5776_v32 = vpop.f32.mrb[44].mxu1 }
 0x26a   : > { %v5756_v30 = vadd.f32 %v5755_v29, %v5754_v28  ;;  %v5757_v31 = vpop.f32.mrb[46].mxu0  ;;  %v5777_v34 = vpop.f32.mrb[45].mxu1 }
 0x26b   : > { %v5758_v33 = vpop.f32.mrb[47].mxu0  ;;  %v5778_v37 = vadd.f32 %v5777_v34, %v5776_v32  ;;  %v5779_v38 = vpop.f32.mrb[46].mxu1 }
 0x26c   : > { %v4660_v36 = vadd.f32 %v5756_v30, %v4620_v27  ;;  %v5780_v39 = vpop.f32.mrb[47].mxu1 }
 0x26e   : > { %v4700_v40 = vadd.f32 %v5778_v37, %v4660_v36 }
 0x286   : > { %4748 = sbr.rel (%p5250_p8) target bundleno = 655 (0x28f), region = 32 }
 0x288   : > { %v5798_v41 = vpop.f32.mrb[48].mxu0 }
 0x289   : > { %v5799_v42 = vpop.f32.mrb[49].mxu0 }
 0x28a   : > { %v5800_v43 = vadd.f32 %v5799_v42, %v5798_v41  ;;  %v5801_v44 = vpop.f32.mrb[50].mxu0 }
 0x28b   : > { %v5802_v45 = vpop.f32.mrb[51].mxu0 }
 0x28c   : > { %v4740_v46 = vadd.f32 %v5800_v43, %v4700_v40 }
 0x28e   : > { %4750 = vst.msk [vmem:[%s6352_s22] sm:$0x3] %vm4749_vm0, %v4740_v46 }
 0x28f PF: > { %p5251_p9 = scmp.le.s32.totalorder %s6279_s9, 0 }
 0x290   : > { %vm4757_vm1 = vcmask (!%p5251_p9), 517120  }
 0x291   : > { %4754 = sbr.rel (%p5251_p9) target bundleno = 665 (0x299), region = 36 }
 0x295   : > { %v4755_v47 = vld [vmem:[%s6352_s22] sm:$0x3] (!%p5251_p9) }
 0x296   : > { %v4756_v48 = vadd.f32 (!%p5251_p9), %v4755_v47, %v4740_v46 }
 0x298   : > { %4758 = vst.msk [vmem:[%s6352_s22] sm:$0x3] %vm4757_vm1, %v4756_v48 }
 0x299 PF: > { %s12_s13 = sadd.s32 1, %s6295_s13   ;;  %s6842_s9 = smov %s6287_s11 }
 0x29a   : > { %p9_p10 = scmp.ge.s32.totalorder %s12_s13, 10   ;;  %s6843_s10 = smov %s6291_s12 }
 0x29b   : > { %s6844_s11 = smov %s6847_s14  ;;  %s6845_s12 = smov %s6851_s15 }
 0x29c   :  { %11 = sbr.rel (!%p9_p10) target bundleno = 3 (0x3), region = 69 }

// kernel: audio_classifier_forward.3
= control target key start
LH: loop header
LB: loop body
LE: loop exit
PB: predicated region body
PF: predicated region fallthrough
CT: control target
= control target key end

     0   :  { %13 = vsyncpa [#allocation3], 0  ;;  %s18711_s0 = inlined_call_operand.vmem [shape: f32[2,9,800], index: 0, kind: input, shape index: {}]   ;;  %s18712_s1 = inlined_call_operand.hbm [shape: f32[16,9], index: 1, kind: input, shape index: {}]   ;;  %s18713_s2 = inlined_call_operand.vmem [shape: f32[16,1], index: 2, kind: input, shape index: {}]   ;;  %s18714_s3 = inlined_call_operand.vmem [shape: f32[9,32,16], index: 3, kind: input, shape index: {}]   ;;  %s18715_s4 = inlined_call_operand.vmem [shape: f32[32,1], index: 4, kind: input, shape index: {}]   ;;  %s18716_s5 = inlined_call_operand.vmem [shape: f32[9,64,32], index: 5, kind: input, shape index: {}]   ;;  %s18717_s6 = inlined_call_operand.vmem [shape: f32[64,1], index: 6, kind: input, shape index: {}]   ;;  %s18718_s7 = inlined_call_operand.hbm [shape: f32[9,800], index: 7, kind: input, shape index: {}]   ;;  %s18719_s8 = inlined_call_operand.vmem [shape: f32[2,64,800], index: 8, kind: output, shape index: {}]  }
   0x1   :  { %14 = vsyncpa [#allocation5], 0  ;;  %s13675_s27 = smov 0  }
   0x2 LB: > { %s13613_s28 = smov [#allocation2]   ;;  %s13681_s30 = sadd.s32 4294967295, %s13611_s27   ;;  %s13611_s27 = sphi %s13675_s27, %s20_s27  }
   0x3   : > { %s236_s29 = sshll.u32 %s13613_s28, 4  ;;  %p11338_p0 = scmp.ge.s32.totalorder %s13611_s27, 1  ;;  %s237_s29 = int_to_ptr.vmem [resolvable:$true] %s236_s29 }
   0x4   : > { %p224_p1 = scmp.lt.s32.totalorder %s13611_s27, 3  ;;  %p18720_p3 = scmp.eq.s32.totalorder %s13681_s30, 0 }
   0x5   : > { %s13614_s10 = smov [#allocation4]   ;;  %s13541_s15 = scalar_lea.hbm %s18712_s1, 256 }
   0x6   : > { %p13685_p2 = pnand %p11338_p0, %p224_p1  ;;  %s264_s11 = sshll.u32 %s13614_s10, 4  ;;  %s13698_s11 = int_to_ptr.vmem [resolvable:$true] %s264_s11 }
   0x7   : > { %p13542_p6 = scmp.ne.s32.totalorder %s18712_s1, %s13541_s15  ;;  %p13548_p10 = scmp.lt.u32.totalorder %s13541_s15, %s18712_s1 }
   0x8   : > { %s18918_s9 = scalar_select %p13685_p2, 1, 0 }
   0x9   : > { %p13473_p4 = pneg %p13685_p2 }
   0xb   : > { %p13694_p5 = pnand %p18720_p3, %p13473_p4 }
   0xd   : > { %p13543_p7 = pneg %p13694_p5 }
   0xf   : > { %p13544_p8 = pnand %p13543_p7, %p13542_p6 }
  0x11   : > { %p13545_p9 = pneg %p13544_p8 }
  0x13   : > { %p13550_p11 = pnand %p13548_p10, %p13545_p9 }
  0x15   : > { %13553 = shalt.err (!%p13550_p11)
}
  0x16   : > { %s13554_s20 = scalar_lea.vmem %s237_s29, 256  ;;  %p13562_p1 = scmp.lt.s32.totalorder %s237_s29, %s237_s29 }
  0x17   : > { %p13555_p12 = scmp.ne.s32.totalorder %s237_s29, %s13554_s20  ;;  %p13563_p4 = scmp.lt.s32.totalorder %s13554_s20, %s13554_s20 }
  0x19   : > { %p13557_p13 = pnand %p13555_p12, %p13543_p7  ;;  %p13564_p3 = por %p13563_p4, %p13562_p1 }
  0x1b   : > { %p13558_p0 = pneg %p13557_p13 }
  0x1d   : > { %p13565_p2 = pnand %p13564_p3, %p13558_p0 }
  0x1f   : > { %13568 = shalt.err (!%p13565_p2)
}
  0x20   : > { %s13615_s21 = smov 128   ;;  %s13616_s22 = smov 8  }
  0x21   : > { %13476 = dma.hbm_to_vmem [thread:$0]  (!%p13694_p5), %s18712_s1, 256, %s237_s29, [#allocation3], %s13615_s21, %s13615_s21, %s13616_s22  }
  0x22   : > { %s13569_s28 = scalar_lea.hbm %s18718_s7, 1792 }
  0x23   : > { %p13570_p6 = scmp.ne.s32.totalorder %s18718_s7, %s13569_s28  ;;  %p13576_p8 = scmp.lt.u32.totalorder %s13569_s28, %s18718_s7 }
  0x25   : > { %p13572_p2 = pnand %p13570_p6, %p13543_p7 }
  0x27   : > { %p13573_p3 = pneg %p13572_p2 }
  0x29   : > { %p13578_p9 = pnand %p13576_p8, %p13573_p3 }
  0x2b   : > { %13581 = shalt.err (!%p13578_p9)
}
  0x2c   : > { %s13582_s29 = scalar_lea.vmem %s13698_s11, 1792  ;;  %p13590_p13 = scmp.lt.s32.totalorder %s13698_s11, %s13698_s11 }
  0x2d   : > { %p13583_p10 = scmp.ne.s32.totalorder %s13698_s11, %s13582_s29  ;;  %p13591_p0 = scmp.lt.s32.totalorder %s13582_s29, %s13582_s29 }
  0x2f   : > { %p13585_p11 = pnand %p13583_p10, %p13543_p7  ;;  %p13592_p1 = por %p13591_p0, %p13590_p13 }
  0x31   : > { %p13586_p12 = pneg %p13585_p11 }
  0x33   : > { %p13593_p4 = pnand %p13592_p1, %p13586_p12 }
  0x35   : > { %13596 = shalt.err (!%p13593_p4)
}
  0x36   : > { %s13617_s16 = smov 896   ;;  %s13618_s17 = smov 56  }
  0x37   : > { %13479 = dma.hbm_to_vmem [thread:$0]  (!%p13694_p5), %s18718_s7, 1792, %s13698_s11, [#allocation5], %s13617_s16, %s13617_s16, %s13618_s17  }
  0x38   : > { %p18920_p6 = scmp.ne.s32.totalorder %s18918_s9, 0 }
  0x3a   : > { %288 = sbr.rel (%p18920_p6) target bundleno = 1813 (0x715), region = 52 }
  0x41   : > { %p18921_p7 = scmp.eq.s32.totalorder %s13681_s30, 0 }
  0x43   : > { %13602 = dma.done.wait (%p18921_p7), [#allocation3], 256   ;;  %p18922_p2 = pmov %p18921_p7 }
  0x45   : > { %13604 = vsyncadd (%p18922_p2), [#allocation3], 4294967040  ;;  %p18923_p3 = pmov %p18922_p2 }
  0x46   : > { %p18924_p8 = pmov %p18922_p2 }
  0x47   : > { %13606 = dma.done.wait (%p18923_p3), [#allocation5], 1792  }
  0x48   : > { %13608 = vsyncadd (%p18924_p8), [#allocation5], 4294965504  ;;  %p326_p9 = scmp.lt.s32.totalorder %s13681_s30, 1  ;;  %v18728_v0 = vmov 0.0   ;;  %v13620_v1 = vmov 0   ;;  %vm371_vm0 = vcmask 1040384  }
  0x49   : > { %457 = vmatprep.mubr.f32.mxu1 %v18728_v0  ;;  %611 = vmatprep.mubr.f32.mxu0 %v18728_v0  ;;  %vm13621_vm1 = vmmov 1   ;;  %v336_v15 = vld [vmem:[#allocation2] sm:$0xff]  ;;  %vm364_vm3 = vcmask 72704   ;;  %v353_v26 = vld [vmem:[%s18713_s2 + $0x8] sm:$0xff]  ;;  %s13622_s25 = smov 40   ;;  %s13623_s26 = smov 41  }
  0x4a   : > { %s19166_s30 = smov (!%p326_p9, %s13681_s30), 1  ;;  %13509 = vset.pattern.permute.xlu0 %v13620_v1  ;;  %13510 = vset.pattern.permute.xlu1 %v13620_v1  ;;  %vm13767_vm2 = vmpackc.low %vm371_vm0, %vm13621_vm1  ;;  %v352_v24 = vld [vmem:[%s18713_s2] sm:$0xff]  ;;  %v337_v27 = vld [vmem:[#allocation2 + $0x8] sm:$0xff]  ;;  %s13624_s28 = smov 39   ;;  %vm857_vm4 = vcmask 326656   ;;  %vm943_vm5 = vcmask 130048  }
  0x4b   : > { %s13463_s9 = smul.u32 112, %s19166_s30  ;;  %356 = vperm.xlu0 %13509, %v352_v24   ;;  %s13625_s10 = smov 1   ;;  %vm749_vm6 = vcmask 334848   ;;  %vm1696_vm7 = vcmask 318464   ;;  %vm2204_vm8 = vcmask 7168   ;;  %vm3163_vm9 = vcmask 1039360  }
  0x4c   : > { %s13626_s13 = smov 127   ;;  %s13627_s14 = smov 89   ;;  %vm3190_vm10 = vcmask 252928   ;;  %vm3672_vm11 = vcmask 728064   ;;  %vm3697_vm12 = vcmask 990208   ;;  %vm4178_vm13 = vcmask 719872  }
  0x4d   : > { %s330_s20 = scalar_lea.vmem %s18711_s0, %s13463_s9  ;;  %s13628_s12 = smov 88   ;;  %vm4684_vm14 = vcmask 711680   ;;  %vm4203_vm15 = vcmask 982016   ;;  %vm4709_vm0 = vcmask 973824   ;;  %vm5539_vm1 = vcmask 261120  }
  0x4e   : > { %v339_v3 = vld [vmem:[%s330_s20 + $0x8] sm:$0xff]  ;;  %v346_v4 = vld [vmem:[%s330_s20 + $0x40] sm:$0x1]  ;;  %v345_v9 = vld [vmem:[%s330_s20 + $0x38] sm:$0x1]  ;;  %s13629_s17 = smov 87  }
  0x4f   : > { %v343_v5 = vld [vmem:[%s330_s20 + $0x28] sm:$0xff]  ;;  %v12335_v6 = vpack.c.bf16 %v346_v4, %v339_v3  ;;  %v350_v7 = vld [vmem:[%s330_s20 + $0x60] sm:$0x1]  ;;  %v349_v13 = vld [vmem:[%s330_s20 + $0x58] sm:$0x1]  ;;  %361 = vperm.xlu0 %13509, %v353_v26  }
  0x50   : > { %v338_v8 = vld [vmem:[%s330_s20] sm:$0xff]  ;;  %v12347_v10 = vpack.c.bf16 %v350_v7, %v343_v5  ;;  %v341_v16 = vld [vmem:[%s330_s20 + $0x18] sm:$0xff]  ;;  %v348_v17 = vld [vmem:[%s330_s20 + $0x50] sm:$0x1] }
  0x51   : > { %v12338_v11 = vpack.c.bf16 %v345_v9, %v338_v8  ;;  %v342_v12 = vld [vmem:[%s330_s20 + $0x20] sm:$0xff]  ;;  %12337 = vmatprep.subr.msk.bf16.mxu1 %vm13767_vm2, %v12335_v6  ;;  %v12341_v18 = vpack.c.bf16 %v348_v17, %v341_v16  ;;  %v340_v19 = vld [vmem:[%s330_s20 + $0x10] sm:$0xff]  ;;  %v347_v20 = vld [vmem:[%s330_s20 + $0x48] sm:$0x1]  ;;  %v780_v9 = vlaneseq }
  0x52   : > { %v12350_v14 = vpack.c.bf16 %v349_v13, %v342_v12  ;;  %12349 = vmatprep.subr.msk.bf16.mxu0 %vm13767_vm2, %v12347_v10  ;;  %v344_v21 = vld [vmem:[%s330_s20 + $0x30] sm:$0xff]  ;;  %v12344_v22 = vpack.c.bf16 %v347_v20, %v340_v19  ;;  %v351_v23 = vld [vmem:[%s330_s20 + $0x68] sm:$0x1] }
  0x53   : > { %12340 = vmatpush1.bf16.msk.msra.mxu1 %vm13767_vm2, %v12338_v11  ;;  %v12353_v25 = vpack.c.bf16 %v351_v23, %v344_v21  ;;  %v13967_v10 = vshrl.u32 %v780_v9, 7  ;;  %v885_v12 = vld [vmem:[#allocation4 + $0x1] ss:$8 sm:$0xf] }
  0x54   : > { %12352 = vmatpush1.bf16.msk.msra.mxu0 %vm13767_vm2, %v12350_v14  ;;  %12343 = vmatprep.subr.msk.bf16.mxu1 %vm13767_vm2, %v12341_v18  ;;  %v886_v13 = vld [vmem:[#allocation4 + $0x1] ss:$8 sm:$0x70] }
  0x55   : > { %v13973_v14 = vor.u32 %v886_v13, %v885_v12  ;;  %v13976_v16 = vsub.s32 1, %v13967_v10  ;;  %v13981_v18 = vsub.s32 0, %v13967_v10  ;;  %v14080_v12 = vld [vmem:[%s18714_s3 + $0x30] sm:$0xff] }
  0x56   : > { %11349 = vmatmul.mubr.msk.f32.vlgmr.msra.gmra.mrb[0].mxu1 %vm364_vm3, %v336_v15 }
  0x57   : > { %11357 = vmatmul.mubr.msk.f32.vlgmr.msra.gmra.mrb[0].mxu0 %vm364_vm3, %v336_v15  ;;  %463 = vmatprep.mubr.f32.mxu1 %v18728_v0  ;;  %v13985_v19 = vrot.slane %v13973_v14, %v13976_v16 }
  0x58   : > { %617 = vmatprep.mubr.f32.mxu0 %v18728_v0  ;;  %12346 = vmatpush1.bf16.msk.msra.mxu1 %vm13767_vm2, %v12344_v22  ;;  %v13996_v22 = vrot.slane %v13973_v14, %v13981_v18 }
  0x59   : > { %12355 = vmatprep.subr.msk.bf16.mxu1 %vm13767_vm2, %v12353_v25 }
  0x5a   : > { %11350 = vmatmul.mubr.msk.f32.gmra.mrb[2].mxu1 %vm364_vm3, %v337_v27 }
  0x5b   : > { %11358 = vmatmul.mubr.msk.f32.gmra.mrb[2].mxu0 %vm364_vm3, %v337_v27  ;;  %534 = vmatprep.mubr.f32.mxu1 %v18728_v0 }
  0x5c   : > { %1109 = vmatprep.mubr.f32.mxu0 %v18728_v0 }
  0x5e   : > { %11353 = vmatmul.mubr.msk.f32.vlgmr.msra.gmra.mrb[4].mxu1 %vm364_vm3, %v336_v15 }
  0x5f   : > { %540 = vmatprep.mubr.f32.mxu1 %v18728_v0  ;;  %12358 = vmatpush3.bf16.msk.msra.mxu1 %vm13767_vm2, %v12353_v25 }
  0x62   : > { %11354 = vmatmul.mubr.msk.f32.gmra.mrb[6].mxu1 %vm364_vm3, %v337_v27 }
  0x63   : > { %12062 = vmatprep.mubr.msk.f32.mxu1 %vm364_vm3, %v336_v15 }
  0x66   : > { %12063 = vmatmul.mubr.msk.f32.vlgmr.msra.gmra.mrb[8].mxu1 %vm364_vm3, %v337_v27 }
  0x67   : > { %1020 = vmatprep.mubr.f32.mxu1 %v18728_v0 }
  0xca   : > { %v13807_v28 = vpop.permute.xlu0 %356 }
  0xce   : > { %v13813_v36 = vpop.permute.xlu0 %361 }
 0x129   : > { %v459_v29 = vpop.f32.mrb[0].mxu1 }
 0x12a   : > { %v460_v30 = vadd.f32 %v459_v29, %v13807_v28  ;;  %v613_v31 = vpop.f32.mrb[0].mxu0  ;;  %v461_v32 = vpop.f32.mrb[1].mxu1 }
 0x12b   : > { %v615_v33 = vpop.f32.mrb[1].mxu0  ;;  %v462_v35 = vadd.f32 %v461_v32, %v13807_v28  ;;  %v614_v42 = vadd.f32 %v613_v31, %v13807_v28  ;;  %v14012_v32 = vsub.s32 5, %v13967_v10 }
 0x12c   : > { %v13810_v34 = vmax.f32 %v460_v30, 0.0  ;;  %v616_v49 = vadd.f32 %v615_v33, %v13807_v28 }
 0x12d   : > { %v465_v37 = vpop.f32.mrb[2].mxu1  ;;  %v13819_v43 = vmax.f32 %v462_v35, 0.0  ;;  %v13828_v48 = vmax.f32 %v614_v42, 0.0  ;;  %v14036_v42 = vld [vmem:[%s18714_s3 + $0x20] sm:$0xff] }
 0x12e   : > { %v466_v38 = vadd.f32 %v465_v37, %v13813_v36  ;;  %v619_v39 = vpop.f32.mrb[2].mxu0  ;;  %v467_v40 = vpop.f32.mrb[3].mxu1  ;;  %833 = vrot.lane.b32.xlu1 %v13810_v34, %s13622_s25  ;;  %v13838_v54 = vmax.f32 %v616_v49, 0.0  ;;  %v14018_v37 = vrot.slane %v13973_v14, %v14012_v32 }
 0x12f   : > { %v621_v41 = vpop.f32.mrb[3].mxu0  ;;  %v468_v45 = vadd.f32 %v467_v40, %v13813_v36  ;;  %v620_v50 = vadd.f32 %v619_v39, %v13813_v36  ;;  %v14027_v39 = vsub.s32 4, %v13967_v10 }
 0x130   : > { %v13821_v44 = vmax.f32 %v466_v38, 0.0  ;;  %v622_v56 = vadd.f32 %v621_v41, %v13813_v36 }
 0x131   : > { %v536_v46 = vpop.f32.mrb[4].mxu1  ;;  %v13832_v51 = vmax.f32 %v468_v45, 0.0  ;;  %v13840_v55 = vmax.f32 %v620_v50, 0.0 }
 0x132   : > { %v538_v47 = vpop.f32.mrb[5].mxu1  ;;  %845 = vrot.lane.b32.xlu0 %v13821_v44, %s13622_s25  ;;  %835 = vrot.lane.b32.xlu1 %v13819_v43, %s13622_s25  ;;  %v13848_v60 = vmax.f32 %v622_v56, 0.0  ;;  %v537_v1 = vadd.f32 %v536_v46, %v13807_v28  ;;  %v14060_v56 = vld [vmem:[%s18714_s3 + $0x28] sm:$0xff] }
 0x133   : > { %v539_v57 = vadd.f32 %v538_v47, %v13807_v28  ;;  %v14043_v47 = vrot.slane %v13973_v14, %v14027_v39 }
 0x134   : > { %v13880_v2 = vmax.f32 %v537_v1, 0.0 }
 0x135   : > { %v542_v52 = vpop.f32.mrb[6].mxu1  ;;  %v13850_v61 = vmax.f32 %v539_v57, 0.0  ;;  %18927 = vst [vmem:[#allocation8_spill] sm:$0xff] %v14043_v47 }
 0x136   : > { %v544_v53 = vpop.f32.mrb[7].mxu1  ;;  %841 = vrot.lane.b32.xlu0 %v13828_v48, %s13622_s25  ;;  %847 = vrot.lane.b32.xlu1 %v13832_v51, %s13622_s25  ;;  %v543_v3 = vadd.f32 %v542_v52, %v13813_v36 }
 0x137   : > { %v545_v62 = vadd.f32 %v544_v53, %v13813_v36 }
 0x138   : > { %v13887_v4 = vmax.f32 %v543_v3, 0.0 }
 0x139   : > { %v12064_v58 = vpop.f32.mrb[8].mxu1  ;;  %v13857_v63 = vmax.f32 %v545_v62, 0.0 }
 0x13a   : > { %v690_v59 = vpop.f32.mrb[9].mxu1  ;;  %853 = vrot.lane.b32.xlu0 %v13840_v55, %s13622_s25  ;;  %843 = vrot.lane.b32.xlu1 %v13838_v54, %s13622_s25  ;;  %v696_v6 = vadd.f32 %v12064_v58, %v13813_v36  ;;  %v776_v58 = vld [vmem:[#allocation4] ss:$8 sm:$0xf] }
 0x13b   : > { %v691_v5 = vadd.f32 %v690_v59, %v13807_v28  ;;  %v777_v59 = vld [vmem:[#allocation4] ss:$8 sm:$0x70] }
 0x13c   : > { %v13949_v8 = vmax.f32 %v696_v6, 0.0 }
 0x13d   : > { %v13943_v7 = vmax.f32 %v691_v5, 0.0  ;;  %v14072_v5 = vor.u32 %v777_v59, %v776_v58 }
 0x13e   : > { %839 = vrot.lane.b32.xlu0 %v13850_v61, %s13622_s25  ;;  %855 = vrot.lane.b32.xlu1 %v13848_v60, %s13622_s25 }
 0x13f   : > { %v14084_v13 = vrot.slane %v14072_v5, %v13976_v16 }
 0x141   : > { %18928 = vst [vmem:[#allocation9_spill] sm:$0xff] %v14084_v13 }
 0x142   : > { %725 = vrot.lane.b32.xlu0 %v13810_v34, %s13623_s26  ;;  %851 = vrot.lane.b32.xlu1 %v13857_v63, %s13622_s25 }
 0x146   : > { %737 = vrot.lane.b32.xlu0 %v13821_v44, %s13623_s26  ;;  %727 = vrot.lane.b32.xlu1 %v13819_v43, %s13623_s26 }
 0x14a   : > { %733 = vrot.lane.b32.xlu0 %v13828_v48, %s13623_s26  ;;  %739 = vrot.lane.b32.xlu1 %v13832_v51, %s13623_s26 }
 0x14e   : > { %745 = vrot.lane.b32.xlu0 %v13840_v55, %s13623_s26  ;;  %735 = vrot.lane.b32.xlu1 %v13838_v54, %s13623_s26 }
 0x152   : > { %731 = vrot.lane.b32.xlu0 %v13850_v61, %s13623_s26  ;;  %747 = vrot.lane.b32.xlu1 %v13848_v60, %s13623_s26 }
 0x156   : > { %837 = vrot.lane.b32.xlu0 %v13880_v2, %s13622_s25  ;;  %743 = vrot.lane.b32.xlu1 %v13857_v63, %s13623_s26 }
 0x15a   : > { %1672 = vrot.lane.b32.xlu0 %v13810_v34, %s13624_s28  ;;  %849 = vrot.lane.b32.xlu1 %v13887_v4, %s13622_s25 }
 0x15e   : > { %1684 = vrot.lane.b32.xlu0 %v13821_v44, %s13624_s28  ;;  %1674 = vrot.lane.b32.xlu1 %v13819_v43, %s13624_s28 }
 0x162   : > { %1680 = vrot.lane.b32.xlu0 %v13828_v48, %s13624_s28  ;;  %1686 = vrot.lane.b32.xlu1 %v13832_v51, %s13624_s28 }
 0x166   : > { %1692 = vrot.lane.b32.xlu0 %v13840_v55, %s13624_s28  ;;  %1682 = vrot.lane.b32.xlu1 %v13838_v54, %s13624_s28 }
 0x16a   : > { %1678 = vrot.lane.b32.xlu0 %v13850_v61, %s13624_s28  ;;  %1694 = vrot.lane.b32.xlu1 %v13848_v60, %s13624_s28 }
 0x16e   : > { %729 = vrot.lane.b32.xlu0 %v13880_v2, %s13623_s26  ;;  %1690 = vrot.lane.b32.xlu1 %v13857_v63, %s13624_s28 }
 0x172   : > { %2176 = vrot.lane.b32.xlu0 %v13810_v34, %s13625_s10  ;;  %741 = vrot.lane.b32.xlu1 %v13887_v4, %s13623_s26 }
 0x176   : > { %2190 = vrot.lane.b32.xlu0 %v13821_v44, %s13625_s10  ;;  %2178 = vrot.lane.b32.xlu1 %v13819_v43, %s13625_s10 }
 0x17a   : > { %1676 = vrot.lane.b32.xlu0 %v13880_v2, %s13624_s28  ;;  %2192 = vrot.lane.b32.xlu1 %v13832_v51, %s13625_s10 }
 0x17e   : > { %2184 = vrot.lane.b32.xlu0 %v13828_v48, %s13625_s10  ;;  %1688 = vrot.lane.b32.xlu1 %v13887_v4, %s13624_s28 }
 0x182   : > { %2198 = vrot.lane.b32.xlu0 %v13840_v55, %s13625_s10  ;;  %2186 = vrot.lane.b32.xlu1 %v13838_v54, %s13625_s10 }
 0x186   : > { %2182 = vrot.lane.b32.xlu0 %v13850_v61, %s13625_s10  ;;  %2200 = vrot.lane.b32.xlu1 %v13848_v60, %s13625_s10 }
 0x18a   : > { %2180 = vrot.lane.b32.xlu0 %v13880_v2, %s13625_s10  ;;  %2196 = vrot.lane.b32.xlu1 %v13857_v63, %s13625_s10 }
 0x18e   : > { %2188 = vrot.lane.b32.xlu0 %v13943_v7, %s13625_s10  ;;  %2194 = vrot.lane.b32.xlu1 %v13887_v4, %s13625_s10 }
 0x192   : > { %3137 = vrot.lane.b32.xlu0 %v13819_v43, %s13626_s13  ;;  %2202 = vrot.lane.b32.xlu1 %v13949_v8, %s13625_s10 }
 0x196   : > { %3151 = vrot.lane.b32.xlu0 %v13832_v51, %s13626_s13  ;;  %3139 = vrot.lane.b32.xlu1 %v13880_v2, %s13626_s13 }
 0x19a   : > { %3135 = vrot.lane.b32.xlu0 %v13810_v34, %s13626_s13  ;;  %3153 = vrot.lane.b32.xlu1 %v13887_v4, %s13626_s13 }
 0x19e   : > { %3145 = vrot.lane.b32.xlu0 %v13838_v54, %s13626_s13  ;;  %3149 = vrot.lane.b32.xlu1 %v13821_v44, %s13626_s13 }
 0x1a0   : > { %v834_v11 = vpop.permute.xlu1 %833 }
 0x1a1   : > { %v882_v25 = vsel %vm857_vm4, 0.0, %v834_v11 }
 0x1a2   : > { %3159 = vrot.lane.b32.xlu0 %v13848_v60, %s13626_s13  ;;  %3161 = vrot.lane.b32.xlu1 %v13949_v8, %s13626_s13  ;;  %v924_v30 = vmul.f32 %v13996_v22, %v882_v25 }
 0x1a4   : > { %v846_v15 = vpop.permute.xlu0 %845  ;;  %v13978_v17 = vpop.permute.xlu1 %835 }
 0x1a5   : > { %v883_v20 = vsel %vm857_vm4, 0.0, %v846_v15  ;;  %v858_v21 = vsel %vm857_vm4, %v834_v11, %v13978_v17 }
 0x1a6   : > { %3143 = vrot.lane.b32.xlu0 %v13828_v48, %s13626_s13  ;;  %3157 = vrot.lane.b32.xlu1 %v13840_v55, %s13626_s13  ;;  %v931_v27 = vmul.f32 %v13996_v22, %v883_v20  ;;  %v925_v28 = vmul.f32 %v13985_v19, %v858_v21  ;;  %v14097_v21 = vrot.slane %v14072_v5, %v13981_v18 }
 0x1a8   : > { %v842_v23 = vpop.permute.xlu0 %841  ;;  %v13998_v24 = vpop.permute.xlu1 %847  ;;  %v12361_v36 = vpack.c.bf16 %v931_v27, %v924_v30  ;;  %18929 = vst [vmem:[#allocation10_spill] sm:$0xff] %v14097_v21 }
 0x1a9   : > { %v863_v26 = vsel %vm857_vm4, %v846_v15, %v13998_v24 }
 0x1aa   : > { %v932_v29 = vmul.f32 %v13985_v19, %v863_v26  ;;  %3141 = vrot.lane.b32.xlu0 %v13850_v61, %s13626_s13  ;;  %3147 = vrot.lane.b32.xlu1 %v13943_v7, %s13626_s13  ;;  %v14105_v26 = vld [vmem:[%s18714_s3 + $0x38] sm:$0xff] }
 0x1ac   : > { %v854_v31 = vpop.permute.xlu0 %853  ;;  %v14014_v33 = vpop.permute.xlu1 %843  ;;  %v12359_v35 = vpack.c.bf16 %v932_v29, %v925_v28 }
 0x1ad   : > { %v862_v38 = vsel %vm857_vm4, %v842_v23, %v14014_v33 }
 0x1ae   : > { %3646 = vrot.lane.b32.xlu0 %v13819_v43, %s13627_s14  ;;  %3155 = vrot.lane.b32.xlu1 %v13857_v63, %s13626_s13  ;;  %v929_v46 = vmul.f32 %v14018_v37, %v862_v38 }
 0x1af   : > { %12360 = vmatprep.subr.bf16.mxu1 %v12359_v35 }
 0x1b0   : > { %12362 = vmatpush1.bf16.msra.mxu1 %v12361_v36  ;;  %v14029_v40 = vpop.permute.xlu0 %839  ;;  %v14031_v41 = vpop.permute.xlu1 %855 }
 0x1b1   : > { %v867_v45 = vsel %vm857_vm4, %v854_v31, %v14031_v41  ;;  %v861_v50 = vsel %vm857_vm4, %v14029_v40, %v842_v23 }
 0x1b2   : > { %v936_v49 = vmul.f32 %v14018_v37, %v867_v45  ;;  %3660 = vrot.lane.b32.xlu0 %v13832_v51, %s13627_s14  ;;  %3648 = vrot.lane.b32.xlu1 %v13880_v2, %s13627_s14  ;;  %v928_v1 = vmul.f32 %v14043_v47, %v861_v50 }
 0x1b3   : > { %11366 = vmatmul.mubr.msk.f32.vlgmr.msra.gmra.mrb[10].mxu1 %vm943_vm5, %v14036_v42 }
 0x1b4   : > { %v726_v52 = vpop.permute.xlu0 %725  ;;  %v14054_v53 = vpop.permute.xlu1 %851  ;;  %1026 = vmatprep.mubr.f32.mxu1 %v18728_v0  ;;  %v12367_v57 = vpack.c.bf16 %v936_v49, %v929_v46  ;;  %v14125_v49 = vrot.slane %v14072_v5, %v14012_v32 }
 0x1b5   : > { %v866_v62 = vsel %vm857_vm4, %v14054_v53, %v854_v31  ;;  %v774_v27 = vsel %vm749_vm6, 0.0, %v726_v52 }
 0x1b6   : > { %v935_v3 = vmul.f32 %v14043_v47, %v866_v62  ;;  %3644 = vrot.lane.b32.xlu0 %v13810_v34, %s13627_s14  ;;  %3662 = vrot.lane.b32.xlu1 %v13887_v4, %s13627_s14  ;;  %v815_v35 = vmul.f32 %v14097_v21, %v774_v27  ;;  %18930 = vst [vmem:[#allocation11_spill] sm:$0xff] %v14125_v49 }
 0x1b7   : > { %11367 = vmatmul.mubr.msk.f32.gmra.mrb[12].mxu1 %vm943_vm5, %v14060_v56  ;;  %12368 = vmatprep.subr.bf16.mxu1 %v12367_v57 }
 0x1b8   : > { %v12369_v6 = vpack.c.bf16 %v935_v3, %v928_v1  ;;  %v738_v9 = vpop.permute.xlu0 %737  ;;  %v14074_v11 = vpop.permute.xlu1 %727  ;;  %1032 = vmatprep.mubr.f32.mxu1 %v18728_v0  ;;  %v14151_v1 = vsub.s32 2, %v13967_v10  ;;  %v14154_v3 = vsub.s32 3, %v13967_v10 }
 0x1b9   : > { %v775_v15 = vsel %vm749_vm6, 0.0, %v738_v9  ;;  %v750_v20 = vsel %vm749_vm6, %v726_v52, %v14074_v11 }
 0x1ba   : > { %3650 = vrot.lane.b32.xlu0 %v13850_v61, %s13627_s14  ;;  %3658 = vrot.lane.b32.xlu1 %v13821_v44, %s13627_s14  ;;  %v822_v29 = vmul.f32 %v14097_v21, %v775_v15  ;;  %v816_v30 = vmul.f32 %v14084_v13, %v750_v20  ;;  %v14161_v20 = vrot.slane %v13973_v14, %v14151_v1 }
 0x1bb   : > { %11368 = vmatmul.mubr.msk.f32.gmra.mrb[14].mxu1 %vm943_vm5, %v14080_v12  ;;  %v14165_v27 = vrot.slane %v13973_v14, %v14154_v3  ;;  %v14325_v21 = vrot.slane %v14072_v5, %v14151_v1 }
 0x1bc   : > { %12370 = vmatpush1.bf16.msra.mxu1 %v12369_v6  ;;  %v734_v23 = vpop.permute.xlu0 %733  ;;  %v14099_v25 = vpop.permute.xlu1 %739  ;;  %1038 = vmatprep.mubr.f32.mxu1 %v18728_v0  ;;  %v12377_v46 = vpack.c.bf16 %v822_v29, %v815_v35 }
 0x1bd   : > { %v755_v28 = vsel %vm749_vm6, %v738_v9, %v14099_v25  ;;  %18937 = vst [vmem:[#allocation17_spill] sm:$0xff] %v14325_v21 }
 0x1be   : > { %v823_v31 = vmul.f32 %v14084_v13, %v755_v28  ;;  %3654 = vrot.lane.b32.xlu0 %v13838_v54, %s13627_s14  ;;  %3652 = vrot.lane.b32.xlu1 %v13828_v48, %s13627_s14  ;;  %v14168_v28 = vsub.s32 6, %v13967_v10  ;;  %v14329_v13 = vrot.slane %v14072_v5, %v14154_v3 }
 0x1bf   : > { %11369 = vmatmul.mubr.msk.f32.gmra.mrb[16].mxu1 %vm943_vm5, %v14105_v26 }
 0x1c0   : > { %v746_v36 = vpop.permute.xlu0 %745  ;;  %v14120_v38 = vpop.permute.xlu1 %735  ;;  %1198 = vmatprep.mubr.f32.mxu1 %v18728_v0  ;;  %v12375_v45 = vpack.c.bf16 %v823_v31, %v816_v30  ;;  %v14184_v10 = vrot.slane %v13973_v14, %v14168_v28  ;;  %18938 = vst [vmem:[#allocation18_spill] sm:$0xff] %v14329_v13 }
 0x1c1   : > { %v754_v50 = vsel %vm749_vm6, %v734_v23, %v14120_v38 }
 0x1c2   : > { %3664 = vrot.lane.b32.xlu0 %v13857_v63, %s13627_s14  ;;  %3666 = vrot.lane.b32.xlu1 %v13840_v55, %s13627_s14  ;;  %v820_v59 = vmul.f32 %v14125_v49, %v754_v50  ;;  %18931 = vst [vmem:[#allocation12_spill] sm:$0xff] %v14184_v10  ;;  %v1724_v50 = vld [vmem:[#allocation4 + $0x2] ss:$8 sm:$0xf] }
 0x1c3   : > { %11374 = vmatmul.mubr.msk.f32.vlgmr.msra.gmra.mrb[18].mxu1 %vm943_vm5, %v14036_v42  ;;  %12376 = vmatprep.subr.bf16.mxu1 %v12375_v45 }
 0x1c4   : > { %12378 = vmatpush1.bf16.msra.mxu1 %v12377_v46  ;;  %v14135_v52 = vpop.permute.xlu0 %731  ;;  %v14137_v57 = vpop.permute.xlu1 %747  ;;  %1204 = vmatprep.mubr.f32.mxu1 %v18728_v0 }
 0x1c5   : > { %v759_v58 = vsel %vm749_vm6, %v746_v36, %v14137_v57 }
 0x1c6   : > { %v827_v62 = vmul.f32 %v14125_v49, %v759_v58  ;;  %3668 = vrot.lane.b32.xlu0 %v13848_v60, %s13627_s14  ;;  %3656 = vrot.lane.b32.xlu1 %v13943_v7, %s13627_s14  ;;  %v1725_v58 = vld [vmem:[#allocation4 + $0x2] ss:$8 sm:$0x70] }
 0x1c7   : > { %11375 = vmatmul.mubr.msk.f32.gmra.mrb[20].mxu1 %vm943_vm5, %v14060_v56 }
 0x1c8   : > { %v838_v6 = vpop.permute.xlu0 %837  ;;  %v14156_v9 = vpop.permute.xlu1 %743  ;;  %1210 = vmatprep.mubr.f32.mxu1 %v18728_v0  ;;  %v12383_v15 = vpack.c.bf16 %v827_v62, %v820_v59 }
 0x1c9   : > { %v859_v29 = vsel %vm857_vm4, %v13978_v17, %v838_v6  ;;  %v860_v30 = vsel %vm857_vm4, %v838_v6, %v14029_v40  ;;  %v758_v31 = vsel %vm749_vm6, %v14156_v9, %v746_v36  ;;  %v14188_v17 = vrot.slane %v14072_v5, %v14027_v39 }
 0x1ca   : > { %4152 = vrot.lane.b32.xlu0 %v13819_v43, %s13628_s12  ;;  %3670 = vrot.lane.b32.xlu1 %v13949_v8, %s13627_s14  ;;  %v753_v40 = vsel %vm749_vm6, %v14135_v52, %v734_v23  ;;  %v926_v36 = vmul.f32 %v14161_v20, %v859_v29  ;;  %v927_v46 = vmul.f32 %v14165_v27, %v860_v30 }
 0x1cb   : > { %11376 = vmatmul.mubr.msk.f32.gmra.mrb[22].mxu1 %vm943_vm5, %v14080_v12  ;;  %12384 = vmatprep.subr.bf16.mxu1 %v12383_v15  ;;  %18932 = vst [vmem:[#allocation13_spill] sm:$0xff] %v14188_v17  ;;  %v826_v62 = vmul.f32 %v14188_v17, %v758_v31  ;;  %v937_v15 = vmul.f32 %v14184_v10, %v14031_v41 }
 0x1cc   : > { %v14192_v35 = vpop.permute.xlu0 %1672  ;;  %v850_v45 = vpop.permute.xlu1 %849  ;;  %1216 = vmatprep.mubr.f32.mxu1 %v18728_v0  ;;  %v930_v41 = vmul.f32 %v14184_v10, %v14014_v33 }
 0x1cd   : > { %v864_v14 = vsel %vm857_vm4, %v13998_v24, %v850_v45  ;;  %v865_v59 = vsel %vm857_vm4, %v850_v45, %v14054_v53  ;;  %v819_v24 = vmul.f32 %v14188_v17, %v753_v40  ;;  %v14213_v53 = vor.u32 %v1725_v58, %v1724_v50  ;;  %v14245_v58 = vld [vmem:[%s18714_s3 + $0x8] sm:$0xff] }
 0x1ce   : > { %v933_v23 = vmul.f32 %v14161_v20, %v864_v14  ;;  %v934_v6 = vmul.f32 %v14165_v27, %v865_v59  ;;  %4166 = vrot.lane.b32.xlu0 %v13832_v51, %s13628_s12  ;;  %4154 = vrot.lane.b32.xlu1 %v13880_v2, %s13628_s12  ;;  %v14221_v14 = vld [vmem:[%s18714_s3] sm:$0xff]  ;;  %v12371_v33 = vpack.c.bf16 %v937_v15, %v930_v41 }
 0x1cf   : > { %11377 = vmatmul.mubr.msk.f32.gmra.mrb[24].mxu1 %vm943_vm5, %v14105_v26  ;;  %v12385_v59 = vpack.c.bf16 %v826_v62, %v819_v24  ;;  %v14227_v40 = vrot.slane %v14213_v53, %v13976_v16 }
 0x1d0   : > { %v12365_v29 = vpack.c.bf16 %v933_v23, %v926_v36  ;;  %v1685_v30 = vpop.permute.xlu0 %1684  ;;  %v14215_v31 = vpop.permute.xlu1 %1674  ;;  %1384 = vmatprep.mubr.f32.mxu1 %v18728_v0  ;;  %v12363_v45 = vpack.c.bf16 %v934_v6, %v927_v46 }
 0x1d1   : > { %18933 = vst [vmem:[#allocation14_spill] sm:$0xff] %v14227_v40  ;;  %v1697_v36 = vsel %vm1696_vm7, %v14192_v35, %v14215_v31  ;;  %v1722_v41 = vsel %vm1696_vm7, 0.0, %v1685_v30 }
 0x1d2   : > { %4150 = vrot.lane.b32.xlu0 %v13810_v34, %s13628_s12  ;;  %4168 = vrot.lane.b32.xlu1 %v13887_v4, %s13628_s12  ;;  %v1764_v23 = vmul.f32 %v14227_v40, %v1697_v36  ;;  %v14286_v36 = vrot.slane %v14213_v53, %v13981_v18 }
 0x1d3   : > { %12364 = vmatprep.subr.bf16.mxu0 %v12363_v45  ;;  %11382 = vmatmul.mubr.msk.f32.vlgmr.msra.gmra.mrb[10].mxu1 %vm943_vm5, %v14221_v14 }
 0x1d4   : > { %12386 = vmatpush1.bf16.msra.mxu1 %v12385_v59  ;;  %12366 = vmatpush1.bf16.msra.mxu0 %v12365_v29  ;;  %v14238_v46 = vpop.permute.xlu0 %1680  ;;  %v14240_v50 = vpop.permute.xlu1 %1686  ;;  %v14268_v29 = vld [vmem:[%s18714_s3 + $0x10] sm:$0xff]  ;;  %v14278_v59 = vrot.slane %v14213_v53, %v14012_v32  ;;  %18935 = vst [vmem:[#allocation16_spill] sm:$0xff] %v14286_v36 }
 0x1d5   : > { %12372 = vmatprep.subr.bf16.mxu0 %v12371_v33  ;;  %v1702_v62 = vsel %vm1696_vm7, %v1685_v30, %v14240_v50  ;;  %1390 = vmatprep.mubr.f32.mxu1 %v18728_v0 }
 0x1d6   : > { %v1771_v6 = vmul.f32 %v14227_v40, %v1702_v62  ;;  %4156 = vrot.lane.b32.xlu0 %v13850_v61, %s13628_s12  ;;  %4164 = vrot.lane.b32.xlu1 %v13821_v44, %s13628_s12  ;;  %18934 = vst [vmem:[#allocation15_spill] sm:$0xff] %v14278_v59 }
 0x1d7   : > { %11370 = vmatmul.mubr.msk.f32.vlgmr.msra.gmra.mrb[4].mxu0 %vm943_vm5, %v14036_v42  ;;  %11383 = vmatmul.mubr.msk.f32.gmra.mrb[12].mxu1 %vm943_vm5, %v14245_v58 }
 0x1d8   : > { %12374 = vmatpush3.bf16.msra.mxu0 %v12371_v33  ;;  %v14260_v15 = vpop.permute.xlu0 %1692  ;;  %v14262_v24 = vpop.permute.xlu1 %1682  ;;  %1115 = vmatprep.mubr.f32.mxu0 %v18728_v0  ;;  %v12391_v45 = vpack.c.bf16 %v1771_v6, %v1764_v23  ;;  %v14299_v23 = vld [vmem:[%s18714_s3 + $0x18] sm:$0xff]  ;;  %v1721_v6 = vsel %vm1696_vm7, 0.0, %v14192_v35 }
 0x1d9   : > { %1396 = vmatprep.mubr.f32.mxu1 %v18728_v0  ;;  %v1701_v33 = vsel %vm1696_vm7, %v14238_v46, %v14262_v24  ;;  %v1763_v35 = vmul.f32 %v14286_v36, %v1721_v6 }
 0x1da   : > { %4170 = vrot.lane.b32.xlu0 %v13857_v63, %s13628_s12  ;;  %4158 = vrot.lane.b32.xlu1 %v13828_v48, %s13628_s12  ;;  %v1768_v49 = vmul.f32 %v14278_v59, %v1701_v33 }
 0x1db   : > { %11371 = vmatmul.mubr.msk.f32.gmra.mrb[6].mxu0 %vm943_vm5, %v14060_v56  ;;  %11384 = vmatmul.mubr.msk.f32.gmra.mrb[14].mxu1 %vm943_vm5, %v14268_v29 }
 0x1dc   : > { %12392 = vmatprep.subr.bf16.mxu1 %v12391_v45  ;;  %v14291_v30 = vpop.permute.xlu0 %1678  ;;  %v14293_v62 = vpop.permute.xlu1 %1694  ;;  %1121 = vmatprep.mubr.f32.mxu0 %v18728_v0  ;;  %v1770_v45 = vmul.f32 %v14286_v36, %v1722_v41 }
 0x1dd   : > { %v1706_v40 = vsel %vm1696_vm7, %v14260_v15, %v14293_v62  ;;  %1402 = vmatprep.mubr.f32.mxu1 %v18728_v0 }
 0x1de   : > { %v1775_v17 = vmul.f32 %v14278_v59, %v1706_v40  ;;  %4160 = vrot.lane.b32.xlu0 %v13838_v54, %s13628_s12  ;;  %4172 = vrot.lane.b32.xlu1 %v13840_v55, %s13628_s12  ;;  %v18936_v40 = vmov 0.0   ;;  %v12393_v59 = vpack.c.bf16 %v1770_v45, %v1763_v35 }
 0x1df   : > { %11372 = vmatmul.mubr.msk.f32.gmra.mrb[8].mxu0 %vm943_vm5, %v14080_v12  ;;  %11385 = vmatmul.mubr.msk.f32.gmra.mrb[16].mxu1 %vm943_vm5, %v14299_v23 }
 0x1e0   : > { %v730_v0 = vpop.permute.xlu0 %729  ;;  %v14319_v41 = vpop.permute.xlu1 %1690  ;;  %1127 = vmatprep.mubr.f32.mxu0 %v18936_v40  ;;  %1562 = vmatprep.mubr.f32.mxu1 %v18936_v40  ;;  %v12399_v33 = vpack.c.bf16 %v1775_v17, %v1768_v49  ;;  %v14345_v49 = vrot.slane %v14072_v5, %v14168_v28 }
 0x1e1   : > { %v751_v6 = vsel %vm749_vm6, %v14074_v11, %v730_v0  ;;  %v752_v36 = vsel %vm749_vm6, %v730_v0, %v14135_v52 }
 0x1e2   : > { %4174 = vrot.lane.b32.xlu0 %v13848_v60, %s13628_s12  ;;  %4176 = vrot.lane.b32.xlu1 %v13949_v8, %s13628_s12  ;;  %18939 = vst [vmem:[#allocation19_spill] sm:$0xff] %v14345_v49  ;;  %v817_v45 = vmul.f32 %v14325_v21, %v751_v6  ;;  %v818_v5 = vmul.f32 %v14329_v13, %v752_v36 }
 0x1e3   : > { %11373 = vmatmul.mubr.msk.f32.gmra.mrb[10].mxu0 %vm943_vm5, %v14105_v26  ;;  %11390 = vmatmul.mubr.msk.f32.vlgmr.msra.gmra.mrb[18].mxu1 %vm943_vm5, %v14221_v14 }
 0x1e4   : > { %12394 = vmatpush1.bf16.msra.mxu1 %v12393_v59  ;;  %v14347_v11 = vpop.permute.xlu0 %2176  ;;  %v742_v17 = vpop.permute.xlu1 %741  ;;  %12069 = vmatprep.mubr.msk.f32.mxu0 %vm943_vm5, %v14036_v42  ;;  %v828_v42 = vmul.f32 %v14345_v49, %v14137_v57  ;;  %v821_v57 = vmul.f32 %v14345_v49, %v14120_v38 }
 0x1e5   : > { %12400 = vmatprep.subr.bf16.mxu1 %v12399_v33  ;;  %v756_v0 = vsel %vm749_vm6, %v14099_v25, %v742_v17  ;;  %v757_v52 = vsel %vm749_vm6, %v742_v17, %v14156_v9  ;;  %1568 = vmatprep.mubr.f32.mxu1 %v18936_v40  ;;  %v2234_v25 = vld [vmem:[#allocation4 + $0x3] ss:$8 sm:$0xf] }
 0x1e6   : > { %v824_v59 = vmul.f32 %v14325_v21, %v756_v0  ;;  %v825_v35 = vmul.f32 %v14329_v13, %v757_v52  ;;  %4662 = vrot.lane.b32.xlu0 %v13850_v61, %s13629_s17  ;;  %4162 = vrot.lane.b32.xlu1 %v13943_v7, %s13628_s12  ;;  %v2235_v9 = vld [vmem:[#allocation4 + $0x3] ss:$8 sm:$0x70] }
 0x1e7   : > { %12070 = vmatmul.mubr.msk.f32.vlgmr.msra.gmra.mrb[12].mxu0 %vm943_vm5, %v14060_v56  ;;  %11391 = vmatmul.mubr.msk.f32.gmra.mrb[20].mxu1 %vm943_vm5, %v14245_v58  ;;  %v14379_v0 = vor.u32 %v2235_v9, %v2234_v25  ;;  %v12387_v56 = vpack.c.bf16 %v828_v42, %v821_v57 }
 0x1e8   : > { %v12381_v36 = vpack.c.bf16 %v824_v59, %v817_v45  ;;  %v14370_v33 = vpop.permute.xlu0 %2190  ;;  %v14372_v6 = vpop.permute.xlu1 %2178  ;;  %12072 = vmatprep.mubr.msk.f32.mxu0 %vm943_vm5, %v14080_v12  ;;  %1574 = vmatprep.mubr.f32.mxu1 %v18936_v40  ;;  %v12379_v17 = vpack.c.bf16 %v825_v35, %v818_v5  ;;  %v1705_v12 = vsel %vm1696_vm7, %v14319_v41, %v14260_v15 }
 0x1e9   : > { %v14392_v38 = vrot.slane %v14379_v0, %v13976_v16  ;;  %v2205_v15 = vsel %vm2204_vm8, %v14347_v11, %v14372_v6  ;;  %v1700_v59 = vsel %vm1696_vm7, %v14291_v30, %v14238_v46  ;;  %v14414_v35 = vrot.slane %v14213_v53, %v14154_v3 }
 0x1ea   : > { %4676 = vrot.lane.b32.xlu0 %v13857_v63, %s13629_s17  ;;  %4664 = vrot.lane.b32.xlu1 %v13828_v48, %s13629_s17 }
 0x1eb   : > { %12073 = vmatmul.mubr.msk.f32.gmra.mrb[14].mxu0 %vm943_vm5, %v14105_v26  ;;  %12380 = vmatprep.subr.bf16.mxu0 %v12379_v17  ;;  %18940 = vst [vmem:[#allocation20_spill] sm:$0xff] %v14392_v38  ;;  %v14400_v26 = vrot.slane %v14213_v53, %v14027_v39  ;;  %18942 = vst [vmem:[#allocation22_spill] sm:$0xff] %v14414_v35  ;;  %v2274_v46 = vmul.f32 %v14392_v38, %v2205_v15 }
 0x1ec   : > { %11392 = vmatmul.mubr.msk.f32.gmra.mrb[22].mxu1 %vm943_vm5, %v14268_v29  ;;  %12382 = vmatpush1.bf16.msra.mxu0 %v12381_v36  ;;  %v1677_v45 = vpop.permute.xlu0 %1676  ;;  %v14396_v52 = vpop.permute.xlu1 %2192 }
 0x1ed   : > { %18941 = vst [vmem:[#allocation21_spill] sm:$0xff] %v14400_v26  ;;  %12388 = vmatprep.subr.bf16.mxu0 %v12387_v56  ;;  %v2211_v5 = vsel %vm2204_vm8, %v14370_v33, %v14396_v52  ;;  %1473 = vmatprep.mubr.f32.mxu0 %v18936_v40  ;;  %v1774_v25 = vmul.f32 %v14400_v26, %v1705_v12  ;;  %v14440_v12 = vld [vmem:[%s18714_s3 + $0x40] sm:$0xff] }
 0x1ee   : > { %v2281_v42 = vmul.f32 %v14392_v38, %v2211_v5  ;;  %1580 = vmatprep.mubr.f32.mxu1 %v18936_v40  ;;  %4658 = vrot.lane.b32.xlu0 %v13819_v43, %s13629_s17  ;;  %v1699_v9 = vsel %vm1696_vm7, %v1677_v45, %v14291_v30  ;;  %v1767_v57 = vmul.f32 %v14400_v26, %v1700_v59 }
 0x1ef   : > { %4678 = vrot.lane.b32.xlu1 %v13840_v55, %s13629_s17  ;;  %11386 = vmatmul.mubr.msk.f32.vlgmr.msra.gmra.mrb[4].mxu0 %vm943_vm5, %v14221_v14  ;;  %v1766_v15 = vmul.f32 %v14414_v35, %v1699_v9 }
 0x1f0   : > { %11393 = vmatmul.mubr.msk.f32.gmra.mrb[24].mxu1 %vm943_vm5, %v14299_v23  ;;  %12390 = vmatpush3.bf16.msra.mxu0 %v12387_v56  ;;  %v14430_v36 = vpop.permute.xlu0 %2184  ;;  %v1689_v17 = vpop.permute.xlu1 %1688  ;;  %v12407_v5 = vpack.c.bf16 %v2281_v42, %v2274_v46  ;;  %v12401_v59 = vpack.c.bf16 %v1774_v25, %v1767_v57  ;;  %v14461_v42 = vld [vmem:[%s18714_s3 + $0x48] sm:$0xff]  ;;  %v14473_v46 = vrot.slane %v14213_v53, %v14151_v1 }
 0x1f1   : > { %v1704_v30 = vsel %vm1696_vm7, %v1689_v17, %v14319_v41  ;;  %1479 = vmatprep.mubr.f32.mxu0 %v18936_v40  ;;  %1858 = vmatprep.mubr.f32.mxu1 %v18936_v40  ;;  %v1703_v25 = vsel %vm1696_vm7, %v14240_v50, %v1689_v17  ;;  %v14483_v50 = vrot.slane %v14213_v53, %v14168_v28 }
 0x1f2   : > { %v1773_v56 = vmul.f32 %v14414_v35, %v1704_v30  ;;  %4672 = vrot.lane.b32.xlu0 %v13832_v51, %s13629_s17  ;;  %18943 = vst [vmem:[#allocation23_spill] sm:$0xff] %v14473_v46  ;;  %v1698_v17 = vsel %vm1696_vm7, %v14215_v31, %v1677_v45  ;;  %v2232_v31 = vsel %vm2204_vm8, 0.0, %v14370_v33 }
 0x1f3   : > { %4660 = vrot.lane.b32.xlu1 %v13880_v2, %s13629_s17  ;;  %11387 = vmatmul.mubr.msk.f32.gmra.mrb[6].mxu0 %vm943_vm5, %v14245_v58  ;;  %18944 = vst [vmem:[#allocation24_spill] sm:$0xff] %v14483_v50  ;;  %v1776_v53 = vmul.f32 %v14483_v50, %v14293_v62  ;;  %v1765_v45 = vmul.f32 %v14473_v46, %v1698_v17 }
 0x1f4   : > { %11402 = vmatmul.mubr.msk.f32.vlgmr.msra.gmra.mrb[10].mxu1 %vm943_vm5, %v14440_v12  ;;  %v14452_v41 = vpop.permute.xlu0 %2198  ;;  %v14454_v38 = vpop.permute.xlu1 %2186  ;;  %1485 = vmatprep.mubr.f32.mxu0 %v18936_v40  ;;  %v12395_v9 = vpack.c.bf16 %v1773_v56, %v1766_v15  ;;  %v14492_v15 = vld [vmem:[%s18714_s3 + $0x50] sm:$0xff]  ;;  %v1772_v56 = vmul.f32 %v14473_v46, %v1703_v25  ;;  %v1769_v62 = vmul.f32 %v14483_v50, %v14262_v24  ;;  %v14525_v25 = vld [vmem:[%s18714_s3 + $0x58] sm:$0xff] }
 0x1f5   : > { %12402 = vmatpush1.bf16.msra.mxu1 %v12401_v59  ;;  %1864 = vmatprep.mubr.f32.mxu1 %v18936_v40  ;;  %v14531_v24 = vrot.slane %v14379_v0, %v14012_v32  ;;  %v14535_v50 = vrot.slane %v14379_v0, %v14154_v3  ;;  %v2209_v46 = vsel %vm2204_vm8, %v14430_v36, %v14454_v38 }
 0x1f6   : > { %12408 = vmatprep.subr.bf16.mxu1 %v12407_v5  ;;  %4656 = vrot.lane.b32.xlu0 %v13810_v34, %s13629_s17  ;;  %v12397_v17 = vpack.c.bf16 %v1772_v56, %v1765_v45  ;;  %v5162_v56 = vld [vmem:[%s18715_s4] sm:$0xff] }
 0x1f7   : > { %4674 = vrot.lane.b32.xlu1 %v13887_v4, %s13629_s17  ;;  %11388 = vmatmul.mubr.msk.f32.gmra.mrb[8].mxu0 %vm943_vm5, %v14268_v29 }
 0x1f8   : > { %11403 = vmatmul.mubr.msk.f32.gmra.mrb[12].mxu1 %vm943_vm5, %v14461_v42  ;;  %12396 = vmatprep.subr.bf16.mxu0 %v12395_v9  ;;  %v14477_v57 = vpop.permute.xlu0 %2182  ;;  %v14479_v30 = vpop.permute.xlu1 %2200  ;;  %v14516_v9 = vrot.slane %v14379_v0, %v13981_v18 }
 0x1f9   : > { %1491 = vmatprep.mubr.f32.mxu0 %v18936_v40  ;;  %1870 = vmatprep.mubr.f32.mxu1 %v18936_v40  ;;  %v2215_v33 = vsel %vm2204_vm8, %v14452_v41, %v14479_v30 }
 0x1fa   : > { %4666 = vrot.lane.b32.xlu0 %v13838_v54, %s13629_s17  ;;  %18945 = vst [vmem:[#allocation25_spill] sm:$0xff] %v14516_v9  ;;  %v2280_v26 = vmul.f32 %v14516_v9, %v2232_v31  ;;  %v2285_v45 = vmul.f32 %v14531_v24, %v2215_v33 }
 0x1fb   : > { %4670 = vrot.lane.b32.xlu1 %v13821_v44, %s13629_s17  ;;  %11389 = vmatmul.mubr.msk.f32.gmra.mrb[10].mxu0 %vm943_vm5, %v14299_v23 }
 0x1fc   : > { %11404 = vmatmul.mubr.msk.f32.gmra.mrb[14].mxu1 %vm943_vm5, %v14492_v15  ;;  %v14508_v5 = vpop.permute.xlu0 %2180  ;;  %v2197_v59 = vpop.permute.xlu1 %2196  ;;  %12079 = vmatprep.mubr.msk.f32.mxu0 %vm943_vm5, %v14221_v14  ;;  %v2231_v14 = vsel %vm2204_vm8, 0.0, %v14347_v11  ;;  %v12403_v11 = vpack.c.bf16 %v1776_v53, %v1769_v62  ;;  %v2278_v53 = vmul.f32 %v14531_v24, %v2209_v46 }
 0x1fd   : > { %1876 = vmatprep.mubr.f32.mxu1 %v18936_v40  ;;  %v2207_v31 = vsel %vm2204_vm8, %v14508_v5, %v14477_v57  ;;  %v2273_v21 = vmul.f32 %v14516_v9, %v2231_v14 }
 0x1fe   : > { %4680 = vrot.lane.b32.xlu0 %v13848_v60, %s13629_s17  ;;  %v12415_v46 = vpack.c.bf16 %v2285_v45, %v2278_v53  ;;  %v2214_v53 = vsel %vm2204_vm8, %v2197_v59, %v14452_v41 }
 0x1ff   : > { %4668 = vrot.lane.b32.xlu1 %v13943_v7, %s13629_s17  ;;  %12080 = vmatmul.mubr.msk.f32.vlgmr.msra.gmra.mrb[12].mxu0 %vm943_vm5, %v14245_v58  ;;  %v12409_v33 = vpack.c.bf16 %v2280_v26, %v2273_v21  ;;  %v2686_v26 = vld [vmem:[#allocation4 + $0x4] ss:$8 sm:$0x70] }
 0x200   : > { %11405 = vmatmul.mubr.msk.f32.gmra.mrb[16].mxu1 %vm943_vm5, %v14525_v25  ;;  %12398 = vmatpush1.bf16.msra.mxu0 %v12397_v17  ;;  %v2189_v35 = vpop.permute.xlu0 %2188  ;;  %v2195_v49 = vpop.permute.xlu1 %2194  ;;  %v2276_v17 = vmul.f32 %v14535_v50, %v2207_v31 }
 0x201   : > { %12404 = vmatprep.subr.bf16.mxu0 %v12403_v11  ;;  %v2213_v58 = vsel %vm2204_vm8, %v2195_v49, %v2197_v59  ;;  %12082 = vmatprep.mubr.msk.f32.mxu0 %vm943_vm5, %v14268_v29  ;;  %v5164_v29 = vld [vmem:[%s18715_s4 + $0x10] sm:$0xff] }
 0x202   : > { %v2283_v62 = vmul.f32 %v14535_v50, %v2213_v58  ;;  %2036 = vmatprep.mubr.f32.mxu1 %v18936_v40  ;;  %5168 = vperm.xlu0 %13509, %v5162_v56  }
 0x203   : > { %4682 = vrot.lane.b32.xlu1 %v13949_v8, %s13629_s17  ;;  %12083 = vmatmul.mubr.msk.f32.gmra.mrb[14].mxu0 %vm943_vm5, %v14299_v23  ;;  %v2685_v23 = vld [vmem:[#allocation4 + $0x4] ss:$8 sm:$0xf] }
 0x204   : > { %11410 = vmatmul.mubr.msk.f32.vlgmr.msra.gmra.mrb[18].mxu1 %vm943_vm5, %v14440_v12  ;;  %v14573_v14 = vpop.permute.xlu0 %3137  ;;  %v2203_v56 = vpop.permute.xlu1 %2202  ;;  %1947 = vmatprep.mubr.f32.mxu0 %v18936_v40  ;;  %v12411_v21 = vpack.c.bf16 %v2283_v62, %v2276_v17  ;;  %v14587_v58 = vor.u32 %v2686_v26, %v2685_v23  ;;  %v2208_v17 = vsel %vm2204_vm8, %v14477_v57, %v14430_v36 }
 0x205   : > { %12410 = vmatpush1.bf16.msra.mxu1 %v12409_v33  ;;  %2042 = vmatprep.mubr.f32.mxu1 %v18936_v40  ;;  %v14602_v33 = vrot.slane %v14379_v0, %v14027_v39  ;;  %v2206_v23 = vsel %vm2204_vm8, %v14372_v6, %v14508_v5 }
 0x206   : > { %12416 = vmatprep.subr.bf16.mxu1 %v12415_v46  ;;  %5178 = vperm.xlu0 %13509, %v5164_v29   ;;  %v14610_v41 = vrot.slane %v14587_v58, %v13976_v16  ;;  %v2212_v29 = vsel %vm2204_vm8, %v14396_v52, %v2195_v49  ;;  %v14619_v46 = vrot.slane %v14379_v0, %v14151_v1 }
 0x207   : > { %11406 = vmatmul.mubr.msk.f32.vlgmr.msra.gmra.mrb[4].mxu0 %vm943_vm5, %v14440_v12  ;;  %v2284_v59 = vmul.f32 %v14602_v33, %v2214_v53  ;;  %v2277_v52 = vmul.f32 %v14602_v33, %v2208_v17 }
 0x208   : > { %11411 = vmatmul.mubr.msk.f32.gmra.mrb[20].mxu1 %vm943_vm5, %v14461_v42  ;;  %12406 = vmatpush3.bf16.msra.mxu0 %v12403_v11  ;;  %v14581_v45 = vpop.permute.xlu0 %3151  ;;  %v14583_v31 = vpop.permute.xlu1 %3139  ;;  %v2732_v49 = vmul.f32 %v14610_v41, %v13832_v51  ;;  %v2210_v51 = vsel %vm2204_vm8, %v14454_v38, %v2189_v35  ;;  %v2282_v26 = vmul.f32 %v14619_v46, %v2212_v29  ;;  %v14668_v35 = vld [vmem:[%s18714_s3 + $0x68] sm:$0xff] }
 0x209   : > { %12412 = vmatprep.subr.bf16.mxu0 %v12411_v21  ;;  %1953 = vmatprep.mubr.f32.mxu0 %v18936_v40  ;;  %v2216_v21 = vsel %vm2204_vm8, %v14479_v30, %v2203_v56  ;;  %v14638_v30 = vrot.slane %v14379_v0, %v14168_v28  ;;  %v14644_v56 = vld [vmem:[%s18714_s3 + $0x60] sm:$0xff]  ;;  %v2725_v53 = vmul.f32 %v14610_v41, %v13819_v43 }
 0x20a   : > { %2048 = vmatprep.mubr.f32.mxu1 %v18936_v40  ;;  %v12417_v6 = vpack.c.bf16 %v2284_v59, %v2277_v52  ;;  %v2275_v0 = vmul.f32 %v14619_v46, %v2206_v23 }
 0x20b   : > { %11407 = vmatmul.mubr.msk.f32.gmra.mrb[6].mxu0 %vm943_vm5, %v14461_v42  ;;  %18946 = vst [vmem:[#allocation26_spill] sm:$0xff] %v14638_v30  ;;  %v2286_v5 = vmul.f32 %v14638_v30, %v2216_v21  ;;  %v12423_v17 = vpack.c.bf16 %v2732_v49, %v2725_v53  ;;  %v2279_v43 = vmul.f32 %v14638_v30, %v2210_v51  ;;  %v14683_v49 = vld [vmem:[%s18714_s3 + $0x70] sm:$0xff]  ;;  %v14705_v51 = vld [vmem:[%s18714_s3 + $0x78] sm:$0xff] }
 0x20c   : > { %11412 = vmatmul.mubr.msk.f32.gmra.mrb[22].mxu1 %vm943_vm5, %v14492_v15  ;;  %v14595_v11 = vpop.permute.xlu0 %3135  ;;  %v14597_v62 = vpop.permute.xlu1 %3153  ;;  %1959 = vmatprep.mubr.f32.mxu0 %v18936_v40  ;;  %v12413_v59 = vpack.c.bf16 %v2282_v26, %v2275_v0  ;;  %v14715_v26 = vrot.slane %v14587_v58, %v14012_v32 }
 0x20d   : > { %2054 = vmatprep.mubr.f32.mxu1 %v18936_v40  ;;  %v12419_v29 = vpack.c.bf16 %v2286_v5, %v2279_v43 }
 0x20e   : > { %18947 = vst [vmem:[#allocation27_spill] sm:$0xff] %v14715_v26  ;;  %v2736_v0 = vmul.f32 %v14715_v26, %v13848_v60 }
 0x20f   : > { %11408 = vmatmul.mubr.msk.f32.gmra.mrb[8].mxu0 %vm943_vm5, %v14492_v15 }
 0x210   : > { %11413 = vmatmul.mubr.msk.f32.gmra.mrb[24].mxu1 %vm943_vm5, %v14525_v25  ;;  %v14625_v36 = vpop.permute.xlu0 %3145  ;;  %v14627_v57 = vpop.permute.xlu1 %3149  ;;  %1965 = vmatprep.mubr.f32.mxu0 %v18936_v40 }
 0x211   : > { %2368 = vmatprep.mubr.f32.mxu1 %v18936_v40 }
 0x213   : > { %11409 = vmatmul.mubr.msk.f32.gmra.mrb[10].mxu0 %vm943_vm5, %v14525_v25 }
 0x214   : > { %11422 = vmatmul.mubr.msk.f32.vlgmr.msra.gmra.mrb[10].mxu1 %vm943_vm5, %v14644_v56  ;;  %v14657_v9 = vpop.permute.xlu0 %3159  ;;  %v14659_v38 = vpop.permute.xlu1 %3161  ;;  %12089 = vmatprep.mubr.msk.f32.mxu0 %vm943_vm5, %v14440_v12 }
 0x215   : > { %12418 = vmatpush1.bf16.msra.mxu1 %v12417_v6  ;;  %2374 = vmatprep.mubr.f32.mxu1 %v18936_v40 }
 0x216   : > { %12424 = vmatprep.subr.bf16.mxu1 %v12423_v17 }
 0x217   : > { %12090 = vmatmul.mubr.msk.f32.vlgmr.msra.gmra.mrb[12].mxu0 %vm943_vm5, %v14461_v42  ;;  %v14687_v42 = vrot.slane %v14587_v58, %v14154_v3 }
 0x218   : > { %11423 = vmatmul.mubr.msk.f32.gmra.mrb[12].mxu1 %vm943_vm5, %v14668_v35  ;;  %12414 = vmatpush1.bf16.msra.mxu0 %v12413_v59  ;;  %v14674_v12 = vpop.permute.xlu0 %3143  ;;  %v14676_v21 = vpop.permute.xlu1 %3157 }
 0x219   : > { %12420 = vmatprep.subr.bf16.mxu0 %v12419_v29  ;;  %12092 = vmatprep.mubr.msk.f32.mxu0 %vm943_vm5, %v14492_v15  ;;  %v2734_v52 = vmul.f32 %v14687_v42, %v13857_v63  ;;  %v14711_v63 = vrot.slane %v14587_v58, %v13981_v18 }
 0x21a   : > { %2380 = vmatprep.mubr.f32.mxu1 %v18936_v40 }
 0x21b   : > { %12093 = vmatmul.mubr.msk.f32.gmra.mrb[14].mxu0 %vm943_vm5, %v14525_v25  ;;  %v2727_v25 = vmul.f32 %v14687_v42, %v13850_v61  ;;  %v2731_v6 = vmul.f32 %v14711_v63, %v13821_v44  ;;  %v2724_v17 = vmul.f32 %v14711_v63, %v13810_v34  ;;  %v2729_v44 = vmul.f32 %v14715_v26, %v13838_v54  ;;  %v3194_v34 = vld [vmem:[#allocation4 + $0x5] ss:$8 sm:$0xf] }
 0x21c   : > { %11424 = vmatmul.mubr.msk.f32.gmra.mrb[14].mxu1 %vm943_vm5, %v14683_v49  ;;  %v14696_v15 = vpop.permute.xlu0 %3141  ;;  %v14698_v23 = vpop.permute.xlu1 %3147  ;;  %2457 = vmatprep.mubr.f32.mxu0 %v18936_v40  ;;  %v3195_v54 = vld [vmem:[#allocation4 + $0x5] ss:$8 sm:$0x70] }
 0x21d   : > { %2386 = vmatprep.mubr.f32.mxu1 %v18936_v40  ;;  %v12427_v53 = vpack.c.bf16 %v2734_v52, %v2727_v25  ;;  %v12425_v43 = vpack.c.bf16 %v2731_v6, %v2724_v17  ;;  %v12431_v59 = vpack.c.bf16 %v2736_v0, %v2729_v44  ;;  %v14749_v52 = vrot.slane %v14587_v58, %v14168_v28 }
 0x21e   : > { %v14763_v0 = vor.u32 %v3195_v54, %v3194_v34  ;;  %v3171_v34 = vsel %vm3163_vm9, %v14581_v45, %v14597_v62 }
 0x21f   : > { %11426 = vmatmul.mubr.msk.f32.vlgmr.msra.gmra.mrb[4].mxu0 %vm943_vm5, %v14644_v56  ;;  %18948 = vst [vmem:[#allocation28_spill] sm:$0xff] %v14749_v52  ;;  %v2730_v44 = vmul.f32 %v14749_v52, %v13943_v7  ;;  %v14787_v7 = vrot.slane %v14587_v58, %v14027_v39 }
 0x220   : > { %11425 = vmatmul.mubr.msk.f32.gmra.mrb[16].mxu1 %vm943_vm5, %v14705_v51  ;;  %12422 = vmatpush3.bf16.msra.mxu0 %v12419_v29  ;;  %v14723_v61 = vpop.permute.xlu0 %3646  ;;  %v14725_v5 = vpop.permute.xlu1 %3155 }
 0x221   : > { %12428 = vmatprep.subr.bf16.mxu0 %v12427_v53  ;;  %2463 = vmatprep.mubr.f32.mxu0 %v18936_v40  ;;  %v14758_v53 = vrot.slane %v14587_v58, %v14151_v1  ;;  %18949 = vst [vmem:[#allocation29_spill] sm:$0xff] %v14787_v7  ;;  %v2735_v30 = vmul.f32 %v14787_v7, %v13840_v55  ;;  %v14819_v55 = vld [vmem:[%s18714_s3 + $0x80] sm:$0xff] }
 0x222   : > { %2546 = vmatprep.mubr.f32.mxu1 %v18936_v40  ;;  %v3173_v13 = vsel %vm3163_vm9, %v14725_v5, %v14676_v21 }
 0x223   : > { %11427 = vmatmul.mubr.msk.f32.gmra.mrb[6].mxu0 %vm943_vm5, %v14668_v35  ;;  %v2733_v17 = vmul.f32 %v14758_v53, %v13887_v4  ;;  %v2726_v4 = vmul.f32 %v14758_v53, %v13880_v2 }
 0x224   : > { %11430 = vmatmul.mubr.msk.f32.vlgmr.msra.gmra.mrb[18].mxu1 %vm943_vm5, %v14644_v56  ;;  %v14739_v60 = vpop.permute.xlu0 %3660  ;;  %v14741_v29 = vpop.permute.xlu1 %3648  ;;  %2469 = vmatprep.mubr.f32.mxu0 %v18936_v40 }
 0x225   : > { %12426 = vmatpush1.bf16.msra.mxu1 %v12425_v43  ;;  %2552 = vmatprep.mubr.f32.mxu1 %v18936_v40  ;;  %v2737_v43 = vmul.f32 %v14749_v52, %v13949_v8  ;;  %v14791_v8 = vrot.slane %v14763_v0, %v13976_v16  ;;  %v12429_v54 = vpack.c.bf16 %v2733_v17, %v2726_v4 }
 0x226   : > { %12432 = vmatprep.subr.bf16.mxu1 %v12431_v59  ;;  %v14812_v4 = vrot.slane %v14763_v0, %v14154_v3 }
 0x227   : > { %11428 = vmatmul.mubr.msk.f32.gmra.mrb[8].mxu0 %vm943_vm5, %v14683_v49  ;;  %18950 = vst [vmem:[#allocation30_spill] sm:$0xff] %v14791_v8  ;;  %v12435_v52 = vpack.c.bf16 %v2737_v43, %v2730_v44  ;;  %v3241_v58 = vmul.f32 %v14791_v8, %v3171_v34  ;;  %v3167_v43 = vsel %vm3163_vm9, %v14696_v15, %v14674_v12 }
 0x228   : > { %11431 = vmatmul.mubr.msk.f32.gmra.mrb[20].mxu1 %vm943_vm5, %v14668_v35  ;;  %v14753_v25 = vpop.permute.xlu1 %3662  ;;  %2475 = vmatprep.mubr.f32.mxu0 %v18936_v40  ;;  %v14760_v6 = vpop.permute.xlu0 %3644  ;;  %18951 = vst [vmem:[#allocation31_spill] sm:$0xff] %v14812_v4  ;;  %v3243_v34 = vmul.f32 %v14812_v4, %v3173_v13  ;;  %v14843_v13 = vld [vmem:[%s18714_s3 + $0x88] sm:$0xff] }
 0x229   : > { %2558 = vmatprep.mubr.f32.mxu1 %v18936_v40 }
 0x22b   : > { %11429 = vmatmul.mubr.msk.f32.gmra.mrb[10].mxu0 %vm943_vm5, %v14705_v51 }
 0x22c   : > { %11432 = vmatmul.mubr.msk.f32.gmra.mrb[22].mxu1 %vm943_vm5, %v14683_v49  ;;  %v14775_v59 = vpop.permute.xlu1 %3658  ;;  %12099 = vmatprep.mubr.msk.f32.mxu0 %vm943_vm5, %v14644_v56  ;;  %v3165_v56 = vsel %vm3163_vm9, %v14573_v14, %v14583_v31  ;;  %v14796_v2 = vpop.permute.xlu0 %3650 }
 0x22d   : > { %2564 = vmatprep.mubr.f32.mxu1 %v18936_v40  ;;  %v3234_v44 = vmul.f32 %v14791_v8, %v3165_v56 }
 0x22f   : > { %12100 = vmatmul.mubr.msk.f32.vlgmr.msra.gmra.mrb[12].mxu0 %vm943_vm5, %v14668_v35  ;;  %v2728_v35 = vmul.f32 %v14787_v7, %v13828_v48  ;;  %v3236_v48 = vmul.f32 %v14812_v4, %v3167_v43  ;;  %v3169_v43 = vsel %vm3163_vm9, %v14625_v36, %v14698_v23  ;;  %v3166_v4 = vsel %vm3163_vm9, %v14583_v31, %v14696_v15  ;;  %v3701_v31 = vld [vmem:[#allocation4 + $0x6] ss:$8 sm:$0xf] }
 0x230   : > { %11433 = vmatmul.mubr.msk.f32.gmra.mrb[24].mxu1 %vm943_vm5, %v14705_v51  ;;  %12430 = vmatpush1.bf16.msra.mxu0 %v12429_v54  ;;  %v14808_v17 = vpop.permute.xlu1 %3652  ;;  %v12439_v54 = vpack.c.bf16 %v3241_v58, %v3234_v44  ;;  %v14837_v56 = vpop.permute.xlu0 %3654  ;;  %v14855_v58 = vld [vmem:[%s18714_s3 + $0x90] sm:$0xff]  ;;  %v14870_v44 = vrot.slane %v14763_v0, %v13981_v18 }
 0x231   : > { %12436 = vmatprep.subr.bf16.mxu0 %v12435_v52  ;;  %12102 = vmatprep.mubr.msk.f32.mxu0 %vm943_vm5, %v14683_v49  ;;  %v12433_v49 = vpack.c.bf16 %v2735_v30, %v2728_v35  ;;  %v12443_v30 = vpack.c.bf16 %v3243_v34, %v3236_v48  ;;  %v14879_v34 = vld [vmem:[%s18714_s3 + $0x98] sm:$0xff]  ;;  %v3172_v48 = vsel %vm3163_vm9, %v14597_v62, %v14725_v5 }
 0x232   : > { %2819 = vmatprep.mubr.f32.mxu1 %v18936_v40  ;;  %18952 = vst [vmem:[#allocation32_spill] sm:$0xff] %v14870_v44  ;;  %v14912_v5 = vrot.slane %v14763_v0, %v14168_v28  ;;  %v3702_v15 = vld [vmem:[#allocation4 + $0x6] ss:$8 sm:$0x70] }
 0x233   : > { %12103 = vmatmul.mubr.msk.f32.gmra.mrb[14].mxu0 %vm943_vm5, %v14705_v51 }
 0x234   : > { %11442 = vmatmul.mubr.msk.f32.vlgmr.msra.gmra.mrb[10].mxu1 %vm943_vm5, %v14819_v55  ;;  %v14833_v10 = vpop.permute.xlu1 %3666  ;;  %2908 = vmatprep.mubr.f32.mxu0 %v18936_v40  ;;  %v14858_v35 = vpop.permute.xlu0 %3664  ;;  %18955 = vst [vmem:[#allocation35_spill] sm:$0xff] %v14912_v5 }
 0x235   : > { %12434 = vmatpush1.bf16.msra.mxu1 %v12433_v49  ;;  %2825 = vmatprep.mubr.f32.mxu1 %v18936_v40 }
 0x236   : > { %12440 = vmatprep.subr.bf16.mxu1 %v12439_v54  ;;  %v3175_v54 = vsel %vm3163_vm9, %v14657_v9, %v14659_v38 }
 0x237   : > { %11446 = vmatmul.mubr.msk.f32.vlgmr.msra.gmra.mrb[4].mxu0 %vm943_vm5, %v14819_v55 }
 0x238   : > { %11443 = vmatmul.mubr.msk.f32.gmra.mrb[12].mxu1 %vm943_vm5, %v14843_v13  ;;  %12438 = vmatpush3.bf16.msra.mxu0 %v12435_v52  ;;  %v14849_v51 = vpop.permute.xlu1 %3656  ;;  %v3170_v52 = vsel %vm3163_vm9, %v14627_v57, %v14581_v45  ;;  %v3164_v45 = vsel %vm3163_vm9, %v14595_v11, %v14573_v14  ;;  %v14886_v57 = vrot.slane %v14763_v0, %v14012_v32  ;;  %v3191_v11 = vsel %vm3190_vm10, %v14698_v23, 0.0  ;;  %v14917_v8 = vpop.permute.xlu0 %3668 }
 0x239   : > { %12444 = vmatprep.subr.bf16.mxu0 %v12443_v30  ;;  %2831 = vmatprep.mubr.f32.mxu1 %v18936_v40  ;;  %v3240_v49 = vmul.f32 %v14870_v44, %v3170_v52  ;;  %v14901_v14 = vrot.slane %v14763_v0, %v14151_v1  ;;  %v3233_v62 = vmul.f32 %v14870_v44, %v3164_v45  ;;  %v3192_v23 = vsel %vm3190_vm10, %v14659_v38, 0.0 }
 0x23a   : > { %2914 = vmatprep.mubr.f32.mxu0 %v18936_v40  ;;  %18953 = vst [vmem:[#allocation33_spill] sm:$0xff] %v14886_v57  ;;  %v3238_v52 = vmul.f32 %v14886_v57, %v3169_v43  ;;  %v3245_v43 = vmul.f32 %v14886_v57, %v3175_v54  ;;  %v3239_v44 = vmul.f32 %v14912_v5, %v3191_v11 }
 0x23b   : > { %11447 = vmatmul.mubr.msk.f32.gmra.mrb[6].mxu0 %vm943_vm5, %v14843_v13  ;;  %18954 = vst [vmem:[#allocation34_spill] sm:$0xff] %v14901_v14  ;;  %v3242_v7 = vmul.f32 %v14901_v14, %v3172_v48  ;;  %v12441_v45 = vpack.c.bf16 %v3240_v49, %v3233_v62  ;;  %v3235_v26 = vmul.f32 %v14901_v14, %v3166_v4 }
 0x23c   : > { %11444 = vmatmul.mubr.msk.f32.gmra.mrb[14].mxu1 %vm943_vm5, %v14855_v58  ;;  %2920 = vmatprep.mubr.f32.mxu0 %v18936_v40  ;;  %v14895_v30 = vpop.permute.xlu1 %3670  ;;  %v12447_v47 = vpack.c.bf16 %v3245_v43, %v3238_v52  ;;  %v3246_v38 = vmul.f32 %v14912_v5, %v3192_v23  ;;  %v14936_v4 = vor.u32 %v3702_v15, %v3701_v31  ;;  %v14938_v48 = vpop.permute.xlu0 %4152  ;;  %v15004_v15 = vld [vmem:[%s18714_s3 + $0xa8] sm:$0xff] }
 0x23d   : > { %2837 = vmatprep.mubr.f32.mxu1 %v18936_v40  ;;  %v12445_v49 = vpack.c.bf16 %v3242_v7, %v3235_v26  ;;  %v3676_v26 = vsel %vm3672_vm11, %v14796_v2, %v14808_v17  ;;  %v14959_v7 = vrot.slane %v14763_v0, %v14027_v39  ;;  %v3168_v52 = vsel %vm3163_vm9, %v14674_v12, %v14625_v36  ;;  %v14978_v0 = vld [vmem:[%s18714_s3 + $0xa0] sm:$0xff] }
 0x23e   : > { %v12451_v11 = vpack.c.bf16 %v3246_v38, %v3239_v44  ;;  %v3174_v62 = vsel %vm3163_vm9, %v14676_v21, %v14657_v9  ;;  %v3680_v23 = vsel %vm3672_vm11, %v14739_v60, %v14753_v25  ;;  %v14989_v9 = vrot.slane %v14936_v4, %v13976_v16  ;;  %v5163_v38 = vld [vmem:[%s18715_s4 + $0x8] sm:$0xff] }
 0x23f   : > { %11448 = vmatmul.mubr.msk.f32.gmra.mrb[8].mxu0 %vm943_vm5, %v14855_v58  ;;  %18957 = vst [vmem:[#allocation37_spill] sm:$0xff] %v14959_v7  ;;  %v3237_v21 = vmul.f32 %v14959_v7, %v3168_v52  ;;  %v3674_v43 = vsel %vm3672_vm11, %v14723_v61, %v14741_v29  ;;  %5173 = vperm.xlu1 %13510, %v5163_v38   ;;  %v15027_v52 = vld [vmem:[%s18714_s3 + $0xb0] sm:$0xff] }
 0x240   : > { %11445 = vmatmul.mubr.msk.f32.gmra.mrb[16].mxu1 %vm943_vm5, %v14879_v34  ;;  %2926 = vmatprep.mubr.f32.mxu0 %v18936_v40  ;;  %v14933_v54 = vpop.permute.xlu1 %4154  ;;  %v14984_v12 = vpop.permute.xlu0 %4166  ;;  %18958 = vst [vmem:[#allocation38_spill] sm:$0xff] %v14989_v9  ;;  %v3748_v31 = vmul.f32 %v14989_v9, %v3680_v23  ;;  %v3681_v23 = vsel %vm3672_vm11, %v14753_v25, %v14858_v35 }
 0x241   : > { %2997 = vmatprep.mubr.f32.mxu1 %v18936_v40  ;;  %v3675_v25 = vsel %vm3672_vm11, %v14741_v29, %v14796_v2  ;;  %v3679_v29 = vsel %vm3672_vm11, %v14775_v59, %v14739_v60  ;;  %v3678_v2 = vsel %vm3672_vm11, %v14837_v56, %v14849_v51  ;;  %v3673_v60 = vsel %vm3672_vm11, %v14760_v6, %v14723_v61 }
 0x242   : > { %v15087_v51 = vrot.slane %v14936_v4, %v14012_v32 }
 0x243   : > { %11449 = vmatmul.mubr.msk.f32.gmra.mrb[10].mxu0 %vm943_vm5, %v14879_v34 }
 0x244   : > { %11450 = vmatmul.mubr.msk.f32.vlgmr.msra.gmra.mrb[18].mxu1 %vm943_vm5, %v14819_v55  ;;  %12109 = vmatprep.mubr.msk.f32.mxu0 %vm943_vm5, %v14819_v55  ;;  %v3682_v55 = vsel %vm3672_vm11, %v14858_v35, %v14833_v10  ;;  %v14962_v44 = vpop.permute.xlu1 %4168  ;;  %18961 = vst [vmem:[#allocation41_spill] sm:$0xff] %v15087_v51 }
 0x245   : > { %12442 = vmatpush1.bf16.msra.mxu1 %v12441_v45  ;;  %3003 = vmatprep.mubr.f32.mxu1 %v18936_v40 }
 0x246   : > { %12448 = vmatprep.subr.bf16.mxu1 %v12447_v47  ;;  %v14949_v47 = vrot.slane %v14936_v4, %v14154_v3 }
 0x247   : > { %12110 = vmatmul.mubr.msk.f32.vlgmr.msra.gmra.mrb[12].mxu0 %vm943_vm5, %v14843_v13 }
 0x248   : > { %11451 = vmatmul.mubr.msk.f32.gmra.mrb[20].mxu1 %vm943_vm5, %v14843_v13  ;;  %12446 = vmatpush1.bf16.msra.mxu0 %v12445_v49  ;;  %18956 = vst [vmem:[#allocation36_spill] sm:$0xff] %v14949_v47  ;;  %v3750_v13 = vmul.f32 %v14949_v47, %v3682_v55  ;;  %v3743_v36 = vmul.f32 %v14949_v47, %v3676_v26  ;;  %v15009_v49 = vpop.permute.xlu1 %4164  ;;  %v5165_v26 = vld [vmem:[%s18715_s4 + $0x18] sm:$0xff] }
 0x249   : > { %12452 = vmatprep.subr.bf16.mxu0 %v12451_v11  ;;  %3009 = vmatprep.mubr.f32.mxu1 %v18936_v40  ;;  %v3741_v55 = vmul.f32 %v14989_v9, %v3674_v43 }
 0x24a   : > { %12112 = vmatprep.mubr.msk.f32.mxu0 %vm943_vm5, %v14855_v58  ;;  %v12459_v45 = vpack.c.bf16 %v3750_v13, %v3743_v36  ;;  %5183 = vperm.xlu1 %13510, %v5165_v26  }
 0x24b   : > { %12113 = vmatmul.mubr.msk.f32.gmra.mrb[14].mxu0 %vm943_vm5, %v14879_v34  ;;  %v12455_v13 = vpack.c.bf16 %v3748_v31, %v3741_v55  ;;  %v4207_v55 = vld [vmem:[#allocation4 + $0x7] ss:$8 sm:$0xf] }
 0x24c   : > { %11452 = vmatmul.mubr.msk.f32.gmra.mrb[22].mxu1 %vm943_vm5, %v14855_v58  ;;  %3417 = vmatprep.mubr.f32.mxu0 %v18936_v40  ;;  %v3244_v58 = vmul.f32 %v14959_v7, %v3174_v62  ;;  %v3732_v62 = vrot.slane %v14936_v4, %v14168_v28  ;;  %v15035_v36 = vpop.permute.xlu1 %4158 }
 0x24d   : > { %3015 = vmatprep.mubr.f32.mxu1 %v18936_v40 }
 0x24e   : > { %v3746_v31 = vmul.f32 0.0, %v3732_v62 }
 0x24f   : > { %11466 = vmatmul.mubr.msk.f32.vlgmr.msra.gmra.mrb[4].mxu0 %vm943_vm5, %v14978_v0 }
 0x250   : > { %11453 = vmatmul.mubr.msk.f32.gmra.mrb[24].mxu1 %vm943_vm5, %v14879_v34  ;;  %12454 = vmatpush3.bf16.msra.mxu0 %v12451_v11  ;;  %v12449_v34 = vpack.c.bf16 %v3244_v58, %v3237_v21  ;;  %v15014_v11 = vpop.permute.xlu0 %4150  ;;  %v15041_v21 = vrot.slane %v14936_v4, %v14151_v1  ;;  %v15049_v58 = vld [vmem:[%s18714_s3 + $0xb8] sm:$0xff]  ;;  %v15089_v62 = vpack.c.bf16 %v3746_v31, %v3746_v31 }
 0x251   : > { %12460 = vmatprep.subr.bf16.mxu0 %v12459_v45  ;;  %3328 = vmatprep.mubr.f32.mxu1 %v18936_v40  ;;  %v3684_v45 = vsel %vm3672_vm11, %v14917_v8, %v14895_v30  ;;  %v15076_v30 = vrot.slane %v14936_v4, %v13981_v18 }
 0x252   : > { %3423 = vmatprep.mubr.f32.mxu0 %v18936_v40  ;;  %18959 = vst [vmem:[#allocation39_spill] sm:$0xff] %v15041_v21  ;;  %v3749_v43 = vmul.f32 %v15041_v21, %v3681_v23  ;;  %v3742_v38 = vmul.f32 %v15041_v21, %v3675_v25  ;;  %v3699_v26 = vsel %vm3697_vm12, %v3684_v45, 0.0  ;;  %18962 = vst [vmem:[#allocation42_spill] sm:$0xff] %v15089_v62  ;;  %v3698_v25 = vsel %vm3697_vm12, %v3678_v2, 0.0 }
 0x253   : > { %11467 = vmatmul.mubr.msk.f32.gmra.mrb[6].mxu0 %vm943_vm5, %v15004_v15  ;;  %18960 = vst [vmem:[#allocation40_spill] sm:$0xff] %v15076_v30  ;;  %v3747_v23 = vmul.f32 %v15076_v30, %v3679_v29  ;;  %v3752_v61 = vmul.f32 %v15087_v51, %v3699_v26 }
 0x254   : > { %11462 = vmatmul.mubr.msk.f32.vlgmr.msra.gmra.mrb[10].mxu1 %vm943_vm5, %v14978_v0  ;;  %3429 = vmatprep.mubr.f32.mxu0 %v18936_v40  ;;  %v15054_v35 = vpop.permute.xlu0 %4156  ;;  %v12461_v59 = vpack.c.bf16 %v3749_v43, %v3742_v38  ;;  %v3740_v43 = vmul.f32 %v15076_v30, %v3673_v60  ;;  %v3745_v38 = vmul.f32 %v15087_v51, %v3698_v25  ;;  %v15126_v60 = vld [vmem:[%s18714_s3 + $0xc0] sm:$0xff]  ;;  %v15140_v25 = vld [vmem:[%s18714_s3 + $0xc8] sm:$0xff] }
 0x255   : > { %12450 = vmatpush1.bf16.msra.mxu1 %v12449_v34  ;;  %3334 = vmatprep.mubr.f32.mxu1 %v18936_v40  ;;  %v4208_v34 = vld [vmem:[#allocation4 + $0x7] ss:$8 sm:$0x70]  ;;  %v4182_v29 = vsel %vm4178_vm13, %v15054_v35, %v15035_v36 }
 0x256   : > { %12456 = vmatprep.subr.bf16.mxu1 %v12455_v13  ;;  %v15079_v13 = vpop.permute.xlu1 %4172  ;;  %v15093_v45 = vor.u32 %v4208_v34, %v4207_v55  ;;  %v12457_v2 = vpack.c.bf16 %v3747_v23, %v3740_v43  ;;  %v12463_v26 = vpack.c.bf16 %v3752_v61, %v3745_v38  ;;  %v15157_v43 = vld [vmem:[%s18714_s3 + $0xd0] sm:$0xff]  ;;  %v15161_v38 = vrot.slane %v14936_v4, %v14027_v39 }
 0x257   : > { %11468 = vmatmul.mubr.msk.f32.gmra.mrb[8].mxu0 %vm943_vm5, %v15027_v52 }
 0x258   : > { %11463 = vmatmul.mubr.msk.f32.gmra.mrb[12].mxu1 %vm943_vm5, %v15004_v15  ;;  %3435 = vmatprep.mubr.f32.mxu0 %v18936_v40  ;;  %v4171_v5 = vpop.permute.xlu0 %4170  ;;  %v15105_v31 = vrot.slane %v15093_v45, %v14154_v3  ;;  %18964 = vst [vmem:[#allocation44_spill] sm:$0xff] %v15161_v38 }
 0x259   : > { %3340 = vmatprep.mubr.f32.mxu1 %v18936_v40  ;;  %v4188_v6 = vsel %vm4178_vm13, %v4171_v5, %v15079_v13 }
 0x25a   : > { %18963 = vst [vmem:[#allocation43_spill] sm:$0xff] %v15105_v31  ;;  %v4256_v55 = vmul.f32 %v15105_v31, %v4188_v6  ;;  %v15116_v34 = vpop.permute.xlu1 %4176 }
 0x25b   : > { %11469 = vmatmul.mubr.msk.f32.gmra.mrb[10].mxu0 %vm943_vm5, %v15049_v58 }
 0x25c   : > { %11464 = vmatmul.mubr.msk.f32.gmra.mrb[14].mxu1 %vm943_vm5, %v15027_v52  ;;  %12119 = vmatprep.mubr.msk.f32.mxu0 %vm943_vm5, %v14978_v0  ;;  %v15129_v23 = vpop.permute.xlu0 %4160 }
 0x25d   : > { %3346 = vmatprep.mubr.f32.mxu1 %v18936_v40 }
 0x25e   : > { %v4163_v61 = vpop.permute.xlu1 %4162 }
 0x25f   : > { %12120 = vmatmul.mubr.msk.f32.vlgmr.msra.gmra.mrb[12].mxu0 %vm943_vm5, %v15004_v15 }
 0x260   : > { %11465 = vmatmul.mubr.msk.f32.gmra.mrb[16].mxu1 %vm943_vm5, %v15049_v58  ;;  %12462 = vmatpush1.bf16.msra.mxu0 %v12461_v59  ;;  %v4249_v59 = vmul.f32 %v15105_v31, %v4182_v29  ;;  %v15144_v6 = vpop.permute.xlu0 %4174  ;;  %v4186_v29 = vsel %vm4178_vm13, %v14984_v12, %v14962_v44 }
 0x261   : > { %3506 = vmatprep.mubr.f32.mxu1 %v18936_v40  ;;  %12122 = vmatprep.mubr.msk.f32.mxu0 %vm943_vm5, %v15027_v52 }
 0x262   : > { %12468 = vmatprep.subr.bf16.mxu0 %v15089_v62 }
 0x263   : > { %12123 = vmatmul.mubr.msk.f32.gmra.mrb[14].mxu0 %vm943_vm5, %v15049_v58 }
 0x264   : > { %11470 = vmatmul.mubr.msk.f32.vlgmr.msra.gmra.mrb[18].mxu1 %vm943_vm5, %v14978_v0  ;;  %3923 = vmatprep.mubr.f32.mxu0 %v18936_v40  ;;  %v12475_v0 = vpack.c.bf16 %v4256_v55, %v4249_v59  ;;  %v4187_v55 = vsel %vm4178_vm13, %v14962_v44, %v4171_v5  ;;  %v15197_v5 = vld [vmem:[%s18714_s3 + $0xd8] sm:$0xff]  ;;  %v4181_v59 = vsel %vm4178_vm13, %v14933_v54, %v15054_v35 }
 0x265   : > { %12458 = vmatpush1.bf16.msra.mxu1 %v12457_v2  ;;  %3512 = vmatprep.mubr.f32.mxu1 %v18936_v40  ;;  %v4180_v2 = vsel %vm4178_vm13, %v14938_v48, %v14933_v54 }
 0x266   : > { %12464 = vmatprep.subr.bf16.mxu1 %v12463_v26  ;;  %v15182_v26 = vpop.permute.xlu1 %4664 }
 0x267   : > { %11486 = vmatmul.mubr.msk.f32.vlgmr.msra.gmra.mrb[4].mxu0 %vm943_vm5, %v15126_v60 }
 0x268   : > { %11471 = vmatmul.mubr.msk.f32.gmra.mrb[20].mxu1 %vm943_vm5, %v15004_v15  ;;  %12470 = vmatpush3.bf16.msra.mxu0 %v15089_v62  ;;  %v3683_v15 = vsel %vm3672_vm11, %v14833_v10, %v14917_v8  ;;  %v3677_v10 = vsel %vm3672_vm11, %v14808_v17, %v14837_v56  ;;  %v15172_v8 = vrot.slane %v15093_v45, %v13976_v16  ;;  %v4714_v62 = vld [vmem:[#allocation4 + $0x38] ss:$8 sm:$0x70] }
 0x269   : > { %12476 = vmatprep.subr.bf16.mxu0 %v12475_v0  ;;  %3518 = vmatprep.mubr.f32.mxu1 %v18936_v40  ;;  %v3751_v4 = vmul.f32 %v15161_v38, %v3683_v15  ;;  %v15189_v56 = vrot.slane %v15093_v45, %v14151_v1  ;;  %v3744_v44 = vmul.f32 %v15161_v38, %v3677_v10  ;;  %v15203_v0 = vpop.permute.xlu0 %4662  ;;  %v4713_v15 = vld [vmem:[#allocation4 + $0x38] ss:$8 sm:$0xf] }
 0x26a   : > { %3929 = vmatprep.mubr.f32.mxu0 %v18936_v40  ;;  %18965 = vst [vmem:[#allocation45_spill] sm:$0xff] %v15172_v8  ;;  %v4254_v17 = vmul.f32 %v15172_v8, %v4186_v29  ;;  %v15215_v35 = vor.u32 %v4714_v62, %v4713_v15  ;;  %v4184_v62 = vsel %vm4178_vm13, %v15129_v23, %v4163_v61 }
 0x26b   : > { %11487 = vmatmul.mubr.msk.f32.gmra.mrb[6].mxu0 %vm943_vm5, %v15140_v25  ;;  %18966 = vst [vmem:[#allocation46_spill] sm:$0xff] %v15189_v56  ;;  %v4255_v29 = vmul.f32 %v15189_v56, %v4187_v55  ;;  %v12465_v51 = vpack.c.bf16 %v3751_v4, %v3744_v44  ;;  %v4248_v10 = vmul.f32 %v15189_v56, %v4181_v59  ;;  %v15256_v59 = vld [vmem:[%s18714_s3 + $0xe0] sm:$0xff] }
 0x26c   : > { %11472 = vmatmul.mubr.msk.f32.gmra.mrb[22].mxu1 %vm943_vm5, %v15027_v52  ;;  %3935 = vmatprep.mubr.f32.mxu0 %v18936_v40  ;;  %v4238_v52 = vrot.slane %v15093_v45, %v14168_v28  ;;  %v4190_v61 = vsel %vm4178_vm13, %v15144_v6, %v15116_v34  ;;  %v15260_v15 = vrot.slane %v15093_v45, %v13981_v18 }
 0x26d   : > { %3524 = vmatprep.mubr.f32.mxu1 %v18936_v40  ;;  %v4677_v55 = vpop.permute.xlu0 %4676  ;;  %v4179_v34 = vsel %vm4178_vm13, %v15014_v11, %v14938_v48  ;;  %v15283_v48 = vld [vmem:[%s18714_s3 + $0xe8] sm:$0xff] }
 0x26e   : > { %v4252_v31 = vmul.f32 0.0, %v4238_v52  ;;  %v12477_v52 = vpack.c.bf16 %v4255_v29, %v4248_v10  ;;  %18969 = vst [vmem:[#allocation49_spill] sm:$0xff] %v15260_v15  ;;  %v4246_v11 = vmul.f32 %v15260_v15, %v4179_v34 }
 0x26f   : > { %11488 = vmatmul.mubr.msk.f32.gmra.mrb[8].mxu0 %vm943_vm5, %v15157_v43 }
 0x270   : > { %11473 = vmatmul.mubr.msk.f32.gmra.mrb[24].mxu1 %vm943_vm5, %v15049_v58  ;;  %3941 = vmatprep.mubr.f32.mxu0 %v18936_v40  ;;  %v4247_v58 = vmul.f32 %v15172_v8, %v4180_v2  ;;  %v15217_v2 = vpop.permute.xlu1 %4678  ;;  %v15220_v4 = vpack.c.bf16 %v4252_v31, %v4252_v31  ;;  %v4688_v31 = vsel %vm4684_vm14, %v15203_v0, %v15182_v26 }
 0x271   : > { %3834 = vmatprep.mubr.f32.mxu1 %v18936_v40 }
 0x272   : > { %v12471_v54 = vpack.c.bf16 %v4254_v17, %v4247_v58  ;;  %18967 = vst [vmem:[#allocation47_spill] sm:$0xff] %v15220_v4  ;;  %v4694_v17 = vsel %vm4684_vm14, %v4677_v55, %v15217_v2  ;;  %v15270_v58 = vrot.slane %v15093_v45, %v14012_v32 }
 0x273   : > { %11489 = vmatmul.mubr.msk.f32.gmra.mrb[10].mxu0 %vm943_vm5, %v15197_v5 }
 0x274   : > { %11482 = vmatmul.mubr.msk.f32.vlgmr.msra.gmra.mrb[10].mxu1 %vm943_vm5, %v15126_v60  ;;  %12129 = vmatprep.mubr.msk.f32.mxu0 %vm943_vm5, %v15126_v60  ;;  %18970 = vst [vmem:[#allocation50_spill] sm:$0xff] %v15270_v58  ;;  %v4661_v29 = vpop.permute.xlu1 %4660 }
 0x275   : > { %12466 = vmatpush1.bf16.msra.mxu1 %v12465_v51  ;;  %3840 = vmatprep.mubr.f32.mxu1 %v18936_v40  ;;  %v15230_v51 = vrot.slane %v15215_v35, %v14154_v3  ;;  %v4185_v3 = vsel %vm4178_vm13, %v15009_v49, %v14984_v12  ;;  %v4204_v12 = vsel %vm4203_vm15, %v4184_v62, 0.0  ;;  %v15286_v62 = vpop.permute.xlu0 %4658 }
 0x276   : > { %12472 = vmatprep.subr.bf16.mxu1 %v12471_v54  ;;  %v4253_v10 = vmul.f32 %v15260_v15, %v4185_v3  ;;  %v4205_v54 = vsel %vm4203_vm15, %v4190_v61, 0.0 }
 0x277   : > { %12130 = vmatmul.mubr.msk.f32.vlgmr.msra.gmra.mrb[12].mxu0 %vm943_vm5, %v15140_v25  ;;  %18968 = vst [vmem:[#allocation48_spill] sm:$0xff] %v15230_v51  ;;  %v4762_v44 = vmul.f32 %v15230_v51, %v4694_v17  ;;  %v4755_v49 = vmul.f32 %v15230_v51, %v4688_v31  ;;  %v4251_v17 = vmul.f32 %v15270_v58, %v4204_v12  ;;  %v15299_v12 = vld [vmem:[%s18714_s3 + $0xf0] sm:$0xff] }
 0x278   : > { %11483 = vmatmul.mubr.msk.f32.gmra.mrb[12].mxu1 %vm943_vm5, %v15140_v25  ;;  %12478 = vmatpush1.bf16.msra.mxu0 %v12477_v52  ;;  %v4258_v31 = vmul.f32 %v15270_v58, %v4205_v54  ;;  %v4675_v3 = vpop.permute.xlu1 %4674  ;;  %v15317_v54 = vld [vmem:[%s18714_s3 + $0xf8] sm:$0xff] }
 0x279   : > { %3846 = vmatprep.mubr.f32.mxu1 %v18936_v40  ;;  %12132 = vmatprep.mubr.msk.f32.mxu0 %vm943_vm5, %v15157_v43  ;;  %v12491_v52 = vpack.c.bf16 %v4762_v44, %v4755_v49  ;;  %v12473_v44 = vpack.c.bf16 %v4253_v10, %v4246_v11  ;;  %v4744_v49 = vrot.slane %v15215_v35, %v14168_v28  ;;  %v4673_v34 = vpop.permute.xlu0 %4672 }
 0x27a   : > { %12484 = vmatprep.subr.bf16.mxu0 %v15220_v4  ;;  %v12479_v61 = vpack.c.bf16 %v4258_v31, %v4251_v17  ;;  %v4693_v10 = vsel %vm4684_vm14, %v4675_v3, %v4677_v55  ;;  %v4687_v28 = vsel %vm4684_vm14, %v4661_v29, %v15203_v0  ;;  %v15335_v0 = vrot.slane %v15093_v45, %v14027_v39 }
 0x27b   : > { %12133 = vmatmul.mubr.msk.f32.gmra.mrb[14].mxu0 %vm943_vm5, %v15197_v5  ;;  %v4692_v31 = vsel %vm4684_vm14, %v4673_v34, %v4675_v3  ;;  %v4686_v45 = vsel %vm4684_vm14, %v15286_v62, %v4661_v29 }
 0x27c   : > { %11484 = vmatmul.mubr.msk.f32.gmra.mrb[14].mxu1 %vm943_vm5, %v15157_v43  ;;  %4429 = vmatprep.mubr.f32.mxu0 %v18936_v40  ;;  %18972 = vst [vmem:[#allocation52_spill] sm:$0xff] %v15335_v0 }
 0x27d   : > { %3852 = vmatprep.mubr.f32.mxu1 %v18936_v40  ;;  %v4657_v11 = vpop.permute.xlu0 %4656 }
 0x27f   : > { %11506 = vmatmul.mubr.msk.f32.vlgmr.msra.gmra.mrb[4].mxu0 %vm943_vm5, %v15256_v59 }
 0x280   : > { %11485 = vmatmul.mubr.msk.f32.gmra.mrb[16].mxu1 %vm943_vm5, %v15197_v5  ;;  %12486 = vmatpush3.bf16.msra.mxu0 %v15220_v4 }
 0x281   : > { %12492 = vmatprep.subr.bf16.mxu0 %v12491_v52  ;;  %4012 = vmatprep.mubr.f32.mxu1 %v18936_v40  ;;  %v4758_v52 = vmul.f32 0.0, %v4744_v49  ;;  %v4667_v49 = vpop.permute.xlu0 %4666 }
 0x282   : > { %4435 = vmatprep.mubr.f32.mxu0 %v18936_v40 }
 0x283   : > { %11507 = vmatmul.mubr.msk.f32.gmra.mrb[6].mxu0 %vm943_vm5, %v15283_v48 }
 0x284   : > { %11490 = vmatmul.mubr.msk.f32.vlgmr.msra.gmra.mrb[18].mxu1 %vm943_vm5, %v15126_v60  ;;  %4441 = vmatprep.mubr.f32.mxu0 %v18936_v40  ;;  %v15309_v60 = vrot.slane %v15215_v35, %v14151_v1  ;;  %v4671_v1 = vpop.permute.xlu1 %4670 }
 0x285   : > { %12474 = vmatpush1.bf16.msra.mxu1 %v12473_v44  ;;  %4018 = vmatprep.mubr.f32.mxu1 %v18936_v40  ;;  %v15346_v44 = vpack.c.bf16 %v4758_v52, %v4758_v52  ;;  %v4681_v52 = vpop.permute.xlu0 %4680 }
 0x286   : > { %12480 = vmatprep.subr.bf16.mxu1 %v12479_v61  ;;  %18971 = vst [vmem:[#allocation51_spill] sm:$0xff] %v15309_v60  ;;  %v4761_v55 = vmul.f32 %v15309_v60, %v4693_v10  ;;  %v4754_v17 = vmul.f32 %v15309_v60, %v4687_v28  ;;  %v15370_v10 = vld [vmem:[%s18714_s3 + $0x100] sm:$0xff] }
 0x287   : > { %11508 = vmatmul.mubr.msk.f32.gmra.mrb[8].mxu0 %vm943_vm5, %v15299_v12  ;;  %18974 = vst [vmem:[#allocation54_spill] sm:$0xff] %v15346_v44 }
 0x288   : > { %11491 = vmatmul.mubr.msk.f32.gmra.mrb[20].mxu1 %vm943_vm5, %v15140_v25  ;;  %4447 = vmatprep.mubr.f32.mxu0 %v18936_v40  ;;  %v4189_v25 = vsel %vm4178_vm13, %v15079_v13, %v15144_v6  ;;  %v4183_v13 = vsel %vm4178_vm13, %v15035_v36, %v15129_v23  ;;  %v15344_v6 = vrot.slane %v15215_v35, %v13976_v16  ;;  %v4669_v36 = vpop.permute.xlu1 %4668 }
 0x289   : > { %4024 = vmatprep.mubr.f32.mxu1 %v18936_v40  ;;  %v4257_v61 = vmul.f32 %v15335_v0, %v4189_v25  ;;  %v4250_v16 = vmul.f32 %v15335_v0, %v4183_v13  ;;  %v11520_v13 = vld [vmem:[%s18714_s3 + $0x110] sm:$0xff] }
 0x28a   : > { %18973 = vst [vmem:[#allocation53_spill] sm:$0xff] %v15344_v6  ;;  %v4760_v3 = vmul.f32 %v15344_v6, %v4692_v31  ;;  %v4753_v23 = vmul.f32 %v15344_v6, %v4686_v45  ;;  %v4690_v31 = vsel %vm4684_vm14, %v4667_v49, %v4669_v36 }
 0x28b   : > { %11509 = vmatmul.mubr.msk.f32.gmra.mrb[10].mxu0 %vm943_vm5, %v15317_v54  ;;  %v12481_v29 = vpack.c.bf16 %v4257_v61, %v4250_v16 }
 0x28c   : > { %11492 = vmatmul.mubr.msk.f32.gmra.mrb[22].mxu1 %vm943_vm5, %v15157_v43  ;;  %12139 = vmatprep.mubr.msk.f32.mxu0 %vm943_vm5, %v15256_v59  ;;  %v12493_v43 = vpack.c.bf16 %v4761_v55, %v4754_v17  ;;  %v4683_v28 = vpop.permute.xlu1 %4682  ;;  %v11519_v55 = vld [vmem:[%s18714_s3 + $0x108] sm:$0xff]  ;;  %v4691_v17 = vsel %vm4684_vm14, %v4671_v1, %v4673_v34  ;;  %v4685_v34 = vsel %vm4684_vm14, %v4657_v11, %v15286_v62  ;;  %v11521_v62 = vld [vmem:[%s18714_s3 + $0x118] sm:$0xff] }
 0x28d   : > { %4030 = vmatprep.mubr.f32.mxu1 %v18936_v40  ;;  %v4696_v25 = vsel %vm4684_vm14, %v4681_v52, %v4683_v28  ;;  %v15403_v1 = vrot.slane %v15215_v35, %v14012_v32 }
 0x28e   : > { %v4711_v61 = vsel %vm4709_vm0, %v4696_v25, 0.0 }
 0x28f   : > { %12140 = vmatmul.mubr.msk.f32.vlgmr.msra.gmra.mrb[12].mxu0 %vm943_vm5, %v15283_v48  ;;  %18976 = vst [vmem:[#allocation56_spill] sm:$0xff] %v15403_v1 }
 0x290   : > { %11493 = vmatmul.mubr.msk.f32.gmra.mrb[24].mxu1 %vm943_vm5, %v15197_v5  ;;  %12494 = vmatpush1.bf16.msra.mxu0 %v12493_v43  ;;  %v12487_v5 = vpack.c.bf16 %v4760_v3, %v4753_v23  ;;  %v15395_v43 = vrot.slane %v15215_v35, %v13981_v18  ;;  %v4710_v3 = vsel %vm4709_vm0, %v4690_v31, 0.0  ;;  %v4764_v18 = vmul.f32 %v15403_v1, %v4711_v61 }
 0x291   : > { %4340 = vmatprep.mubr.f32.mxu1 %v18936_v40  ;;  %12142 = vmatprep.mubr.msk.f32.mxu0 %vm943_vm5, %v15299_v12  ;;  %v4757_v11 = vmul.f32 %v15403_v1, %v4710_v3  ;;  %v15437_v23 = vrot.slane %v15215_v35, %v14027_v39  ;;  %v15465_v39 = vpop.permute.xlu0 %5168 }
 0x292   : > { %12500 = vmatprep.subr.bf16.mxu0 %v15346_v44  ;;  %18975 = vst [vmem:[#allocation55_spill] sm:$0xff] %v15395_v43  ;;  %v4759_v45 = vmul.f32 %v15395_v43, %v4691_v17  ;;  %v4752_v32 = vmul.f32 %v15395_v43, %v4685_v34 }
 0x293   : > { %12143 = vmatmul.mubr.msk.f32.gmra.mrb[14].mxu0 %vm943_vm5, %v15317_v54  ;;  %v12495_v36 = vpack.c.bf16 %v4764_v18, %v4757_v11  ;;  %18977 = vst [vmem:[#allocation57_spill] sm:$0xff] %v15437_v23 }
 0x294   : > { %11502 = vmatmul.mubr.msk.f32.vlgmr.msra.gmra.mrb[10].mxu1 %vm943_vm5, %v15256_v59  ;;  %4935 = vmatprep.mubr.f32.mxu0 %v18936_v40  ;;  %v12489_v16 = vpack.c.bf16 %v4759_v45, %v4752_v32 }
 0x295   : > { %12482 = vmatpush1.bf16.msra.mxu1 %v12481_v29  ;;  %4346 = vmatprep.mubr.f32.mxu1 %v18936_v40 }
 0x296   : > { %12488 = vmatprep.subr.bf16.mxu1 %v12487_v5 }
 0x297   : > { %11526 = vmatmul.mubr.msk.f32.vlgmr.msra.gmra.mrb[4].mxu0 %vm943_vm5, %v15370_v10 }
 0x298   : > { %11503 = vmatmul.mubr.msk.f32.gmra.mrb[12].mxu1 %vm943_vm5, %v15283_v48  ;;  %4941 = vmatprep.mubr.f32.mxu0 %v18936_v40 }
 0x299   : > { %4352 = vmatprep.mubr.f32.mxu1 %v18936_v40  ;;  %12502 = vmatpush3.bf16.msra.mxu0 %v15346_v44 }
 0x29b   : > { %11527 = vmatmul.mubr.msk.f32.gmra.mrb[6].mxu0 %vm943_vm5, %v11519_v55 }
 0x29c   : > { %11504 = vmatmul.mubr.msk.f32.gmra.mrb[14].mxu1 %vm943_vm5, %v15299_v12  ;;  %4947 = vmatprep.mubr.f32.mxu0 %v18936_v40 }
 0x29d   : > { %4358 = vmatprep.mubr.f32.mxu1 %v18936_v40 }
 0x29f   : > { %11528 = vmatmul.mubr.msk.f32.gmra.mrb[8].mxu0 %vm943_vm5, %v11520_v13 }
 0x2a0   : > { %11505 = vmatmul.mubr.msk.f32.gmra.mrb[16].mxu1 %vm943_vm5, %v15317_v54  ;;  %4953 = vmatprep.mubr.f32.mxu0 %v18936_v40 }
 0x2a1   : > { %4518 = vmatprep.mubr.f32.mxu1 %v18936_v40 }
 0x2a3   : > { %11529 = vmatmul.mubr.msk.f32.gmra.mrb[10].mxu0 %vm943_vm5, %v11521_v62 }
 0x2a4   : > { %11510 = vmatmul.mubr.msk.f32.vlgmr.msra.gmra.mrb[18].mxu1 %vm943_vm5, %v15256_v59  ;;  %12149 = vmatprep.mubr.msk.f32.mxu0 %vm943_vm5, %v15370_v10  ;;  %v4695_v59 = vsel %vm4684_vm14, %v15217_v2, %v4681_v52 }
 0x2a5   : > { %12490 = vmatpush1.bf16.msra.mxu1 %v12489_v16  ;;  %4524 = vmatprep.mubr.f32.mxu1 %v18936_v40  ;;  %v4763_v29 = vmul.f32 %v15437_v23, %v4695_v59 }
 0x2a6   : > { %12496 = vmatprep.subr.bf16.mxu1 %v12495_v36 }
 0x2a7   : > { %12150 = vmatmul.mubr.msk.f32.vlgmr.msra.gmra.mrb[12].mxu0 %vm943_vm5, %v11519_v55 }
 0x2a8   : > { %11511 = vmatmul.mubr.msk.f32.gmra.mrb[20].mxu1 %vm943_vm5, %v15283_v48  ;;  %12152 = vmatprep.mubr.msk.f32.mxu0 %vm943_vm5, %v11520_v13  ;;  %v4689_v48 = vsel %vm4684_vm14, %v15182_v26, %v4667_v49 }
 0x2a9   : > { %4530 = vmatprep.mubr.f32.mxu1 %v18936_v40  ;;  %v4756_v2 = vmul.f32 %v15437_v23, %v4689_v48 }
 0x2ab   : > { %12153 = vmatmul.mubr.msk.f32.gmra.mrb[14].mxu0 %vm943_vm5, %v11521_v62 }
 0x2ac   : > { %11512 = vmatmul.mubr.msk.f32.gmra.mrb[22].mxu1 %vm943_vm5, %v15299_v12  ;;  %7491 = vmatprep.mubr.f32.mxu0 %v18936_v40  ;;  %v12497_v12 = vpack.c.bf16 %v4763_v29, %v4756_v2 }
 0x2ad   : > { %4536 = vmatprep.mubr.f32.mxu1 %v18936_v40 }
 0x2b0   : > { %11513 = vmatmul.mubr.msk.f32.gmra.mrb[24].mxu1 %vm943_vm5, %v15317_v54 }
 0x2b1   : > { %4846 = vmatprep.mubr.f32.mxu1 %v18936_v40 }
 0x2b4   : > { %11522 = vmatmul.mubr.msk.f32.vlgmr.msra.gmra.mrb[10].mxu1 %vm943_vm5, %v15370_v10 }
 0x2b5   : > { %12498 = vmatpush1.bf16.msra.mxu1 %v12497_v12  ;;  %4852 = vmatprep.mubr.f32.mxu1 %v18936_v40 }
 0x2b8   : > { %11523 = vmatmul.mubr.msk.f32.gmra.mrb[12].mxu1 %vm943_vm5, %v11519_v55 }
 0x2b9   : > { %4858 = vmatprep.mubr.f32.mxu1 %v18936_v40 }
 0x2bc   : > { %11524 = vmatmul.mubr.msk.f32.gmra.mrb[14].mxu1 %vm943_vm5, %v11520_v13 }
 0x2bd   : > { %4864 = vmatprep.mubr.f32.mxu1 %v18936_v40 }
 0x2be   : > { %v15469_v5 = vpop.permute.xlu1 %5173 }
 0x2c0   : > { %11525 = vmatmul.mubr.msk.f32.gmra.mrb[16].mxu1 %vm943_vm5, %v11521_v62 }
 0x2c1   : > { %5024 = vmatprep.mubr.f32.mxu1 %v18936_v40 }
 0x2c4   : > { %11530 = vmatmul.mubr.msk.f32.vlgmr.msra.gmra.mrb[18].mxu1 %vm943_vm5, %v15370_v10 }
 0x2c5   : > { %5030 = vmatprep.mubr.f32.mxu1 %v18936_v40 }
 0x2c8   : > { %11531 = vmatmul.mubr.msk.f32.gmra.mrb[20].mxu1 %vm943_vm5, %v11519_v55 }
 0x2c9   : > { %5036 = vmatprep.mubr.f32.mxu1 %v18936_v40 }
 0x2cc   : > { %11532 = vmatmul.mubr.msk.f32.gmra.mrb[22].mxu1 %vm943_vm5, %v11520_v13  ;;  %v15483_v13 = vpop.permute.xlu0 %5178 }
 0x2cd   : > { %5042 = vmatprep.mubr.f32.mxu1 %v18936_v40 }
 0x2d0   : > { %11533 = vmatmul.mubr.msk.f32.gmra.mrb[24].mxu1 %vm943_vm5, %v11521_v62  ;;  %v15493_v62 = vpop.permute.xlu1 %5183 }
 0x2d1   : > { %5628 = vmatprep.mubr.f32.mxu1 %v18936_v40 }
 0x36a   : > { %v4937_v26 = vpop.f32.mrb[4].mxu0 }
 0x36b   : > { %v5188_v35 = vadd.f32 %v15465_v39, %v4937_v26  ;;  %v4939_v54 = vpop.f32.mrb[5].mxu0 }
 0x36c   : > { %v5189_v49 = vadd.f32 %v15465_v39, %v4939_v54 }
 0x36d   : > { %v15471_v10 = vmax.f32 %v5188_v35, 0.0 }
 0x36e   : > { %v15473_v28 = vmax.f32 %v5189_v49, 0.0  ;;  %v4943_v55 = vpop.f32.mrb[6].mxu0 }
 0x36f   : > { %v5195_v52 = vadd.f32 %v15469_v5, %v4943_v55  ;;  %7145 = vrot.lane.b32.xlu0 %v15471_v10, %s13625_s10  ;;  %v4945_v25 = vpop.f32.mrb[7].mxu0 }
 0x370   : > { %18978 = vst [vmem:[#allocation58_spill] sm:$0xff] %v15473_v28  ;;  %v5196_v17 = vadd.f32 %v15469_v5, %v4945_v25  ;;  %7147 = vrot.lane.b32.xlu1 %v15473_v28, %s13625_s10 }
 0x371   : > { %v15481_v31 = vmax.f32 %v5195_v52, 0.0 }
 0x372   : > { %v15485_v61 = vmax.f32 %v5196_v17, 0.0  ;;  %v4949_v34 = vpop.f32.mrb[8].mxu0 }
 0x373   : > { %18979 = vst [vmem:[#allocation59_spill] sm:$0xff] %v15481_v31  ;;  %v5202_v45 = vadd.f32 %v15483_v13, %v4949_v34  ;;  %v4951_v3 = vpop.f32.mrb[9].mxu0  ;;  %7159 = vrot.lane.b32.xlu0 %v15481_v31, %s13625_s10 }
 0x374   : > { %18980 = vst [vmem:[#allocation60_spill] sm:$0xff] %v15485_v61  ;;  %v5203_v18 = vadd.f32 %v15483_v13, %v4951_v3  ;;  %7161 = vrot.lane.b32.xlu1 %v15485_v61, %s13625_s10 }
 0x375   : > { %v15495_v32 = vmax.f32 %v5202_v45, 0.0 }
 0x376   : > { %v15497_v11 = vmax.f32 %v5203_v18, 0.0  ;;  %v4955_v16 = vpop.f32.mrb[10].mxu0 }
 0x377   : > { %18981 = vst [vmem:[#allocation61_spill] sm:$0xff] %v15495_v32  ;;  %v5209_v36 = vadd.f32 %v15493_v62, %v4955_v16  ;;  %v4957_v59 = vpop.f32.mrb[11].mxu0  ;;  %7173 = vrot.lane.b32.xlu0 %v15495_v32, %s13625_s10 }
 0x378   : > { %18982 = vst [vmem:[#allocation62_spill] sm:$0xff] %v15497_v11  ;;  %v5210_v48 = vadd.f32 %v15493_v62, %v4957_v59  ;;  %7175 = vrot.lane.b32.xlu1 %v15497_v11, %s13625_s10 }
 0x379   : > { %v15505_v29 = vmax.f32 %v5209_v36, 0.0 }
 0x37a   : > { %v15507_v2 = vmax.f32 %v5210_v48, 0.0  ;;  %v15509_v12 = vpop.f32.mrb[12].mxu0 }
 0x37b   : > { %18983 = vst [vmem:[#allocation63_spill] sm:$0xff] %v15505_v29  ;;  %v15511_v26 = vpop.f32.mrb[13].mxu0  ;;  %7187 = vrot.lane.b32.xlu0 %v15505_v29, %s13625_s10 }
 0x37c   : > { %18984 = vst [vmem:[#allocation64_spill] sm:$0xff] %v15507_v2  ;;  %7189 = vrot.lane.b32.xlu1 %v15507_v2, %s13625_s10 }
 0x37e   : > { %v15517_v35 = vpop.f32.mrb[14].mxu0 }
 0x37f   : > { %v15519_v54 = vpop.f32.mrb[15].mxu0 }
 0x387   : > { %v4848_v49 = vpop.f32.mrb[10].mxu1 }
 0x388   : > { %v4850_v55 = vpop.f32.mrb[11].mxu1 }
 0x389   : > { %v5187_v52 = vadd.f32 %v15465_v39, %v4850_v55 }
 0x38b   : > { %v15522_v25 = vmax.f32 %v5187_v52, 0.0  ;;  %v4854_v17 = vpop.f32.mrb[12].mxu1 }
 0x38c   : > { %v4856_v34 = vpop.f32.mrb[13].mxu1 }
 0x38d   : > { %18985 = vst [vmem:[#allocation65_spill] sm:$0xff] %v15522_v25  ;;  %v5194_v45 = vadd.f32 %v15469_v5, %v4856_v34  ;;  %7143 = vrot.lane.b32.xlu0 %v15522_v25, %s13625_s10 }
 0x38f   : > { %v15527_v3 = vmax.f32 %v5194_v45, 0.0  ;;  %v4860_v18 = vpop.f32.mrb[14].mxu1 }
 0x390   : > { %v4862_v16 = vpop.f32.mrb[15].mxu1 }
 0x391   : > { %18986 = vst [vmem:[#allocation66_spill] sm:$0xff] %v15527_v3  ;;  %v5201_v36 = vadd.f32 %v15483_v13, %v4862_v16  ;;  %7157 = vrot.lane.b32.xlu1 %v15527_v3, %s13625_s10 }
 0x393   : > { %v15532_v59 = vmax.f32 %v5201_v36, 0.0  ;;  %v4866_v48 = vpop.f32.mrb[16].mxu1 }
 0x394   : > { %v4868_v55 = vpop.f32.mrb[17].mxu1 }
 0x395   : > { %18987 = vst [vmem:[#allocation67_spill] sm:$0xff] %v15532_v59  ;;  %v5208_v52 = vadd.f32 %v15493_v62, %v4868_v55  ;;  %7171 = vrot.lane.b32.xlu0 %v15532_v59, %s13625_s10 }
 0x397   : > { %v15537_v34 = vmax.f32 %v5208_v52, 0.0  ;;  %v5026_v45 = vpop.f32.mrb[18].mxu1 }
 0x398   : > { %v5190_v23 = vadd.f32 %v15465_v39, %v5026_v45  ;;  %v5028_v44 = vpop.f32.mrb[19].mxu1 }
 0x399   : > { %18988 = vst [vmem:[#allocation68_spill] sm:$0xff] %v15537_v34  ;;  %v5191_v16 = vadd.f32 %v15465_v39, %v5028_v44  ;;  %7185 = vrot.lane.b32.xlu1 %v15537_v34, %s13625_s10 }
 0x39a   : > { %v15543_v36 = vmax.f32 %v5190_v23, 0.0 }
 0x39b   : > { %v15545_v1 = vmax.f32 %v5191_v16, 0.0  ;;  %v5032_v4 = vpop.f32.mrb[20].mxu1 }
 0x39c   : > { %18989 = vst [vmem:[#allocation69_spill] sm:$0xff] %v15543_v36  ;;  %v5197_v55 = vadd.f32 %v15469_v5, %v5032_v4  ;;  %7149 = vrot.lane.b32.xlu0 %v15543_v36, %s13625_s10  ;;  %v5034_v52 = vpop.f32.mrb[21].mxu1 }
 0x39d   : > { %18990 = vst [vmem:[#allocation70_spill] sm:$0xff] %v15545_v1  ;;  %v5198_v51 = vadd.f32 %v15469_v5, %v5034_v52  ;;  %7151 = vrot.lane.b32.xlu1 %v15545_v1, %s13625_s10 }
 0x39e   : > { %v15553_v44 = vmax.f32 %v5197_v55, 0.0 }
 0x39f   : > { %v15555_v45 = vmax.f32 %v5198_v51, 0.0  ;;  %v5038_v23 = vpop.f32.mrb[22].mxu1 }
 0x3a0   : > { %18991 = vst [vmem:[#allocation71_spill] sm:$0xff] %v15553_v44  ;;  %v5204_v16 = vadd.f32 %v15483_v13, %v5038_v23  ;;  %7163 = vrot.lane.b32.xlu0 %v15553_v44, %s13625_s10  ;;  %v5040_v4 = vpop.f32.mrb[23].mxu1 }
 0x3a1   : > { %18992 = vst [vmem:[#allocation72_spill] sm:$0xff] %v15555_v45  ;;  %v5205_v6 = vadd.f32 %v15483_v13, %v5040_v4  ;;  %7165 = vrot.lane.b32.xlu1 %v15555_v45, %s13625_s10  ;;  %v5186_v4 = vadd.f32 %v15465_v39, %v4848_v49 }
 0x3a2   : > { %v15563_v52 = vmax.f32 %v5204_v16, 0.0 }
 0x3a3   : > { %v15565_v60 = vmax.f32 %v5205_v6, 0.0  ;;  %v5044_v55 = vpop.f32.mrb[24].mxu1  ;;  %v15582_v6 = vmax.f32 %v5186_v4, 0.0 }
 0x3a4   : > { %18993 = vst [vmem:[#allocation73_spill] sm:$0xff] %v15563_v52  ;;  %v5211_v51 = vadd.f32 %v15493_v62, %v5044_v55  ;;  %7177 = vrot.lane.b32.xlu0 %v15563_v52, %s13625_s10  ;;  %v5046_v23 = vpop.f32.mrb[25].mxu1  ;;  %v5193_v55 = vadd.f32 %v15469_v5, %v4854_v17  ;;  %v5207_v17 = vadd.f32 %v15493_v62, %v4866_v48 }
 0x3a5   : > { %18994 = vst [vmem:[#allocation74_spill] sm:$0xff] %v15565_v60  ;;  %v5212_v58 = vadd.f32 %v15493_v62, %v5046_v23  ;;  %7179 = vrot.lane.b32.xlu1 %v15565_v60, %s13625_s10  ;;  %18997 = vst [vmem:[#allocation77_spill] sm:$0xff] %v15582_v6 }
 0x3a6   : > { %v15574_v43 = vmax.f32 %v5211_v51, 0.0  ;;  %v15589_v49 = vmax.f32 %v5193_v55, 0.0  ;;  %v15603_v23 = vmax.f32 %v5207_v17, 0.0 }
 0x3a7   : > { %v15576_v16 = vmax.f32 %v5212_v58, 0.0  ;;  %v5200_v58 = vadd.f32 %v15483_v13, %v4860_v18 }
 0x3a8   : > { %18995 = vst [vmem:[#allocation75_spill] sm:$0xff] %v15574_v43  ;;  %7191 = vrot.lane.b32.xlu0 %v15574_v43, %s13625_s10  ;;  %18998 = vst [vmem:[#allocation78_spill] sm:$0xff] %v15589_v49 }
 0x3a9   : > { %18996 = vst [vmem:[#allocation76_spill] sm:$0xff] %v15576_v16  ;;  %7193 = vrot.lane.b32.xlu1 %v15576_v16, %s13625_s10  ;;  %v15596_v51 = vmax.f32 %v5200_v58, 0.0 }
 0x3ab   : > { %18999 = vst [vmem:[#allocation79_spill] sm:$0xff] %v15596_v51 }
 0x3ac   : > { %5402 = vrot.lane.b32.xlu0 %v15582_v6, %s13622_s25 }
 0x3ad   : > { %5404 = vrot.lane.b32.xlu1 %v15522_v25, %s13622_s25 }
 0x3b0   : > { %5414 = vrot.lane.b32.xlu0 %v15589_v49, %s13622_s25 }
 0x3b1   : > { %5416 = vrot.lane.b32.xlu1 %v15527_v3, %s13622_s25 }
 0x3b4   : > { %5426 = vrot.lane.b32.xlu0 %v15596_v51, %s13622_s25 }
 0x3b5   : > { %5428 = vrot.lane.b32.xlu1 %v15532_v59, %s13622_s25 }
 0x3b8   : > { %5438 = vrot.lane.b32.xlu0 %v15603_v23, %s13622_s25 }
 0x3b9   : > { %5440 = vrot.lane.b32.xlu1 %v15537_v34, %s13622_s25 }
 0x3bc   : > { %5406 = vrot.lane.b32.xlu0 %v15471_v10, %s13622_s25 }
 0x3bd   : > { %5408 = vrot.lane.b32.xlu1 %v15473_v28, %s13622_s25 }
 0x3c0   : > { %5418 = vrot.lane.b32.xlu0 %v15481_v31, %s13622_s25 }
 0x3c1   : > { %5420 = vrot.lane.b32.xlu1 %v15485_v61, %s13622_s25 }
 0x3c4   : > { %5430 = vrot.lane.b32.xlu0 %v15495_v32, %s13622_s25 }
 0x3c5   : > { %5432 = vrot.lane.b32.xlu1 %v15497_v11, %s13622_s25 }
 0x3c8   : > { %5442 = vrot.lane.b32.xlu0 %v15505_v29, %s13622_s25 }
 0x3c9   : > { %5444 = vrot.lane.b32.xlu1 %v15507_v2, %s13622_s25 }
 0x3cc   : > { %5410 = vrot.lane.b32.xlu0 %v15543_v36, %s13622_s25 }
 0x3cd   : > { %5412 = vrot.lane.b32.xlu1 %v15545_v1, %s13622_s25 }
 0x3d0   : > { %5422 = vrot.lane.b32.xlu0 %v15553_v44, %s13622_s25 }
 0x3d1   : > { %5424 = vrot.lane.b32.xlu1 %v15555_v45, %s13622_s25 }
 0x3d4   : > { %5434 = vrot.lane.b32.xlu0 %v15563_v52, %s13622_s25 }
 0x3d5   : > { %5436 = vrot.lane.b32.xlu1 %v15565_v60, %s13622_s25 }
 0x3d8   : > { %5446 = vrot.lane.b32.xlu0 %v15574_v43, %s13622_s25 }
 0x3d9   : > { %8379 = vrot.lane.b32.xlu1 %v15471_v10, %s13626_s13 }
 0x3dc   : > { %8377 = vrot.lane.b32.xlu0 %v15522_v25, %s13626_s13 }
 0x3dd   : > { %8393 = vrot.lane.b32.xlu1 %v15481_v31, %s13626_s13 }
 0x3e0   : > { %8391 = vrot.lane.b32.xlu0 %v15527_v3, %s13626_s13 }
 0x3e1   : > { %8389 = vrot.lane.b32.xlu1 %v15589_v49, %s13626_s13  ;;  %v7146_v18 = vpop.permute.xlu0 %7145 }
 0x3e2   : > { %v15649_v48 = vpop.permute.xlu1 %7147 }
 0x3e3   : > { %v7199_v4 = vsel %vm2204_vm8, %v7146_v18, %v15649_v48 }
 0x3e4   : > { %8375 = vrot.lane.b32.xlu0 %v15582_v6, %s13626_s13  ;;  %v7256_v0 = vmul.f32 %v7199_v4, %v14535_v50 }
 0x3e5   : > { %8407 = vrot.lane.b32.xlu1 %v15495_v32, %s13626_s13  ;;  %v7160_v55 = vpop.permute.xlu0 %7159 }
 0x3e6   : > { %v15657_v58 = vpop.permute.xlu1 %7161 }
 0x3e7   : > { %v7205_v17 = vsel %vm2204_vm8, %v7160_v55, %v15657_v58 }
 0x3e8   : > { %v7263_v56 = vmul.f32 %v7205_v17, %v14535_v50  ;;  %8405 = vrot.lane.b32.xlu0 %v15532_v59, %s13626_s13 }
 0x3e9   : > { %5448 = vrot.lane.b32.xlu1 %v15576_v16, %s13622_s25  ;;  %v7174_v4 = vpop.permute.xlu0 %7173 }
 0x3ea   : > { %v12607_v8 = vpack.c.bf16 %v7263_v56, %v7256_v0  ;;  %v15679_v56 = vpop.permute.xlu1 %7175 }
 0x3eb   : > { %v7211_v21 = vsel %vm2204_vm8, %v7174_v4, %v15679_v56 }
 0x3ec   : > { %8419 = vrot.lane.b32.xlu0 %v15537_v34, %s13626_s13  ;;  %12608 = vmatprep.subr.bf16.mxu0 %v12607_v8 }
 0x3ed   : > { %8421 = vrot.lane.b32.xlu1 %v15505_v29, %s13626_s13  ;;  %v7188_v8 = vpop.permute.xlu0 %7187 }
 0x3ee   : > { %v15689_v0 = vpop.permute.xlu1 %7189 }
 0x3ef   : > { %v7217_v38 = vsel %vm2204_vm8, %v7188_v8, %v15689_v0 }
 0x3f0   : > { %8403 = vrot.lane.b32.xlu0 %v15596_v51, %s13626_s13  ;;  %v7277_v30 = vmul.f32 %v7217_v38, %v14535_v50 }
 0x3f1   : > { %8417 = vrot.lane.b32.xlu1 %v15603_v23, %s13626_s13 }
 0x3f4   : > { %8381 = vrot.lane.b32.xlu0 %v15473_v28, %s13626_s13 }
 0x3f5   : > { %8383 = vrot.lane.b32.xlu1 %v15543_v36, %s13626_s13 }
 0x3f8   : > { %8395 = vrot.lane.b32.xlu0 %v15485_v61, %s13626_s13 }
 0x3f9   : > { %8397 = vrot.lane.b32.xlu1 %v15553_v44, %s13626_s13 }
 0x3fc   : > { %5266 = vrot.lane.b32.xlu0 %v15582_v6, %s13623_s26 }
 0x3fd   : > { %5268 = vrot.lane.b32.xlu1 %v15522_v25, %s13623_s26 }
 0x3ff   : > { %v15691_v17 = vpop.permute.xlu0 %7143 }
 0x400   : > { %19000 = vst [vmem:[#allocation80_spill] sm:$0xff] %v15691_v17  ;;  %5278 = vrot.lane.b32.xlu0 %v15589_v49, %s13623_s26  ;;  %v7198_v15 = vsel %vm2204_vm8, %v15691_v17, %v7146_v18  ;;  %v7270_v18 = vmul.f32 %v7211_v21, %v14535_v50 }
 0x401   : > { %5280 = vrot.lane.b32.xlu1 %v15527_v3, %s13623_s26  ;;  %v7255_v7 = vmul.f32 %v7198_v15, %v14619_v46 }
 0x402   : > { %v12611_v38 = vpack.c.bf16 %v7277_v30, %v7270_v18  ;;  %v5192_v30 = vadd.f32 %v15465_v39, %v15511_v26  ;;  %v5199_v26 = vadd.f32 %v15509_v12, %v15469_v5 }
 0x403   : > { %v15703_v47 = vpop.permute.xlu1 %7157 }
 0x404   : > { %19001 = vst [vmem:[#allocation81_spill] sm:$0xff] %v15703_v47  ;;  %v7204_v9 = vsel %vm2204_vm8, %v15703_v47, %v7160_v55  ;;  %8409 = vrot.lane.b32.xlu0 %v15497_v11, %s13626_s13 }
 0x405   : > { %v7262_v57 = vmul.f32 %v7204_v9, %v14619_v46  ;;  %8411 = vrot.lane.b32.xlu1 %v15563_v52, %s13626_s13 }
 0x407   : > { %v12609_v17 = vpack.c.bf16 %v7262_v57, %v7255_v7  ;;  %v15715_v14 = vpop.permute.xlu0 %7171 }
 0x408   : > { %19002 = vst [vmem:[#allocation82_spill] sm:$0xff] %v15715_v14  ;;  %8423 = vrot.lane.b32.xlu0 %v15507_v2, %s13626_s13  ;;  %v7210_v15 = vsel %vm2204_vm8, %v15715_v14, %v7174_v4  ;;  %v7835_v14 = vmul.f32 %v15603_v23, %v14711_v63 }
 0x409   : > { %12610 = vmatpush1.bf16.msra.mxu0 %v12609_v17  ;;  %8425 = vrot.lane.b32.xlu1 %v15574_v43, %s13626_s13  ;;  %v7269_v57 = vmul.f32 %v7210_v15, %v14619_v46  ;;  %v15750_v17 = vmax.f32 %v5192_v30, 0.0 }
 0x40a   : > { %12612 = vmatprep.subr.bf16.mxu0 %v12611_v38 }
 0x40b   : > { %v15723_v9 = vpop.permute.xlu1 %7185  ;;  %19005 = vst [vmem:[#allocation85_spill] sm:$0xff] %v15750_v17 }
 0x40c   : > { %19003 = vst [vmem:[#allocation83_spill] sm:$0xff] %v15723_v9  ;;  %v7216_v50 = vsel %vm2204_vm8, %v15723_v9, %v7188_v8  ;;  %5290 = vrot.lane.b32.xlu0 %v15596_v51, %s13623_s26  ;;  %v15930_v9 = vld [vmem:[%s18716_s5 + $0x40] sm:$0xff] }
 0x40d   : > { %v7276_v7 = vmul.f32 %v7216_v50, %v14619_v46  ;;  %5292 = vrot.lane.b32.xlu1 %v15532_v59, %s13623_s26  ;;  %v15744_v46 = vld [vmem:[%s18716_s5 + $0xc0] sm:$0xff] }
 0x40e   : > { %v7150_v21 = vpop.permute.xlu0 %7149 }
 0x40f   : > { %v12613_v55 = vpack.c.bf16 %v7276_v7, %v7269_v57  ;;  %v15735_v4 = vpop.permute.xlu1 %7151  ;;  %v7200_v18 = vsel %vm2204_vm8, %v15649_v48, %v7150_v21  ;;  %v15773_v48 = vld [vmem:[%s18716_s5 + $0xc8] sm:$0xff] }
 0x410   : > { %19004 = vst [vmem:[#allocation84_spill] sm:$0xff] %v15735_v4  ;;  %5302 = vrot.lane.b32.xlu0 %v15603_v23, %s13623_s26  ;;  %v7201_v8 = vsel %vm2204_vm8, %v7150_v21, %v15735_v4  ;;  %v15776_v21 = vmax.f32 %v5199_v26, 0.0 }
 0x411   : > { %12614 = vmatpush1.bf16.msra.mxu0 %v12613_v55  ;;  %5304 = vrot.lane.b32.xlu1 %v15537_v34, %s13623_s26  ;;  %v7258_v5 = vmul.f32 %v7201_v8, %v14531_v24 }
 0x412   : > { %v7164_v39 = vpop.permute.xlu0 %7163  ;;  %19007 = vst [vmem:[#allocation87_spill] sm:$0xff] %v15776_v21 }
 0x413   : > { %v7206_v38 = vsel %vm2204_vm8, %v15657_v58, %v7164_v39  ;;  %v15756_v15 = vpop.permute.xlu1 %7165  ;;  %v7257_v58 = vmul.f32 %v7200_v18, %v14602_v33 }
 0x414   : > { %19006 = vst [vmem:[#allocation86_spill] sm:$0xff] %v15756_v15  ;;  %v7264_v50 = vmul.f32 %v7206_v38, %v14602_v33  ;;  %v7207_v57 = vsel %vm2204_vm8, %v7164_v39, %v15756_v15  ;;  %11666 = vmatmul.mubr.msk.f32.vlgmr.msra.gmra.mrb[16].mxu0 %vm5539_vm1, %v15744_v46  ;;  %8385 = vrot.lane.b32.xlu0 %v15545_v1, %s13626_s13  ;;  %v15789_v39 = vld [vmem:[%s18716_s5 + $0xd0] sm:$0xff] }
 0x415   : > { %v7265_v12 = vmul.f32 %v7207_v57, %v14531_v24  ;;  %8387 = vrot.lane.b32.xlu1 %v15750_v17, %s13626_s13  ;;  %7497 = vmatprep.mubr.f32.mxu0 %v18936_v40 }
 0x416   : > { %v7178_v7 = vpop.permute.xlu0 %7177  ;;  %v12617_v8 = vpack.c.bf16 %v7264_v50, %v7257_v58 }
 0x417   : > { %v15778_v30 = vpop.permute.xlu1 %7179  ;;  %v12615_v55 = vpack.c.bf16 %v7265_v12, %v7258_v5  ;;  %v7212_v38 = vsel %vm2204_vm8, %v15679_v56, %v7178_v7 }
 0x418   : > { %19008 = vst [vmem:[#allocation88_spill] sm:$0xff] %v15778_v30  ;;  %11667 = vmatmul.mubr.msk.f32.gmra.mrb[18].mxu0 %vm5539_vm1, %v15773_v48  ;;  %8399 = vrot.lane.b32.xlu0 %v15555_v45, %s13626_s13  ;;  %v7213_v26 = vsel %vm2204_vm8, %v7178_v7, %v15778_v30  ;;  %v7822_v7 = vmul.f32 %v15527_v3, %v14610_v41 }
 0x419   : > { %12616 = vmatprep.subr.bf16.mxu0 %v12615_v55  ;;  %8401 = vrot.lane.b32.xlu1 %v15776_v21, %s13626_s13  ;;  %v7272_v58 = vmul.f32 %v7213_v26, %v14531_v24  ;;  %v7271_v55 = vmul.f32 %v7212_v38, %v14602_v33  ;;  %v5206_v26 = vadd.f32 %v15483_v13, %v15519_v54  ;;  %v15835_v13 = vld [vmem:[%s18716_s5 + $0xe0] sm:$0xff] }
 0x41a   : > { %12618 = vmatpush1.bf16.msra.mxu0 %v12617_v8  ;;  %v7192_v18 = vpop.permute.xlu0 %7191  ;;  %7503 = vmatprep.mubr.f32.mxu0 %v18936_v40 }
 0x41b   : > { %v7218_v50 = vsel %vm2204_vm8, %v15689_v0, %v7192_v18  ;;  %v15798_v57 = vpop.permute.xlu1 %7193  ;;  %v15815_v0 = vld [vmem:[%s18716_s5 + $0xd8] sm:$0xff] }
 0x41c   : > { %19009 = vst [vmem:[#allocation89_spill] sm:$0xff] %v15798_v57  ;;  %v7278_v5 = vmul.f32 %v7218_v50, %v14602_v33  ;;  %v7219_v12 = vsel %vm2204_vm8, %v7192_v18, %v15798_v57  ;;  %11668 = vmatmul.mubr.msk.f32.gmra.mrb[20].mxu0 %vm5539_vm1, %v15789_v39  ;;  %5270 = vrot.lane.b32.xlu0 %v15471_v10, %s13623_s26 }
 0x41d   : > { %v7279_v56 = vmul.f32 %v7219_v12, %v14531_v24  ;;  %5272 = vrot.lane.b32.xlu1 %v15473_v28, %s13623_s26  ;;  %7509 = vmatprep.mubr.f32.mxu0 %v18936_v40  ;;  %v7815_v50 = vmul.f32 %v15522_v25, %v14610_v41 }
 0x41e   : > { %v5403_v8 = vpop.permute.xlu0 %5402  ;;  %v12621_v12 = vpack.c.bf16 %v7278_v5, %v7271_v55  ;;  %v5213_v5 = vadd.f32 %v15517_v35, %v15493_v62 }
 0x41f   : > { %v15822_v24 = vpop.permute.xlu1 %5404  ;;  %v12619_v18 = vpack.c.bf16 %v7279_v56, %v7272_v58  ;;  %v12631_v33 = vpack.c.bf16 %v7822_v7, %v7815_v50  ;;  %v15842_v58 = vmax.f32 %v5206_v26, 0.0  ;;  %v5498_v56 = vsel %vm857_vm4, 0.0, %v5403_v8 }
 0x420   : > { %11669 = vmatmul.mubr.msk.f32.gmra.mrb[22].mxu0 %vm5539_vm1, %v15815_v0  ;;  %5282 = vrot.lane.b32.xlu0 %v15481_v31, %s13623_s26  ;;  %v5450_v54 = vsel %vm857_vm4, %v5403_v8, %v15822_v24  ;;  %v15860_v8 = vld [vmem:[%s18716_s5 + $0xe8] sm:$0xff]  ;;  %v5502_v26 = vmul.f32 %v5498_v56, %v13996_v22  ;;  %v15876_v56 = vld [vmem:[%s18716_s5 + $0xf0] sm:$0xff] }
 0x421   : > { %5284 = vrot.lane.b32.xlu1 %v15485_v61, %s13623_s26  ;;  %12620 = vmatprep.subr.bf16.mxu0 %v12619_v18  ;;  %19010 = vst [vmem:[#allocation90_spill] sm:$0xff] %v15842_v58  ;;  %v5503_v62 = vmul.f32 %v5450_v54, %v13985_v19 }
 0x422   : > { %v5415_v38 = vpop.permute.xlu0 %5414  ;;  %12622 = vmatpush1.bf16.msra.mxu0 %v12621_v12  ;;  %7515 = vmatprep.mubr.f32.mxu0 %v18936_v40 }
 0x423   : > { %v5499_v7 = vsel %vm857_vm4, 0.0, %v5415_v38  ;;  %12632 = vmatprep.subr.bf16.mxu0 %v12631_v33  ;;  %v5417_v55 = vpop.permute.xlu1 %5416  ;;  %v15863_v33 = vmax.f32 %v5213_v5, 0.0 }
 0x424   : > { %v5509_v18 = vmul.f32 %v5499_v7, %v13996_v22  ;;  %v5455_v50 = vsel %vm857_vm4, %v5415_v38, %v5417_v55  ;;  %11670 = vmatmul.mubr.msk.f32.gmra.mrb[24].mxu0 %vm5539_vm1, %v15835_v13  ;;  %8413 = vrot.lane.b32.xlu0 %v15565_v60, %s13626_s13 }
 0x425   : > { %v5510_v35 = vmul.f32 %v5455_v50, %v13985_v19  ;;  %8415 = vrot.lane.b32.xlu1 %v15842_v58, %s13626_s13  ;;  %7521 = vmatprep.mubr.f32.mxu0 %v18936_v40  ;;  %19011 = vst [vmem:[#allocation91_spill] sm:$0xff] %v15863_v33 }
 0x426   : > { %v5427_v12 = vpop.permute.xlu0 %5426  ;;  %v12505_v7 = vpack.c.bf16 %v5509_v18, %v5502_v26 }
 0x427   : > { %v15865_v38 = vpop.permute.xlu1 %5428  ;;  %v12503_v54 = vpack.c.bf16 %v5510_v35, %v5503_v62  ;;  %v5500_v18 = vsel %vm857_vm4, 0.0, %v5427_v12 }
 0x428   : > { %11671 = vmatmul.mubr.msk.f32.gmra.mrb[26].mxu0 %vm5539_vm1, %v15860_v8  ;;  %5294 = vrot.lane.b32.xlu0 %v15495_v32, %s13623_s26  ;;  %v5460_v5 = vsel %vm857_vm4, %v5427_v12, %v15865_v38  ;;  %v15900_v12 = vld [vmem:[%s18716_s5 + $0xf8] sm:$0xff] }
 0x429   : > { %8429 = vrot.lane.b32.xlu1 %v15863_v33, %s13626_s13  ;;  %12504 = vmatprep.subr.bf16.mxu1 %v12503_v54 }
 0x42a   : > { %v5439_v50 = vpop.permute.xlu0 %5438  ;;  %12506 = vmatpush1.bf16.msra.mxu1 %v12505_v7  ;;  %7527 = vmatprep.mubr.f32.mxu0 %v18936_v40  ;;  %v5517_v7 = vmul.f32 %v5460_v5, %v13985_v19  ;;  %v7821_v5 = vmul.f32 %v15589_v49, %v14711_v63 }
 0x42b   : > { %v5501_v62 = vsel %vm857_vm4, 0.0, %v5439_v50  ;;  %v15883_v35 = vpop.permute.xlu1 %5440 }
 0x42c   : > { %v5523_v26 = vmul.f32 %v5501_v62, %v13996_v22  ;;  %v5465_v54 = vsel %vm857_vm4, %v5439_v50, %v15883_v35  ;;  %11672 = vmatmul.mubr.msk.f32.gmra.mrb[28].mxu0 %vm5539_vm1, %v15876_v56  ;;  %5306 = vrot.lane.b32.xlu0 %v15505_v29, %s13623_s26  ;;  %v5516_v50 = vmul.f32 %v5500_v18, %v13996_v22 }
 0x42d   : > { %v5524_v57 = vmul.f32 %v5465_v54, %v13985_v19  ;;  %5296 = vrot.lane.b32.xlu1 %v15497_v11, %s13623_s26  ;;  %7533 = vmatprep.mubr.f32.mxu0 %v18936_v40  ;;  %v7836_v54 = vmul.f32 %v15537_v34, %v14610_v41  ;;  %v7814_v22 = vmul.f32 %v15582_v6, %v14711_v63 }
 0x42e   : > { %v5407_v62 = vpop.permute.xlu0 %5406  ;;  %v12509_v19 = vpack.c.bf16 %v5523_v26, %v5516_v50  ;;  %v7829_v26 = vmul.f32 %v15532_v59, %v14610_v41 }
 0x42f   : > { %v15903_v30 = vpop.permute.xlu1 %5408  ;;  %v12507_v15 = vpack.c.bf16 %v5524_v57, %v5517_v7  ;;  %v7824_v7 = vmul.f32 %v15485_v61, %v14687_v42  ;;  %v5451_v41 = vsel %vm857_vm4, %v15822_v24, %v5407_v62  ;;  %v7817_v24 = vmul.f32 %v15473_v28, %v14687_v42 }
 0x430   : > { %11673 = vmatmul.mubr.msk.f32.gmra.mrb[30].mxu0 %vm5539_vm1, %v15900_v12  ;;  %9050 = vrot.lane.b32.xlu0 %v15522_v25, %s13627_s14  ;;  %v5452_v57 = vsel %vm857_vm4, %v5407_v62, %v15903_v30 }
 0x431   : > { %5308 = vrot.lane.b32.xlu1 %v15507_v2, %s13623_s26  ;;  %12508 = vmatprep.subr.bf16.mxu1 %v12507_v15  ;;  %v12633_v15 = vpack.c.bf16 %v7821_v5, %v7814_v22  ;;  %v12635_v5 = vpack.c.bf16 %v7836_v54, %v7829_v26  ;;  %v5505_v22 = vmul.f32 %v5452_v57, %v14165_v27  ;;  %v15961_v57 = vld [vmem:[%s18716_s5 + $0x48] sm:$0xff] }
 0x432   : > { %v5419_v18 = vpop.permute.xlu0 %5418  ;;  %12510 = vmatpush1.bf16.msra.mxu1 %v12509_v19  ;;  %7604 = vmatprep.mubr.f32.mxu0 %v18936_v40  ;;  %v7828_v19 = vmul.f32 %v15596_v51, %v14711_v63 }
 0x433   : > { %v5456_v50 = vsel %vm857_vm4, %v5417_v55, %v5419_v18  ;;  %v15925_v4 = vpop.permute.xlu1 %5420 }
 0x434   : > { %v5457_v55 = vsel %vm857_vm4, %v5419_v18, %v15925_v4  ;;  %8427 = vrot.lane.b32.xlu0 %v15576_v16, %s13626_s13  ;;  %11674 = vmatmul.mubr.msk.f32.vlgmr.msra.gmra.mrb[32].mxu0 %vm5539_vm1, %v15744_v46  ;;  %v5511_v47 = vmul.f32 %v5456_v50, %v14161_v20  ;;  %v5504_v46 = vmul.f32 %v5451_v41, %v14161_v20 }
 0x435   : > { %v5512_v33 = vmul.f32 %v5457_v55, %v14165_v27  ;;  %12634 = vmatpush1.bf16.msra.mxu0 %v12633_v15  ;;  %9052 = vrot.lane.b32.xlu1 %v15471_v10, %s13627_s14  ;;  %v12637_v54 = vpack.c.bf16 %v7835_v14, %v7828_v19  ;;  %v12639_v50 = vpack.c.bf16 %v7824_v7, %v7817_v24 }
 0x436   : > { %11546 = vmatmul.mubr.msk.f32.vlgmr.msra.gmra.mrb[26].mxu1 %vm5539_vm1, %v15930_v9  ;;  %12636 = vmatprep.subr.bf16.mxu0 %v12635_v5  ;;  %v5431_v63 = vpop.permute.xlu0 %5430  ;;  %v12513_v26 = vpack.c.bf16 %v5511_v47, %v5504_v46  ;;  %v15980_v47 = vld [vmem:[%s18716_s5 + $0x50] sm:$0xff] }
 0x437   : > { %7610 = vmatprep.mubr.f32.mxu0 %v18936_v40  ;;  %v15955_v62 = vpop.permute.xlu1 %5432  ;;  %5634 = vmatprep.mubr.f32.mxu1 %v18936_v40  ;;  %v12511_v18 = vpack.c.bf16 %v5512_v33, %v5505_v22  ;;  %v5461_v7 = vsel %vm857_vm4, %v15865_v38, %v5431_v63 }
 0x438   : > { %9064 = vrot.lane.b32.xlu0 %v15527_v3, %s13627_s14  ;;  %11675 = vmatmul.mubr.msk.f32.gmra.mrb[34].mxu0 %vm5539_vm1, %v15773_v48  ;;  %v5462_v14 = vsel %vm857_vm4, %v5431_v63, %v15955_v62  ;;  %v5518_v5 = vmul.f32 %v5461_v7, %v14161_v20 }
 0x439   : > { %12638 = vmatpush1.bf16.msra.mxu0 %v12637_v54  ;;  %9066 = vrot.lane.b32.xlu1 %v15481_v31, %s13627_s14 }
 0x43a   : > { %11547 = vmatmul.mubr.msk.f32.gmra.mrb[28].mxu1 %vm5539_vm1, %v15961_v57  ;;  %12512 = vmatprep.subr.bf16.mxu1 %v12511_v18  ;;  %v5443_v33 = vpop.permute.xlu0 %5442 }
 0x43b   : > { %12640 = vmatprep.subr.bf16.mxu0 %v12639_v50  ;;  %v5466_v15 = vsel %vm857_vm4, %v15883_v35, %v5443_v33  ;;  %12514 = vmatpush1.bf16.msra.mxu1 %v12513_v26  ;;  %v15975_v48 = vpop.permute.xlu1 %5444  ;;  %v5519_v35 = vmul.f32 %v5462_v14, %v14165_v27 }
 0x43c   : > { %7616 = vmatprep.mubr.f32.mxu0 %v18936_v40  ;;  %v5467_v19 = vsel %vm857_vm4, %v5443_v33, %v15975_v48  ;;  %9048 = vrot.lane.b32.xlu0 %v15582_v6, %s13627_s14  ;;  %v5525_v41 = vmul.f32 %v5466_v15, %v14161_v20  ;;  %v16049_v33 = vld [vmem:[%s18716_s5 + $0x68] sm:$0xff] }
 0x43d   : > { %v5526_v55 = vmul.f32 %v5467_v19, %v14165_v27  ;;  %5640 = vmatprep.mubr.f32.mxu1 %v18936_v40  ;;  %11676 = vmatmul.mubr.msk.f32.gmra.mrb[36].mxu0 %vm5539_vm1, %v15789_v39  ;;  %v16007_v27 = vld [vmem:[%s18716_s5 + $0x58] sm:$0xff]  ;;  %v16068_v19 = vld [vmem:[%s18716_s5 + $0x70] sm:$0xff] }
 0x43e   : > { %9062 = vrot.lane.b32.xlu1 %v15589_v49, %s13627_s14  ;;  %11548 = vmatmul.mubr.msk.f32.gmra.mrb[30].mxu1 %vm5539_vm1, %v15980_v47  ;;  %v5411_v38 = vpop.permute.xlu0 %5410  ;;  %v12517_v63 = vpack.c.bf16 %v5525_v41, %v5518_v5  ;;  %v7838_v5 = vmul.f32 %v15507_v2, %v14687_v42 }
 0x43f   : > { %7622 = vmatprep.mubr.f32.mxu0 %v18936_v40  ;;  %v16001_v22 = vpop.permute.xlu1 %5412  ;;  %5646 = vmatprep.mubr.f32.mxu1 %v18936_v40  ;;  %v12515_v39 = vpack.c.bf16 %v5526_v55, %v5519_v35  ;;  %v7823_v55 = vmul.f32 %v15481_v31, %v14758_v53 }
 0x440   : > { %5274 = vrot.lane.b32.xlu0 %v15543_v36, %s13623_s26  ;;  %v5454_v20 = vsel %vm857_vm4, %v5411_v38, %v16001_v22 }
 0x441   : > { %11677 = vmatmul.mubr.msk.f32.gmra.mrb[38].mxu0 %vm5539_vm1, %v15815_v0  ;;  %12516 = vmatprep.subr.bf16.mxu1 %v12515_v39  ;;  %v16025_v0 = vld [vmem:[%s18716_s5 + $0x60] sm:$0xff]  ;;  %v5507_v18 = vmul.f32 %v5454_v20, %v14018_v37 }
 0x442   : > { %5276 = vrot.lane.b32.xlu1 %v15545_v1, %s13623_s26  ;;  %11549 = vmatmul.mubr.msk.f32.gmra.mrb[32].mxu1 %vm5539_vm1, %v16007_v27  ;;  %v5423_v24 = vpop.permute.xlu0 %5422  ;;  %v19015_v39 = vld [vmem:[#allocation8_spill] sm:$0xff] }
 0x443   : > { %12518 = vmatpush1.bf16.msra.mxu1 %v12517_v63  ;;  %7628 = vmatprep.mubr.f32.mxu0 %v18936_v40  ;;  %v16020_v46 = vpop.permute.xlu1 %5424  ;;  %v5458_v35 = vsel %vm857_vm4, %v15925_v4, %v5423_v24  ;;  %v5453_v4 = vsel %vm857_vm4, %v15903_v30, %v5411_v38  ;;  %v16111_v30 = vld [vmem:[%s18716_s5 + $0x100] sm:$0xff] }
 0x444   : > { %v5459_v54 = vsel %vm857_vm4, %v5423_v24, %v16020_v46  ;;  %5286 = vrot.lane.b32.xlu0 %v15553_v44, %s13623_s26  ;;  %5652 = vmatprep.mubr.f32.mxu1 %v18936_v40  ;;  %v5513_v63 = vmul.f32 %v5458_v35, %v19015_v39  ;;  %v7831_v24 = vmul.f32 %v15497_v11, %v14687_v42  ;;  %v19016_v42 = vld [vmem:[#allocation27_spill] sm:$0xff] }
 0x445   : > { %v5514_v26 = vmul.f32 %v5459_v54, %v14018_v37  ;;  %11678 = vmatmul.mubr.msk.f32.gmra.mrb[40].mxu0 %vm5539_vm1, %v15835_v13  ;;  %v5506_v54 = vmul.f32 %v5453_v4, %v19015_v39  ;;  %v7826_v4 = vmul.f32 %v15555_v45, %v19016_v42 }
 0x446   : > { %5288 = vrot.lane.b32.xlu1 %v15555_v45, %s13623_s26  ;;  %11550 = vmatmul.mubr.msk.f32.gmra.mrb[34].mxu1 %vm5539_vm1, %v16025_v0  ;;  %v16040_v50 = vpop.permute.xlu0 %5434 }
 0x447   : > { %7634 = vmatprep.mubr.f32.mxu0 %v18936_v40  ;;  %v16043_v14 = vpop.permute.xlu1 %5436  ;;  %5658 = vmatprep.mubr.f32.mxu1 %v18936_v40  ;;  %v12519_v13 = vpack.c.bf16 %v5514_v26, %v5507_v18  ;;  %v12643_v26 = vpack.c.bf16 %v7838_v5, %v7831_v24  ;;  %v12521_v35 = vpack.c.bf16 %v5513_v63, %v5506_v54  ;;  %v16141_v5 = vld [vmem:[%s18716_s5 + $0x108] sm:$0xff] }
 0x448   : > { %9078 = vrot.lane.b32.xlu0 %v15532_v59, %s13627_s14  ;;  %v7830_v63 = vmul.f32 %v15495_v32, %v14758_v53  ;;  %v5464_v54 = vsel %vm857_vm4, %v16040_v50, %v16043_v14 }
 0x449   : > { %11679 = vmatmul.mubr.msk.f32.gmra.mrb[42].mxu0 %vm5539_vm1, %v15860_v8  ;;  %12520 = vmatprep.subr.bf16.mxu1 %v12519_v13  ;;  %v7837_v13 = vmul.f32 %v15505_v29, %v14758_v53 }
 0x44a   : > { %9080 = vrot.lane.b32.xlu1 %v15495_v32, %s13627_s14  ;;  %11551 = vmatmul.mubr.msk.f32.gmra.mrb[36].mxu1 %vm5539_vm1, %v16049_v33  ;;  %v16059_v15 = vpop.permute.xlu0 %5446 }
 0x44b   : > { %7640 = vmatprep.mubr.f32.mxu0 %v18936_v40  ;;  %v16062_v7 = vpop.permute.xlu1 %8379  ;;  %5664 = vmatprep.mubr.f32.mxu1 %v18936_v40  ;;  %v12645_v24 = vpack.c.bf16 %v7837_v13, %v7830_v63  ;;  %v5521_v63 = vmul.f32 %v5464_v54, %v14018_v37  ;;  %v16201_v54 = vld [vmem:[%s18716_s5 + $0x118] sm:$0xff] }
 0x44c   : > { %19012 = vst [vmem:[#allocation92_spill] sm:$0xff] %v16062_v7  ;;  %9092 = vrot.lane.b32.xlu0 %v15537_v34, %s13627_s14 }
 0x44d   : > { %11680 = vmatmul.mubr.msk.f32.gmra.mrb[44].mxu0 %vm5539_vm1, %v15876_v56  ;;  %v16089_v56 = vld [vmem:[%s18716_s5 + $0x78] sm:$0xff] }
 0x44e   : > { %9094 = vrot.lane.b32.xlu1 %v15505_v29, %s13627_s14  ;;  %11552 = vmatmul.mubr.msk.f32.gmra.mrb[38].mxu1 %vm5539_vm1, %v16068_v19  ;;  %v16078_v8 = vpop.permute.xlu0 %8377  ;;  %19014 = vst [vmem:[#allocation94_spill] sm:$0xff] %v16089_v56 }
 0x44f   : > { %7646 = vmatprep.mubr.f32.mxu0 %v18936_v40  ;;  %v16083_v41 = vpop.permute.xlu1 %8393  ;;  %5670 = vmatprep.mubr.f32.mxu1 %v18936_v40 }
 0x450   : > { %19013 = vst [vmem:[#allocation93_spill] sm:$0xff] %v16083_v41  ;;  %9076 = vrot.lane.b32.xlu0 %v15596_v51, %s13627_s14 }
 0x451   : > { %11681 = vmatmul.mubr.msk.f32.gmra.mrb[46].mxu0 %vm5539_vm1, %v15900_v12  ;;  %v7816_v12 = vmul.f32 %v15471_v10, %v14758_v53 }
 0x452   : > { %9090 = vrot.lane.b32.xlu1 %v15603_v23, %s13627_s14  ;;  %11553 = vmatmul.mubr.msk.f32.gmra.mrb[40].mxu1 %vm5539_vm1, %v16089_v56  ;;  %v16106_v20 = vpop.permute.xlu0 %8391 }
 0x453   : > { %7939 = vmatprep.mubr.f32.mxu0 %v18936_v40  ;;  %v16116_v38 = vpop.permute.xlu1 %8389  ;;  %5741 = vmatprep.mubr.f32.mxu1 %v18936_v40  ;;  %v12641_v18 = vpack.c.bf16 %v7823_v55, %v7816_v12  ;;  %v7819_v12 = vmul.f32 %v15545_v1, %v19016_v42 }
 0x454   : > { %5298 = vrot.lane.b32.xlu0 %v15563_v52, %s13623_s26 }
 0x455   : > { %11698 = vmatmul.mubr.msk.f32.vlgmr.msra.gmra.mrb[48].mxu0 %vm5539_vm1, %v16111_v30  ;;  %v12647_v53 = vpack.c.bf16 %v7826_v4, %v7819_v12 }
 0x456   : > { %12642 = vmatpush1.bf16.msra.mxu0 %v12641_v18  ;;  %5300 = vrot.lane.b32.xlu1 %v15565_v60, %s13623_s26  ;;  %v16130_v31 = vpop.permute.xlu0 %8375 }
 0x457   : > { %11554 = vmatmul.mubr.msk.f32.vlgmr.msra.gmra.mrb[42].mxu1 %vm5539_vm1, %v15930_v9  ;;  %12644 = vmatprep.subr.bf16.mxu0 %v12643_v26  ;;  %v16136_v55 = vpop.permute.xlu1 %8407  ;;  %v5468_v26 = vsel %vm857_vm4, %v15975_v48, %v16059_v15  ;;  %v5463_v48 = vsel %vm857_vm4, %v15955_v62, %v16040_v50  ;;  %v19017_v62 = vld [vmem:[#allocation12_spill] sm:$0xff] }
 0x458   : > { %12522 = vmatpush1.bf16.msra.mxu1 %v12521_v35  ;;  %7945 = vmatprep.mubr.f32.mxu0 %v18936_v40  ;;  %v16170_v35 = vld [vmem:[%s18716_s5 + $0x110] sm:$0xff]  ;;  %v5515_v50 = vmul.f32 %v16020_v46, %v19017_v62  ;;  %v5508_v46 = vmul.f32 %v16001_v22, %v19017_v62 }
 0x459   : > { %5310 = vrot.lane.b32.xlu0 %v15574_v43, %s13623_s26  ;;  %5747 = vmatprep.mubr.f32.mxu1 %v18936_v40 }
 0x45a   : > { %11699 = vmatmul.mubr.msk.f32.gmra.mrb[50].mxu0 %vm5539_vm1, %v16141_v5  ;;  %5312 = vrot.lane.b32.xlu1 %v15576_v16, %s13623_s26  ;;  %v16158_v18 = vpop.permute.xlu0 %8405 }
 0x45b   : > { %12646 = vmatpush1.bf16.msra.mxu0 %v12645_v24  ;;  %11555 = vmatmul.mubr.msk.f32.gmra.mrb[44].mxu1 %vm5539_vm1, %v15961_v57  ;;  %v16165_v13 = vpop.permute.xlu1 %5448  ;;  %v5527_v24 = vmul.f32 %v5468_v26, %v19015_v39  ;;  %v5520_v26 = vmul.f32 %v5463_v48, %v19015_v39  ;;  %v16217_v39 = vpack.c.bf16 %v5515_v50, %v5508_v46  ;;  %v16225_v48 = vld [vmem:[%s18716_s5 + $0x120] sm:$0xff] }
 0x45c   : > { %12648 = vmatprep.subr.bf16.mxu0 %v12647_v53  ;;  %7951 = vmatprep.mubr.f32.mxu0 %v18936_v40  ;;  %v5469_v4 = vsel %vm857_vm4, %v16059_v15, %v16165_v13 }
 0x45d   : > { %v5528_v12 = vmul.f32 %v5469_v4, %v14018_v37  ;;  %9054 = vrot.lane.b32.xlu0 %v15473_v28, %s13627_s14  ;;  %5753 = vmatprep.mubr.f32.mxu1 %v18936_v40  ;;  %v12525_v4 = vpack.c.bf16 %v5527_v24, %v5520_v26  ;;  %v16245_v24 = vld [vmem:[%s18716_s5 + $0x128] sm:$0xff]  ;;  %v16264_v26 = vld [vmem:[%s18716_s5 + $0x130] sm:$0xff] }
 0x45e   : > { %11700 = vmatmul.mubr.msk.f32.gmra.mrb[52].mxu0 %vm5539_vm1, %v16170_v35  ;;  %9056 = vrot.lane.b32.xlu1 %v15543_v36, %s13627_s14  ;;  %v16189_v15 = vpop.permute.xlu0 %8419 }
 0x45f   : > { %11556 = vmatmul.mubr.msk.f32.gmra.mrb[46].mxu1 %vm5539_vm1, %v15980_v47  ;;  %7957 = vmatprep.mubr.f32.mxu0 %v18936_v40  ;;  %v16196_v37 = vpop.permute.xlu1 %8421  ;;  %v12523_v53 = vpack.c.bf16 %v5528_v12, %v5521_v63 }
 0x460   : > { %5759 = vmatprep.mubr.f32.mxu1 %v18936_v40 }
 0x461   : > { %9068 = vrot.lane.b32.xlu0 %v15485_v61, %s13627_s14  ;;  %12524 = vmatprep.subr.bf16.mxu1 %v12523_v53 }
 0x462   : > { %11701 = vmatmul.mubr.msk.f32.gmra.mrb[54].mxu0 %vm5539_vm1, %v16201_v54  ;;  %9070 = vrot.lane.b32.xlu1 %v15553_v44, %s13627_s14  ;;  %v16213_v29 = vpop.permute.xlu0 %8403 }
 0x463   : > { %11557 = vmatmul.mubr.msk.f32.gmra.mrb[48].mxu1 %vm5539_vm1, %v16007_v27  ;;  %7963 = vmatprep.mubr.f32.mxu0 %v18936_v40  ;;  %v16220_v22 = vpop.permute.xlu1 %8417 }
 0x464   : > { %12526 = vmatpush1.bf16.msra.mxu1 %v12525_v4  ;;  %5765 = vmatprep.mubr.f32.mxu1 %v18936_v40 }
 0x465   : > { %12528 = vmatprep.subr.bf16.mxu1 %v16217_v39  ;;  %9082 = vrot.lane.b32.xlu0 %v15497_v11, %s13627_s14 }
 0x466   : > { %11702 = vmatmul.mubr.msk.f32.gmra.mrb[56].mxu0 %vm5539_vm1, %v16225_v48  ;;  %9084 = vrot.lane.b32.xlu1 %v15563_v52, %s13627_s14  ;;  %v16235_v63 = vpop.permute.xlu0 %8381 }
 0x467   : > { %19018 = vst [vmem:[#allocation8_spill] sm:$0xff] %v16235_v63  ;;  %11558 = vmatmul.mubr.msk.f32.gmra.mrb[50].mxu1 %vm5539_vm1, %v16025_v0  ;;  %7969 = vmatprep.mubr.f32.mxu0 %v18936_v40  ;;  %v16240_v12 = vpop.permute.xlu1 %8383  ;;  %v7840_v63 = vmul.f32 %v15576_v16, %v19016_v42 }
 0x468   : > { %19019 = vst [vmem:[#allocation27_spill] sm:$0xff] %v16240_v12  ;;  %5771 = vmatprep.mubr.f32.mxu1 %v18936_v40  ;;  %v5529_v12 = vmul.f32 %v16165_v13, %v19017_v62  ;;  %v7833_v13 = vmul.f32 %v15565_v60, %v19016_v42 }
 0x469   : > { %9096 = vrot.lane.b32.xlu0 %v15507_v2, %s13627_s14  ;;  %v16283_v2 = vld [vmem:[%s18716_s5 + $0x138] sm:$0xff] }
 0x46a   : > { %11703 = vmatmul.mubr.msk.f32.gmra.mrb[58].mxu0 %vm5539_vm1, %v16245_v24  ;;  %9098 = vrot.lane.b32.xlu1 %v15574_v43, %s13627_s14  ;;  %v16254_v50 = vpop.permute.xlu0 %8395 }
 0x46b   : > { %19020 = vst [vmem:[#allocation12_spill] sm:$0xff] %v16254_v50  ;;  %11559 = vmatmul.mubr.msk.f32.gmra.mrb[52].mxu1 %vm5539_vm1, %v16049_v33  ;;  %7975 = vmatprep.mubr.f32.mxu0 %v18936_v40  ;;  %v16259_v53 = vpop.permute.xlu1 %8397  ;;  %v5522_v50 = vmul.f32 %v16043_v14, %v19017_v62  ;;  %v12651_v14 = vpack.c.bf16 %v7840_v63, %v7833_v13 }
 0x46c   : > { %19021 = vst [vmem:[#allocation95_spill] sm:$0xff] %v16259_v53  ;;  %5777 = vmatprep.mubr.f32.mxu1 %v18936_v40 }
 0x46d   : > { %6476 = vrot.lane.b32.xlu0 %v15582_v6, %s13624_s28  ;;  %v19022_v6 = vld [vmem:[#allocation29_spill] sm:$0xff] }
 0x46e   : > { %11704 = vmatmul.mubr.msk.f32.gmra.mrb[60].mxu0 %vm5539_vm1, %v16264_v26  ;;  %6478 = vrot.lane.b32.xlu1 %v15522_v25, %s13624_s28  ;;  %v16273_v46 = vpop.permute.xlu0 %5266  ;;  %v7825_v25 = vmul.f32 %v15553_v44, %v19022_v6  ;;  %v7839_v53 = vmul.f32 %v15574_v43, %v19022_v6 }
 0x46f   : > { %11560 = vmatmul.mubr.msk.f32.gmra.mrb[54].mxu1 %vm5539_vm1, %v16068_v19  ;;  %7981 = vmatprep.mubr.f32.mxu0 %v18936_v40  ;;  %v16278_v4 = vpop.permute.xlu1 %5268 }
 0x470   : > { %5783 = vmatprep.mubr.f32.mxu1 %v18936_v40 }
 0x471   : > { %6488 = vrot.lane.b32.xlu0 %v15589_v49, %s13624_s28  ;;  %v7818_v49 = vmul.f32 %v15543_v36, %v19022_v6  ;;  %v5314_v36 = vsel %vm749_vm6, %v16273_v46, %v16278_v4 }
 0x472   : > { %11705 = vmatmul.mubr.msk.f32.gmra.mrb[62].mxu0 %vm5539_vm1, %v16283_v2  ;;  %6490 = vrot.lane.b32.xlu1 %v15527_v3, %s13624_s28  ;;  %v16294_v11 = vpop.permute.xlu0 %5278  ;;  %v8438_v3 = vsel %vm3163_vm9, %v16106_v20, %v16083_v41 }
 0x473   : > { %11561 = vmatmul.mubr.msk.f32.gmra.mrb[56].mxu1 %vm5539_vm1, %v16089_v56  ;;  %8052 = vmatprep.mubr.f32.mxu0 %v18936_v40  ;;  %v16303_v44 = vpop.permute.xlu1 %5280  ;;  %v12649_v41 = vpack.c.bf16 %v7825_v25, %v7818_v49  ;;  %v19024_v56 = vld [vmem:[#allocation9_spill] sm:$0xff]  ;;  %v12531_v49 = vpack.c.bf16 %v5529_v12, %v5522_v50 }
 0x474   : > { %19023 = vst [vmem:[#allocation29_spill] sm:$0xff] %v16303_v44  ;;  %v5319_v32 = vsel %vm749_vm6, %v16294_v11, %v16303_v44  ;;  %5854 = vmatprep.mubr.f32.mxu1 %v18936_v40  ;;  %v8432_v44 = vsel %vm3163_vm9, %v16078_v8, %v16062_v7  ;;  %v7832_v7 = vmul.f32 %v15563_v52, %v19022_v6 }
 0x475   : > { %6500 = vrot.lane.b32.xlu0 %v15596_v51, %s13624_s28  ;;  %v5374_v42 = vmul.f32 %v5319_v32, %v19024_v56  ;;  %v19025_v51 = vld [vmem:[#allocation30_spill] sm:$0xff]  ;;  %v5367_v32 = vmul.f32 %v5314_v36, %v19024_v56 }
 0x476   : > { %11706 = vmatmul.mubr.msk.f32.vlgmr.msra.gmra.mrb[16].mxu0 %vm5539_vm1, %v16111_v30  ;;  %6502 = vrot.lane.b32.xlu1 %v15532_v59, %s13624_s28  ;;  %v16333_v62 = vpop.permute.xlu0 %8409  ;;  %v8495_v25 = vmul.f32 %v8438_v3, %v19025_v51  ;;  %v8488_v63 = vmul.f32 %v8432_v44, %v19025_v51  ;;  %v12653_v3 = vpack.c.bf16 %v7839_v53, %v7832_v7 }
 0x477   : > { %12650 = vmatpush1.bf16.msra.mxu0 %v12649_v41  ;;  %11562 = vmatmul.mubr.msk.f32.vlgmr.msra.gmra.mrb[58].mxu1 %vm5539_vm1, %v15930_v9  ;;  %v16338_v43 = vpop.permute.xlu1 %8411  ;;  %v12535_v36 = vpack.c.bf16 %v5374_v42, %v5367_v32 }
 0x478   : > { %12530 = vmatpush3.bf16.msra.mxu1 %v16217_v39  ;;  %12652 = vmatprep.subr.bf16.mxu0 %v12651_v14  ;;  %v12663_v6 = vpack.c.bf16 %v8495_v25, %v8488_v63  ;;  %v19028_v25 = vld [vmem:[#allocation91_spill] sm:$0xff]  ;;  %v8450_v63 = vsel %vm3163_vm9, %v16189_v15, %v16196_v37 }
 0x479   : > { %12532 = vmatprep.subr.bf16.mxu1 %v12531_v49  ;;  %8058 = vmatprep.mubr.f32.mxu0 %v18936_v40 }
 0x47a   : > { %6512 = vrot.lane.b32.xlu0 %v15603_v23, %s13624_s28  ;;  %5860 = vmatprep.mubr.f32.mxu1 %v18936_v40  ;;  %v16349_v41 = vpop.permute.xlu0 %8423 }
 0x47b   : > { %11707 = vmatmul.mubr.msk.f32.gmra.mrb[18].mxu0 %vm5539_vm1, %v16141_v5  ;;  %6514 = vrot.lane.b32.xlu1 %v15537_v34, %s13624_s28  ;;  %v16355_v44 = vpop.permute.xlu1 %8425 }
 0x47c   : > { %12654 = vmatpush1.bf16.msra.mxu0 %v12653_v3  ;;  %11563 = vmatmul.mubr.msk.f32.gmra.mrb[60].mxu1 %vm5539_vm1, %v15961_v57 }
 0x47d   : > { %12534 = vmatpush3.bf16.msra.mxu1 %v12531_v49  ;;  %12664 = vmatprep.subr.bf16.mxu0 %v12663_v6  ;;  %v8431_v49 = vsel %vm3163_vm9, %v16130_v31, %v16078_v8  ;;  %v8444_v31 = vsel %vm3163_vm9, %v16158_v18, %v16136_v55  ;;  %v19029_v8 = vld [vmem:[#allocation32_spill] sm:$0xff] }
 0x47e   : > { %12536 = vmatprep.subr.bf16.mxu1 %v12535_v36  ;;  %8064 = vmatprep.mubr.f32.mxu0 %v18936_v40  ;;  %v16360_v7 = vpop.permute.xlu0 %5290  ;;  %v8437_v36 = vsel %vm3163_vm9, %v16116_v38, %v16106_v20  ;;  %v8487_v6 = vmul.f32 %v8431_v49, %v19029_v8  ;;  %v8509_v20 = vmul.f32 %v8450_v63, %v19025_v51  ;;  %v19030_v63 = vld [vmem:[#allocation59_spill] sm:$0xff] }
 0x47f   : > { %9058 = vrot.lane.b32.xlu0 %v15545_v1, %s13627_s14  ;;  %5866 = vmatprep.mubr.f32.mxu1 %v18936_v40  ;;  %v16365_v39 = vpop.permute.xlu1 %5292  ;;  %v8502_v49 = vmul.f32 %v8444_v31, %v19025_v51  ;;  %v19039_v1 = vld [vmem:[#allocation27_spill] sm:$0xff] }
 0x480   : > { %11708 = vmatmul.mubr.msk.f32.gmra.mrb[20].mxu0 %vm5539_vm1, %v16170_v35  ;;  %9060 = vrot.lane.b32.xlu1 %v15750_v17, %s13627_s14  ;;  %v5362_v17 = vsel %vm749_vm6, 0.0, %v16273_v46  ;;  %v5324_v51 = vsel %vm749_vm6, %v16360_v7, %v16365_v39  ;;  %v19033_v46 = vld [vmem:[#allocation94_spill] sm:$0xff] }
 0x481   : > { %11564 = vmatmul.mubr.msk.f32.gmra.mrb[62].mxu1 %vm5539_vm1, %v15980_v47  ;;  %8070 = vmatprep.mubr.f32.mxu0 %v18936_v40 }
 0x482   : > { %5872 = vmatprep.mubr.f32.mxu1 %v18936_v40  ;;  %v5303_v12 = vpop.permute.xlu0 %5302 }
 0x483   : > { %9072 = vrot.lane.b32.xlu0 %v15555_v45, %s13627_s14  ;;  %v16377_v50 = vpop.permute.xlu1 %5304 }
 0x484   : > { %11709 = vmatmul.mubr.msk.f32.gmra.mrb[22].mxu0 %vm5539_vm1, %v16201_v54  ;;  %9074 = vrot.lane.b32.xlu1 %v15776_v21, %s13627_s14  ;;  %v5329_v38 = vsel %vm749_vm6, %v5303_v12, %v16377_v50  ;;  %v8494_v21 = vmul.f32 %v8437_v36, %v19029_v8 }
 0x485   : > { %11565 = vmatmul.mubr.msk.f32.gmra.mrb[64].mxu1 %vm5539_vm1, %v16007_v27  ;;  %8076 = vmatprep.mubr.f32.mxu0 %v18936_v40 }
 0x486   : > { %5878 = vmatprep.mubr.f32.mxu1 %v18936_v40  ;;  %v16387_v53 = vpop.permute.xlu0 %8385 }
 0x487   : > { %9086 = vrot.lane.b32.xlu0 %v15565_v60, %s13627_s14  ;;  %v16391_v13 = vpop.permute.xlu1 %8387  ;;  %v19032_v60 = vld [vmem:[#allocation10_spill] sm:$0xff] }
 0x488   : > { %19026 = vst [vmem:[#allocation9_spill] sm:$0xff] %v16391_v13  ;;  %11710 = vmatmul.mubr.msk.f32.gmra.mrb[24].mxu0 %vm5539_vm1, %v16225_v48  ;;  %9088 = vrot.lane.b32.xlu1 %v15842_v58, %s13627_s14  ;;  %v5366_v52 = vmul.f32 %v5362_v17, %v19032_v60  ;;  %v19037_v17 = vld [vmem:[#allocation61_spill] sm:$0xff] }
 0x489   : > { %11566 = vmatmul.mubr.msk.f32.gmra.mrb[66].mxu1 %vm5539_vm1, %v16025_v0  ;;  %8082 = vmatprep.mubr.f32.mxu0 %v18936_v40 }
 0x48a   : > { %5884 = vmatprep.mubr.f32.mxu1 %v18936_v40  ;;  %v16401_v42 = vpop.permute.xlu0 %8399 }
 0x48b   : > { %6480 = vrot.lane.b32.xlu0 %v15471_v10, %s13624_s28  ;;  %v16405_v14 = vpop.permute.xlu1 %8401 }
 0x48c   : > { %19027 = vst [vmem:[#allocation30_spill] sm:$0xff] %v16405_v14  ;;  %11711 = vmatmul.mubr.msk.f32.gmra.mrb[26].mxu0 %vm5539_vm1, %v16245_v24  ;;  %9102 = vrot.lane.b32.xlu1 %v19028_v25, %s13627_s14  ;;  %v5363_v25 = vsel %vm749_vm6, 0.0, %v16294_v11  ;;  %v8443_v11 = vsel %vm3163_vm9, %v16213_v29, %v16158_v18  ;;  %v12665_v29 = vpack.c.bf16 %v8494_v21, %v8487_v6 }
 0x48d   : > { %11567 = vmatmul.mubr.msk.f32.gmra.mrb[68].mxu1 %vm5539_vm1, %v16049_v33  ;;  %8088 = vmatprep.mubr.f32.mxu0 %v18936_v40  ;;  %v5373_v36 = vmul.f32 %v5363_v25, %v19032_v60  ;;  %v5388_v18 = vmul.f32 %v5329_v38, %v19024_v56  ;;  %v19035_v25 = vld [vmem:[#allocation12_spill] sm:$0xff]  ;;  %v12667_v21 = vpack.c.bf16 %v8509_v20, %v8502_v49 }
 0x48e   : > { %5890 = vmatprep.mubr.f32.mxu1 %v18936_v40  ;;  %v16418_v32 = vpop.permute.xlu0 %5270  ;;  %v8501_v38 = vmul.f32 %v8443_v11, %v19029_v8  ;;  %v5364_v11 = vsel %vm749_vm6, 0.0, %v16360_v7 }
 0x48f   : > { %9100 = vrot.lane.b32.xlu0 %v15576_v16, %s13627_s14  ;;  %v16425_v3 = vpop.permute.xlu1 %5272  ;;  %v8449_v16 = vsel %vm3163_vm9, %v16220_v22, %v16189_v15  ;;  %v19034_v22 = vld [vmem:[#allocation95_spill] sm:$0xff]  ;;  %v12537_v49 = vpack.c.bf16 %v5373_v36, %v5366_v52 }
 0x490   : > { %11712 = vmatmul.mubr.msk.f32.gmra.mrb[28].mxu0 %vm5539_vm1, %v16264_v26  ;;  %6482 = vrot.lane.b32.xlu1 %v15473_v28, %s13624_s28  ;;  %v8440_v31 = vsel %vm3163_vm9, %v19035_v25, %v19034_v22  ;;  %v8508_v45 = vmul.f32 %v8449_v16, %v19029_v8  ;;  %v5316_v22 = vsel %vm749_vm6, %v16418_v32, %v16425_v3  ;;  %v19041_v16 = vld [vmem:[#allocation18_spill] sm:$0xff] }
 0x491   : > { %11568 = vmatmul.mubr.msk.f32.gmra.mrb[70].mxu1 %vm5539_vm1, %v16068_v19  ;;  %8094 = vmatprep.mubr.f32.mxu0 %v18936_v40  ;;  %v5369_v36 = vmul.f32 %v5316_v22, %v19041_v16 }
 0x492   : > { %5896 = vmatprep.mubr.f32.mxu1 %v18936_v40  ;;  %v16447_v58 = vpop.permute.xlu0 %5282 }
 0x493   : > { %6492 = vrot.lane.b32.xlu0 %v19030_v63, %s13624_s28  ;;  %v16458_v28 = vpop.permute.xlu1 %5284 }
 0x494   : > { %19031 = vst [vmem:[#allocation32_spill] sm:$0xff] %v16458_v28  ;;  %11713 = vmatmul.mubr.msk.f32.gmra.mrb[30].mxu0 %vm5539_vm1, %v16283_v2  ;;  %6494 = vrot.lane.b32.xlu1 %v15485_v61, %s13624_s28  ;;  %v5321_v15 = vsel %vm749_vm6, %v16447_v58, %v16458_v28  ;;  %v5365_v61 = vsel %vm749_vm6, 0.0, %v5303_v12  ;;  %v5381_v28 = vmul.f32 %v5324_v51, %v19024_v56  ;;  %v19042_v56 = vld [vmem:[#allocation62_spill] sm:$0xff]  ;;  %v19043_v51 = vld [vmem:[#allocation31_spill] sm:$0xff] }
 0x495   : > { %11569 = vmatmul.mubr.msk.f32.gmra.mrb[72].mxu1 %vm5539_vm1, %v19033_v46  ;;  %8165 = vmatprep.mubr.f32.mxu0 %v18936_v40  ;;  %v5376_v8 = vmul.f32 %v5321_v15, %v19041_v16 }
 0x496   : > { %12163 = vmatprep.mubr.msk.f32.mxu1 %vm5539_vm1, %v15930_v9  ;;  %v16485_v6 = vpop.permute.xlu0 %8413  ;;  %v19040_v9 = vld [vmem:[#allocation8_spill] sm:$0xff]  ;;  %v12539_v52 = vpack.c.bf16 %v5388_v18, %v5381_v28 }
 0x497   : > { %19036 = vst [vmem:[#allocation10_spill] sm:$0xff] %v16485_v6  ;;  %6504 = vrot.lane.b32.xlu0 %v19037_v17, %s13624_s28  ;;  %v16495_v12 = vpop.permute.xlu1 %8415  ;;  %v8434_v20 = vsel %vm3163_vm9, %v19040_v9, %v19039_v1  ;;  %v8497_v6 = vmul.f32 %v8440_v31, %v19043_v51  ;;  %v12543_v28 = vpack.c.bf16 %v5376_v8, %v5369_v36  ;;  %v19046_v18 = vld [vmem:[#allocation64_spill] sm:$0xff]  ;;  %v19052_v36 = vld [vmem:[#allocation78_spill] sm:$0xff] }
 0x498   : > { %19038 = vst [vmem:[#allocation94_spill] sm:$0xff] %v16495_v12  ;;  %11714 = vmatmul.mubr.msk.f32.vlgmr.msra.gmra.mrb[32].mxu0 %vm5539_vm1, %v16111_v30  ;;  %6506 = vrot.lane.b32.xlu1 %v19042_v56, %s13624_s28  ;;  %v5387_v12 = vmul.f32 %v5365_v61, %v19032_v60  ;;  %v8490_v15 = vmul.f32 %v8434_v20, %v19043_v51 }
 0x499   : > { %12666 = vmatpush1.bf16.msra.mxu0 %v12665_v29  ;;  %12164 = vmatmul.mubr.msk.f32.vlgmr.msra.gmra.mrb[74].mxu1 %vm5539_vm1, %v15961_v57  ;;  %v5380_v30 = vmul.f32 %v5364_v11, %v19032_v60  ;;  %v12669_v61 = vpack.c.bf16 %v8508_v45, %v8501_v38  ;;  %v19045_v29 = vld [vmem:[#allocation63_spill] sm:$0xff]  ;;  %v19049_v38 = vld [vmem:[#allocation66_spill] sm:$0xff] }
 0x49a   : > { %12538 = vmatpush1.bf16.msra.mxu1 %v12537_v49  ;;  %12668 = vmatprep.subr.bf16.mxu0 %v12667_v21  ;;  %v5295_v7 = vpop.permute.xlu0 %5294  ;;  %v12671_v60 = vpack.c.bf16 %v8497_v6, %v8490_v15 }
 0x49b   : > { %12540 = vmatprep.subr.bf16.mxu1 %v12539_v52  ;;  %8171 = vmatprep.mubr.f32.mxu0 %v18936_v40  ;;  %v16515_v31 = vpop.permute.xlu1 %8429  ;;  %v12541_v57 = vpack.c.bf16 %v5387_v12, %v5380_v30  ;;  %v19050_v12 = vld [vmem:[#allocation17_spill] sm:$0xff] }
 0x49c   : > { %19044 = vst [vmem:[#allocation12_spill] sm:$0xff] %v16515_v31  ;;  %6516 = vrot.lane.b32.xlu0 %v19045_v29, %s13624_s28  ;;  %12166 = vmatprep.mubr.msk.f32.mxu1 %vm5539_vm1, %v15980_v47  ;;  %v19047_v47 = vld [vmem:[#allocation65_spill] sm:$0xff] }
 0x49d   : > { %11715 = vmatmul.mubr.msk.f32.gmra.mrb[34].mxu0 %vm5539_vm1, %v16141_v5  ;;  %6518 = vrot.lane.b32.xlu1 %v19046_v18, %s13624_s28  ;;  %v19048_v5 = vld [vmem:[#allocation29_spill] sm:$0xff] }
 0x49e   : > { %12670 = vmatpush1.bf16.msra.mxu0 %v12669_v61  ;;  %12167 = vmatmul.mubr.msk.f32.gmra.mrb[76].mxu1 %vm5539_vm1, %v16007_v27  ;;  %v5307_v45 = vpop.permute.xlu0 %5306  ;;  %v5320_v21 = vsel %vm749_vm6, %v19048_v5, %v16447_v58  ;;  %v5315_v58 = vsel %vm749_vm6, %v16278_v4, %v16418_v32  ;;  %v8452_v5 = vsel %vm3163_vm9, %v16349_v41, %v16355_v44 }
 0x49f   : > { %12542 = vmatpush1.bf16.msra.mxu1 %v12541_v57  ;;  %12672 = vmatprep.subr.bf16.mxu0 %v12671_v60  ;;  %v16527_v22 = vpop.permute.xlu1 %5296  ;;  %v5375_v20 = vmul.f32 %v5320_v21, %v19050_v12  ;;  %v5330_v49 = vsel %vm749_vm6, %v16377_v50, %v5307_v45  ;;  %v5368_v11 = vmul.f32 %v5315_v58, %v19050_v12  ;;  %v19054_v21 = vld [vmem:[#allocation92_spill] sm:$0xff] }
 0x4a0   : > { %12544 = vmatprep.subr.bf16.mxu1 %v12543_v28  ;;  %8177 = vmatprep.mubr.f32.mxu0 %v18936_v40  ;;  %v5325_v50 = vsel %vm749_vm6, %v16365_v39, %v5295_v7  ;;  %v5389_v52 = vmul.f32 %v5330_v49, %v19050_v12  ;;  %v16620_v28 = vld [vmem:[%s18716_s5 + $0x10] sm:$0xff] }
 0x4a1   : > { %9715 = vrot.lane.b32.xlu0 %v19047_v47, %s13628_s12  ;;  %12169 = vmatprep.mubr.msk.f32.mxu1 %vm5539_vm1, %v16025_v0  ;;  %v5326_v0 = vsel %vm749_vm6, %v5295_v7, %v16527_v22  ;;  %v12545_v8 = vpack.c.bf16 %v5375_v20, %v5368_v11  ;;  %v5382_v7 = vmul.f32 %v5325_v50, %v19050_v12  ;;  %v19056_v12 = vld [vmem:[#allocation79_spill] sm:$0xff]  ;;  %v16686_v50 = vld [vmem:[%s18716_s5 + $0x20] sm:$0xff] }
 0x4a2   : > { %11716 = vmatmul.mubr.msk.f32.gmra.mrb[36].mxu0 %vm5539_vm1, %v16170_v35  ;;  %9717 = vrot.lane.b32.xlu1 %v15471_v10, %s13628_s12  ;;  %v16538_v27 = vpop.permute.xlu0 %9050  ;;  %v5383_v4 = vmul.f32 %v5326_v0, %v19041_v16  ;;  %v8511_v20 = vmul.f32 %v8452_v5, %v19043_v51  ;;  %v8442_v11 = vsel %vm3163_vm9, %v16401_v42, %v16405_v14 }
 0x4a3   : > { %12170 = vmatmul.mubr.msk.f32.gmra.mrb[78].mxu1 %vm5539_vm1, %v16049_v33  ;;  %8183 = vmatprep.mubr.f32.mxu0 %v18936_v40  ;;  %v16546_v6 = vpop.permute.xlu1 %5308  ;;  %v12549_v30 = vpack.c.bf16 %v5389_v52, %v5382_v7  ;;  %v8436_v7 = vsel %vm3163_vm9, %v16387_v53, %v16391_v13  ;;  %v16774_v13 = vld [vmem:[%s18716_s5 + $0x38] sm:$0xff] }
 0x4a4   : > { %12172 = vmatprep.mubr.msk.f32.mxu1 %vm5539_vm1, %v16068_v19  ;;  %v5331_v35 = vsel %vm749_vm6, %v5307_v45, %v16546_v6 }
 0x4a5   : > { %9729 = vrot.lane.b32.xlu0 %v19049_v38, %s13628_s12  ;;  %v5390_v33 = vmul.f32 %v5331_v35, %v19041_v16  ;;  %v19051_v16 = vld [vmem:[#allocation77_spill] sm:$0xff]  ;;  %v19055_v35 = vld [vmem:[#allocation34_spill] sm:$0xff] }
 0x4a6   : > { %11717 = vmatmul.mubr.msk.f32.gmra.mrb[38].mxu0 %vm5539_vm1, %v16201_v54  ;;  %9731 = vrot.lane.b32.xlu1 %v19030_v63, %s13628_s12  ;;  %v16565_v19 = vpop.permute.xlu0 %8427  ;;  %v16580_v54 = vld [vmem:[%s18716_s5] sm:$0xff] }
 0x4a7   : > { %12173 = vmatmul.mubr.msk.f32.gmra.mrb[80].mxu1 %vm5539_vm1, %v19033_v46  ;;  %8189 = vmatprep.mubr.f32.mxu0 %v18936_v40  ;;  %v16573_v32 = vpop.permute.xlu1 %9052  ;;  %v12547_v46 = vpack.c.bf16 %v5390_v33, %v5383_v4  ;;  %v8446_v33 = vsel %vm3163_vm9, %v16333_v62, %v16338_v43 }
 0x4a8   : > { %6096 = vmatprep.mubr.f32.mxu1 %v18936_v40 }
 0x4a9   : > { %9713 = vrot.lane.b32.xlu0 %v19051_v16, %s13628_s12 }
 0x4aa   : > { %11718 = vmatmul.mubr.msk.f32.gmra.mrb[40].mxu0 %vm5539_vm1, %v16225_v48  ;;  %9727 = vrot.lane.b32.xlu1 %v19052_v36, %s13628_s12  ;;  %v16591_v15 = vpop.permute.xlu0 %9064  ;;  %v16603_v48 = vld [vmem:[%s18716_s5 + $0x8] sm:$0xff] }
 0x4ab   : > { %11578 = vmatmul.mubr.msk.f32.vlgmr.msra.gmra.mrb[26].mxu1 %vm5539_vm1, %v16580_v54  ;;  %8195 = vmatprep.mubr.f32.mxu0 %v18936_v40  ;;  %v16596_v39 = vpop.permute.xlu1 %9066 }
 0x4ac   : > { %12546 = vmatpush1.bf16.msra.mxu1 %v12545_v8  ;;  %6102 = vmatprep.mubr.f32.mxu1 %v18936_v40 }
 0x4ad   : > { %9743 = vrot.lane.b32.xlu0 %v15532_v59, %s13628_s12  ;;  %12548 = vmatprep.subr.bf16.mxu1 %v12547_v46  ;;  %v19073_v59 = vld [vmem:[#allocation58_spill] sm:$0xff] }
 0x4ae   : > { %11719 = vmatmul.mubr.msk.f32.gmra.mrb[42].mxu0 %vm5539_vm1, %v16245_v24  ;;  %9745 = vrot.lane.b32.xlu1 %v19037_v17, %s13628_s12  ;;  %v16611_v61 = vpop.permute.xlu0 %9048  ;;  %v19053_v24 = vld [vmem:[#allocation93_spill] sm:$0xff] }
 0x4af   : > { %11579 = vmatmul.mubr.msk.f32.gmra.mrb[28].mxu1 %vm5539_vm1, %v16603_v48  ;;  %8201 = vmatprep.mubr.f32.mxu0 %v18936_v40  ;;  %v8439_v60 = vsel %vm3163_vm9, %v19053_v24, %v19035_v25  ;;  %v8433_v25 = vsel %vm3163_vm9, %v19054_v21, %v19040_v9  ;;  %v8451_v9 = vsel %vm3163_vm9, %v16196_v37, %v16349_v41  ;;  %v16676_v37 = vld [vmem:[%s18716_s5 + $0x140] sm:$0xff] }
 0x4b0   : > { %12550 = vmatpush1.bf16.msra.mxu1 %v12549_v30  ;;  %6108 = vmatprep.mubr.f32.mxu1 %v18936_v40  ;;  %v16622_v57 = vpop.permute.xlu1 %9062  ;;  %v8496_v58 = vmul.f32 %v8439_v60, %v19055_v35  ;;  %v8489_v4 = vmul.f32 %v8433_v25, %v19055_v35  ;;  %v8504_v41 = vmul.f32 %v8446_v33, %v19043_v51  ;;  %v19058_v51 = vld [vmem:[#allocation33_spill] sm:$0xff]  ;;  %v19059_v60 = vld [vmem:[#allocation70_spill] sm:$0xff] }
 0x4b1   : > { %9757 = vrot.lane.b32.xlu0 %v15537_v34, %s13628_s12  ;;  %v8510_v52 = vmul.f32 %v8451_v9, %v19055_v35  ;;  %v8499_v30 = vmul.f32 %v8442_v11, %v19058_v51  ;;  %v16715_v9 = vld [vmem:[%s18716_s5 + $0x148] sm:$0xff]  ;;  %v19072_v34 = vld [vmem:[#allocation76_spill] sm:$0xff] }
 0x4b2   : > { %11720 = vmatmul.mubr.msk.f32.gmra.mrb[44].mxu0 %vm5539_vm1, %v16264_v26  ;;  %9759 = vrot.lane.b32.xlu1 %v19045_v29, %s13628_s12  ;;  %v16633_v45 = vpop.permute.xlu0 %5274  ;;  %v16648_v26 = vld [vmem:[%s18716_s5 + $0x18] sm:$0xff]  ;;  %v12673_v8 = vpack.c.bf16 %v8496_v58, %v8489_v4  ;;  %v12675_v5 = vpack.c.bf16 %v8511_v20, %v8504_v41  ;;  %v8492_v4 = vmul.f32 %v8436_v7, %v19058_v51 }
 0x4b3   : > { %11580 = vmatmul.mubr.msk.f32.gmra.mrb[30].mxu1 %vm5539_vm1, %v16620_v28  ;;  %8207 = vmatprep.mubr.f32.mxu0 %v18936_v40  ;;  %v19061_v58 = vld [vmem:[#allocation11_spill] sm:$0xff] }
 0x4b4   : > { %6114 = vmatprep.mubr.f32.mxu1 %v18936_v40  ;;  %v16650_v0 = vpop.permute.xlu1 %5276  ;;  %v19063_v41 = vld [vmem:[#allocation71_spill] sm:$0xff]  ;;  %v12679_v7 = vpack.c.bf16 %v8499_v30, %v8492_v4 }
 0x4b5   : > { %9741 = vrot.lane.b32.xlu0 %v19056_v12, %s13628_s12  ;;  %v5318_v24 = vsel %vm749_vm6, %v16633_v45, %v16650_v0 }
 0x4b6   : > { %11721 = vmatmul.mubr.msk.f32.gmra.mrb[46].mxu0 %vm5539_vm1, %v16283_v2  ;;  %9755 = vrot.lane.b32.xlu1 %v15603_v23, %s13628_s12  ;;  %v5287_v49 = vpop.permute.xlu0 %5286  ;;  %v8445_v2 = vsel %vm3163_vm9, %v16136_v55, %v16333_v62  ;;  %v19057_v55 = vld [vmem:[#allocation69_spill] sm:$0xff] }
 0x4b7   : > { %11581 = vmatmul.mubr.msk.f32.gmra.mrb[32].mxu1 %vm5539_vm1, %v16648_v26  ;;  %8612 = vmatprep.mubr.f32.mxu0 %v18936_v40  ;;  %v8503_v25 = vmul.f32 %v8445_v2, %v19055_v35  ;;  %v16722_v35 = vld [vmem:[%s18716_s5 + $0x28] sm:$0xff]  ;;  %v5371_v2 = vmul.f32 %v5318_v24, %v19061_v58 }
 0x4b8   : > { %6120 = vmatprep.mubr.f32.mxu1 %v18936_v40  ;;  %v16688_v46 = vpop.permute.xlu1 %5288 }
 0x4b9   : > { %6484 = vrot.lane.b32.xlu0 %v19057_v55, %s13624_s28  ;;  %v5323_v62 = vsel %vm749_vm6, %v5287_v49, %v16688_v46  ;;  %v12677_v11 = vpack.c.bf16 %v8510_v52, %v8503_v25  ;;  %v16741_v52 = vld [vmem:[%s18716_s5 + $0x150] sm:$0xff]  ;;  %v19065_v25 = vld [vmem:[#allocation73_spill] sm:$0xff] }
 0x4ba   : > { %11738 = vmatmul.mubr.msk.f32.vlgmr.msra.gmra.mrb[48].mxu0 %vm5539_vm1, %v16676_v37  ;;  %6486 = vrot.lane.b32.xlu1 %v19059_v60, %s13624_s28  ;;  %v16706_v21 = vpop.permute.xlu0 %9078  ;;  %v5378_v33 = vmul.f32 %v5323_v62, %v19061_v58 }
 0x4bb   : > { %19060 = vst [vmem:[#allocation27_spill] sm:$0xff] %v16706_v21  ;;  %12674 = vmatpush1.bf16.msra.mxu0 %v12673_v8  ;;  %11582 = vmatmul.mubr.msk.f32.gmra.mrb[34].mxu1 %vm5539_vm1, %v16686_v50  ;;  %v19064_v8 = vld [vmem:[#allocation72_spill] sm:$0xff] }
 0x4bc   : > { %12676 = vmatprep.subr.bf16.mxu0 %v12675_v5  ;;  %8618 = vmatprep.mubr.f32.mxu0 %v18936_v40  ;;  %v16724_v20 = vpop.permute.xlu1 %9080  ;;  %v12551_v24 = vpack.c.bf16 %v5378_v33, %v5371_v2  ;;  %v16747_v5 = vld [vmem:[%s18716_s5 + $0x30] sm:$0xff] }
 0x4bd   : > { %19062 = vst [vmem:[#allocation8_spill] sm:$0xff] %v16724_v20  ;;  %6496 = vrot.lane.b32.xlu0 %v19063_v41, %s13624_s28  ;;  %6126 = vmatprep.mubr.f32.mxu1 %v18936_v40  ;;  %v19066_v33 = vld [vmem:[#allocation74_spill] sm:$0xff] }
 0x4be   : > { %11739 = vmatmul.mubr.msk.f32.gmra.mrb[50].mxu0 %vm5539_vm1, %v16715_v9  ;;  %6498 = vrot.lane.b32.xlu1 %v19064_v8, %s13624_s28  ;;  %v16734_v62 = vpop.permute.xlu0 %9092 }
 0x4bf   : > { %12678 = vmatpush1.bf16.msra.mxu0 %v12677_v11  ;;  %11583 = vmatmul.mubr.msk.f32.gmra.mrb[36].mxu1 %vm5539_vm1, %v16722_v35  ;;  %v19068_v11 = vld [vmem:[#allocation32_spill] sm:$0xff] }
 0x4c0   : > { %12680 = vmatprep.subr.bf16.mxu0 %v12679_v7  ;;  %8624 = vmatprep.mubr.f32.mxu0 %v18936_v40  ;;  %v16749_v30 = vpop.permute.xlu1 %9094  ;;  %v5322_v2 = vsel %vm749_vm6, %v19068_v11, %v5287_v49  ;;  %v16767_v7 = vld [vmem:[%s18716_s5 + $0x158] sm:$0xff]  ;;  %v5317_v49 = vsel %vm749_vm6, %v16425_v3, %v16633_v45  ;;  %v19071_v11 = vld [vmem:[#allocation13_spill] sm:$0xff]  ;;  %v16794_v3 = vld [vmem:[%s18716_s5 + $0x160] sm:$0xff] }
 0x4c1   : > { %6508 = vrot.lane.b32.xlu0 %v19065_v25, %s13624_s28  ;;  %6132 = vmatprep.mubr.f32.mxu1 %v18936_v40  ;;  %v5377_v29 = vmul.f32 %v5322_v2, %v19071_v11  ;;  %v5370_v45 = vmul.f32 %v5317_v49, %v19071_v11 }
 0x4c2   : > { %11740 = vmatmul.mubr.msk.f32.gmra.mrb[52].mxu0 %vm5539_vm1, %v16741_v52  ;;  %6510 = vrot.lane.b32.xlu1 %v19066_v33, %s13624_s28  ;;  %v16758_v4 = vpop.permute.xlu0 %9076 }
 0x4c3   : > { %19067 = vst [vmem:[#allocation18_spill] sm:$0xff] %v16758_v4  ;;  %11584 = vmatmul.mubr.msk.f32.gmra.mrb[38].mxu1 %vm5539_vm1, %v16747_v5  ;;  %12552 = vmatprep.subr.bf16.mxu1 %v12551_v24  ;;  %v19070_v24 = vld [vmem:[#allocation75_spill] sm:$0xff]  ;;  %v12553_v63 = vpack.c.bf16 %v5377_v29, %v5370_v45 }
 0x4c4   : > { %8630 = vmatprep.mubr.f32.mxu0 %v18936_v40  ;;  %6138 = vmatprep.mubr.f32.mxu1 %v18936_v40  ;;  %v16776_v14 = vpop.permute.xlu1 %9090 }
 0x4c5   : > { %19069 = vst [vmem:[#allocation31_spill] sm:$0xff] %v16776_v14  ;;  %6520 = vrot.lane.b32.xlu0 %v19070_v24, %s13624_s28  ;;  %v16814_v14 = vld [vmem:[%s18716_s5 + $0x168] sm:$0xff] }
 0x4c6   : > { %11741 = vmatmul.mubr.msk.f32.gmra.mrb[54].mxu0 %vm5539_vm1, %v16767_v7  ;;  %6522 = vrot.lane.b32.xlu1 %v19072_v34, %s13624_s28  ;;  %v5299_v17 = vpop.permute.xlu0 %5298 }
 0x4c7   : > { %11585 = vmatmul.mubr.msk.f32.gmra.mrb[40].mxu1 %vm5539_vm1, %v16774_v13  ;;  %8636 = vmatprep.mubr.f32.mxu0 %v18936_v40  ;;  %v5327_v38 = vsel %vm749_vm6, %v16527_v22, %v5299_v17 }
 0x4c8   : > { %6209 = vmatprep.mubr.f32.mxu1 %v18936_v40  ;;  %v16798_v2 = vpop.permute.xlu1 %5300 }
 0x4c9   : > { %9719 = vrot.lane.b32.xlu0 %v19073_v59, %s13628_s12  ;;  %v5328_v49 = vsel %vm749_vm6, %v5299_v17, %v16798_v2  ;;  %v19074_v59 = vld [vmem:[#allocation60_spill] sm:$0xff]  ;;  %v16840_v17 = vld [vmem:[%s18716_s5 + $0x170] sm:$0xff] }
 0x4ca   : > { %11742 = vmatmul.mubr.msk.f32.gmra.mrb[56].mxu0 %vm5539_vm1, %v16794_v3  ;;  %9721 = vrot.lane.b32.xlu1 %v19057_v55, %s13628_s12  ;;  %v5385_v21 = vmul.f32 %v5328_v49, %v19061_v58 }
 0x4cb   : > { %11586 = vmatmul.mubr.msk.f32.vlgmr.msra.gmra.mrb[42].mxu1 %vm5539_vm1, %v16580_v54  ;;  %8642 = vmatprep.mubr.f32.mxu0 %v18936_v40  ;;  %v5311_v29 = vpop.permute.xlu0 %5310 }
 0x4cc   : > { %12554 = vmatpush1.bf16.msra.mxu1 %v12553_v63  ;;  %6215 = vmatprep.mubr.f32.mxu1 %v18936_v40  ;;  %v5332_v45 = vsel %vm749_vm6, %v16546_v6, %v5311_v29  ;;  %v16819_v55 = vpop.permute.xlu1 %5312 }
 0x4cd   : > { %9733 = vrot.lane.b32.xlu0 %v19074_v59, %s13628_s12  ;;  %v5333_v4 = vsel %vm749_vm6, %v5311_v29, %v16819_v55  ;;  %v5391_v6 = vmul.f32 %v5332_v45, %v19071_v11  ;;  %v19076_v45 = vld [vmem:[#allocation95_spill] sm:$0xff] }
 0x4ce   : > { %11743 = vmatmul.mubr.msk.f32.gmra.mrb[58].mxu0 %vm5539_vm1, %v16814_v14  ;;  %9735 = vrot.lane.b32.xlu1 %v19063_v41, %s13628_s12  ;;  %v5392_v63 = vmul.f32 %v5333_v4, %v19061_v58  ;;  %v19075_v58 = vld [vmem:[#allocation19_spill] sm:$0xff]  ;;  %v5384_v41 = vmul.f32 %v5327_v38, %v19071_v11  ;;  %v8441_v59 = vsel %vm3163_vm9, %v19076_v45, %v16401_v42  ;;  %v19080_v45 = vld [vmem:[#allocation94_spill] sm:$0xff] }
 0x4cf   : > { %11587 = vmatmul.mubr.msk.f32.gmra.mrb[44].mxu1 %vm5539_vm1, %v16603_v48  ;;  %8648 = vmatprep.mubr.f32.mxu0 %v18936_v40  ;;  %v16842_v22 = vpop.permute.xlu0 %9054  ;;  %v5379_v4 = vmul.f32 %v16688_v46, %v19075_v58  ;;  %v5372_v38 = vmul.f32 %v16650_v0, %v19075_v58  ;;  %v16870_v42 = vld [vmem:[%s18716_s5 + $0x178] sm:$0xff] }
 0x4d0   : > { %6221 = vmatprep.mubr.f32.mxu1 %v18936_v40  ;;  %v16845_v49 = vpop.permute.xlu1 %9056  ;;  %v12555_v29 = vpack.c.bf16 %v5392_v63, %v5385_v21  ;;  %v8454_v21 = vsel %vm3163_vm9, %v16565_v19, %v16515_v31  ;;  %v12557_v46 = vpack.c.bf16 %v5391_v6, %v5384_v41  ;;  %19077 = vst [vmem:[#allocation65_spill] sm:$0xff] %v16870_v42  ;;  %v19079_v41 = vld [vmem:[#allocation37_spill] sm:$0xff]  ;;  %v19081_v31 = vld [vmem:[#allocation10_spill] sm:$0xff] }
 0x4d1   : > { %9747 = vrot.lane.b32.xlu0 %v19042_v56, %s13628_s12  ;;  %v8435_v63 = vsel %vm3163_vm9, %v19039_v1, %v16387_v53  ;;  %v8498_v6 = vmul.f32 %v8441_v59, %v19079_v41  ;;  %v16886_v56 = vpack.c.bf16 %v5379_v4, %v5372_v38  ;;  %v8453_v1 = vsel %vm3163_vm9, %v16355_v44, %v16565_v19 }
 0x4d2   : > { %11744 = vmatmul.mubr.msk.f32.gmra.mrb[60].mxu0 %vm5539_vm1, %v16840_v17  ;;  %9749 = vrot.lane.b32.xlu1 %v19065_v25, %s13628_s12  ;;  %v8448_v25 = vsel %vm3163_vm9, %v19081_v31, %v19080_v45  ;;  %v8513_v53 = vmul.f32 %v8454_v21, %v19058_v51  ;;  %v8491_v59 = vmul.f32 %v8435_v63, %v19079_v41  ;;  %v19082_v45 = vld [vmem:[#allocation38_spill] sm:$0xff] }
 0x4d3   : > { %11588 = vmatmul.mubr.msk.f32.gmra.mrb[46].mxu1 %vm5539_vm1, %v16620_v28  ;;  %8654 = vmatprep.mubr.f32.mxu0 %v18936_v40  ;;  %v16872_v11 = vpop.permute.xlu0 %9068  ;;  %v8447_v19 = vsel %vm3163_vm9, %v16338_v43, %v19081_v31  ;;  %v8506_v4 = vmul.f32 %v8448_v25, %v19058_v51  ;;  %v9105_v63 = vsel %vm3672_vm11, %v16538_v27, %v16573_v32  ;;  %v19083_v31 = vld [vmem:[#allocation85_spill] sm:$0xff] }
 0x4d4   : > { %6227 = vmatprep.mubr.f32.mxu1 %v18936_v40  ;;  %12556 = vmatprep.subr.bf16.mxu1 %v12555_v29  ;;  %v16878_v0 = vpop.permute.xlu1 %9070  ;;  %v9111_v29 = vsel %vm3672_vm11, %v16591_v15, %v16596_v39  ;;  %v12681_v38 = vpack.c.bf16 %v8498_v6, %v8491_v59  ;;  %v8505_v25 = vmul.f32 %v8447_v19, %v19079_v41 }
 0x4d5   : > { %19078 = vst [vmem:[#allocation29_spill] sm:$0xff] %v16878_v0  ;;  %9761 = vrot.lane.b32.xlu0 %v19046_v18, %s13628_s12  ;;  %12558 = vmatpush1.bf16.msra.mxu1 %v12557_v46  ;;  %v8512_v46 = vmul.f32 %v8453_v1, %v19079_v41  ;;  %v9163_v43 = vmul.f32 %v9111_v29, %v19082_v45  ;;  %v19084_v41 = vld [vmem:[#allocation87_spill] sm:$0xff] }
 0x4d6   : > { %11745 = vmatmul.mubr.msk.f32.gmra.mrb[62].mxu0 %vm5539_vm1, %v16870_v42  ;;  %9763 = vrot.lane.b32.xlu1 %v19070_v24, %s13628_s12  ;;  %v12683_v51 = vpack.c.bf16 %v8513_v53, %v8506_v4  ;;  %v9157_v1 = vmul.f32 %v9105_v63, %v19082_v45  ;;  %v19085_v63 = vld [vmem:[#allocation90_spill] sm:$0xff]  ;;  %v19092_v18 = vld [vmem:[#allocation31_spill] sm:$0xff] }
 0x4d7   : > { %11589 = vmatmul.mubr.msk.f32.gmra.mrb[48].mxu1 %vm5539_vm1, %v16648_v26  ;;  %12560 = vmatprep.subr.bf16.mxu1 %v16886_v56  ;;  %v16903_v44 = vpop.permute.xlu0 %9082  ;;  %v12685_v29 = vpack.c.bf16 %v8512_v46, %v8505_v25 }
 0x4d8   : > { %8725 = vmatprep.mubr.f32.mxu0 %v18936_v40  ;;  %6233 = vmatprep.mubr.f32.mxu1 %v18936_v40  ;;  %v16911_v21 = vpop.permute.xlu1 %9084  ;;  %v12695_v53 = vpack.c.bf16 %v9163_v43, %v9157_v1 }
 0x4d9   : > { %9723 = vrot.lane.b32.xlu0 %v19059_v60, %s13628_s12 }
 0x4da   : > { %11746 = vmatmul.mubr.msk.f32.vlgmr.msra.gmra.mrb[16].mxu0 %vm5539_vm1, %v16676_v37  ;;  %9725 = vrot.lane.b32.xlu1 %v19083_v31, %s13628_s12 }
 0x4db   : > { %12682 = vmatpush1.bf16.msra.mxu0 %v12681_v38  ;;  %11590 = vmatmul.mubr.msk.f32.gmra.mrb[50].mxu1 %vm5539_vm1, %v16686_v50  ;;  %v16927_v6 = vpop.permute.xlu0 %9096 }
 0x4dc   : > { %12684 = vmatprep.subr.bf16.mxu0 %v12683_v51  ;;  %8731 = vmatprep.mubr.f32.mxu0 %v18936_v40  ;;  %v16931_v59 = vpop.permute.xlu1 %9098  ;;  %v5393_v51 = vmul.f32 %v16819_v55, %v19075_v58 }
 0x4dd   : > { %9737 = vrot.lane.b32.xlu0 %v19064_v8, %s13628_s12  ;;  %6239 = vmatprep.mubr.f32.mxu1 %v18936_v40  ;;  %v19087_v8 = vld [vmem:[#allocation91_spill] sm:$0xff] }
 0x4de   : > { %11747 = vmatmul.mubr.msk.f32.gmra.mrb[18].mxu0 %vm5539_vm1, %v16715_v9  ;;  %9739 = vrot.lane.b32.xlu1 %v19084_v41, %s13628_s12 }
 0x4df   : > { %12686 = vmatpush1.bf16.msra.mxu0 %v12685_v29  ;;  %11591 = vmatmul.mubr.msk.f32.gmra.mrb[52].mxu1 %vm5539_vm1, %v16722_v35  ;;  %v16942_v19 = vpop.permute.xlu0 %6476 }
 0x4e0   : > { %12696 = vmatprep.subr.bf16.mxu0 %v12695_v53  ;;  %8737 = vmatprep.mubr.f32.mxu0 %v18936_v40  ;;  %v16945_v4 = vpop.permute.xlu1 %6478  ;;  %v5386_v53 = vmul.f32 %v16798_v2, %v19075_v58 }
 0x4e1   : > { %7141 = vrot.lane.b32.xlu0 %v19051_v16, %s13625_s10  ;;  %6245 = vmatprep.mubr.f32.mxu1 %v18936_v40  ;;  %v6524_v1 = vsel %vm1696_vm7, %v16942_v19, %v16945_v4 }
 0x4e2   : > { %11748 = vmatmul.mubr.msk.f32.gmra.mrb[20].mxu0 %vm5539_vm1, %v16741_v52  ;;  %7155 = vrot.lane.b32.xlu1 %v19052_v36, %s13625_s10  ;;  %v12563_v24 = vpack.c.bf16 %v5393_v51, %v5386_v53  ;;  %v9110_v51 = vsel %vm3672_vm11, %v16622_v57, %v16591_v15  ;;  %v19089_v57 = vld [vmem:[#allocation27_spill] sm:$0xff] }
 0x4e3   : > { %11592 = vmatmul.mubr.msk.f32.gmra.mrb[54].mxu1 %vm5539_vm1, %v16747_v5  ;;  %8743 = vmatprep.mubr.f32.mxu0 %v18936_v40  ;;  %v16957_v38 = vpop.permute.xlu0 %6488 }
 0x4e4   : > { %6251 = vmatprep.mubr.f32.mxu1 %v18936_v40  ;;  %v16960_v46 = vpop.permute.xlu1 %6490 }
 0x4e5   : > { %9751 = vrot.lane.b32.xlu0 %v19066_v33, %s13628_s12  ;;  %v6529_v43 = vsel %vm1696_vm7, %v16957_v38, %v16960_v46  ;;  %v19086_v33 = vld [vmem:[#allocation14_spill] sm:$0xff] }
 0x4e6   : > { %11749 = vmatmul.mubr.msk.f32.gmra.mrb[22].mxu0 %vm5539_vm1, %v16767_v7  ;;  %9753 = vrot.lane.b32.xlu1 %v19085_v63, %s13628_s12  ;;  %v6584_v55 = vmul.f32 %v6529_v43, %v19086_v33  ;;  %v6577_v60 = vmul.f32 %v6524_v1, %v19086_v33  ;;  %v19090_v1 = vld [vmem:[#allocation66_spill] sm:$0xff] }
 0x4e7   : > { %11593 = vmatmul.mubr.msk.f32.gmra.mrb[56].mxu1 %vm5539_vm1, %v16774_v13  ;;  %8749 = vmatprep.mubr.f32.mxu0 %v18936_v40  ;;  %v16976_v25 = vpop.permute.xlu0 %6500 }
 0x4e8   : > { %6322 = vmatprep.mubr.f32.mxu1 %v18936_v40  ;;  %v16982_v29 = vpop.permute.xlu1 %6502  ;;  %v12567_v58 = vpack.c.bf16 %v6584_v55, %v6577_v60  ;;  %v9104_v60 = vsel %vm3672_vm11, %v16611_v61, %v16538_v27  ;;  %v19088_v27 = vld [vmem:[#allocation40_spill] sm:$0xff] }
 0x4e9   : > { %9765 = vrot.lane.b32.xlu0 %v19072_v34, %s13628_s12  ;;  %v9156_v15 = vmul.f32 %v9104_v60, %v19088_v27  ;;  %v9162_v61 = vmul.f32 %v9110_v51, %v19088_v27  ;;  %v9122_v60 = vsel %vm3672_vm11, %v19092_v18, %v16734_v62  ;;  %v19093_v51 = vld [vmem:[#allocation59_spill] sm:$0xff] }
 0x4ea   : > { %11750 = vmatmul.mubr.msk.f32.gmra.mrb[24].mxu0 %vm5539_vm1, %v16794_v3  ;;  %9767 = vrot.lane.b32.xlu1 %v19087_v8, %s13628_s12  ;;  %s13464_s12 = smul.u32 448, %s19166_s30 }
 0x4eb   : > { %11594 = vmatmul.mubr.msk.f32.vlgmr.msra.gmra.mrb[58].mxu1 %vm5539_vm1, %v16580_v54  ;;  %8755 = vmatprep.mubr.f32.mxu0 %v18936_v40  ;;  %v12697_v18 = vpack.c.bf16 %v9162_v61, %v9156_v15  ;;  %v19095_v61 = vld [vmem:[#allocation67_spill] sm:$0xff] }
 0x4ec   : > { %12562 = vmatpush3.bf16.msra.mxu1 %v16886_v56  ;;  %6328 = vmatprep.mubr.f32.mxu1 %v18936_v40  ;;  %v16999_v2 = vpop.permute.xlu0 %6512  ;;  %s18536_s24 = scalar_lea.vmem %s18719_s8, %s13464_s12 }
 0x4ed   : > { %12564 = vmatprep.subr.bf16.mxu1 %v12563_v24  ;;  %7169 = vrot.lane.b32.xlu0 %v19056_v12, %s13625_s10  ;;  %v17003_v43 = vpop.permute.xlu1 %6514 }
 0x4ee   : > { %11751 = vmatmul.mubr.msk.f32.gmra.mrb[26].mxu0 %vm5539_vm1, %v16814_v14  ;;  %7183 = vrot.lane.b32.xlu1 %v15603_v23, %s13625_s10 }
 0x4ef   : > { %11595 = vmatmul.mubr.msk.f32.gmra.mrb[60].mxu1 %vm5539_vm1, %v16603_v48  ;;  %8761 = vmatprep.mubr.f32.mxu0 %v18936_v40 }
 0x4f0   : > { %12566 = vmatpush3.bf16.msra.mxu1 %v12563_v24  ;;  %6334 = vmatprep.mubr.f32.mxu1 %v18936_v40 }
 0x4f1   : > { %12568 = vmatprep.subr.bf16.mxu1 %v12567_v58  ;;  %10380 = vrot.lane.b32.xlu0 %v19047_v47, %s13629_s17  ;;  %v17015_v56 = vpop.permute.xlu0 %9058  ;;  %v9123_v47 = vsel %vm3672_vm11, %v16734_v62, %v16749_v30  ;;  %v19091_v58 = vld [vmem:[#allocation18_spill] sm:$0xff] }
 0x4f2   : > { %11752 = vmatmul.mubr.msk.f32.gmra.mrb[28].mxu0 %vm5539_vm1, %v16840_v17  ;;  %10382 = vrot.lane.b32.xlu1 %v15471_v10, %s13629_s17  ;;  %v17027_v24 = vpop.permute.xlu1 %9060  ;;  %v9117_v10 = vsel %vm3672_vm11, %v19089_v57, %v16724_v20  ;;  %v9175_v55 = vmul.f32 %v9123_v47, %v19082_v45  ;;  %v9116_v34 = vsel %vm3672_vm11, %v19091_v58, %v19089_v57 }
 0x4f3   : > { %11596 = vmatmul.mubr.msk.f32.gmra.mrb[62].mxu1 %vm5539_vm1, %v16620_v28  ;;  %8767 = vmatprep.mubr.f32.mxu0 %v18936_v40  ;;  %v9113_v47 = vsel %vm3672_vm11, %v16872_v11, %v16878_v0  ;;  %v9169_v57 = vmul.f32 %v9117_v10, %v19082_v45  ;;  %v9168_v62 = vmul.f32 %v9116_v34, %v19088_v27  ;;  %v19094_v0 = vld [vmem:[#allocation36_spill] sm:$0xff] }
 0x4f4   : > { %6340 = vmatprep.mubr.f32.mxu1 %v18936_v40  ;;  %v9107_v58 = vsel %vm3672_vm11, %v16842_v22, %v16845_v49 }
 0x4f5   : > { %10394 = vrot.lane.b32.xlu0 %v19090_v1, %s13629_s17  ;;  %v17043_v53 = vpop.permute.xlu0 %9072  ;;  %v9174_v1 = vmul.f32 %v9122_v60, %v19088_v27  ;;  %v12699_v34 = vpack.c.bf16 %v9175_v55, %v9169_v57  ;;  %v9159_v27 = vmul.f32 %v9107_v58, %v19094_v0  ;;  %v6573_v55 = vsel %vm1696_vm7, 0.0, %v16957_v38 }
 0x4f6   : > { %11753 = vmatmul.mubr.msk.f32.gmra.mrb[30].mxu0 %vm5539_vm1, %v16870_v42  ;;  %10396 = vrot.lane.b32.xlu1 %v19093_v51, %s13629_s17  ;;  %v17056_v20 = vpop.permute.xlu1 %9074  ;;  %v9165_v42 = vmul.f32 %v9113_v47, %v19094_v0  ;;  %v6539_v60 = vsel %vm1696_vm7, %v16999_v2, %v17003_v43  ;;  %v19097_v47 = vld [vmem:[#allocation68_spill] sm:$0xff] }
 0x4f7   : > { %11597 = vmatmul.mubr.msk.f32.gmra.mrb[64].mxu1 %vm5539_vm1, %v16648_v26  ;;  %8838 = vmatprep.mubr.f32.mxu0 %v18936_v40 }
 0x4f8   : > { %6346 = vmatprep.mubr.f32.mxu1 %v18936_v40 }
 0x4f9   : > { %10378 = vrot.lane.b32.xlu0 %v19051_v16, %s13629_s17  ;;  %v17073_v51 = vpop.permute.xlu0 %9086  ;;  %v12701_v16 = vpack.c.bf16 %v9174_v1, %v9168_v62  ;;  %v6534_v62 = vsel %vm1696_vm7, %v16976_v25, %v16982_v29  ;;  %v19099_v1 = vld [vmem:[#allocation63_spill] sm:$0xff] }
 0x4fa   : > { %11754 = vmatmul.mubr.msk.f32.vlgmr.msra.gmra.mrb[32].mxu0 %vm5539_vm1, %v16676_v37  ;;  %10392 = vrot.lane.b32.xlu1 %v19052_v36, %s13629_s17  ;;  %v17080_v45 = vpop.permute.xlu1 %9088  ;;  %v12703_v36 = vpack.c.bf16 %v9165_v42, %v9159_v27 }
 0x4fb   : > { %12698 = vmatpush1.bf16.msra.mxu0 %v12697_v18  ;;  %11598 = vmatmul.mubr.msk.f32.gmra.mrb[66].mxu1 %vm5539_vm1, %v16686_v50  ;;  %v19098_v18 = vld [vmem:[#allocation16_spill] sm:$0xff] }
 0x4fc   : > { %12700 = vmatprep.subr.bf16.mxu0 %v12699_v34  ;;  %8844 = vmatprep.mubr.f32.mxu0 %v18936_v40  ;;  %v6583_v38 = vmul.f32 %v6573_v55, %v19098_v18  ;;  %v6598_v34 = vmul.f32 %v6539_v60, %v19086_v33 }
 0x4fd   : > { %7153 = vrot.lane.b32.xlu0 %v19083_v31, %s13625_s10  ;;  %6352 = vmatprep.mubr.f32.mxu1 %v18936_v40  ;;  %v17089_v37 = vpop.permute.xlu0 %6480 }
 0x4fe   : > { %11755 = vmatmul.mubr.msk.f32.gmra.mrb[34].mxu0 %vm5539_vm1, %v16715_v9  ;;  %7167 = vrot.lane.b32.xlu1 %v19084_v41, %s13625_s10  ;;  %v17095_v15 = vpop.permute.xlu1 %9102  ;;  %v19096_v9 = vld [vmem:[#allocation61_spill] sm:$0xff] }
 0x4ff   : > { %12702 = vmatpush1.bf16.msra.mxu0 %v12701_v16  ;;  %11599 = vmatmul.mubr.msk.f32.gmra.mrb[68].mxu1 %vm5539_vm1, %v16722_v35 }
 0x500   : > { %12704 = vmatprep.subr.bf16.mxu0 %v12703_v36  ;;  %8850 = vmatprep.mubr.f32.mxu0 %v18936_v40  ;;  %v6591_v36 = vmul.f32 %v6534_v62, %v19086_v33 }
 0x501   : > { %10408 = vrot.lane.b32.xlu0 %v19095_v61, %s13629_s17  ;;  %6358 = vmatprep.mubr.f32.mxu1 %v18936_v40  ;;  %v17103_v10 = vpop.permute.xlu0 %9100  ;;  %v19100_v61 = vld [vmem:[#allocation22_spill] sm:$0xff] }
 0x502   : > { %11756 = vmatmul.mubr.msk.f32.gmra.mrb[36].mxu0 %vm5539_vm1, %v16741_v52  ;;  %10410 = vrot.lane.b32.xlu1 %v19096_v9, %s13629_s17  ;;  %v17109_v42 = vpop.permute.xlu1 %6482  ;;  %v6572_v52 = vsel %vm1696_vm7, 0.0, %v16942_v19  ;;  %v6575_v19 = vsel %vm1696_vm7, 0.0, %v16999_v2  ;;  %v6574_v2 = vsel %vm1696_vm7, 0.0, %v16976_v25  ;;  %v12571_v25 = vpack.c.bf16 %v6598_v34, %v6591_v36  ;;  %v19104_v34 = vld [vmem:[#allocation60_spill] sm:$0xff] }
 0x503   : > { %11600 = vmatmul.mubr.msk.f32.gmra.mrb[70].mxu1 %vm5539_vm1, %v16747_v5  ;;  %8856 = vmatprep.mubr.f32.mxu0 %v18936_v40  ;;  %v6526_v16 = vsel %vm1696_vm7, %v17089_v37, %v17109_v42 }
 0x504   : > { %6364 = vmatprep.mubr.f32.mxu1 %v18936_v40  ;;  %v6579_v33 = vmul.f32 %v6526_v16, %v19100_v61 }
 0x505   : > { %10422 = vrot.lane.b32.xlu0 %v19097_v47, %s13629_s17  ;;  %v6493_v57 = vpop.permute.xlu0 %6492 }
 0x506   : > { %11757 = vmatmul.mubr.msk.f32.gmra.mrb[38].mxu0 %vm5539_vm1, %v16767_v7  ;;  %10424 = vrot.lane.b32.xlu1 %v19099_v1, %s13629_s17  ;;  %v17132_v58 = vpop.permute.xlu1 %6494  ;;  %v6576_v7 = vmul.f32 %v6572_v52, %v19098_v18  ;;  %v6597_v52 = vmul.f32 %v6575_v19, %v19098_v18  ;;  %v6525_v19 = vsel %vm1696_vm7, %v16945_v4, %v17089_v37 }
 0x507   : > { %11601 = vmatmul.mubr.msk.f32.gmra.mrb[72].mxu1 %vm5539_vm1, %v16774_v13  ;;  %v6531_v27 = vsel %vm1696_vm7, %v6493_v57, %v17132_v58  ;;  %8862 = vmatprep.mubr.f32.mxu0 %v18936_v40 }
 0x508   : > { %12183 = vmatprep.mubr.msk.f32.mxu1 %vm5539_vm1, %v16580_v54  ;;  %v6586_v9 = vmul.f32 %v6531_v27, %v19100_v61  ;;  %v12569_v60 = vpack.c.bf16 %v6583_v38, %v6576_v7  ;;  %v6530_v38 = vsel %vm1696_vm7, %v16960_v46, %v6493_v57  ;;  %v9115_v57 = vsel %vm3672_vm11, %v17043_v53, %v17056_v20  ;;  %v19105_v27 = vld [vmem:[#allocation23_spill] sm:$0xff] }
 0x509   : > { %10406 = vrot.lane.b32.xlu0 %v19056_v12, %s13629_s17  ;;  %v17154_v55 = vpop.permute.xlu0 %6504  ;;  %v6590_v12 = vmul.f32 %v6574_v2, %v19098_v18  ;;  %v19101_v18 = vld [vmem:[#allocation58_spill] sm:$0xff]  ;;  %v6585_v7 = vmul.f32 %v6530_v38, %v19105_v27  ;;  %v19107_v20 = vld [vmem:[#allocation71_spill] sm:$0xff]  ;;  %v9153_v36 = vsel %vm3697_vm12, %v9115_v57, 0.0 }
 0x50a   : > { %11758 = vmatmul.mubr.msk.f32.gmra.mrb[40].mxu0 %vm5539_vm1, %v16794_v3  ;;  %10420 = vrot.lane.b32.xlu1 %v15603_v23, %s13629_s17  ;;  %v17161_v54 = vpop.permute.xlu1 %6506  ;;  %v12575_v23 = vpack.c.bf16 %v6586_v9, %v6579_v33  ;;  %v6578_v9 = vmul.f32 %v6525_v19, %v19105_v27  ;;  %v19108_v33 = vld [vmem:[#allocation8_spill] sm:$0xff] }
 0x50b   : > { %12184 = vmatmul.mubr.msk.f32.vlgmr.msra.gmra.mrb[74].mxu1 %vm5539_vm1, %v16603_v48  ;;  %8868 = vmatprep.mubr.f32.mxu0 %v18936_v40  ;;  %v12573_v3 = vpack.c.bf16 %v6597_v52, %v6590_v12 }
 0x50c   : > { %12570 = vmatpush1.bf16.msra.mxu1 %v12569_v60  ;;  %12186 = vmatprep.mubr.msk.f32.mxu1 %vm5539_vm1, %v16620_v28  ;;  %v9112_v28 = vsel %vm3672_vm11, %v16596_v39, %v16872_v11  ;;  %v19102_v39 = vld [vmem:[#allocation69_spill] sm:$0xff]  ;;  %v19103_v11 = vld [vmem:[#allocation39_spill] sm:$0xff] }
 0x50d   : > { %12572 = vmatprep.subr.bf16.mxu1 %v12571_v25  ;;  %7181 = vrot.lane.b32.xlu0 %v19085_v63, %s13625_s10 }
 0x50e   : > { %11759 = vmatmul.mubr.msk.f32.gmra.mrb[42].mxu0 %vm5539_vm1, %v16814_v14  ;;  %7195 = vrot.lane.b32.xlu1 %v19087_v8, %s13625_s10  ;;  %v6517_v48 = vpop.permute.xlu0 %6516  ;;  %v9106_v14 = vsel %vm3672_vm11, %v16573_v32, %v16842_v22 }
 0x50f   : > { %12187 = vmatmul.mubr.msk.f32.gmra.mrb[76].mxu1 %vm5539_vm1, %v16648_v26  ;;  %v17178_v47 = vpop.permute.xlu1 %6518  ;;  %8874 = vmatprep.mubr.f32.mxu0 %v18936_v40  ;;  %v9125_v26 = vsel %vm3672_vm11, %v16927_v6, %v16931_v59  ;;  %v9158_v22 = vmul.f32 %v9106_v14, %v19103_v11  ;;  %v6540_v60 = vsel %vm1696_vm7, %v17003_v43, %v6517_v48  ;;  %v19109_v43 = vld [vmem:[#allocation62_spill] sm:$0xff]  ;;  %v19111_v14 = vld [vmem:[#allocation41_spill] sm:$0xff] }
 0x510   : > { %12574 = vmatpush1.bf16.msra.mxu1 %v12573_v3  ;;  %12189 = vmatprep.mubr.msk.f32.mxu1 %vm5539_vm1, %v16686_v50  ;;  %v9164_v50 = vmul.f32 %v9112_v28, %v19103_v11  ;;  %v6541_v62 = vsel %vm1696_vm7, %v6517_v48, %v17178_v47  ;;  %v9177_v46 = vmul.f32 %v9125_v26, %v19094_v0  ;;  %v19110_v28 = vld [vmem:[#allocation73_spill] sm:$0xff] }
 0x511   : > { %12576 = vmatprep.subr.bf16.mxu1 %v12575_v23  ;;  %10384 = vrot.lane.b32.xlu0 %v19101_v18, %s13629_s17  ;;  %v6600_v37 = vmul.f32 %v6541_v62, %v19100_v61  ;;  %v12577_v3 = vpack.c.bf16 %v6585_v7, %v6578_v9  ;;  %v6535_v48 = vsel %vm1696_vm7, %v16982_v29, %v17154_v55  ;;  %v19112_v62 = vld [vmem:[#allocation49_spill] sm:$0xff] }
 0x512   : > { %11760 = vmatmul.mubr.msk.f32.gmra.mrb[44].mxu0 %vm5539_vm1, %v16840_v17  ;;  %10386 = vrot.lane.b32.xlu1 %v19102_v39, %s13629_s17  ;;  %v9119_v17 = vsel %vm3672_vm11, %v16903_v44, %v16911_v21  ;;  %v12705_v4 = vpack.c.bf16 %v9164_v50, %v9158_v22  ;;  %v9167_v18 = vmul.f32 %v9153_v36, %v19111_v14  ;;  %v17289_v22 = vld [vmem:[%s18716_s5 + $0x188] sm:$0xff] }
 0x513   : > { %12190 = vmatmul.mubr.msk.f32.gmra.mrb[78].mxu1 %vm5539_vm1, %v16722_v35  ;;  %v17203_v32 = vpop.permute.xlu0 %9715  ;;  %8880 = vmatprep.mubr.f32.mxu0 %v18936_v40  ;;  %v9124_v35 = vsel %vm3672_vm11, %v16749_v30, %v16927_v6  ;;  %v6536_v30 = vsel %vm1696_vm7, %v17154_v55, %v17161_v54  ;;  %v19106_v6 = vld [vmem:[#allocation65_spill] sm:$0xff]  ;;  %v9171_v2 = vmul.f32 %v9119_v17, %v19094_v0 }
 0x514   : > { %v17212_v1 = vpop.permute.xlu1 %9717  ;;  %12192 = vmatprep.mubr.msk.f32.mxu1 %vm5539_vm1, %v16747_v5  ;;  %v9109_v5 = vsel %vm3672_vm11, %v17015_v56, %v17027_v24  ;;  %v17248_v24 = vld [vmem:[%s18716_s5 + $0x180] sm:$0xff]  ;;  %v9118_v0 = vsel %vm3672_vm11, %v19108_v33, %v16903_v44  ;;  %v9176_v25 = vmul.f32 %v9124_v35, %v19103_v11  ;;  %v6593_v23 = vmul.f32 %v6536_v30, %v19100_v61  ;;  %v17355_v33 = vld [vmem:[%s18716_s5 + $0x98] sm:$0xff] }
 0x515   : > { %10398 = vrot.lane.b32.xlu0 %v19104_v34, %s13629_s17  ;;  %v9152_v12 = vsel %vm3697_vm12, %v9109_v5, 0.0  ;;  %v12707_v44 = vpack.c.bf16 %v9177_v46, %v9171_v2  ;;  %v6599_v26 = vmul.f32 %v6540_v60, %v19105_v27  ;;  %v9170_v50 = vmul.f32 %v9118_v0, %v19103_v11  ;;  %v17301_v46 = vld [vmem:[%s18716_s5 + $0x88] sm:$0xff]  ;;  %v19113_v34 = vld [vmem:[#allocation64_spill] sm:$0xff]  ;;  %v19115_v2 = vld [vmem:[#allocation70_spill] sm:$0xff] }
 0x516   : > { %11761 = vmatmul.mubr.msk.f32.gmra.mrb[46].mxu0 %vm5539_vm1, %v19106_v6  ;;  %10400 = vrot.lane.b32.xlu1 %v19107_v20, %s13629_s17  ;;  %v12579_v39 = vpack.c.bf16 %v6600_v37, %v6593_v23  ;;  %v9161_v29 = vmul.f32 %v9152_v12, %v19111_v14  ;;  %v6592_v17 = vmul.f32 %v6535_v48, %v19105_v27  ;;  %v19114_v27 = vld [vmem:[#allocation75_spill] sm:$0xff]  ;;  %v17329_v37 = vld [vmem:[%s18716_s5 + $0x90] sm:$0xff]  ;;  %v19116_v0 = vld [vmem:[#allocation72_spill] sm:$0xff] }
 0x517   : > { %12193 = vmatmul.mubr.msk.f32.gmra.mrb[80].mxu1 %vm5539_vm1, %v16774_v13  ;;  %v17242_v16 = vpop.permute.xlu0 %9729  ;;  %9277 = vmatprep.mubr.f32.mxu0 %v18936_v40  ;;  %v17261_v13 = vld [vmem:[%s18716_s5 + $0x80] sm:$0xff]  ;;  %v12709_v57 = vpack.c.bf16 %v9176_v25, %v9170_v50  ;;  %v17348_v60 = vld [vmem:[%s18716_s5 + $0x198] sm:$0xff] }
 0x518   : > { %v17255_v52 = vpop.permute.xlu1 %9731  ;;  %6701 = vmatprep.mubr.f32.mxu1 %v18936_v40  ;;  %v12581_v5 = vpack.c.bf16 %v6599_v26, %v6592_v17  ;;  %v12711_v7 = vpack.c.bf16 %v9167_v18, %v9161_v29  ;;  %v17372_v23 = vld [vmem:[%s18716_s5 + $0x1a0] sm:$0xff]  ;;  %v17401_v18 = vld [vmem:[%s18716_s5 + $0xa8] sm:$0xff]  ;;  %v17424_v17 = vld [vmem:[%s18716_s5 + $0x1b0] sm:$0xff] }
 0x519   : > { %10412 = vrot.lane.b32.xlu0 %v19109_v43, %s13629_s17  ;;  %v17379_v43 = vld [vmem:[%s18716_s5 + $0xa0] sm:$0xff]  ;;  %v19119_v29 = vld [vmem:[#allocation29_spill] sm:$0xff] }
 0x51a   : > { %11778 = vmatmul.mubr.msk.f32.vlgmr.msra.gmra.mrb[48].mxu0 %vm5539_vm1, %v17248_v24  ;;  %10414 = vrot.lane.b32.xlu1 %v19110_v28, %s13629_s17  ;;  %v19118_v26 = vld [vmem:[#allocation76_spill] sm:$0xff] }
 0x51b   : > { %12706 = vmatpush1.bf16.msra.mxu0 %v12705_v4  ;;  %11618 = vmatmul.mubr.msk.f32.vlgmr.msra.gmra.mrb[26].mxu1 %vm5539_vm1, %v17261_v13  ;;  %v9714_v61 = vpop.permute.xlu0 %9713  ;;  %v17324_v4 = vld [vmem:[%s18716_s5 + $0x190] sm:$0xff]  ;;  %v11043_v50 = vld [vmem:[%s18717_s6] sm:$0xff] }
 0x51c   : > { %12578 = vmatpush1.bf16.msra.mxu1 %v12577_v3  ;;  %12708 = vmatprep.subr.bf16.mxu0 %v12707_v44  ;;  %v9769_v55 = vsel %vm4178_vm13, %v9714_v61, %v17203_v32  ;;  %v9728_v38 = vpop.permute.xlu1 %9727  ;;  %v19117_v3 = vld [vmem:[#allocation74_spill] sm:$0xff]  ;;  %v17394_v44 = vld [vmem:[%s18716_s5 + $0x1a8] sm:$0xff] }
 0x51d   : > { %v17293_v35 = vmul.f32 %v9769_v55, %v19112_v62  ;;  %12580 = vmatprep.subr.bf16.mxu1 %v12579_v39  ;;  %v9775_v11 = vsel %vm4178_vm13, %v9728_v38, %v17242_v16  ;;  %9283 = vmatprep.mubr.f32.mxu0 %v18936_v40  ;;  %v9114_v55 = vsel %vm3672_vm11, %v19119_v29, %v17043_v53  ;;  %v11045_v29 = vld [vmem:[%s18717_s6 + $0x10] sm:$0xff] }
 0x51e   : > { %v17304_v19 = vmul.f32 %v9775_v11, %v19112_v62  ;;  %10426 = vrot.lane.b32.xlu0 %v19113_v34, %s13629_s17  ;;  %6707 = vmatprep.mubr.f32.mxu1 %v18936_v40  ;;  %v9127_v11 = vsel %vm3672_vm11, %v17103_v10, %v17095_v15  ;;  %v17439_v34 = vld [vmem:[%s18716_s5 + $0xb0] sm:$0xff]  ;;  %v9108_v15 = vsel %vm3672_vm11, %v16845_v49, %v17015_v56 }
 0x51f   : > { %11779 = vmatmul.mubr.msk.f32.gmra.mrb[50].mxu0 %vm5539_vm1, %v17289_v22  ;;  %10428 = vrot.lane.b32.xlu1 %v19114_v27, %s13629_s17  ;;  %v17313_v30 = vpop.permute.xlu0 %9743  ;;  %v9155_v49 = vsel %vm3697_vm12, %v9127_v11, 0.0  ;;  %v11046_v11 = vld [vmem:[%s18717_s6 + $0x18] sm:$0xff] }
 0x520   : > { %12710 = vmatpush1.bf16.msra.mxu0 %v12709_v57  ;;  %11619 = vmatmul.mubr.msk.f32.gmra.mrb[28].mxu1 %vm5539_vm1, %v17301_v46  ;;  %v17319_v20 = vpop.permute.xlu1 %9745  ;;  %v11044_v57 = vld [vmem:[%s18717_s6 + $0x8] sm:$0xff] }
 0x521   : > { %12582 = vmatpush1.bf16.msra.mxu1 %v12581_v5  ;;  %12712 = vmatprep.subr.bf16.mxu0 %v12711_v7  ;;  %v19120_v5 = vld [vmem:[#allocation15_spill] sm:$0xff] }
 0x522   : > { %9289 = vmatprep.mubr.f32.mxu0 %v18936_v40  ;;  %10388 = vrot.lane.b32.xlu0 %v19115_v2, %s13629_s17  ;;  %v19121_v2 = vld [vmem:[#allocation44_spill] sm:$0xff] }
 0x523   : > { %6713 = vmatprep.mubr.f32.mxu1 %v18936_v40  ;;  %11780 = vmatmul.mubr.msk.f32.gmra.mrb[52].mxu0 %vm5539_vm1, %v17324_v4  ;;  %v17337_v36 = vpop.permute.xlu0 %9757 }
 0x524   : > { %10390 = vrot.lane.b32.xlu1 %v19083_v31, %s13629_s17  ;;  %11620 = vmatmul.mubr.msk.f32.gmra.mrb[30].mxu1 %vm5539_vm1, %v17329_v37  ;;  %v17343_v9 = vpop.permute.xlu1 %9759 }
 0x525   : > { %9295 = vmatprep.mubr.f32.mxu0 %v18936_v40  ;;  %6719 = vmatprep.mubr.f32.mxu1 %v18936_v40 }
 0x526   : > { %10402 = vrot.lane.b32.xlu0 %v19116_v0, %s13629_s17  ;;  %v9166_v0 = vmul.f32 %v9114_v55, %v19121_v2 }
 0x527   : > { %11781 = vmatmul.mubr.msk.f32.gmra.mrb[54].mxu0 %vm5539_vm1, %v17348_v60  ;;  %v17361_v25 = vpop.permute.xlu0 %9741 }
 0x528   : > { %10404 = vrot.lane.b32.xlu1 %v19084_v41, %s13629_s17  ;;  %11621 = vmatmul.mubr.msk.f32.gmra.mrb[32].mxu1 %vm5539_vm1, %v17355_v33  ;;  %v17367_v12 = vpop.permute.xlu1 %9755 }
 0x529   : > { %9301 = vmatprep.mubr.f32.mxu0 %v18936_v40  ;;  %6725 = vmatprep.mubr.f32.mxu1 %v18936_v40 }
 0x52a   : > { %10416 = vrot.lane.b32.xlu0 %v19117_v3, %s13629_s17  ;;  %v9121_v3 = vsel %vm3672_vm11, %v17073_v51, %v17080_v45  ;;  %v17463_v45 = vld [vmem:[%s18716_s5 + $0x1b8] sm:$0xff] }
 0x52b   : > { %11782 = vmatmul.mubr.msk.f32.gmra.mrb[56].mxu0 %vm5539_vm1, %v17372_v23  ;;  %v6485_v48 = vpop.permute.xlu0 %6484 }
 0x52c   : > { %10418 = vrot.lane.b32.xlu1 %v19085_v63, %s13629_s17  ;;  %11622 = vmatmul.mubr.msk.f32.gmra.mrb[34].mxu1 %vm5539_vm1, %v17379_v43  ;;  %v17389_v28 = vpop.permute.xlu1 %6486 }
 0x52d   : > { %9307 = vmatprep.mubr.f32.mxu0 %v18936_v40  ;;  %6731 = vmatprep.mubr.f32.mxu1 %v18936_v40  ;;  %v6528_v61 = vsel %vm1696_vm7, %v6485_v48, %v17389_v28 }
 0x52e   : > { %10430 = vrot.lane.b32.xlu0 %v19118_v26, %s13629_s17  ;;  %v6581_v27 = vmul.f32 %v6528_v61, %v19120_v5 }
 0x52f   : > { %11783 = vmatmul.mubr.msk.f32.gmra.mrb[58].mxu0 %vm5539_vm1, %v17394_v44  ;;  %v6497_v39 = vpop.permute.xlu0 %6496 }
 0x530   : > { %10432 = vrot.lane.b32.xlu1 %v19087_v8, %s13629_s17  ;;  %11623 = vmatmul.mubr.msk.f32.gmra.mrb[36].mxu1 %vm5539_vm1, %v17401_v18  ;;  %v17419_v38 = vpop.permute.xlu1 %6498  ;;  %v6532_v55 = vsel %vm1696_vm7, %v17132_v58, %v6497_v39  ;;  %v9120_v58 = vsel %vm3672_vm11, %v16911_v21, %v17073_v51  ;;  %v9776_v21 = vsel %vm4178_vm13, %v17242_v16, %v17255_v52  ;;  %v19122_v51 = vld [vmem:[#allocation21_spill] sm:$0xff] }
 0x531   : > { %v6533_v53 = vsel %vm1696_vm7, %v6497_v39, %v17419_v38  ;;  %9313 = vmatprep.mubr.f32.mxu0 %v18936_v40  ;;  %6737 = vmatprep.mubr.f32.mxu1 %v18936_v40  ;;  %v9179_v39 = vmul.f32 %v9155_v49, %v19111_v14  ;;  %v9770_v16 = vsel %vm4178_vm13, %v17203_v32, %v17212_v1 }
 0x532   : > { %v6588_v7 = vmul.f32 %v6533_v53, %v19120_v5  ;;  %11053 = vperm.xlu0 %13509, %v11043_v50   ;;  %v9160_v50 = vmul.f32 %v9108_v15, %v19121_v2  ;;  %v17476_v53 = vld [vmem:[%s18716_s5 + $0xb8] sm:$0xff] }
 0x533   : > { %11784 = vmatmul.mubr.msk.f32.gmra.mrb[60].mxu0 %vm5539_vm1, %v17424_v17  ;;  %v6509_v26 = vpop.permute.xlu0 %6508 }
 0x534   : > { %11058 = vperm.xlu1 %13510, %v11044_v57   ;;  %11624 = vmatmul.mubr.msk.f32.gmra.mrb[38].mxu1 %vm5539_vm1, %v17439_v34  ;;  %v17458_v56 = vpop.permute.xlu1 %6510  ;;  %v12583_v61 = vpack.c.bf16 %v6588_v7, %v6581_v27  ;;  %v9154_v57 = vsel %vm3697_vm12, %v9121_v3, 0.0  ;;  %v12713_v15 = vpack.c.bf16 %v9166_v0, %v9160_v50  ;;  %v6527_v27 = vsel %vm1696_vm7, %v17109_v42, %v6485_v48  ;;  %v11047_v3 = vld [vmem:[%s18717_s6 + $0x20] sm:$0xff] }
 0x535   : > { %9319 = vmatprep.mubr.f32.mxu0 %v18936_v40  ;;  %6743 = vmatprep.mubr.f32.mxu1 %v18936_v40  ;;  %v9126_v0 = vsel %vm3672_vm11, %v16931_v59, %v17103_v10  ;;  %v9173_v48 = vmul.f32 %v9154_v57, %v19111_v14  ;;  %v6538_v49 = vsel %vm1696_vm7, %v6509_v26, %v17458_v56  ;;  %v11048_v10 = vld [vmem:[%s18717_s6 + $0x28] sm:$0xff] }
 0x536   : > { %11063 = vperm.xlu0 %13509, %v11045_v29   ;;  %12584 = vmatprep.subr.bf16.mxu1 %v12583_v61  ;;  %v6587_v29 = vmul.f32 %v6532_v55, %v19122_v51  ;;  %v6580_v14 = vmul.f32 %v6527_v27, %v19122_v51  ;;  %v9178_v55 = vmul.f32 %v9126_v0, %v19121_v2 }
 0x537   : > { %11785 = vmatmul.mubr.msk.f32.gmra.mrb[62].mxu0 %vm5539_vm1, %v17463_v45  ;;  %v6521_v7 = vpop.permute.xlu0 %6520  ;;  %v12715_v6 = vpack.c.bf16 %v9179_v39, %v9173_v48  ;;  %v6537_v32 = vsel %vm1696_vm7, %v17161_v54, %v6509_v26  ;;  %v6595_v27 = vmul.f32 %v6538_v49, %v19120_v5  ;;  %v11050_v54 = vld [vmem:[%s18717_s6 + $0x38] sm:$0xff]  ;;  %v19125_v48 = vld [vmem:[#allocation46_spill] sm:$0xff] }
 0x538   : > { %11068 = vperm.xlu1 %13510, %v11046_v11   ;;  %11625 = vmatmul.mubr.msk.f32.gmra.mrb[40].mxu1 %vm5539_vm1, %v17476_v53  ;;  %v17499_v42 = vpop.permute.xlu1 %6522  ;;  %v6542_v61 = vsel %vm1696_vm7, %v17178_v47, %v6521_v7  ;;  %v19123_v11 = vld [vmem:[#allocation45_spill] sm:$0xff]  ;;  %v12585_v63 = vpack.c.bf16 %v6587_v29, %v6580_v14 }
 0x539   : > { %v6543_v59 = vsel %vm1696_vm7, %v6521_v7, %v17499_v42  ;;  %9390 = vmatprep.mubr.f32.mxu0 %v18936_v40  ;;  %6814 = vmatprep.mubr.f32.mxu1 %v18936_v40  ;;  %v9828_v57 = vmul.f32 %v9776_v21, %v19123_v11  ;;  %v11049_v7 = vld [vmem:[%s18717_s6 + $0x30] sm:$0xff]  ;;  %v9822_v39 = vmul.f32 %v9770_v16, %v19123_v11 }
 0x53a   : > { %v6602_v50 = vmul.f32 %v6543_v59, %v19120_v5  ;;  %11073 = vperm.xlu0 %13509, %v11047_v3   ;;  %v9172_v3 = vmul.f32 %v9120_v58, %v19121_v2  ;;  %v6601_v0 = vmul.f32 %v6542_v61, %v19122_v51  ;;  %v19124_v5 = vld [vmem:[#allocation24_spill] sm:$0xff]  ;;  %v6594_v21 = vmul.f32 %v6537_v32, %v19122_v51 }
 0x53b   : > { %11786 = vmatmul.mubr.msk.f32.vlgmr.msra.gmra.mrb[16].mxu0 %vm5539_vm1, %v17248_v24  ;;  %v17522_v8 = vpop.permute.xlu0 %9719  ;;  %v6589_v26 = vmul.f32 %v17419_v38, %v19124_v5  ;;  %v6582_v29 = vmul.f32 %v17389_v28, %v19124_v5 }
 0x53c   : > { %12714 = vmatpush1.bf16.msra.mxu0 %v12713_v15  ;;  %11078 = vperm.xlu1 %13510, %v11048_v10   ;;  %v17527_v47 = vpop.permute.xlu1 %9721  ;;  %v9771_v2 = vsel %vm4178_vm13, %v17212_v1, %v17522_v8  ;;  %v12587_v15 = vpack.c.bf16 %v6602_v50, %v6595_v27  ;;  %v12717_v58 = vpack.c.bf16 %v9178_v55, %v9172_v3  ;;  %v19132_v27 = vld [vmem:[#allocation20_spill] sm:$0xff] }
 0x53d   : > { %11626 = vmatmul.mubr.msk.f32.vlgmr.msra.gmra.mrb[42].mxu1 %vm5539_vm1, %v17261_v13  ;;  %12716 = vmatprep.subr.bf16.mxu0 %v12715_v6  ;;  %v12589_v51 = vpack.c.bf16 %v6601_v0, %v6594_v21  ;;  %v17560_v49 = vmul.f32 %v9771_v2, %v19125_v48  ;;  %v17567_v59 = vpack.c.bf16 %v6589_v26, %v6582_v29  ;;  %v19126_v2 = vld [vmem:[#allocation52_spill] sm:$0xff] }
 0x53e   : > { %12586 = vmatpush1.bf16.msra.mxu1 %v12585_v63  ;;  %9396 = vmatprep.mubr.f32.mxu0 %v18936_v40  ;;  %v12727_v63 = vpack.c.bf16 %v9828_v57, %v9822_v39  ;;  %v19129_v21 = vld [vmem:[#allocation80_spill] sm:$0xff] }
 0x53f   : > { %11083 = vperm.xlu0 %13509, %v11049_v7   ;;  %6820 = vmatprep.mubr.f32.mxu1 %v18936_v40  ;;  %v17548_v6 = vpop.permute.xlu0 %9733 }
 0x540   : > { %11787 = vmatmul.mubr.msk.f32.gmra.mrb[18].mxu0 %vm5539_vm1, %v17289_v22  ;;  %11088 = vperm.xlu1 %13510, %v11050_v54   ;;  %v9777_v1 = vsel %vm4178_vm13, %v17255_v52, %v17548_v6  ;;  %v17557_v38 = vpop.permute.xlu1 %9735 }
 0x541   : > { %12718 = vmatpush1.bf16.msra.mxu0 %v12717_v58  ;;  %11627 = vmatmul.mubr.msk.f32.gmra.mrb[44].mxu1 %vm5539_vm1, %v17301_v46  ;;  %v17565_v28 = vmul.f32 %v9777_v1, %v19125_v48 }
 0x542   : > { %12588 = vmatprep.subr.bf16.mxu1 %v12587_v15  ;;  %12728 = vmatprep.subr.bf16.mxu0 %v12727_v63  ;;  %v9788_v63 = vsel %vm4178_vm13, %v17337_v36, %v17343_v9 }
 0x543   : > { %12590 = vmatpush1.bf16.msra.mxu1 %v12589_v51  ;;  %9402 = vmatprep.mubr.f32.mxu0 %v18936_v40  ;;  %v17572_v10 = vpop.permute.xlu0 %9747  ;;  %v9782_v51 = vsel %vm4178_vm13, %v17313_v30, %v17319_v20 }
 0x544   : > { %12592 = vmatprep.subr.bf16.mxu1 %v17567_v59  ;;  %6826 = vmatprep.mubr.f32.mxu1 %v18936_v40  ;;  %v17576_v16 = vpop.permute.xlu1 %9749  ;;  %v9783_v14 = vsel %vm4178_vm13, %v17319_v20, %v17572_v10  ;;  %v9781_v20 = vsel %vm4178_vm13, %v17361_v25, %v17313_v30  ;;  %v19130_v30 = vld [vmem:[#allocation81_spill] sm:$0xff] }
 0x545   : > { %11788 = vmatmul.mubr.msk.f32.gmra.mrb[20].mxu0 %vm5539_vm1, %v17324_v4  ;;  %11628 = vmatmul.mubr.msk.f32.gmra.mrb[46].mxu1 %vm5539_vm1, %v17329_v37  ;;  %v17595_v57 = vmul.f32 %v9783_v14, %v19125_v48 }
 0x546   : > { %9408 = vmatprep.mubr.f32.mxu0 %v18936_v40  ;;  %6832 = vmatprep.mubr.f32.mxu1 %v18936_v40 }
 0x547   : > { %v17587_v61 = vpop.permute.xlu0 %9761 }
 0x548   : > { %v9789_v50 = vsel %vm4178_vm13, %v17343_v9, %v17587_v61  ;;  %v17592_v55 = vpop.permute.xlu1 %9763  ;;  %v6603_v9 = vmul.f32 %v17499_v42, %v19124_v5  ;;  %v9778_v42 = vsel %vm4178_vm13, %v17548_v6, %v17557_v38 }
 0x549   : > { %11789 = vmatmul.mubr.msk.f32.gmra.mrb[22].mxu0 %vm5539_vm1, %v17348_v60  ;;  %11629 = vmatmul.mubr.msk.f32.gmra.mrb[48].mxu1 %vm5539_vm1, %v17355_v33  ;;  %v17602_v32 = vmul.f32 %v9789_v50, %v19125_v48  ;;  %v9840_v48 = vmul.f32 %v9788_v63, %v19123_v11  ;;  %v9834_v50 = vmul.f32 %v9782_v51, %v19123_v11  ;;  %v19131_v51 = vld [vmem:[#allocation43_spill] sm:$0xff] }
 0x54a   : > { %9414 = vmatprep.mubr.f32.mxu0 %v18936_v40  ;;  %6838 = vmatprep.mubr.f32.mxu1 %v18936_v40  ;;  %v6596_v63 = vmul.f32 %v17458_v56, %v19124_v5 }
 0x54b   : > { %v17608_v7 = vpop.permute.xlu0 %9723  ;;  %v12731_v6 = vpack.c.bf16 %v9840_v48, %v9834_v50 }
 0x54c   : > { %v9773_v3 = vsel %vm4178_vm13, %v17527_v47, %v17608_v7  ;;  %v17613_v39 = vpop.permute.xlu1 %9725  ;;  %v12595_v5 = vpack.c.bf16 %v6603_v9, %v6596_v63 }
 0x54d   : > { %11790 = vmatmul.mubr.msk.f32.gmra.mrb[24].mxu0 %vm5539_vm1, %v17372_v23  ;;  %11630 = vmatmul.mubr.msk.f32.gmra.mrb[50].mxu1 %vm5539_vm1, %v17379_v43  ;;  %v17629_v15 = vmul.f32 %v9773_v3, %v19126_v2  ;;  %v9787_v3 = vsel %vm4178_vm13, %v17367_v12, %v17337_v36  ;;  %v9833_v12 = vmul.f32 %v9781_v20, %v19112_v62 }
 0x54e   : > { %9420 = vmatprep.mubr.f32.mxu0 %v18936_v40  ;;  %6844 = vmatprep.mubr.f32.mxu1 %v18936_v40  ;;  %v9839_v56 = vmul.f32 %v9787_v3, %v19112_v62 }
 0x54f   : > { %v17621_v0 = vpop.permute.xlu0 %9737  ;;  %19127 = vst [vmem:[#allocation17_spill] sm:$0xff] %v17629_v15 }
 0x550   : > { %v9779_v54 = vsel %vm4178_vm13, %v17557_v38, %v17621_v0  ;;  %v17626_v26 = vpop.permute.xlu1 %9739  ;;  %v12733_v20 = vpack.c.bf16 %v9839_v56, %v9833_v12 }
 0x551   : > { %11791 = vmatmul.mubr.msk.f32.gmra.mrb[26].mxu0 %vm5539_vm1, %v17394_v44  ;;  %11631 = vmatmul.mubr.msk.f32.gmra.mrb[52].mxu1 %vm5539_vm1, %v17401_v18  ;;  %v17636_v58 = vmul.f32 %v9779_v54, %v19126_v2 }
 0x552   : > { %9426 = vmatprep.mubr.f32.mxu0 %v18936_v40  ;;  %6850 = vmatprep.mubr.f32.mxu1 %v18936_v40 }
 0x553   : > { %19128 = vst [vmem:[#allocation77_spill] sm:$0xff] %v17636_v58  ;;  %v17642_v29 = vpop.permute.xlu0 %7141 }
 0x554   : > { %v17647_v1 = vpop.permute.xlu1 %7155  ;;  %v7197_v11 = vsel %vm2204_vm8, %v17642_v29, %v19129_v21  ;;  %v9772_v21 = vsel %vm4178_vm13, %v17522_v8, %v17527_v47  ;;  %v19133_v47 = vpack.c.bf16 %v17304_v19, %v17293_v35 }
 0x555   : > { %11792 = vmatmul.mubr.msk.f32.gmra.mrb[28].mxu0 %vm5539_vm1, %v17424_v17  ;;  %11632 = vmatmul.mubr.msk.f32.gmra.mrb[54].mxu1 %vm5539_vm1, %v17439_v34  ;;  %v7203_v36 = vsel %vm2204_vm8, %v17647_v1, %v19130_v30  ;;  %v9830_v30 = vmul.f32 %v9778_v42, %v19131_v51  ;;  %v7254_v52 = vmul.f32 %v7197_v11, %v19132_v27  ;;  %v19134_v42 = vld [vmem:[#allocation55_spill] sm:$0xff] }
 0x556   : > { %9432 = vmatprep.mubr.f32.mxu0 %v18936_v40  ;;  %6856 = vmatprep.mubr.f32.mxu1 %v18936_v40  ;;  %v7261_v62 = vmul.f32 %v7203_v36, %v19132_v27  ;;  %v9824_v9 = vmul.f32 %v9772_v21, %v19131_v51 }
 0x557   : > { %v17661_v14 = vpop.permute.xlu0 %9751 }
 0x558   : > { %v17670_v54 = vpop.permute.xlu1 %9753  ;;  %v9785_v25 = vsel %vm4178_vm13, %v17576_v16, %v17661_v14  ;;  %v12735_v35 = vpack.c.bf16 %v9830_v30, %v9824_v9  ;;  %v12599_v19 = vpack.c.bf16 %v7261_v62, %v7254_v52  ;;  %v7249_v30 = vsel %vm2204_vm8, 0.0, %v17642_v29  ;;  %v19137_v9 = vld [vmem:[#allocation25_spill] sm:$0xff] }
 0x559   : > { %11793 = vmatmul.mubr.msk.f32.gmra.mrb[30].mxu0 %vm5539_vm1, %v17463_v45  ;;  %11633 = vmatmul.mubr.msk.f32.gmra.mrb[56].mxu1 %vm5539_vm1, %v17476_v53  ;;  %v17708_v48 = vmul.f32 %v9785_v25, %v19126_v2  ;;  %v7250_v62 = vsel %vm2204_vm8, 0.0, %v17647_v1  ;;  %v9774_v1 = vsel %vm4178_vm13, %v17608_v7, %v17613_v39  ;;  %v19138_v7 = vld [vmem:[#allocation84_spill] sm:$0xff] }
 0x55a   : > { %9503 = vmatprep.mubr.f32.mxu0 %v18936_v40  ;;  %6927 = vmatprep.mubr.f32.mxu1 %v18936_v40 }
 0x55b   : > { %v17694_v38 = vpop.permute.xlu0 %9765 }
 0x55c   : > { %v9791_v15 = vsel %vm4178_vm13, %v17592_v55, %v17694_v38  ;;  %v17704_v58 = vpop.permute.xlu1 %9767 }
 0x55d   : > { %11794 = vmatmul.mubr.msk.f32.vlgmr.msra.gmra.mrb[32].mxu0 %vm5539_vm1, %v17248_v24  ;;  %11634 = vmatmul.mubr.msk.f32.vlgmr.msra.gmra.mrb[58].mxu1 %vm5539_vm1, %v17261_v13  ;;  %v17715_v8 = vmul.f32 %v9791_v15, %v19126_v2 }
 0x55e   : > { %12730 = vmatpush1.bf16.msra.mxu0 %v19133_v47  ;;  %12594 = vmatpush3.bf16.msra.mxu1 %v17567_v59 }
 0x55f   : > { %12732 = vmatprep.subr.bf16.mxu0 %v12731_v6  ;;  %v12749_v50 = vpack.c.bf16 %v17715_v8, %v17708_v48  ;;  %12596 = vmatprep.subr.bf16.mxu1 %v12595_v5  ;;  %v17724_v24 = vpop.permute.xlu0 %7169  ;;  %v9790_v6 = vsel %vm4178_vm13, %v17587_v61, %v17592_v55  ;;  %v19136_v61 = vld [vmem:[#allocation83_spill] sm:$0xff]  ;;  %v19152_v8 = vld [vmem:[#allocation90_spill] sm:$0xff] }
 0x560   : > { %9509 = vmatprep.mubr.f32.mxu0 %v18936_v40  ;;  %6933 = vmatprep.mubr.f32.mxu1 %v18936_v40  ;;  %v17728_v2 = vpop.permute.xlu1 %7183  ;;  %v13518_v48 = vld [vmem:[%s18716_s5 + $0xf8] sm:$0xff] }
 0x561   : > { %11795 = vmatmul.mubr.msk.f32.gmra.mrb[34].mxu0 %vm5539_vm1, %v17289_v22  ;;  %11635 = vmatmul.mubr.msk.f32.gmra.mrb[60].mxu1 %vm5539_vm1, %v17301_v46  ;;  %v7215_v55 = vsel %vm2204_vm8, %v17728_v2, %v19136_v61 }
 0x562   : > { %12734 = vmatpush1.bf16.msra.mxu0 %v12733_v20  ;;  %12598 = vmatpush3.bf16.msra.mxu1 %v12595_v5  ;;  %v9784_v5 = vsel %vm4178_vm13, %v17572_v10, %v17576_v16  ;;  %v19135_v10 = vld [vmem:[#allocation82_spill] sm:$0xff]  ;;  %v7253_v20 = vmul.f32 %v7249_v30, %v19137_v9 }
 0x563   : > { %12736 = vmatprep.subr.bf16.mxu0 %v12735_v35  ;;  %12600 = vmatprep.subr.bf16.mxu1 %v12599_v19  ;;  %v17734_v59 = vpop.permute.xlu0 %10380  ;;  %v7209_v16 = vsel %vm2204_vm8, %v17724_v24, %v19135_v10  ;;  %v7260_v35 = vmul.f32 %v7250_v62, %v19137_v9  ;;  %v19141_v10 = vld [vmem:[#allocation26_spill] sm:$0xff] }
 0x564   : > { %9515 = vmatprep.mubr.f32.mxu0 %v18936_v40  ;;  %6939 = vmatprep.mubr.f32.mxu1 %v18936_v40  ;;  %v17738_v15 = vpop.permute.xlu1 %10382 }
 0x565   : > { %11796 = vmatmul.mubr.msk.f32.gmra.mrb[36].mxu0 %vm5539_vm1, %v17324_v4  ;;  %11636 = vmatmul.mubr.msk.f32.gmra.mrb[62].mxu1 %vm5539_vm1, %v17329_v37  ;;  %v12601_v30 = vpack.c.bf16 %v7260_v35, %v7253_v20  ;;  %v17879_v20 = vld [vmem:[%s18716_s5 + $0x1d0] sm:$0xff] }
 0x566   : > { %9521 = vmatprep.mubr.f32.mxu0 %v18936_v40  ;;  %6945 = vmatprep.mubr.f32.mxu1 %v18936_v40 }
 0x567   : > { %v17746_v22 = vpop.permute.xlu0 %10394 }
 0x568   : > { %v17748_v52 = vpop.permute.xlu1 %10396 }
 0x569   : > { %11797 = vmatmul.mubr.msk.f32.gmra.mrb[38].mxu0 %vm5539_vm1, %v17348_v60  ;;  %11637 = vmatmul.mubr.msk.f32.gmra.mrb[64].mxu1 %vm5539_vm1, %v17355_v33 }
 0x56a   : > { %9527 = vmatprep.mubr.f32.mxu0 %v18936_v40  ;;  %6951 = vmatprep.mubr.f32.mxu1 %v18936_v40 }
 0x56b   : > { %v10379_v4 = vpop.permute.xlu0 %10378 }
 0x56c   : > { %v10434_v3 = vsel %vm4684_vm14, %v10379_v4, %v17734_v59  ;;  %v10393_v63 = vpop.permute.xlu1 %10392  ;;  %v7251_v4 = vsel %vm2204_vm8, 0.0, %v17724_v24  ;;  %v9817_v24 = vsel %vm4203_vm15, %v9774_v1, 0.0 }
 0x56d   : > { %11798 = vmatmul.mubr.msk.f32.gmra.mrb[40].mxu0 %vm5539_vm1, %v17372_v23  ;;  %11638 = vmatmul.mubr.msk.f32.gmra.mrb[66].mxu1 %vm5539_vm1, %v17379_v43  ;;  %v17763_v60 = vmul.f32 %v10434_v3, %v19134_v42  ;;  %v10440_v11 = vsel %vm4684_vm14, %v10393_v63, %v17746_v22  ;;  %v7268_v3 = vmul.f32 %v7209_v16, %v19132_v27 }
 0x56e   : > { %v17768_v36 = vmul.f32 %v10440_v11, %v19134_v42  ;;  %9533 = vmatprep.mubr.f32.mxu0 %v18936_v40  ;;  %6957 = vmatprep.mubr.f32.mxu1 %v18936_v40  ;;  %v7275_v63 = vmul.f32 %v7215_v55, %v19132_v27  ;;  %v19139_v11 = vld [vmem:[#allocation86_spill] sm:$0xff]  ;;  %v17841_v27 = vld [vmem:[%s18716_s5 + $0x1c0] sm:$0xff] }
 0x56f   : > { %v7154_v25 = vpop.permute.xlu0 %7153 }
 0x570   : > { %v12761_v23 = vpack.c.bf16 %v17768_v36, %v17763_v60  ;;  %v7168_v12 = vpop.permute.xlu1 %7167  ;;  %v7202_v39 = vsel %vm2204_vm8, %v19138_v7, %v7154_v25  ;;  %v12603_v61 = vpack.c.bf16 %v7275_v63, %v7268_v3  ;;  %v13522_v60 = vld [vmem:[%s18716_s5 + $0x118] sm:$0xff] }
 0x571   : > { %11799 = vmatmul.mubr.msk.f32.gmra.mrb[42].mxu0 %vm5539_vm1, %v17394_v44  ;;  %11639 = vmatmul.mubr.msk.f32.gmra.mrb[68].mxu1 %vm5539_vm1, %v17401_v18  ;;  %v9780_v44 = vsel %vm4178_vm13, %v17621_v0, %v17626_v26  ;;  %v9836_v0 = vmul.f32 %v9784_v5, %v19131_v51  ;;  %v9842_v26 = vmul.f32 %v9790_v6, %v19131_v51  ;;  %v7252_v51 = vsel %vm2204_vm8, 0.0, %v17728_v2 }
 0x572   : > { %9539 = vmatprep.mubr.f32.mxu0 %v18936_v40  ;;  %6963 = vmatprep.mubr.f32.mxu1 %v18936_v40  ;;  %v9818_v47 = vsel %vm4203_vm15, %v9780_v44, 0.0  ;;  %v7208_v5 = vsel %vm2204_vm8, %v19139_v11, %v7168_v12  ;;  %v19140_v44 = vld [vmem:[#allocation50_spill] sm:$0xff]  ;;  %v7267_v12 = vmul.f32 %v7251_v4, %v19137_v9  ;;  %v7274_v62 = vmul.f32 %v7252_v51, %v19137_v9 }
 0x573   : > { %v17780_v56 = vpop.permute.xlu0 %10408  ;;  %v12739_v2 = vpack.c.bf16 %v9842_v26, %v9836_v0  ;;  %v9832_v25 = vmul.f32 %v9818_v47, %v19140_v44  ;;  %v7259_v16 = vmul.f32 %v7202_v39, %v19141_v10  ;;  %v19142_v0 = vpack.c.bf16 %v17565_v28, %v17560_v49  ;;  %v17863_v26 = vld [vmem:[%s18716_s5 + $0x1c8] sm:$0xff]  ;;  %v19146_v39 = vld [vmem:[#allocation51_spill] sm:$0xff] }
 0x574   : > { %v17788_v21 = vpop.permute.xlu1 %10410  ;;  %v9826_v1 = vmul.f32 %v9817_v24, %v19140_v44  ;;  %v12605_v9 = vpack.c.bf16 %v7274_v62, %v7267_v12  ;;  %v19143_v28 = vpack.c.bf16 %v17602_v32, %v17595_v57  ;;  %v19145_v32 = vld [vmem:[#allocation89_spill] sm:$0xff] }
 0x575   : > { %11800 = vmatmul.mubr.msk.f32.gmra.mrb[44].mxu0 %vm5539_vm1, %v17424_v17  ;;  %11640 = vmatmul.mubr.msk.f32.gmra.mrb[70].mxu1 %vm5539_vm1, %v17439_v34 }
 0x576   : > { %9545 = vmatprep.mubr.f32.mxu0 %v18936_v40  ;;  %6969 = vmatprep.mubr.f32.mxu1 %v18936_v40 }
 0x577   : > { %v17811_v29 = vpop.permute.xlu0 %10422 }
 0x578   : > { %v17819_v19 = vpop.permute.xlu1 %10424 }
 0x579   : > { %11801 = vmatmul.mubr.msk.f32.gmra.mrb[46].mxu0 %vm5539_vm1, %v17463_v45  ;;  %11641 = vmatmul.mubr.msk.f32.gmra.mrb[72].mxu1 %vm5539_vm1, %v17476_v53 }
 0x57a   : > { %9942 = vmatprep.mubr.f32.mxu0 %v18936_v40  ;;  %12203 = vmatprep.mubr.msk.f32.mxu1 %vm5539_vm1, %v17261_v13  ;;  %v7266_v13 = vmul.f32 %v7208_v5, %v19141_v10  ;;  %v17927_v5 = vld [vmem:[%s18716_s5 + $0x1e0] sm:$0xff] }
 0x57b   : > { %v17844_v6 = vpop.permute.xlu0 %10406 }
 0x57c   : > { %v17855_v55 = vpop.permute.xlu1 %10420  ;;  %v12623_v49 = vpack.c.bf16 %v7266_v13, %v7259_v16 }
 0x57d   : > { %11818 = vmatmul.mubr.msk.f32.vlgmr.msra.gmra.mrb[48].mxu0 %vm5539_vm1, %v17841_v27  ;;  %12204 = vmatmul.mubr.msk.f32.vlgmr.msra.gmra.mrb[74].mxu1 %vm5539_vm1, %v17301_v46  ;;  %v12743_v46 = vpack.c.bf16 %v9832_v25, %v9826_v1 }
 0x57e   : > { %12738 = vmatpush1.bf16.msra.mxu0 %v19142_v0  ;;  %12602 = vmatpush1.bf16.msra.mxu1 %v12601_v30  ;;  %v19147_v30 = vld [vmem:[#allocation28_spill] sm:$0xff] }
 0x57f   : > { %12740 = vmatprep.subr.bf16.mxu0 %v12739_v2  ;;  %12604 = vmatprep.subr.bf16.mxu1 %v12603_v61  ;;  %v7182_v47 = vpop.permute.xlu0 %7181  ;;  %v7820_v12 = vmul.f32 %v19083_v31, %v19147_v30  ;;  %v7827_v62 = vmul.f32 %v19084_v41, %v19147_v30  ;;  %v17963_v31 = vld [vmem:[%s18716_s5 + $0xc8] sm:$0xff] }
 0x580   : > { %9948 = vmatprep.mubr.f32.mxu0 %v18936_v40  ;;  %12206 = vmatprep.mubr.msk.f32.mxu1 %vm5539_vm1, %v17329_v37  ;;  %v7196_v37 = vpop.permute.xlu1 %7195 }
 0x581   : > { %11819 = vmatmul.mubr.msk.f32.gmra.mrb[50].mxu0 %vm5539_vm1, %v17863_v26  ;;  %12207 = vmatmul.mubr.msk.f32.gmra.mrb[76].mxu1 %vm5539_vm1, %v17355_v33  ;;  %v19144_v33 = vld [vmem:[#allocation88_spill] sm:$0xff]  ;;  %v7220_v4 = vsel %vm2204_vm8, %v19145_v32, %v7196_v37  ;;  %v17970_v61 = vpack.c.bf16 %v7827_v62, %v7820_v12  ;;  %v13514_v37 = vld [vmem:[%s18716_s5 + $0xd8] sm:$0xff]  ;;  %v10435_v32 = vsel %vm4684_vm14, %v17734_v59, %v17738_v15  ;;  %v19154_v62 = vld [vmem:[#allocation30_spill] sm:$0xff] }
 0x582   : > { %12742 = vmatpush1.bf16.msra.mxu0 %v19143_v28  ;;  %12606 = vmatpush1.bf16.msra.mxu1 %v12605_v9  ;;  %v7214_v57 = vsel %vm2204_vm8, %v19144_v33, %v7182_v47  ;;  %v7280_v7 = vmul.f32 %v7220_v4, %v19141_v10  ;;  %v17982_v47 = vld [vmem:[%s18716_s5 + $0x1f0] sm:$0xff]  ;;  %v9792_v9 = vsel %vm4178_vm13, %v17694_v38, %v17704_v58  ;;  %v18006_v38 = vld [vmem:[%s18716_s5 + $0x1f8] sm:$0xff]  ;;  %v19148_v4 = vld [vmem:[#allocation53_spill] sm:$0xff] }
 0x583   : > { %12744 = vmatprep.subr.bf16.mxu0 %v12743_v46  ;;  %12624 = vmatprep.subr.bf16.mxu1 %v12623_v49  ;;  %v17881_v35 = vpop.permute.xlu0 %10384  ;;  %v13513_v28 = vld [vmem:[%s18716_s5 + $0xd0] sm:$0xff]  ;;  %v9820_v58 = vsel %vm4203_vm15, %v9792_v9, 0.0  ;;  %v10441_v33 = vsel %vm4684_vm14, %v17746_v22, %v17748_v52  ;;  %v10487_v59 = vmul.f32 %v10435_v32, %v19148_v4 }
 0x584   : > { %9954 = vmatprep.mubr.f32.mxu0 %v18936_v40  ;;  %12209 = vmatprep.mubr.msk.f32.mxu1 %vm5539_vm1, %v17379_v43  ;;  %v10436_v3 = vsel %vm4684_vm14, %v17738_v15, %v17881_v35  ;;  %v17903_v43 = vld [vmem:[%s18716_s5 + $0x1d8] sm:$0xff]  ;;  %v13516_v15 = vld [vmem:[%s18716_s5 + $0xe8] sm:$0xff] }
 0x585   : > { %11820 = vmatmul.mubr.msk.f32.gmra.mrb[52].mxu0 %vm5539_vm1, %v17879_v20  ;;  %12210 = vmatmul.mubr.msk.f32.gmra.mrb[78].mxu1 %vm5539_vm1, %v17401_v18  ;;  %v7273_v18 = vmul.f32 %v7214_v57, %v19141_v10  ;;  %v17913_v11 = vmul.f32 %v10436_v3, %v19146_v39  ;;  %v17950_v10 = vld [vmem:[%s18716_s5 + $0x1e8] sm:$0xff]  ;;  %v10493_v3 = vmul.f32 %v10441_v33, %v19148_v4  ;;  %v19158_v33 = vld [vmem:[#allocation94_spill] sm:$0xff] }
 0x586   : > { %9960 = vmatprep.mubr.f32.mxu0 %v18936_v40  ;;  %12212 = vmatprep.mubr.msk.f32.mxu1 %vm5539_vm1, %v17439_v34 }
 0x587   : > { %v17905_v51 = vpop.permute.xlu0 %10398  ;;  %v12627_v25 = vpack.c.bf16 %v7280_v7, %v7273_v18  ;;  %v13515_v18 = vld [vmem:[%s18716_s5 + $0xe0] sm:$0xff] }
 0x588   : > { %v10442_v63 = vsel %vm4684_vm14, %v17748_v52, %v17905_v51  ;;  %v19149_v52 = vld [vmem:[#allocation77_spill] sm:$0xff] }
 0x589   : > { %11821 = vmatmul.mubr.msk.f32.gmra.mrb[54].mxu0 %vm5539_vm1, %v17903_v43  ;;  %12213 = vmatmul.mubr.msk.f32.gmra.mrb[80].mxu1 %vm5539_vm1, %v17476_v53  ;;  %v17920_v34 = vmul.f32 %v10442_v63, %v19146_v39  ;;  %v17938_v53 = vld [vmem:[%s18716_s5 + $0xc0] sm:$0xff]  ;;  %v19150_v63 = vld [vmem:[#allocation17_spill] sm:$0xff] }
 0x58a   : > { %9966 = vmatprep.mubr.f32.mxu0 %v18936_v40  ;;  %7378 = vmatprep.mubr.f32.mxu1 %v18936_v40  ;;  %v19151_v7 = vpack.c.bf16 %v19149_v52, %v19150_v63  ;;  %v19159_v63 = vld [vmem:[#allocation48_spill] sm:$0xff] }
 0x58b   : > { %v12769_v24 = vpack.c.bf16 %v17920_v34, %v17913_v11  ;;  %v17931_v2 = vpop.permute.xlu0 %10412  ;;  %v13538_v11 = vld [vmem:[%s18716_s5 + $0x198] sm:$0xff] }
 0x58c   : > { %v10448_v16 = vsel %vm4684_vm14, %v17788_v21, %v17931_v2 }
 0x58d   : > { %11822 = vmatmul.mubr.msk.f32.gmra.mrb[56].mxu0 %vm5539_vm1, %v17927_v5  ;;  %11658 = vmatmul.mubr.msk.f32.vlgmr.msra.gmra.mrb[26].mxu1 %vm5539_vm1, %v17938_v53  ;;  %v17973_v0 = vmul.f32 %v10448_v16, %v19146_v39  ;;  %v8484_v16 = vsel %vm3190_vm10, %v19154_v62, 0.0  ;;  %v13527_v62 = vld [vmem:[%s18716_s5 + $0x140] sm:$0xff] }
 0x58e   : > { %12626 = vmatpush3.bf16.msra.mxu1 %v12623_v49  ;;  %9972 = vmatprep.mubr.f32.mxu0 %v18936_v40  ;;  %v9786_v49 = vsel %vm4178_vm13, %v17661_v14, %v17670_v54  ;;  %v9844_v54 = vmul.f32 %v9820_v58, %v19140_v44 }
 0x58f   : > { %12628 = vmatprep.subr.bf16.mxu1 %v12627_v25  ;;  %7384 = vmatprep.mubr.f32.mxu1 %v18936_v40  ;;  %v9819_v14 = vsel %vm4203_vm15, %v9786_v49, 0.0  ;;  %v19156_v49 = vld [vmem:[#allocation35_spill] sm:$0xff] }
 0x590   : > { %v17956_v13 = vpop.permute.xlu0 %10426  ;;  %v9838_v57 = vmul.f32 %v9819_v14, %v19140_v44  ;;  %v12759_v44 = vpack.c.bf16 %v10493_v3, %v10487_v59  ;;  %v8500_v58 = vmul.f32 %v8484_v16, %v19156_v49  ;;  %v10447_v3 = vsel %vm4684_vm14, %v17780_v56, %v17788_v21  ;;  %v13519_v21 = vld [vmem:[%s18716_s5 + $0x100] sm:$0xff]  ;;  %v13520_v59 = vld [vmem:[%s18716_s5 + $0x108] sm:$0xff] }
 0x591   : > { %11823 = vmatmul.mubr.msk.f32.gmra.mrb[58].mxu0 %vm5539_vm1, %v17950_v10  ;;  %11659 = vmatmul.mubr.msk.f32.gmra.mrb[28].mxu1 %vm5539_vm1, %v17963_v31  ;;  %v10454_v41 = vsel %vm4684_vm14, %v17819_v19, %v17956_v13  ;;  %v13528_v16 = vld [vmem:[%s18716_s5 + $0x148] sm:$0xff] }
 0x592   : > { %12630 = vmatpush3.bf16.msra.mxu1 %v12627_v25  ;;  %v17976_v1 = vmul.f32 %v10454_v41, %v19146_v39  ;;  %9978 = vmatprep.mubr.f32.mxu0 %v18936_v40  ;;  %v12747_v22 = vpack.c.bf16 %v9844_v54, %v9838_v57  ;;  %v13517_v39 = vld [vmem:[%s18716_s5 + $0xf0] sm:$0xff]  ;;  %v19153_v25 = vld [vmem:[#allocation91_spill] sm:$0xff]  ;;  %v19155_v41 = vld [vmem:[#allocation9_spill] sm:$0xff]  ;;  %v8485_v57 = vsel %vm3190_vm10, %v19158_v33, 0.0 }
 0x593   : > { %12656 = vmatprep.subr.bf16.mxu1 %v17970_v61  ;;  %7390 = vmatprep.mubr.f32.mxu1 %v18936_v40  ;;  %v7841_v12 = vmul.f32 %v19153_v25, %v19147_v30  ;;  %v8483_v9 = vsel %vm3190_vm10, %v19155_v41, 0.0  ;;  %v13533_v33 = vld [vmem:[%s18716_s5 + $0x170] sm:$0xff] }
 0x594   : > { %v12773_v46 = vpack.c.bf16 %v17976_v1, %v17973_v0  ;;  %v8493_v14 = vmul.f32 %v8483_v9, %v19156_v49  ;;  %v18193_v41 = vpop.permute.xlu0 %10388  ;;  %v13540_v0 = vld [vmem:[%s18716_s5 + $0x1a8] sm:$0xff]  ;;  %v18312_v1 = vld [vmem:[%s18716_s5 + $0x218] sm:$0xff] }
 0x595   : > { %11824 = vmatmul.mubr.msk.f32.gmra.mrb[60].mxu0 %vm5539_vm1, %v17982_v47  ;;  %11660 = vmatmul.mubr.msk.f32.gmra.mrb[30].mxu1 %vm5539_vm1, %v13513_v28 }
 0x596   : > { %9984 = vmatprep.mubr.f32.mxu0 %v18936_v40  ;;  %7396 = vmatprep.mubr.f32.mxu1 %v18936_v40  ;;  %v12687_v54 = vpack.c.bf16 %v8500_v58, %v8493_v14  ;;  %v13530_v58 = vld [vmem:[%s18716_s5 + $0x158] sm:$0xff] }
 0x598   : > { %v18214_v14 = vpop.permute.xlu0 %10402 }
 0x599   : > { %11825 = vmatmul.mubr.msk.f32.gmra.mrb[62].mxu0 %vm5539_vm1, %v18006_v38  ;;  %11661 = vmatmul.mubr.msk.f32.gmra.mrb[32].mxu1 %vm5539_vm1, %v13514_v37 }
 0x59a   : > { %10055 = vmatprep.mubr.f32.mxu0 %v18936_v40  ;;  %7402 = vmatprep.mubr.f32.mxu1 %v18936_v40 }
 0x59d   : > { %11826 = vmatmul.mubr.msk.f32.vlgmr.msra.gmra.mrb[16].mxu0 %vm5539_vm1, %v17841_v27  ;;  %11662 = vmatmul.mubr.msk.f32.gmra.mrb[34].mxu1 %vm5539_vm1, %v13515_v18 }
 0x59e   : > { %12746 = vmatpush1.bf16.msra.mxu0 %v19151_v7  ;;  %10061 = vmatprep.mubr.f32.mxu0 %v18936_v40 }
 0x59f   : > { %12748 = vmatprep.subr.bf16.mxu0 %v12747_v22  ;;  %7408 = vmatprep.mubr.f32.mxu1 %v18936_v40  ;;  %v10452_v22 = vsel %vm4684_vm14, %v17855_v55, %v17811_v29 }
 0x5a0   : > { %v10504_v55 = vmul.f32 %v10452_v22, %v19134_v42  ;;  %v18254_v22 = vld [vmem:[%s18716_s5 + $0x200] sm:$0xff] }
 0x5a1   : > { %11827 = vmatmul.mubr.msk.f32.gmra.mrb[18].mxu0 %vm5539_vm1, %v17863_v26  ;;  %11663 = vmatmul.mubr.msk.f32.gmra.mrb[36].mxu1 %vm5539_vm1, %v13516_v15 }
 0x5a2   : > { %12750 = vmatpush1.bf16.msra.mxu0 %v12749_v50  ;;  %10067 = vmatprep.mubr.f32.mxu0 %v18936_v40  ;;  %v7834_v50 = vmul.f32 %v19152_v8, %v19147_v30  ;;  %v13524_v8 = vld [vmem:[%s18716_s5 + $0x128] sm:$0xff] }
 0x5a3   : > { %12760 = vmatprep.subr.bf16.mxu0 %v12759_v44  ;;  %7414 = vmatprep.mubr.f32.mxu1 %v18936_v40  ;;  %v13521_v44 = vld [vmem:[%s18716_s5 + $0x110] sm:$0xff] }
 0x5a4   : > { %v12659_v30 = vpack.c.bf16 %v7841_v12, %v7834_v50  ;;  %v13525_v50 = vld [vmem:[%s18716_s5 + $0x130] sm:$0xff]  ;;  %v13526_v12 = vld [vmem:[%s18716_s5 + $0x138] sm:$0xff] }
 0x5a5   : > { %11828 = vmatmul.mubr.msk.f32.gmra.mrb[20].mxu0 %vm5539_vm1, %v17879_v20  ;;  %11664 = vmatmul.mubr.msk.f32.gmra.mrb[38].mxu1 %vm5539_vm1, %v13517_v39 }
 0x5a6   : > { %10073 = vmatprep.mubr.f32.mxu0 %v18936_v40  ;;  %7420 = vmatprep.mubr.f32.mxu1 %v18936_v40 }
 0x5a9   : > { %11829 = vmatmul.mubr.msk.f32.gmra.mrb[22].mxu0 %vm5539_vm1, %v17903_v43  ;;  %11665 = vmatmul.mubr.msk.f32.gmra.mrb[40].mxu1 %vm5539_vm1, %v13518_v48 }
 0x5aa   : > { %10079 = vmatprep.mubr.f32.mxu0 %v18936_v40  ;;  %12223 = vmatprep.mubr.msk.f32.mxu1 %vm5539_vm1, %v17938_v53  ;;  %v18083_v53 = vpop.permute.xlu1 %10386 }
 0x5ad   : > { %11830 = vmatmul.mubr.msk.f32.gmra.mrb[24].mxu0 %vm5539_vm1, %v17927_v5  ;;  %12224 = vmatmul.mubr.msk.f32.vlgmr.msra.gmra.mrb[74].mxu1 %vm5539_vm1, %v17963_v31  ;;  %v19157_v31 = vld [vmem:[#allocation12_spill] sm:$0xff] }
 0x5ae   : > { %12658 = vmatpush3.bf16.msra.mxu1 %v17970_v61  ;;  %10085 = vmatprep.mubr.f32.mxu0 %v18936_v40  ;;  %v8486_v61 = vsel %vm3190_vm10, %v19157_v31, 0.0  ;;  %v19161_v31 = vld [vmem:[#allocation47_spill] sm:$0xff] }
 0x5af   : > { %12660 = vmatprep.subr.bf16.mxu1 %v12659_v30  ;;  %12226 = vmatprep.mubr.msk.f32.mxu1 %vm5539_vm1, %v13513_v28  ;;  %v10453_v28 = vsel %vm4684_vm14, %v17811_v29, %v17819_v19  ;;  %v8514_v32 = vmul.f32 %v8486_v61, %v19156_v49  ;;  %v10446_v19 = vsel %vm4684_vm14, %v17844_v6, %v17780_v56  ;;  %v13532_v61 = vld [vmem:[%s18716_s5 + $0x168] sm:$0xff] }
 0x5b0   : > { %v8507_v56 = vmul.f32 %v8485_v57, %v19156_v49  ;;  %v10499_v29 = vmul.f32 %v10447_v3, %v19148_v4  ;;  %v10498_v6 = vmul.f32 %v10446_v19, %v19134_v42  ;;  %v13529_v49 = vld [vmem:[%s18716_s5 + $0x150] sm:$0xff] }
 0x5b1   : > { %11831 = vmatmul.mubr.msk.f32.gmra.mrb[26].mxu0 %vm5539_vm1, %v17950_v10  ;;  %12227 = vmatmul.mubr.msk.f32.gmra.mrb[76].mxu1 %vm5539_vm1, %v13514_v37  ;;  %v18100_v37 = vpop.permute.xlu1 %10400 }
 0x5b2   : > { %12662 = vmatpush3.bf16.msra.mxu1 %v12659_v30  ;;  %10091 = vmatprep.mubr.f32.mxu0 %v18936_v40  ;;  %v10443_v52 = vsel %vm4684_vm14, %v17905_v51, %v18100_v37  ;;  %v10437_v51 = vsel %vm4684_vm14, %v17881_v35, %v18083_v53  ;;  %v12765_v35 = vpack.c.bf16 %v10504_v55, %v10498_v6  ;;  %v13531_v30 = vld [vmem:[%s18716_s5 + $0x160] sm:$0xff]  ;;  %v13536_v6 = vld [vmem:[%s18716_s5 + $0x188] sm:$0xff] }
 0x5b3   : > { %12688 = vmatprep.subr.bf16.mxu1 %v12687_v54  ;;  %12229 = vmatprep.mubr.msk.f32.mxu1 %vm5539_vm1, %v13515_v18  ;;  %v10505_v18 = vmul.f32 %v10453_v28, %v19148_v4  ;;  %v10495_v7 = vmul.f32 %v10443_v52, %v19159_v63  ;;  %v10489_v42 = vmul.f32 %v10437_v51, %v19159_v63  ;;  %v18272_v51 = vld [vmem:[%s18716_s5 + $0x208] sm:$0xff] }
 0x5b5   : > { %11832 = vmatmul.mubr.msk.f32.gmra.mrb[28].mxu0 %vm5539_vm1, %v17982_v47  ;;  %12230 = vmatmul.mubr.msk.f32.gmra.mrb[78].mxu1 %vm5539_vm1, %v13516_v15  ;;  %v12763_v4 = vpack.c.bf16 %v10505_v18, %v10499_v29  ;;  %v12691_v15 = vpack.c.bf16 %v8514_v32, %v8507_v56  ;;  %v12767_v36 = vpack.c.bf16 %v10495_v7, %v10489_v42  ;;  %v13534_v18 = vld [vmem:[%s18716_s5 + $0x178] sm:$0xff]  ;;  %v19162_v56 = vld [vmem:[#allocation56_spill] sm:$0xff]  ;;  %v13537_v7 = vld [vmem:[%s18716_s5 + $0x190] sm:$0xff] }
 0x5b6   : > { %10097 = vmatprep.mubr.f32.mxu0 %v18936_v40  ;;  %12232 = vmatprep.mubr.msk.f32.mxu1 %vm5539_vm1, %v13517_v39  ;;  %v13523_v39 = vld [vmem:[%s18716_s5 + $0x120] sm:$0xff] }
 0x5b9   : > { %11833 = vmatmul.mubr.msk.f32.gmra.mrb[30].mxu0 %vm5539_vm1, %v18006_v38  ;;  %12233 = vmatmul.mubr.msk.f32.gmra.mrb[80].mxu1 %vm5539_vm1, %v13518_v48  ;;  %v19160_v48 = vld [vmem:[#allocation42_spill] sm:$0xff] }
 0x5ba   : > { %10168 = vmatprep.mubr.f32.mxu0 %v18936_v40  ;;  %12243 = vmatprep.mubr.msk.f32.mxu1 %vm5539_vm1, %v13519_v21 }
 0x5bd   : > { %11834 = vmatmul.mubr.msk.f32.vlgmr.msra.gmra.mrb[32].mxu0 %vm5539_vm1, %v17841_v27  ;;  %12244 = vmatmul.mubr.msk.f32.vlgmr.msra.gmra.mrb[74].mxu1 %vm5539_vm1, %v13520_v59  ;;  %v13539_v59 = vld [vmem:[%s18716_s5 + $0x1a0] sm:$0xff] }
 0x5be   : > { %12762 = vmatpush1.bf16.msra.mxu0 %v12761_v23  ;;  %12690 = vmatpush3.bf16.msra.mxu1 %v12687_v54  ;;  %v18155_v23 = vpop.permute.xlu1 %10414 }
 0x5bf   : > { %12764 = vmatprep.subr.bf16.mxu0 %v12763_v4  ;;  %12692 = vmatprep.subr.bf16.mxu1 %v12691_v15  ;;  %v10449_v32 = vsel %vm4684_vm14, %v17931_v2, %v18155_v23  ;;  %v13535_v2 = vld [vmem:[%s18716_s5 + $0x180] sm:$0xff]  ;;  %v10417_v4 = vpop.permute.xlu0 %10416 }
 0x5c0   : > { %10174 = vmatprep.mubr.f32.mxu0 %v18936_v40  ;;  %12246 = vmatprep.mubr.msk.f32.mxu1 %vm5539_vm1, %v13521_v44  ;;  %v10501_v52 = vmul.f32 %v10449_v32, %v19159_v63  ;;  %v18371_v44 = vld [vmem:[%s18716_s5 + $0x238] sm:$0xff] }
 0x5c1   : > { %11835 = vmatmul.mubr.msk.f32.gmra.mrb[34].mxu0 %vm5539_vm1, %v17863_v26  ;;  %12247 = vmatmul.mubr.msk.f32.gmra.mrb[76].mxu1 %vm5539_vm1, %v13522_v60  ;;  %v19164_v60 = vld [vmem:[#allocation57_spill] sm:$0xff] }
 0x5c2   : > { %12766 = vmatpush1.bf16.msra.mxu0 %v12765_v35  ;;  %12694 = vmatpush3.bf16.msra.mxu1 %v12691_v15  ;;  %v18174_v25 = vpop.permute.xlu1 %10428  ;;  %v10444_v35 = vsel %vm4684_vm14, %v18100_v37, %v18214_v14  ;;  %v10438_v37 = vsel %vm4684_vm14, %v18083_v53, %v18193_v41  ;;  %v10450_v53 = vsel %vm4684_vm14, %v18155_v23, %v10417_v4 }
 0x5c3   : > { %12768 = vmatprep.subr.bf16.mxu0 %v12767_v36  ;;  %10180 = vmatprep.mubr.f32.mxu0 %v18936_v40  ;;  %v10455_v28 = vsel %vm4684_vm14, %v17956_v13, %v18174_v25  ;;  %v10496_v36 = vmul.f32 %v10444_v35, %v19164_v60 }
 0x5c4   : > { %12249 = vmatprep.mubr.msk.f32.mxu1 %vm5539_vm1, %v13523_v39  ;;  %12720 = vmatprep.subr.bf16.mxu1 %v19160_v48  ;;  %v10507_v3 = vmul.f32 %v10455_v28, %v19159_v63 }
 0x5c5   : > { %11836 = vmatmul.mubr.msk.f32.gmra.mrb[36].mxu0 %vm5539_vm1, %v17879_v20  ;;  %12250 = vmatmul.mubr.msk.f32.gmra.mrb[78].mxu1 %vm5539_vm1, %v13524_v8 }
 0x5c6   : > { %10186 = vmatprep.mubr.f32.mxu0 %v18936_v40  ;;  %12252 = vmatprep.mubr.msk.f32.mxu1 %vm5539_vm1, %v13525_v50  ;;  %v10391_v9 = vpop.permute.xlu1 %10390  ;;  %v12771_v55 = vpack.c.bf16 %v10507_v3, %v10501_v52 }
 0x5c7   : > { %v10439_v13 = vsel %vm4684_vm14, %v18193_v41, %v10391_v9 }
 0x5c8   : > { %v10482_v21 = vsel %vm4709_vm0, %v10439_v13, 0.0 }
 0x5c9   : > { %11837 = vmatmul.mubr.msk.f32.gmra.mrb[38].mxu0 %vm5539_vm1, %v17903_v43  ;;  %12253 = vmatmul.mubr.msk.f32.gmra.mrb[80].mxu1 %vm5539_vm1, %v13526_v12  ;;  %v10491_v63 = vmul.f32 %v10482_v21, %v19162_v56 }
 0x5ca   : > { %10192 = vmatprep.mubr.f32.mxu0 %v18936_v40  ;;  %12263 = vmatprep.mubr.msk.f32.mxu1 %vm5539_vm1, %v13527_v62  ;;  %v10405_v54 = vpop.permute.xlu1 %10404 }
 0x5cb   : > { %v10445_v57 = vsel %vm4684_vm14, %v18214_v14, %v10405_v54 }
 0x5cc   : > { %v10483_v19 = vsel %vm4709_vm0, %v10445_v57, 0.0 }
 0x5cd   : > { %11838 = vmatmul.mubr.msk.f32.gmra.mrb[40].mxu0 %vm5539_vm1, %v17927_v5  ;;  %12264 = vmatmul.mubr.msk.f32.vlgmr.msra.gmra.mrb[74].mxu1 %vm5539_vm1, %v13528_v16  ;;  %v10497_v29 = vmul.f32 %v10483_v19, %v19162_v56 }
 0x5ce   : > { %10198 = vmatprep.mubr.f32.mxu0 %v18936_v40  ;;  %12266 = vmatprep.mubr.msk.f32.mxu1 %vm5539_vm1, %v13529_v49  ;;  %v10419_v15 = vpop.permute.xlu1 %10418 }
 0x5cf   : > { %12722 = vmatpush3.bf16.msra.mxu1 %v19160_v48  ;;  %v12775_v34 = vpack.c.bf16 %v10497_v29, %v10491_v63 }
 0x5d0   : > { %12724 = vmatprep.subr.bf16.mxu1 %v19160_v48 }
 0x5d1   : > { %11839 = vmatmul.mubr.msk.f32.gmra.mrb[42].mxu0 %vm5539_vm1, %v17950_v10  ;;  %12267 = vmatmul.mubr.msk.f32.gmra.mrb[76].mxu1 %vm5539_vm1, %v13530_v58 }
 0x5d2   : > { %10204 = vmatprep.mubr.f32.mxu0 %v18936_v40  ;;  %12269 = vmatprep.mubr.msk.f32.mxu1 %vm5539_vm1, %v13531_v30  ;;  %v10433_v42 = vpop.permute.xlu1 %10432 }
 0x5d3   : > { %12726 = vmatpush3.bf16.msra.mxu1 %v19160_v48 }
 0x5d4   : > { %12752 = vmatprep.subr.bf16.mxu1 %v19161_v31 }
 0x5d5   : > { %11840 = vmatmul.mubr.msk.f32.gmra.mrb[44].mxu0 %vm5539_vm1, %v17982_v47  ;;  %12270 = vmatmul.mubr.msk.f32.gmra.mrb[78].mxu1 %vm5539_vm1, %v13532_v61 }
 0x5d6   : > { %10210 = vmatprep.mubr.f32.mxu0 %v18936_v40  ;;  %12272 = vmatprep.mubr.msk.f32.mxu1 %vm5539_vm1, %v13533_v33 }
 0x5d9   : > { %11841 = vmatmul.mubr.msk.f32.gmra.mrb[46].mxu0 %vm5539_vm1, %v18006_v38  ;;  %12273 = vmatmul.mubr.msk.f32.gmra.mrb[80].mxu1 %vm5539_vm1, %v13534_v18 }
 0x5da   : > { %10607 = vmatprep.mubr.f32.mxu0 %v18936_v40  ;;  %12283 = vmatprep.mubr.msk.f32.mxu1 %vm5539_vm1, %v13535_v2 }
 0x5dd   : > { %11858 = vmatmul.mubr.msk.f32.vlgmr.msra.gmra.mrb[48].mxu0 %vm5539_vm1, %v18254_v22  ;;  %12284 = vmatmul.mubr.msk.f32.vlgmr.msra.gmra.mrb[74].mxu1 %vm5539_vm1, %v13536_v6 }
 0x5de   : > { %12770 = vmatpush1.bf16.msra.mxu0 %v12769_v24  ;;  %10613 = vmatprep.mubr.f32.mxu0 %v18936_v40  ;;  %v18293_v24 = vld [vmem:[%s18716_s5 + $0x210] sm:$0xff] }
 0x5df   : > { %12772 = vmatprep.subr.bf16.mxu0 %v12771_v55  ;;  %12286 = vmatprep.mubr.msk.f32.mxu1 %vm5539_vm1, %v13537_v7 }
 0x5e0   : > { %12754 = vmatpush3.bf16.msra.mxu1 %v19161_v31 }
 0x5e1   : > { %11859 = vmatmul.mubr.msk.f32.gmra.mrb[50].mxu0 %vm5539_vm1, %v18272_v51  ;;  %12287 = vmatmul.mubr.msk.f32.gmra.mrb[76].mxu1 %vm5539_vm1, %v13538_v11 }
 0x5e2   : > { %12774 = vmatpush1.bf16.msra.mxu0 %v12773_v46  ;;  %10619 = vmatprep.mubr.f32.mxu0 %v18936_v40  ;;  %v19163_v46 = vld [vmem:[#allocation54_spill] sm:$0xff] }
 0x5e3   : > { %12776 = vmatprep.subr.bf16.mxu0 %v12775_v34  ;;  %12289 = vmatprep.mubr.msk.f32.mxu1 %vm5539_vm1, %v13539_v59 }
 0x5e4   : > { %12756 = vmatprep.subr.bf16.mxu1 %v19161_v31 }
 0x5e5   : > { %11860 = vmatmul.mubr.msk.f32.gmra.mrb[52].mxu0 %vm5539_vm1, %v18293_v24  ;;  %12290 = vmatmul.mubr.msk.f32.gmra.mrb[78].mxu1 %vm5539_vm1, %v13540_v0 }
 0x5e6   : > { %10625 = vmatprep.mubr.f32.mxu0 %v18936_v40  ;;  %12292 = vmatprep.mubr.msk.f32.mxu1 %vm5539_vm1, %v17424_v17  ;;  %v18326_v17 = vld [vmem:[%s18716_s5 + $0x220] sm:$0xff] }
 0x5e7   : > { %12758 = vmatpush3.bf16.msra.mxu1 %v19161_v31 }
 0x5e8   : > { %12784 = vmatprep.subr.bf16.mxu1 %v19163_v46 }
 0x5e9   : > { %11861 = vmatmul.mubr.msk.f32.gmra.mrb[54].mxu0 %vm5539_vm1, %v18312_v1  ;;  %12293 = vmatmul.mubr.msk.f32.gmra.mrb[80].mxu1 %vm5539_vm1, %v17463_v45  ;;  %v18338_v45 = vld [vmem:[%s18716_s5 + $0x228] sm:$0xff] }
 0x5ea   : > { %10631 = vmatprep.mubr.f32.mxu0 %v18936_v40  ;;  %12303 = vmatprep.mubr.msk.f32.mxu1 %vm5539_vm1, %v17841_v27  ;;  %v10431_v27 = vpop.permute.xlu0 %10430 }
 0x5eb   : > { %v10456_v39 = vsel %vm4684_vm14, %v18174_v25, %v10431_v27 }
 0x5ec   : > { %v10508_v25 = vmul.f32 %v10456_v39, %v19164_v60 }
 0x5ed   : > { %11862 = vmatmul.mubr.msk.f32.gmra.mrb[56].mxu0 %vm5539_vm1, %v18326_v17  ;;  %12304 = vmatmul.mubr.msk.f32.vlgmr.msra.gmra.mrb[74].mxu1 %vm5539_vm1, %v17863_v26  ;;  %v18352_v26 = vld [vmem:[%s18716_s5 + $0x230] sm:$0xff] }
 0x5ee   : > { %10637 = vmatprep.mubr.f32.mxu0 %v18936_v40  ;;  %12306 = vmatprep.mubr.msk.f32.mxu1 %vm5539_vm1, %v17879_v20  ;;  %v10457_v20 = vsel %vm4684_vm14, %v10431_v27, %v10433_v42 }
 0x5ef   : > { %12786 = vmatpush3.bf16.msra.mxu1 %v19163_v46 }
 0x5f0   : > { %12788 = vmatprep.subr.bf16.mxu1 %v19163_v46 }
 0x5f1   : > { %11863 = vmatmul.mubr.msk.f32.gmra.mrb[58].mxu0 %vm5539_vm1, %v18338_v45  ;;  %12307 = vmatmul.mubr.msk.f32.gmra.mrb[76].mxu1 %vm5539_vm1, %v17903_v43  ;;  %v10451_v43 = vsel %vm4684_vm14, %v10417_v4, %v10419_v15 }
 0x5f2   : > { %10643 = vmatprep.mubr.f32.mxu0 %v18936_v40  ;;  %12309 = vmatprep.mubr.msk.f32.mxu1 %vm5539_vm1, %v17927_v5  ;;  %v10485_v5 = vsel %vm4709_vm0, %v10457_v20, 0.0 }
 0x5f3   : > { %12790 = vmatpush3.bf16.msra.mxu1 %v19163_v46  ;;  %v10509_v48 = vmul.f32 %v10485_v5, %v19162_v56 }
 0x5f5   : > { %11864 = vmatmul.mubr.msk.f32.gmra.mrb[60].mxu0 %vm5539_vm1, %v18352_v26  ;;  %12310 = vmatmul.mubr.msk.f32.gmra.mrb[78].mxu1 %vm5539_vm1, %v17950_v10  ;;  %v10484_v10 = vsel %vm4709_vm0, %v10451_v43, 0.0 }
 0x5f6   : > { %10649 = vmatprep.mubr.f32.mxu0 %v18936_v40  ;;  %12312 = vmatprep.mubr.msk.f32.mxu1 %vm5539_vm1, %v17982_v47  ;;  %v10490_v47 = vmul.f32 %v10438_v37, %v19164_v60  ;;  %v10503_v8 = vmul.f32 %v10484_v10, %v19162_v56 }
 0x5f8   : > { %v12777_v50 = vpack.c.bf16 %v10496_v36, %v10490_v47  ;;  %v12779_v12 = vpack.c.bf16 %v10509_v48, %v10503_v8 }
 0x5f9   : > { %11865 = vmatmul.mubr.msk.f32.gmra.mrb[62].mxu0 %vm5539_vm1, %v18371_v44  ;;  %12313 = vmatmul.mubr.msk.f32.gmra.mrb[80].mxu1 %vm5539_vm1, %v18006_v38  ;;  %v10502_v38 = vmul.f32 %v10450_v53, %v19164_v60  ;;  %v18530_v60 = vpop.permute.xlu0 %11053 }
 0x5fa   : > { %10720 = vmatprep.mubr.f32.mxu0 %v18936_v40  ;;  %12323 = vmatprep.mubr.msk.f32.mxu1 %vm5539_vm1, %v18254_v22 }
 0x5fb   : > { %v12781_v23 = vpack.c.bf16 %v10508_v25, %v10502_v38 }
 0x5fd   : > { %11866 = vmatmul.mubr.msk.f32.vlgmr.msra.gmra.mrb[16].mxu0 %vm5539_vm1, %v18254_v22  ;;  %12324 = vmatmul.mubr.msk.f32.vlgmr.msra.gmra.mrb[74].mxu1 %vm5539_vm1, %v18272_v51 }
 0x5fe   : > { %12778 = vmatpush1.bf16.msra.mxu0 %v12777_v50  ;;  %10726 = vmatprep.mubr.f32.mxu0 %v18936_v40  ;;  %v18539_v50 = vpop.permute.xlu1 %11058 }
 0x5ff   : > { %12780 = vmatprep.subr.bf16.mxu0 %v12779_v12  ;;  %12326 = vmatprep.mubr.msk.f32.mxu1 %vm5539_vm1, %v18293_v24 }
 0x601   : > { %11867 = vmatmul.mubr.msk.f32.gmra.mrb[18].mxu0 %vm5539_vm1, %v18272_v51  ;;  %12327 = vmatmul.mubr.msk.f32.gmra.mrb[76].mxu1 %vm5539_vm1, %v18312_v1 }
 0x602   : > { %12782 = vmatpush1.bf16.msra.mxu0 %v12781_v23  ;;  %10732 = vmatprep.mubr.f32.mxu0 %v18936_v40 }
 0x603   : > { %12329 = vmatprep.mubr.msk.f32.mxu1 %vm5539_vm1, %v18326_v17 }
 0x605   : > { %11868 = vmatmul.mubr.msk.f32.gmra.mrb[20].mxu0 %vm5539_vm1, %v18293_v24  ;;  %12330 = vmatmul.mubr.msk.f32.gmra.mrb[78].mxu1 %vm5539_vm1, %v18338_v45 }
 0x606   : > { %10738 = vmatprep.mubr.f32.mxu0 %v18936_v40  ;;  %12332 = vmatprep.mubr.msk.f32.mxu1 %vm5539_vm1, %v18352_v26 }
 0x609   : > { %11869 = vmatmul.mubr.msk.f32.gmra.mrb[22].mxu0 %vm5539_vm1, %v18312_v1  ;;  %12333 = vmatmul.mubr.msk.f32.gmra.mrb[80].mxu1 %vm5539_vm1, %v18371_v44 }
 0x60a   : > { %10744 = vmatprep.mubr.f32.mxu0 %v18936_v40 }
 0x60d   : > { %11870 = vmatmul.mubr.msk.f32.gmra.mrb[24].mxu0 %vm5539_vm1, %v18326_v17 }
 0x60e   : > { %10750 = vmatprep.mubr.f32.mxu0 %v18936_v40 }
 0x610   : > { %v18423_v62 = vpop.f32.mrb[42].mxu1 }
 0x611   : > { %11871 = vmatmul.mubr.msk.f32.gmra.mrb[26].mxu0 %vm5539_vm1, %v18338_v45  ;;  %v18427_v16 = vpop.f32.mrb[43].mxu1 }
 0x612   : > { %10756 = vmatprep.mubr.f32.mxu0 %v18936_v40 }
 0x614   : > { %v18430_v41 = vpop.f32.mrb[44].mxu1 }
 0x615   : > { %11872 = vmatmul.mubr.msk.f32.gmra.mrb[28].mxu0 %vm5539_vm1, %v18352_v26  ;;  %v18434_v9 = vpop.f32.mrb[45].mxu1 }
 0x616   : > { %10762 = vmatprep.mubr.f32.mxu0 %v18936_v40 }
 0x618   : > { %v18437_v49 = vpop.f32.mrb[46].mxu1 }
 0x619   : > { %11873 = vmatmul.mubr.msk.f32.gmra.mrb[30].mxu0 %vm5539_vm1, %v18371_v44  ;;  %v18441_v58 = vpop.f32.mrb[47].mxu1 }
 0x61a   : > { %10833 = vmatprep.mubr.f32.mxu0 %v18936_v40 }
 0x61c   : > { %v18444_v30 = vpop.f32.mrb[48].mxu1 }
 0x61d   : > { %11874 = vmatmul.mubr.msk.f32.vlgmr.msra.gmra.mrb[32].mxu0 %vm5539_vm1, %v18254_v22  ;;  %v18448_v14 = vpop.f32.mrb[49].mxu1 }
 0x61e   : > { %10839 = vmatprep.mubr.f32.mxu0 %v18936_v40 }
 0x620   : > { %v18451_v54 = vpop.f32.mrb[50].mxu1 }
 0x621   : > { %11875 = vmatmul.mubr.msk.f32.gmra.mrb[34].mxu0 %vm5539_vm1, %v18272_v51  ;;  %v18455_v31 = vpop.f32.mrb[51].mxu1 }
 0x622   : > { %10845 = vmatprep.mubr.f32.mxu0 %v18936_v40 }
 0x624   : > { %v18458_v61 = vpop.f32.mrb[52].mxu1 }
 0x625   : > { %11876 = vmatmul.mubr.msk.f32.gmra.mrb[36].mxu0 %vm5539_vm1, %v18293_v24  ;;  %v18462_v28 = vpop.f32.mrb[53].mxu1 }
 0x626   : > { %10851 = vmatprep.mubr.f32.mxu0 %v18936_v40 }
 0x628   : > { %v18465_v33 = vpop.f32.mrb[54].mxu1 }
 0x629   : > { %11877 = vmatmul.mubr.msk.f32.gmra.mrb[38].mxu0 %vm5539_vm1, %v18312_v1  ;;  %v18469_v57 = vpop.f32.mrb[55].mxu1 }
 0x62a   : > { %10857 = vmatprep.mubr.f32.mxu0 %v18936_v40 }
 0x62c   : > { %v18472_v32 = vpop.f32.mrb[56].mxu1 }
 0x62d   : > { %11878 = vmatmul.mubr.msk.f32.gmra.mrb[40].mxu0 %vm5539_vm1, %v18326_v17  ;;  %v18476_v3 = vpop.f32.mrb[57].mxu1 }
 0x62e   : > { %10863 = vmatprep.mubr.f32.mxu0 %v18936_v40 }
 0x630   : > { %v18479_v13 = vpop.f32.mrb[58].mxu1 }
 0x631   : > { %11879 = vmatmul.mubr.msk.f32.gmra.mrb[42].mxu0 %vm5539_vm1, %v18338_v45  ;;  %v18483_v18 = vpop.f32.mrb[59].mxu1 }
 0x632   : > { %10869 = vmatprep.mubr.f32.mxu0 %v18936_v40 }
 0x634   : > { %v18486_v19 = vpop.f32.mrb[60].mxu1 }
 0x635   : > { %11880 = vmatmul.mubr.msk.f32.gmra.mrb[44].mxu0 %vm5539_vm1, %v18352_v26  ;;  %v18490_v2 = vpop.f32.mrb[61].mxu1 }
 0x636   : > { %10875 = vmatprep.mubr.f32.mxu0 %v18936_v40 }
 0x638   : > { %v18493_v22 = vpop.f32.mrb[62].mxu1 }
 0x639   : > { %11881 = vmatmul.mubr.msk.f32.gmra.mrb[46].mxu0 %vm5539_vm1, %v18371_v44  ;;  %v18497_v52 = vpop.f32.mrb[63].mxu1 }
 0x63c   : > { %v18499_v21 = vpop.f32.mrb[64].mxu1 }
 0x63d   : > { %v18501_v56 = vpop.f32.mrb[65].mxu1 }
 0x640   : > { %v18503_v29 = vpop.f32.mrb[66].mxu1 }
 0x641   : > { %v18505_v6 = vpop.f32.mrb[67].mxu1 }
 0x644   : > { %v18507_v55 = vpop.f32.mrb[68].mxu1 }
 0x645   : > { %v18509_v51 = vpop.f32.mrb[69].mxu1 }
 0x648   : > { %v18511_v40 = vpop.f32.mrb[70].mxu1 }
 0x649   : > { %v18513_v63 = vpop.f32.mrb[71].mxu1 }
 0x64c   : > { %v18515_v7 = vpop.f32.mrb[72].mxu1 }
 0x64d   : > { %v18517_v11 = vpop.f32.mrb[73].mxu1 }
 0x660   : > { %v7380_v34 = vpop.f32.mrb[26].mxu1 }
 0x661   : > { %v7382_v24 = vpop.f32.mrb[27].mxu1 }
 0x664   : > { %v7386_v59 = vpop.f32.mrb[28].mxu1 }
 0x665   : > { %v7388_v0 = vpop.f32.mrb[29].mxu1 }
 0x668   : > { %v7392_v1 = vpop.f32.mrb[30].mxu1 }
 0x669   : > { %v7394_v46 = vpop.f32.mrb[31].mxu1 }
 0x66c   : > { %v7398_v4 = vpop.f32.mrb[32].mxu1 }
 0x66d   : > { %v7400_v15 = vpop.f32.mrb[33].mxu1 }
 0x670   : > { %v7404_v17 = vpop.f32.mrb[34].mxu1 }
 0x671   : > { %v7406_v45 = vpop.f32.mrb[35].mxu1 }
 0x674   : > { %v7410_v27 = vpop.f32.mrb[36].mxu1 }
 0x675   : > { %v18519_v42 = vpop.f32.mrb[37].mxu1 }
 0x678   : > { %v18521_v26 = vpop.f32.mrb[38].mxu1 }
 0x679   : > { %v18523_v20 = vpop.f32.mrb[39].mxu1 }
 0x67c   : > { %v18525_v35 = vpop.f32.mrb[40].mxu1 }
 0x67d   : > { %v18527_v43 = vpop.f32.mrb[41].mxu1 }
 0x6b0   : > { %v10609_v5 = vpop.f32.mrb[48].mxu0 }
 0x6b1   : > { %v12791_v44 = vadd.f32 %v10609_v5, %v7380_v34  ;;  %v10611_v37 = vpop.f32.mrb[49].mxu0 }
 0x6b2   : > { %v12792_v36 = vadd.f32 %v10611_v37, %v7382_v24  ;;  %v18545_v37 = vpop.permute.xlu0 %11063 }
 0x6b3   : > { %v11091_v10 = vadd.f32 %v12791_v44, %v18530_v60 }
 0x6b4   : > { %v11092_v39 = vadd.f32 %v12792_v36, %v18530_v60  ;;  %v10615_v48 = vpop.f32.mrb[50].mxu0 }
 0x6b5   : > { %v11147_v47 = vmax.f32 %v11091_v10, 0.0  ;;  %v12793_v53 = vadd.f32 %v10615_v48, %v7386_v59  ;;  %v10617_v8 = vpop.f32.mrb[51].mxu0 }
 0x6b6   : > { %v11148_v25 = vmax.f32 %v11092_v39, 0.0  ;;  %v12794_v12 = vadd.f32 %v10617_v8, %v7388_v0  ;;  %v18551_v8 = vpop.permute.xlu1 %11068 }
 0x6b7   : > { %11203 = vst [vmem:[%s18536_s24] sm:$0xff] %v11147_v47  ;;  %v11098_v38 = vadd.f32 %v12793_v53, %v18539_v50 }
 0x6b8   : > { %11204 = vst [vmem:[%s18536_s24 + $0x8] sm:$0xff] %v11148_v25  ;;  %v11099_v23 = vadd.f32 %v12794_v12, %v18539_v50  ;;  %v10621_v34 = vpop.f32.mrb[52].mxu0 }
 0x6b9   : > { %v11154_v24 = vmax.f32 %v11098_v38, 0.0  ;;  %v12795_v5 = vadd.f32 %v10621_v34, %v7392_v1  ;;  %v10623_v44 = vpop.f32.mrb[53].mxu0 }
 0x6ba   : > { %v11155_v59 = vmax.f32 %v11099_v23, 0.0  ;;  %v12796_v36 = vadd.f32 %v10623_v44, %v7394_v46 }
 0x6bb   : > { %11210 = vst [vmem:[%s18536_s24 + $0x38] sm:$0xff] %v11154_v24  ;;  %v11105_v10 = vadd.f32 %v12795_v5, %v18545_v37  ;;  %v18557_v5 = vpop.permute.xlu0 %11073 }
 0x6bc   : > { %11211 = vst [vmem:[%s18536_s24 + $0x40] sm:$0xff] %v11155_v59  ;;  %v11106_v0 = vadd.f32 %v12796_v36, %v18545_v37  ;;  %v10627_v39 = vpop.f32.mrb[54].mxu0 }
 0x6bd   : > { %v11161_v48 = vmax.f32 %v11105_v10, 0.0  ;;  %v12797_v47 = vadd.f32 %v10627_v39, %v7398_v4  ;;  %v10629_v53 = vpop.f32.mrb[55].mxu0 }
 0x6be   : > { %v11162_v1 = vmax.f32 %v11106_v0, 0.0  ;;  %v12798_v25 = vadd.f32 %v10629_v53, %v7400_v15 }
 0x6bf   : > { %11217 = vst [vmem:[%s18536_s24 + $0x70] sm:$0xff] %v11161_v48  ;;  %v11112_v12 = vadd.f32 %v12797_v47, %v18551_v8  ;;  %v18563_v48 = vpop.permute.xlu1 %11078 }
 0x6c0   : > { %11218 = vst [vmem:[%s18536_s24 + $0x78] sm:$0xff] %v11162_v1  ;;  %v11113_v46 = vadd.f32 %v12798_v25, %v18551_v8  ;;  %v10633_v38 = vpop.f32.mrb[56].mxu0 }
 0x6c1   : > { %v11168_v23 = vmax.f32 %v11112_v12, 0.0  ;;  %v12799_v34 = vadd.f32 %v10633_v38, %v7404_v17  ;;  %v10635_v24 = vpop.f32.mrb[57].mxu0 }
 0x6c2   : > { %v11169_v4 = vmax.f32 %v11113_v46, 0.0  ;;  %v12800_v44 = vadd.f32 %v10635_v24, %v7406_v45  ;;  %v18571_v46 = vpop.permute.xlu0 %11083 }
 0x6c3   : > { %11224 = vst [vmem:[%s18536_s24 + $0xa8] sm:$0xff] %v11168_v23  ;;  %v11119_v59 = vadd.f32 %v12799_v34, %v18557_v5 }
 0x6c4   : > { %11225 = vst [vmem:[%s18536_s24 + $0xb0] sm:$0xff] %v11169_v4  ;;  %v11120_v15 = vadd.f32 %v12800_v44, %v18557_v5  ;;  %v10639_v36 = vpop.f32.mrb[58].mxu0 }
 0x6c5   : > { %v11175_v10 = vmax.f32 %v11119_v59, 0.0  ;;  %v12801_v0 = vadd.f32 %v10639_v36, %v7410_v27  ;;  %v10641_v39 = vpop.f32.mrb[59].mxu0 }
 0x6c6   : > { %v11176_v17 = vmax.f32 %v11120_v15, 0.0  ;;  %v12802_v47 = vadd.f32 %v10641_v39, %v18519_v42 }
 0x6c7   : > { %11231 = vst [vmem:[%s18536_s24 + $0xe0] sm:$0xff] %v11175_v10  ;;  %v11126_v45 = vadd.f32 %v12801_v0, %v18563_v48 }
 0x6c8   : > { %11232 = vst [vmem:[%s18536_s24 + $0xe8] sm:$0xff] %v11176_v17  ;;  %v11127_v53 = vadd.f32 %v12802_v47, %v18563_v48  ;;  %v10645_v1 = vpop.f32.mrb[60].mxu0 }
 0x6c9   : > { %v11182_v25 = vmax.f32 %v11126_v45, 0.0  ;;  %v12803_v12 = vadd.f32 %v10645_v1, %v18521_v26  ;;  %v10647_v27 = vpop.f32.mrb[61].mxu0  ;;  %v18579_v26 = vpop.permute.xlu1 %11088 }
 0x6ca   : > { %v11183_v38 = vmax.f32 %v11127_v53, 0.0  ;;  %v12804_v23 = vadd.f32 %v10647_v27, %v18523_v20 }
 0x6cb   : > { %11238 = vst [vmem:[%s18536_s24 + $0x118] sm:$0xff] %v11182_v25  ;;  %v11133_v42 = vadd.f32 %v12803_v12, %v18571_v46 }
 0x6cc   : > { %11239 = vst [vmem:[%s18536_s24 + $0x120] sm:$0xff] %v11183_v38  ;;  %v11134_v34 = vadd.f32 %v12804_v23, %v18571_v46  ;;  %v10651_v24 = vpop.f32.mrb[62].mxu0 }
 0x6cd   : > { %v11189_v4 = vmax.f32 %v11133_v42, 0.0  ;;  %v12805_v44 = vadd.f32 %v10651_v24, %v18525_v35  ;;  %v10653_v59 = vpop.f32.mrb[63].mxu0 }
 0x6ce   : > { %v11190_v15 = vmax.f32 %v11134_v34, 0.0  ;;  %v12806_v36 = vadd.f32 %v10653_v59, %v18527_v43 }
 0x6cf   : > { %11245 = vst [vmem:[%s18536_s24 + $0x150] sm:$0xff] %v11189_v4  ;;  %v11140_v20 = vadd.f32 %v12805_v44, %v18579_v26 }
 0x6d0   : > { %11246 = vst [vmem:[%s18536_s24 + $0x158] sm:$0xff] %v11190_v15  ;;  %v11141_v10 = vadd.f32 %v12806_v36, %v18579_v26  ;;  %v10722_v0 = vpop.f32.mrb[16].mxu0  ;;  %v12325_v39 = vpop.f32.mrb[74].mxu1 }
 0x6d1   : > { %v11196_v17 = vmax.f32 %v11140_v20, 0.0  ;;  %v12807_v47 = vadd.f32 %v10722_v0, %v18423_v62  ;;  %v10724_v35 = vpop.f32.mrb[17].mxu0  ;;  %v11104_v45 = vadd.f32 %v12325_v39, %v18539_v50  ;;  %v10948_v53 = vpop.f32.mrb[75].mxu1 }
 0x6d2   : > { %v11197_v1 = vmax.f32 %v11141_v10, 0.0  ;;  %v12808_v43 = vadd.f32 %v10724_v35, %v18427_v16  ;;  %v11097_v25 = vadd.f32 %v18530_v60, %v10948_v53 }
 0x6d3   : > { %11252 = vst [vmem:[%s18536_s24 + $0x188] sm:$0xff] %v11196_v17  ;;  %v11093_v12 = vadd.f32 %v12807_v47, %v18530_v60  ;;  %v11160_v27 = vmax.f32 %v11104_v45, 0.0 }
 0x6d4   : > { %11253 = vst [vmem:[%s18536_s24 + $0x190] sm:$0xff] %v11197_v1  ;;  %v11094_v38 = vadd.f32 %v12808_v43, %v18530_v60  ;;  %v11153_v62 = vmax.f32 %v11097_v25, 0.0  ;;  %v10728_v23 = vpop.f32.mrb[18].mxu0  ;;  %v12328_v42 = vpop.f32.mrb[76].mxu1 }
 0x6d5   : > { %v11149_v34 = vmax.f32 %v11093_v12, 0.0  ;;  %11216 = vst.msk [vmem:[%s18536_s24 + $0x68] sm:$0xff] %vm5539_vm1, %v11160_v27  ;;  %v12809_v16 = vadd.f32 %v10728_v23, %v18430_v41  ;;  %v10730_v24 = vpop.f32.mrb[19].mxu0  ;;  %v11118_v4 = vadd.f32 %v12328_v42, %v18551_v8  ;;  %v10958_v44 = vpop.f32.mrb[77].mxu1 }
 0x6d6   : > { %v11150_v59 = vmax.f32 %v11094_v38, 0.0  ;;  %11209 = vst.msk [vmem:[%s18536_s24 + $0x30] sm:$0xff] %vm5539_vm1, %v11153_v62  ;;  %v12810_v15 = vadd.f32 %v10730_v24, %v18434_v9  ;;  %v11111_v36 = vadd.f32 %v18545_v37, %v10958_v44 }
 0x6d7   : > { %11205 = vst [vmem:[%s18536_s24 + $0x10] sm:$0xff] %v11149_v34  ;;  %v11100_v20 = vadd.f32 %v12809_v16, %v18539_v50  ;;  %v11174_v10 = vmax.f32 %v11118_v4, 0.0 }
 0x6d8   : > { %11206 = vst [vmem:[%s18536_s24 + $0x18] sm:$0xff] %v11150_v59  ;;  %v11101_v41 = vadd.f32 %v12810_v15, %v18539_v50  ;;  %v11167_v0 = vmax.f32 %v11111_v36, 0.0  ;;  %v10734_v39 = vpop.f32.mrb[20].mxu0  ;;  %v12331_v17 = vpop.f32.mrb[78].mxu1 }
 0x6d9   : > { %v11156_v47 = vmax.f32 %v11100_v20, 0.0  ;;  %11230 = vst.msk [vmem:[%s18536_s24 + $0xd8] sm:$0xff] %vm5539_vm1, %v11174_v10  ;;  %v12811_v9 = vadd.f32 %v10734_v39, %v18437_v49  ;;  %v10736_v35 = vpop.f32.mrb[21].mxu0  ;;  %v11132_v45 = vadd.f32 %v12331_v17, %v18563_v48  ;;  %v10968_v53 = vpop.f32.mrb[79].mxu1 }
 0x6da   : > { %v11157_v1 = vmax.f32 %v11101_v41, 0.0  ;;  %11223 = vst.msk [vmem:[%s18536_s24 + $0xa0] sm:$0xff] %vm5539_vm1, %v11167_v0  ;;  %v12812_v43 = vadd.f32 %v10736_v35, %v18441_v58  ;;  %v11125_v25 = vadd.f32 %v18557_v5, %v10968_v53 }
 0x6db   : > { %11212 = vst [vmem:[%s18536_s24 + $0x48] sm:$0xff] %v11156_v47  ;;  %v11107_v12 = vadd.f32 %v12811_v9, %v18545_v37  ;;  %v11188_v27 = vmax.f32 %v11132_v45, 0.0 }
 0x6dc   : > { %11213 = vst [vmem:[%s18536_s24 + $0x50] sm:$0xff] %v11157_v1  ;;  %v11108_v49 = vadd.f32 %v12812_v43, %v18545_v37  ;;  %v11181_v38 = vmax.f32 %v11125_v25, 0.0  ;;  %v10740_v62 = vpop.f32.mrb[22].mxu0  ;;  %v12334_v23 = vpop.f32.mrb[80].mxu1 }
 0x6dd   : > { %v11163_v42 = vmax.f32 %v11107_v12, 0.0  ;;  %11244 = vst.msk [vmem:[%s18536_s24 + $0x148] sm:$0xff] %vm5539_vm1, %v11188_v27  ;;  %v12813_v58 = vadd.f32 %v10740_v62, %v18444_v30  ;;  %v10742_v34 = vpop.f32.mrb[23].mxu0  ;;  %v11146_v16 = vadd.f32 %v12334_v23, %v18579_v26  ;;  %v10978_v24 = vpop.f32.mrb[81].mxu1 }
 0x6de   : > { %v11164_v4 = vmax.f32 %v11108_v49, 0.0  ;;  %11237 = vst.msk [vmem:[%s18536_s24 + $0x110] sm:$0xff] %vm5539_vm1, %v11181_v38  ;;  %v12814_v44 = vadd.f32 %v10742_v34, %v18448_v14  ;;  %v11139_v59 = vadd.f32 %v18571_v46, %v10978_v24 }
 0x6df   : > { %11219 = vst [vmem:[%s18536_s24 + $0x80] sm:$0xff] %v11163_v42  ;;  %v11114_v15 = vadd.f32 %v12813_v58, %v18551_v8  ;;  %v11202_v36 = vmax.f32 %v11146_v16, 0.0 }
 0x6e0   : > { %11220 = vst [vmem:[%s18536_s24 + $0x88] sm:$0xff] %v11164_v4  ;;  %v11115_v30 = vadd.f32 %v12814_v44, %v18551_v8  ;;  %v11195_v20 = vmax.f32 %v11139_v59, 0.0  ;;  %v10746_v10 = vpop.f32.mrb[24].mxu0 }
 0x6e1   : > { %v11170_v41 = vmax.f32 %v11114_v15, 0.0  ;;  %11258 = vst.msk [vmem:[%s18536_s24 + $0x1b8] sm:$0xff] %vm5539_vm1, %v11202_v36  ;;  %v12815_v0 = vadd.f32 %v10746_v10, %v18451_v54  ;;  %v10748_v14 = vpop.f32.mrb[25].mxu0 }
 0x6e2   : > { %v11171_v39 = vmax.f32 %v11115_v30, 0.0  ;;  %11251 = vst.msk [vmem:[%s18536_s24 + $0x180] sm:$0xff] %vm5539_vm1, %v11195_v20  ;;  %v12816_v17 = vadd.f32 %v10748_v14, %v18455_v31 }
 0x6e3   : > { %11226 = vst [vmem:[%s18536_s24 + $0xb8] sm:$0xff] %v11170_v41  ;;  %v11121_v47 = vadd.f32 %v12815_v0, %v18557_v5 }
 0x6e4   : > { %11227 = vst [vmem:[%s18536_s24 + $0xc0] sm:$0xff] %v11171_v39  ;;  %v11122_v9 = vadd.f32 %v12816_v17, %v18557_v5  ;;  %v10752_v35 = vpop.f32.mrb[26].mxu0 }
 0x6e5   : > { %v11177_v45 = vmax.f32 %v11121_v47, 0.0  ;;  %v12817_v53 = vadd.f32 %v10752_v35, %v18458_v61  ;;  %v10754_v54 = vpop.f32.mrb[27].mxu0 }
 0x6e6   : > { %v11178_v1 = vmax.f32 %v11122_v9, 0.0  ;;  %v12818_v43 = vadd.f32 %v10754_v54, %v18462_v28 }
 0x6e7   : > { %11233 = vst [vmem:[%s18536_s24 + $0xf0] sm:$0xff] %v11177_v45  ;;  %v11128_v25 = vadd.f32 %v12817_v53, %v18563_v48 }
 0x6e8   : > { %11234 = vst [vmem:[%s18536_s24 + $0xf8] sm:$0xff] %v11178_v1  ;;  %v11129_v31 = vadd.f32 %v12818_v43, %v18563_v48  ;;  %v10758_v12 = vpop.f32.mrb[28].mxu0 }
 0x6e9   : > { %v11184_v27 = vmax.f32 %v11128_v25, 0.0  ;;  %v12819_v49 = vadd.f32 %v10758_v12, %v18465_v33  ;;  %v10760_v38 = vpop.f32.mrb[29].mxu0 }
 0x6ea   : > { %v11185_v62 = vmax.f32 %v11129_v31, 0.0  ;;  %v12820_v61 = vadd.f32 %v10760_v38, %v18469_v57 }
 0x6eb   : > { %11240 = vst [vmem:[%s18536_s24 + $0x128] sm:$0xff] %v11184_v27  ;;  %v11135_v23 = vadd.f32 %v12819_v49, %v18571_v46 }
 0x6ec   : > { %11241 = vst [vmem:[%s18536_s24 + $0x130] sm:$0xff] %v11185_v62  ;;  %v11136_v28 = vadd.f32 %v12820_v61, %v18571_v46  ;;  %v10764_v42 = vpop.f32.mrb[30].mxu0 }
 0x6ed   : > { %v11191_v58 = vmax.f32 %v11135_v23, 0.0  ;;  %v12821_v34 = vadd.f32 %v10764_v42, %v18472_v32  ;;  %v10766_v16 = vpop.f32.mrb[31].mxu0 }
 0x6ee   : > { %v11192_v24 = vmax.f32 %v11136_v28, 0.0  ;;  %v12822_v33 = vadd.f32 %v10766_v16, %v18476_v3 }
 0x6ef   : > { %11247 = vst [vmem:[%s18536_s24 + $0x160] sm:$0xff] %v11191_v58  ;;  %v11142_v4 = vadd.f32 %v12821_v34, %v18579_v26 }
 0x6f0   : > { %11248 = vst [vmem:[%s18536_s24 + $0x168] sm:$0xff] %v11192_v24  ;;  %v11143_v57 = vadd.f32 %v12822_v33, %v18579_v26  ;;  %v10835_v44 = vpop.f32.mrb[32].mxu0 }
 0x6f1   : > { %v11198_v59 = vmax.f32 %v11142_v4, 0.0  ;;  %v12823_v15 = vadd.f32 %v10835_v44, %v18479_v13  ;;  %v10837_v36 = vpop.f32.mrb[33].mxu0 }
 0x6f2   : > { %v11199_v30 = vmax.f32 %v11143_v57, 0.0  ;;  %v12824_v32 = vadd.f32 %v10837_v36, %v18483_v18 }
 0x6f3   : > { %11254 = vst [vmem:[%s18536_s24 + $0x198] sm:$0xff] %v11198_v59  ;;  %v11095_v20 = vadd.f32 %v12823_v15, %v18530_v60 }
 0x6f4   : > { %11255 = vst [vmem:[%s18536_s24 + $0x1a0] sm:$0xff] %v11199_v30  ;;  %v11096_v3 = vadd.f32 %v12824_v32, %v18530_v60  ;;  %v10841_v10 = vpop.f32.mrb[34].mxu0 }
 0x6f5   : > { %v11151_v41 = vmax.f32 %v11095_v20, 0.0  ;;  %v12825_v0 = vadd.f32 %v10841_v10, %v18486_v19  ;;  %v10843_v14 = vpop.f32.mrb[35].mxu0 }
 0x6f6   : > { %v11152_v39 = vmax.f32 %v11096_v3, 0.0  ;;  %v12826_v13 = vadd.f32 %v10843_v14, %v18490_v2 }
 0x6f7   : > { %11207 = vst [vmem:[%s18536_s24 + $0x20] sm:$0xff] %v11151_v41  ;;  %v11102_v17 = vadd.f32 %v12825_v0, %v18539_v50 }
 0x6f8   : > { %11208 = vst [vmem:[%s18536_s24 + $0x28] sm:$0xff] %v11152_v39  ;;  %v11103_v18 = vadd.f32 %v12826_v13, %v18539_v50  ;;  %v10847_v47 = vpop.f32.mrb[36].mxu0 }
 0x6f9   : > { %v11158_v9 = vmax.f32 %v11102_v17, 0.0  ;;  %v12827_v60 = vadd.f32 %v10847_v47, %v18493_v22  ;;  %v10849_v35 = vpop.f32.mrb[37].mxu0 }
 0x6fa   : > { %v11159_v45 = vmax.f32 %v11103_v18, 0.0  ;;  %v12828_v19 = vadd.f32 %v10849_v35, %v18497_v52 }
 0x6fb   : > { %11214 = vst [vmem:[%s18536_s24 + $0x58] sm:$0xff] %v11158_v9  ;;  %v11109_v53 = vadd.f32 %v12827_v60, %v18545_v37 }
 0x6fc   : > { %11215 = vst [vmem:[%s18536_s24 + $0x60] sm:$0xff] %v11159_v45  ;;  %v11110_v2 = vadd.f32 %v12828_v19, %v18545_v37  ;;  %v10853_v54 = vpop.f32.mrb[38].mxu0 }
 0x6fd   : > { %v11165_v1 = vmax.f32 %v11109_v53, 0.0  ;;  %v12829_v50 = vadd.f32 %v10853_v54, %v18499_v21  ;;  %v10855_v43 = vpop.f32.mrb[39].mxu0 }
 0x6fe   : > { %v11166_v25 = vmax.f32 %v11110_v2, 0.0  ;;  %v12830_v22 = vadd.f32 %v10855_v43, %v18501_v56 }
 0x6ff   : > { %11221 = vst [vmem:[%s18536_s24 + $0x90] sm:$0xff] %v11165_v1  ;;  %v11116_v31 = vadd.f32 %v12829_v50, %v18551_v8 }
 0x700   : > { %11222 = vst [vmem:[%s18536_s24 + $0x98] sm:$0xff] %v11166_v25  ;;  %v11117_v52 = vadd.f32 %v12830_v22, %v18551_v8  ;;  %v10859_v12 = vpop.f32.mrb[40].mxu0 }
 0x701   : > { %v11172_v27 = vmax.f32 %v11116_v31, 0.0  ;;  %v12831_v37 = vadd.f32 %v10859_v12, %v18503_v29  ;;  %v10861_v49 = vpop.f32.mrb[41].mxu0 }
 0x702   : > { %v11173_v38 = vmax.f32 %v11117_v52, 0.0  ;;  %v12832_v21 = vadd.f32 %v10861_v49, %v18505_v6 }
 0x703   : > { %11228 = vst [vmem:[%s18536_s24 + $0xc8] sm:$0xff] %v11172_v27  ;;  %v11123_v62 = vadd.f32 %v12831_v37, %v18557_v5 }
 0x704   : > { %11229 = vst [vmem:[%s18536_s24 + $0xd0] sm:$0xff] %v11173_v38  ;;  %v11124_v56 = vadd.f32 %v12832_v21, %v18557_v5  ;;  %v10865_v61 = vpop.f32.mrb[42].mxu0 }
 0x705   : > { %v11179_v23 = vmax.f32 %v11123_v62, 0.0  ;;  %v12833_v8 = vadd.f32 %v10865_v61, %v18507_v55  ;;  %v10867_v28 = vpop.f32.mrb[43].mxu0 }
 0x706   : > { %v11180_v42 = vmax.f32 %v11124_v56, 0.0  ;;  %v12834_v29 = vadd.f32 %v10867_v28, %v18509_v51 }
 0x707   : > { %11235 = vst [vmem:[%s18536_s24 + $0x100] sm:$0xff] %v11179_v23  ;;  %v11130_v58 = vadd.f32 %v12833_v8, %v18563_v48 }
 0x708   : > { %11236 = vst [vmem:[%s18536_s24 + $0x108] sm:$0xff] %v11180_v42  ;;  %v11131_v6 = vadd.f32 %v12834_v29, %v18563_v48  ;;  %v10871_v34 = vpop.f32.mrb[44].mxu0 }
 0x709   : > { %v11186_v16 = vmax.f32 %v11130_v58, 0.0  ;;  %v12835_v5 = vadd.f32 %v10871_v34, %v18511_v40  ;;  %v10873_v24 = vpop.f32.mrb[45].mxu0 }
 0x70a   : > { %v11187_v33 = vmax.f32 %v11131_v6, 0.0  ;;  %v12836_v55 = vadd.f32 %v10873_v24, %v18513_v63 }
 0x70b   : > { %11242 = vst [vmem:[%s18536_s24 + $0x138] sm:$0xff] %v11186_v16  ;;  %v11137_v51 = vadd.f32 %v12835_v5, %v18571_v46 }
 0x70c   : > { %11243 = vst [vmem:[%s18536_s24 + $0x140] sm:$0xff] %v11187_v33  ;;  %v11138_v4 = vadd.f32 %v12836_v55, %v18571_v46  ;;  %v10877_v57 = vpop.f32.mrb[46].mxu0 }
 0x70d   : > { %v11193_v48 = vmax.f32 %v11137_v51, 0.0  ;;  %v12837_v44 = vadd.f32 %v10877_v57, %v18515_v7  ;;  %v10879_v59 = vpop.f32.mrb[47].mxu0 }
 0x70e   : > { %v11194_v15 = vmax.f32 %v11138_v4, 0.0  ;;  %v12838_v40 = vadd.f32 %v10879_v59, %v18517_v11 }
 0x70f   : > { %11249 = vst [vmem:[%s18536_s24 + $0x170] sm:$0xff] %v11193_v48  ;;  %v11144_v36 = vadd.f32 %v12837_v44, %v18579_v26 }
 0x710   : > { %11250 = vst [vmem:[%s18536_s24 + $0x178] sm:$0xff] %v11194_v15  ;;  %v11145_v63 = vadd.f32 %v12838_v40, %v18579_v26 }
 0x711   : > { %v11200_v30 = vmax.f32 %v11144_v36, 0.0 }
 0x712   : > { %v11201_v32 = vmax.f32 %v11145_v63, 0.0 }
 0x713   : > { %11256 = vst [vmem:[%s18536_s24 + $0x1a8] sm:$0xff] %v11200_v30 }
 0x714   : > { %11257 = vst [vmem:[%s18536_s24 + $0x1b0] sm:$0xff] %v11201_v32 }
 0x715 PF: > { %s20_s27 = sadd.s32 1, %s13611_s27  }
 0x716   : > { %p17_p5 = scmp.ge.s32.totalorder %s20_s27, 4  }
 0x718   :  { %19 = sbr.rel (!%p17_p5) target bundleno = 2 (0x2), region = 115 }
 0x71f   :  { %11280 = vsyncpa [#allocation3], 1 }
 0x720   :  { %11282 = vsyncpa [#allocation3 + $0x1], 1 }
 0x721   :  { %11283 = vsyncpa [#allocation5], 1 }

</bundles_post_ra>
